<compile_context>
chip_gen: v7x
topology: tpu7x:2x2x1
jax: 0.10.0
libtpu: 0.0.40
codegen_flags: <defaults>
</compile_context>

<pallas_src>
import functools
import math

import jax
import jax.numpy as jnp
from jax.experimental import pallas as pl
from jax.experimental.pallas import tpu as pltpu


# ---------------------------------------------------------------------------
# In-kernel math helpers (f32).
# ---------------------------------------------------------------------------
def _layernorm(x, eps=1e-6):
    # nn.LayerNorm(dim, elementwise_affine=False, eps=1e-6): biased variance.
    mu = jnp.mean(x, axis=-1, keepdims=True)
    var = jnp.mean((x - mu) ** 2, axis=-1, keepdims=True)
    return (x - mu) * jax.lax.rsqrt(var + eps)


def _gelu_exact(x):
    # nn.GELU() default (approximate='none') -> exact erf formulation.
    return 0.5 * x * (1.0 + jax.lax.erf(x * (1.0 / math.sqrt(2.0))))


# ---------------------------------------------------------------------------
# Kernel: grid = (batch, query_tile).
# ---------------------------------------------------------------------------
def dit_block_kernel(
    mods_ref,                 # (1, 6, D) f32: s1, b1, g1, s2, b2, g2
    xf_ref,                   # (1, N, D) bf16: full sequence (resident per batch)
    wq_ref, bq_ref,           # (D, D) bf16, (1, D) f32
    wk_ref, bk_ref,           # (D, D) bf16, (1, D) f32
    wv_ref, bv_ref,           # (D, D) bf16, (1, D) f32
    wpr_ref, bpr_ref,         # (D, D) bf16, (1, D) f32
    w1_ref, b1_ref,           # (D, 4D) bf16, (1, 4D) f32
    w2_ref, b2_ref,           # (4D, D) bf16, (1, D) f32
    o_ref,                    # (1, TQ, D)
    k_scr, v_scr,             # (H, N, hd) bf16 scratch: per-batch K/V cache
    qh_scr,                   # (H, TQ, hd) bf16 scratch
    ctx_scr,                  # (TQ, D) bf16 scratch
    *, n_heads,
):
    D = wq_ref.shape[0]
    H = n_heads
    hd = D // H
    TQ = o_ref.shape[1]
    scale = hd ** -0.5
    cdt = wq_ref.dtype          # MXU input dtype (bf16)
    f32 = jnp.float32

    qt = pl.program_id(1)

    # Modulation vectors, hoisted once per grid step.
    mods = mods_ref[0].astype(f32)          # (6, D)
    s1p = 1.0 + mods[0:1]
    b1m = mods[1:2]
    g1 = mods[2:3]
    s2p = 1.0 + mods[3:4]
    b2m = mods[4:5]
    g2 = mods[5:6]

    # --- Once per batch element: K/V for the full sequence, stored head-major.
    # Split K and V matmuls so the peak live (N, D) f32 intermediate is halved
    # and its live range is bounded by the per-head scratch stores.
    @pl.when(qt == 0)
    def _():
        xf = xf_ref[0].astype(f32)                                    # (N, D)
        xf_ln = (_layernorm(xf) * s1p + b1m).astype(cdt)
        k = (jnp.dot(xf_ln, wk_ref[...], preferred_element_type=f32)
             + bk_ref[...]).astype(k_scr.dtype)                       # (N, D)
        for h in range(H):      # static, lane-aligned slices (hd % 128 == 0)
            k_scr[h] = k[:, h * hd:(h + 1) * hd]
        v = (jnp.dot(xf_ln, wv_ref[...], preferred_element_type=f32)
             + bv_ref[...]).astype(v_scr.dtype)                       # (N, D)
        for h in range(H):
            v_scr[h] = v[:, h * hd:(h + 1) * hd]

    # --- Per query tile: slice out of the resident full-sequence block ---------
    start = pl.multiple_of(qt * TQ, TQ)
    x_t = xf_ref.at[0][pl.ds(start, TQ), :].astype(f32)               # (TQ, D)

    # Attention branch.
    x_ln = _layernorm(x_t) * s1p + b1m
    q = jnp.dot(x_ln.astype(cdt), wq_ref[...],
                preferred_element_type=f32) + bq_ref[...]             # (TQ, D)
    qs = (q * scale).astype(cdt)            # fold softmax scale into q (bias incl.)
    for h in range(H):
        qh_scr[h] = qs[:, h * hd:(h + 1) * hd]

    # Head-batched score / context matmuls (contract on last dims; no k.T).
    s = jnp.einsum("hqd,hkd->hqk", qh_scr[...], k_scr[...],
                   preferred_element_type=f32)                        # (H, TQ, N)
    s = s - jnp.max(s, axis=-1, keepdims=True)
    p = jnp.exp(s)
    # approx reciprocal (EUP slot, ~2^-12 rel err) vs exact division: intentional.
    p = p * pl.reciprocal(jnp.sum(p, axis=-1, keepdims=True), approx=True)
    ctx = jnp.einsum("hqk,hkd->hqd", p.astype(cdt), v_scr[...],
                     preferred_element_type=f32)                      # (H, TQ, hd)
    for h in range(H):
        ctx_scr[:, h * hd:(h + 1) * hd] = ctx[h].astype(ctx_scr.dtype)

    # Single K=D output projection (full MXU depth instead of per-head K=hd).
    mha = jnp.dot(ctx_scr[...], wpr_ref[...],
                  preferred_element_type=f32) + bpr_ref[...]
    x_t = x_t + mha * g1

    # Feed-forward branch.
    x_ln2 = _layernorm(x_t) * s2p + b2m
    hf = jnp.dot(x_ln2.astype(cdt), w1_ref[...],
                 preferred_element_type=f32) + b1_ref[...]
    hf = _gelu_exact(hf)
    ffw = jnp.dot(hf.astype(cdt), w2_ref[...],
                  preferred_element_type=f32) + b2_ref[...]

    o_ref[0] = (x_t + ffw * g2).astype(o_ref.dtype)


# ---------------------------------------------------------------------------
# Wrapper.
# ---------------------------------------------------------------------------
def dit_block(x, c, params, n_heads, *, tq=None, compute_dtype=jnp.bfloat16):
    B, N, D = x.shape
    assert D % n_heads == 0, "dim must be divisible by n_heads"
    hd = D // n_heads
    # Head-major scratch slicing is only lane-aligned (cheap) at hd % 128 == 0.
    assert hd % 128 == 0, (
        f"head_dim={hd} must be a multiple of 128 for lane-aligned head-major "
        "scratch; pad heads or use a different layout.")
    if tq is None:
        # v6e/v7x MXU is 2x256x256: prefer M=256 tiles; v5e saturates at 128.
        if N % 256 == 0:
            tq = 256
        elif N % 128 == 0:
            tq = 128
        else:
            tq = N
    assert N % tq == 0 and (tq == N or tq % 8 == 0)

    f32 = jnp.float32

    # Conditioning / gating MLPs: tiny M=B matmuls -> plain XLA.  Only the six
    # (B, D) modulation vectors enter the kernel (frees the 6*D^2 wc/wg weights
    # from kernel VMEM).
    sc = jax.nn.silu(c.astype(f32))
    cond = sc @ params["wc"].astype(f32) + params["bc"][0].astype(f32)
    gate = sc @ params["wg"].astype(f32) + params["bg"][0].astype(f32)
    s1, b1, s2, b2 = jnp.split(cond, 4, axis=-1)
    g1, g2 = jnp.split(gate, 2, axis=-1)
    mods = jnp.stack([s1, b1, g1, s2, b2, g2], axis=1)       # (B, 6, D) f32

    # Matmul weights in bf16; biases stay f32 (added to f32 accumulators).
    # QKV split into separate Q / K / V projections (see kernel note).
    wq = params["wqkv"][:, :D].astype(compute_dtype)
    wk = params["wqkv"][:, D:2 * D].astype(compute_dtype)
    wv = params["wqkv"][:, 2 * D:].astype(compute_dtype)
    bq = params["bqkv"][:, :D].astype(f32)
    bk = params["bqkv"][:, D:2 * D].astype(f32)
    bv = params["bqkv"][:, 2 * D:].astype(f32)
    wpr = params["wpr"].astype(compute_dtype)
    bpr = params["bpr"].astype(f32)
    w1 = params["w_ffw1"].astype(compute_dtype)
    bf1 = params["b_ffw1"].astype(f32)
    w2 = params["w_ffw2"].astype(compute_dtype)
    bf2 = params["b_ffw2"].astype(f32)
    weights = [wq, bq, wk, bk, wv, bv, wpr, bpr, w1, bf1, w2, bf2]

    # Single-buffer blocks whose index map is constant across the inner grid axis
    # (weights: constant over the whole grid; xf: constant per batch element).
    _sb_mode = {}
    if hasattr(pl, "Buffered"):
        try:
            pl.BlockSpec((1, 1), lambda b, q: (0, 0), pipeline_mode=pl.Buffered(1))
            _sb_mode = {"pipeline_mode": pl.Buffered(1)}
        except Exception:
            _sb_mode = {}
    single_buffer = bool(_sb_mode)

    grid = (B, N // tq)
    in_specs = [
        pl.BlockSpec((1, 6, D), lambda b, q: (b, 0, 0)),               # mods
        pl.BlockSpec((1, N, D), lambda b, q: (b, 0, 0), **_sb_mode),   # x (full seq)
    ] + [pl.BlockSpec(w.shape, lambda b, q: (0, 0), **_sb_mode) for w in weights]
    out_specs = pl.BlockSpec((1, tq, D), lambda b, q: (b, q, 0))

    scratch_shapes = [
        pltpu.VMEM((n_heads, N, hd), compute_dtype),   # K cache (head-major)
        pltpu.VMEM((n_heads, N, hd), compute_dtype),   # V cache (head-major)
        pltpu.VMEM((n_heads, tq, hd), compute_dtype),  # Q tile (head-major)
        pltpu.VMEM((tq, D), compute_dtype),            # per-head context -> proj
    ]

    # VMEM budget, generation-aware (default scoped limit is only 16-32 MiB; v7x
    # physical is 64 MiB/TC so never request all of it).
    cbytes = jnp.dtype(compute_dtype).itemsize
    wbuf = 1 if single_buffer else 2
    weight_bytes = sum(int(w.size) * w.dtype.itemsize for w in weights)
    block_bytes = (2 * 6 * D * 4                       # mods (double-buffered)
                   + wbuf * N * D * cbytes             # resident x (bf16)
                   + 2 * tq * D * x.dtype.itemsize)    # output tile
    scratch_bytes = (2 * N + 2 * tq) * D * cbytes
    interm_bytes = (3 * N * D * 4                      # xf upcast + LN + K-or-V f32
                    + 2 * n_heads * tq * N * 4         # scores + probs
                    + n_heads * tq * hd * 4            # ctx f32
                    + 2 * tq * 4 * D * 4               # ffw hidden
                    + 8 * tq * D * 4)                  # misc per-tile temps
    est = wbuf * weight_bytes + block_bytes + scratch_bytes + interm_bytes + (4 << 20)
    try:
        phys = int(pltpu.get_tpu_info().vmem_capacity_bytes)
    except Exception:
        phys = 64 << 20   # conservative fallback (valid on every generation)
    cap = int(phys * 0.8)  # leave headroom for Mosaic internal scratch/semaphores
    vmem_limit = int(min(cap, max(32 << 20, est)))

    # Advisory cost estimate consistent with the actual DMA pattern
    # (x is read once, in compute_dtype; output written once in x.dtype).
    flops = int(2 * B * N * 12 * D * D                 # q,k,v,proj,ffw1,ffw2
                + 4 * B * N * N * D)                   # scores + context
    transcendentals = int(B * n_heads * N * N + 4 * B * N * D)
    bytes_accessed = int(weight_bytes
                         + B * N * D * cbytes
                         + B * N * D * x.dtype.itemsize
                         + 6 * B * D * 4)

    kernel = functools.partial(dit_block_kernel, n_heads=n_heads)

    return pl.pallas_call(
        kernel,
        out_shape=jax.ShapeDtypeStruct((B, N, D), x.dtype),
        grid=grid,
        in_specs=in_specs,
        out_specs=out_specs,
        scratch_shapes=scratch_shapes,
        compiler_params=pltpu.CompilerParams(
            dimension_semantics=("parallel", "arbitrary"),
            vmem_limit_bytes=vmem_limit,
        ),
        cost_estimate=pl.CostEstimate(
            flops=flops,
            transcendentals=transcendentals,
            bytes_accessed=bytes_accessed,
        ),
    )(mods, x.astype(compute_dtype), *weights)


# ---------------------------------------------------------------------------
# Pure-JAX reference (mirrors the PyTorch forward exactly, f32).
# ---------------------------------------------------------------------------
def dit_block_reference(x, c, p, n_heads):
    B, N, D = x.shape
    hd = D // n_heads
    scale = hd ** -0.5

    def ln(y):
        mu = jnp.mean(y, -1, keepdims=True)
        var = jnp.mean((y - mu) ** 2, -1, keepdims=True)
        return (y - mu) / jnp.sqrt(var + 1e-6)

    sc = c * jax.nn.sigmoid(c)
    cond = sc @ p["wc"] + p["bc"][0]
    gate = sc @ p["wg"] + p["bg"][0]
    s1, b1, s2, b2 = jnp.split(cond, 4, axis=-1)
    g1, g2 = jnp.split(gate, 2, axis=-1)

    x_ln = ln(x) * (1.0 + s1[:, None, :]) + b1[:, None, :]
    qkv = x_ln @ p["wqkv"] + p["bqkv"][0]
    q, k, v = jnp.split(qkv, 3, axis=-1)
    q = q.reshape(B, N, n_heads, hd).transpose(0, 2, 1, 3)
    k = k.reshape(B, N, n_heads, hd).transpose(0, 2, 1, 3)
    v = v.reshape(B, N, n_heads, hd).transpose(0, 2, 1, 3)
    attn = jax.nn.softmax(jnp.einsum("bhqd,bhkd->bhqk", q, k) * scale, axis=-1)
    out = jnp.einsum("bhqk,bhkd->bhqd", attn, v).transpose(0, 2, 1, 3).reshape(B, N, D)
    mha = out @ p["wpr"] + p["bpr"][0]
    x = x + mha * g1[:, None, :]

    x_ln2 = ln(x) * (1.0 + s2[:, None, :]) + b2[:, None, :]
    h1 = jax.nn.gelu(x_ln2 @ p["w_ffw1"] + p["b_ffw1"][0], approximate=False)
    ffw = h1 @ p["w_ffw2"] + p["b_ffw2"][0]
    return x + ffw * g2[:, None, :]


# ---------------------------------------------------------------------------
# Main
# ---------------------------------------------------------------------------
if __name__ == "__main__":
    # Small but lane/MXU-friendly shapes: D multiple of 128, head_dim = 128,
    # tq=128 with two query tiles per batch element (exercises K/V scratch reuse
    # and the qt==0 / qt>0 paths). B=2 keeps both v7x TensorCores busy.
    B, N, D, H = 2, 256, 256, 2
    TQ = 128

    key = jax.random.PRNGKey(0)
    ks = jax.random.split(key, 16)

    def w(k, shape, s=0.02):
        return jax.random.normal(k, shape, dtype=jnp.float32) * s

    params = {
        "wc": w(ks[0], (D, 4 * D)),      "bc": w(ks[1], (1, 4 * D)),
        "wg": w(ks[2], (D, 2 * D)),      "bg": w(ks[3], (1, 2 * D)),
        "wqkv": w(ks[4], (D, 3 * D)),    "bqkv": w(ks[5], (1, 3 * D)),
        "wpr": w(ks[6], (D, D)),         "bpr": w(ks[7], (1, D)),
        "w_ffw1": w(ks[8], (D, 4 * D)),  "b_ffw1": w(ks[9], (1, 4 * D)),
        "w_ffw2": w(ks[10], (4 * D, D)), "b_ffw2": w(ks[11], (1, D)),
    }

    x = jax.random.normal(ks[12], (B, N, D), dtype=jnp.float32)
    c = jax.random.normal(ks[13], (B, D), dtype=jnp.float32)

    out = jax.block_until_ready(dit_block(x, c, params, n_heads=H, tq=TQ))
    ref = jax.block_until_ready(dit_block_reference(x, c, params, n_heads=H))

    assert out.shape == (B, N, D)
    # bf16 activation/weight path vs f32 reference: tolerance covers the
    # intentional mixed-precision error (dominant term is bf16(x) rounding).
    assert jnp.allclose(out, ref, rtol=1e-2, atol=1e-2), (
        f"max abs err = {jnp.max(jnp.abs(out - ref))}"
    )
    print("KERNEL_OK")
</pallas_src>

<mosaic_0001>
module attributes {stable_mosaic.version = 11 : i64} {
  func.func @dit_block_kernel(%arg0: i32, %arg1: i32, %arg2: memref<1x6x256xf32, #tpu.memory_space<vmem>>, %arg3: memref<1x256x256xbf16, #tpu.memory_space<vmem>>, %arg4: memref<256x256xbf16, #tpu.memory_space<vmem>>, %arg5: memref<1x256xf32, #tpu.memory_space<vmem>>, %arg6: memref<256x256xbf16, #tpu.memory_space<vmem>>, %arg7: memref<1x256xf32, #tpu.memory_space<vmem>>, %arg8: memref<256x256xbf16, #tpu.memory_space<vmem>>, %arg9: memref<1x256xf32, #tpu.memory_space<vmem>>, %arg10: memref<256x256xbf16, #tpu.memory_space<vmem>>, %arg11: memref<1x256xf32, #tpu.memory_space<vmem>>, %arg12: memref<256x1024xbf16, #tpu.memory_space<vmem>>, %arg13: memref<1x1024xf32, #tpu.memory_space<vmem>>, %arg14: memref<1024x256xbf16, #tpu.memory_space<vmem>>, %arg15: memref<1x256xf32, #tpu.memory_space<vmem>>, %arg16: memref<1x128x256xf32, #tpu.memory_space<vmem>>, %arg17: memref<2x256x128xbf16, #tpu.memory_space<vmem>>, %arg18: memref<2x256x128xbf16, #tpu.memory_space<vmem>>, %arg19: memref<2x128x128xbf16, #tpu.memory_space<vmem>>, %arg20: memref<128x256xbf16, #tpu.memory_space<vmem>>) attributes {dimension_semantics = [#tpu.dimension_semantics<parallel>, #tpu.dimension_semantics<arbitrary>], iteration_bounds = array<i64: 2, 2>, scalar_prefetch = 0 : i64, scratch_operands = 4 : i64, tpu.core_type = #tpu.core_type<tc>, window_params = [{transform_indices = @transform_0, window_bounds = array<i64: 1, 6, 256>}, {pipeline_mode = #tpu.pipeline_mode<synchronous>, transform_indices = @transform_1, window_bounds = array<i64: 1, 256, 256>}, {pipeline_mode = #tpu.pipeline_mode<synchronous>, transform_indices = @transform_2, window_bounds = array<i64: 256, 256>}, {pipeline_mode = #tpu.pipeline_mode<synchronous>, transform_indices = @transform_3, window_bounds = array<i64: 1, 256>}, {pipeline_mode = #tpu.pipeline_mode<synchronous>, transform_indices = @transform_4, window_bounds = array<i64: 256, 256>}, {pipeline_mode = #tpu.pipeline_mode<synchronous>, transform_indices = @transform_5, window_bounds = array<i64: 1, 256>}, {pipeline_mode = #tpu.pipeline_mode<synchronous>, transform_indices = @transform_6, window_bounds = array<i64: 256, 256>}, {pipeline_mode = #tpu.pipeline_mode<synchronous>, transform_indices = @transform_7, window_bounds = array<i64: 1, 256>}, {pipeline_mode = #tpu.pipeline_mode<synchronous>, transform_indices = @transform_8, window_bounds = array<i64: 256, 256>}, {pipeline_mode = #tpu.pipeline_mode<synchronous>, transform_indices = @transform_9, window_bounds = array<i64: 1, 256>}, {pipeline_mode = #tpu.pipeline_mode<synchronous>, transform_indices = @transform_10, window_bounds = array<i64: 256, 1024>}, {pipeline_mode = #tpu.pipeline_mode<synchronous>, transform_indices = @transform_11, window_bounds = array<i64: 1, 1024>}, {pipeline_mode = #tpu.pipeline_mode<synchronous>, transform_indices = @transform_12, window_bounds = array<i64: 1024, 256>}, {pipeline_mode = #tpu.pipeline_mode<synchronous>, transform_indices = @transform_13, window_bounds = array<i64: 1, 256>}, {transform_indices = @transform_14, window_bounds = array<i64: 1, 128, 256>}]} {
    %c0 = arith.constant 0 : index
    %c0_0 = arith.constant 0 : index
    %c0_1 = arith.constant 0 : index
    %0 = vector.load %arg2[%c0, %c0_0, %c0_1] : memref<1x6x256xf32, #tpu.memory_space<vmem>>, vector<1x6x256xf32>
    %1 = vector.shape_cast %0 : vector<1x6x256xf32> to vector<6x256xf32>
    %2 = vector.extract_strided_slice %1 {offsets = [0, 0], sizes = [1, 256], strides = [1, 1]} : vector<6x256xf32> to vector<1x256xf32>
    %cst = arith.constant 1.000000e+00 : f32
    %3 = vector.broadcast %cst : f32 to vector<1x256xf32>
    %4 = arith.addf %3, %2 : vector<1x256xf32>
    %5 = vector.extract_strided_slice %1 {offsets = [1, 0], sizes = [1, 256], strides = [1, 1]} : vector<6x256xf32> to vector<1x256xf32>
    %6 = vector.extract_strided_slice %1 {offsets = [2, 0], sizes = [1, 256], strides = [1, 1]} : vector<6x256xf32> to vector<1x256xf32>
    %7 = vector.extract_strided_slice %1 {offsets = [3, 0], sizes = [1, 256], strides = [1, 1]} : vector<6x256xf32> to vector<1x256xf32>
    %cst_2 = arith.constant 1.000000e+00 : f32
    %8 = vector.broadcast %cst_2 : f32 to vector<1x256xf32>
    %9 = arith.addf %8, %7 : vector<1x256xf32>
    %10 = vector.extract_strided_slice %1 {offsets = [4, 0], sizes = [1, 256], strides = [1, 1]} : vector<6x256xf32> to vector<1x256xf32>
    %11 = vector.extract_strided_slice %1 {offsets = [5, 0], sizes = [1, 256], strides = [1, 1]} : vector<6x256xf32> to vector<1x256xf32>
    %c0_i32 = arith.constant 0 : i32
    %12 = arith.cmpi eq, %arg1, %c0_i32 : i32
    %13 = arith.extui %12 : i1 to i32
    %c0_i32_3 = arith.constant 0 : i32
    %14 = arith.cmpi ne, %13, %c0_i32_3 : i32
    scf.if %14 {
      %c0_68 = arith.constant 0 : index
      %c0_69 = arith.constant 0 : index
      %c0_70 = arith.constant 0 : index
      %142 = vector.load %arg3[%c0_68, %c0_69, %c0_70] : memref<1x256x256xbf16, #tpu.memory_space<vmem>>, vector<1x256x256xbf16>
      %143 = vector.shape_cast %142 : vector<1x256x256xbf16> to vector<256x256xbf16>
      %144 = arith.extf %143 : vector<256x256xbf16> to vector<256x256xf32>
      %cst_71 = arith.constant dense<0.000000e+00> : vector<256xf32>
      %145 = vector.multi_reduction <add>, %144, %cst_71 [1] : vector<256x256xf32> to vector<256xf32>
      %146 = vector.shape_cast %145 : vector<256xf32> to vector<256x1xf32>
      %cst_72 = arith.constant 2.560000e+02 : f32
      %147 = vector.broadcast %cst_72 : f32 to vector<256x1xf32>
      %148 = arith.divf %146, %147 : vector<256x1xf32>
      %149 = vector.broadcast %148 : vector<256x1xf32> to vector<256x256xf32>
      %150 = arith.subf %144, %149 : vector<256x256xf32>
      %151 = arith.mulf %150, %150 : vector<256x256xf32>
      %cst_73 = arith.constant dense<0.000000e+00> : vector<256xf32>
      %152 = vector.multi_reduction <add>, %151, %cst_73 [1] : vector<256x256xf32> to vector<256xf32>
      %153 = vector.shape_cast %152 : vector<256xf32> to vector<256x1xf32>
      %cst_74 = arith.constant 2.560000e+02 : f32
      %154 = vector.broadcast %cst_74 : f32 to vector<256x1xf32>
      %155 = arith.divf %153, %154 : vector<256x1xf32>
      %156 = vector.broadcast %148 : vector<256x1xf32> to vector<256x256xf32>
      %157 = arith.subf %144, %156 : vector<256x256xf32>
      %cst_75 = arith.constant 9.99999997E-7 : f32
      %158 = vector.broadcast %cst_75 : f32 to vector<256x1xf32>
      %159 = arith.addf %155, %158 : vector<256x1xf32>
      %160 = math.rsqrt %159 : vector<256x1xf32>
      %161 = vector.broadcast %160 : vector<256x1xf32> to vector<256x256xf32>
      %162 = arith.mulf %157, %161 : vector<256x256xf32>
      %163 = vector.broadcast %4 : vector<1x256xf32> to vector<256x256xf32>
      %164 = arith.mulf %162, %163 : vector<256x256xf32>
      %165 = vector.broadcast %5 : vector<1x256xf32> to vector<256x256xf32>
      %166 = arith.addf %164, %165 : vector<256x256xf32>
      %167 = arith.truncf %166 : vector<256x256xf32> to vector<256x256xbf16>
      %c0_76 = arith.constant 0 : index
      %c0_77 = arith.constant 0 : index
      %168 = vector.load %arg6[%c0_76, %c0_77] : memref<256x256xbf16, #tpu.memory_space<vmem>>, vector<256x256xbf16>
      %cst_78 = arith.constant dense<0.000000e+00> : vector<256x256xf32>
      %169 = tpu.matmul %167, %168, %cst_78 {dimension_numbers = #tpu.dot_dimension_numbers<[1], [0], [0], [1], [0, 0, 1, 1], [], []>} : vector<256x256xbf16>, vector<256x256xbf16>, vector<256x256xf32> -> vector<256x256xf32>
      %c0_79 = arith.constant 0 : index
      %c0_80 = arith.constant 0 : index
      %170 = vector.load %arg7[%c0_79, %c0_80] : memref<1x256xf32, #tpu.memory_space<vmem>>, vector<1x256xf32>
      %171 = vector.broadcast %170 : vector<1x256xf32> to vector<256x256xf32>
      %172 = arith.addf %169, %171 : vector<256x256xf32>
      %173 = arith.truncf %172 : vector<256x256xf32> to vector<256x256xbf16>
      %174 = vector.extract_strided_slice %173 {offsets = [0, 0], sizes = [256, 128], strides = [1, 1]} : vector<256x256xbf16> to vector<256x128xbf16>
      %c0_81 = arith.constant 0 : index
      %c0_82 = arith.constant 0 : index
      %c0_83 = arith.constant 0 : index
      %175 = vector.load %arg17[%c0_81, %c0_82, %c0_83] : memref<2x256x128xbf16, #tpu.memory_space<vmem>>, vector<1x256x128xbf16>
      %176 = vector.shape_cast %175 : vector<1x256x128xbf16> to vector<256x128xbf16>
      %177 = vector.shape_cast %174 : vector<256x128xbf16> to vector<1x256x128xbf16>
      tpu.vector_store %arg17[%c0_81, %c0_82, %c0_83], %177 {strides = array<i32>} : memref<2x256x128xbf16, #tpu.memory_space<vmem>>, vector<1x256x128xbf16>,
      %178 = vector.extract_strided_slice %173 {offsets = [0, 128], sizes = [256, 128], strides = [1, 1]} : vector<256x256xbf16> to vector<256x128xbf16>
      %c1_84 = arith.constant 1 : index
      %c0_85 = arith.constant 0 : index
      %c0_86 = arith.constant 0 : index
      %179 = vector.load %arg17[%c1_84, %c0_85, %c0_86] : memref<2x256x128xbf16, #tpu.memory_space<vmem>>, vector<1x256x128xbf16>
      %180 = vector.shape_cast %179 : vector<1x256x128xbf16> to vector<256x128xbf16>
      %181 = vector.shape_cast %178 : vector<256x128xbf16> to vector<1x256x128xbf16>
      tpu.vector_store %arg17[%c1_84, %c0_85, %c0_86], %181 {strides = array<i32>} : memref<2x256x128xbf16, #tpu.memory_space<vmem>>, vector<1x256x128xbf16>,
      %c0_87 = arith.constant 0 : index
      %c0_88 = arith.constant 0 : index
      %182 = vector.load %arg8[%c0_87, %c0_88] : memref<256x256xbf16, #tpu.memory_space<vmem>>, vector<256x256xbf16>
      %cst_89 = arith.constant dense<0.000000e+00> : vector<256x256xf32>
      %183 = tpu.matmul %167, %182, %cst_89 {dimension_numbers = #tpu.dot_dimension_numbers<[1], [0], [0], [1], [0, 0, 1, 1], [], []>} : vector<256x256xbf16>, vector<256x256xbf16>, vector<256x256xf32> -> vector<256x256xf32>
      %c0_90 = arith.constant 0 : index
      %c0_91 = arith.constant 0 : index
      %184 = vector.load %arg9[%c0_90, %c0_91] : memref<1x256xf32, #tpu.memory_space<vmem>>, vector<1x256xf32>
      %185 = vector.broadcast %184 : vector<1x256xf32> to vector<256x256xf32>
      %186 = arith.addf %183, %185 : vector<256x256xf32>
      %187 = arith.truncf %186 : vector<256x256xf32> to vector<256x256xbf16>
      %188 = vector.extract_strided_slice %187 {offsets = [0, 0], sizes = [256, 128], strides = [1, 1]} : vector<256x256xbf16> to vector<256x128xbf16>
      %c0_92 = arith.constant 0 : index
      %c0_93 = arith.constant 0 : index
      %c0_94 = arith.constant 0 : index
      %189 = vector.load %arg18[%c0_92, %c0_93, %c0_94] : memref<2x256x128xbf16, #tpu.memory_space<vmem>>, vector<1x256x128xbf16>
      %190 = vector.shape_cast %189 : vector<1x256x128xbf16> to vector<256x128xbf16>
      %191 = vector.shape_cast %188 : vector<256x128xbf16> to vector<1x256x128xbf16>
      tpu.vector_store %arg18[%c0_92, %c0_93, %c0_94], %191 {strides = array<i32>} : memref<2x256x128xbf16, #tpu.memory_space<vmem>>, vector<1x256x128xbf16>,
      %192 = vector.extract_strided_slice %187 {offsets = [0, 128], sizes = [256, 128], strides = [1, 1]} : vector<256x256xbf16> to vector<256x128xbf16>
      %c1_95 = arith.constant 1 : index
      %c0_96 = arith.constant 0 : index
      %c0_97 = arith.constant 0 : index
      %193 = vector.load %arg18[%c1_95, %c0_96, %c0_97] : memref<2x256x128xbf16, #tpu.memory_space<vmem>>, vector<1x256x128xbf16>
      %194 = vector.shape_cast %193 : vector<1x256x128xbf16> to vector<256x128xbf16>
      %195 = vector.shape_cast %192 : vector<256x128xbf16> to vector<1x256x128xbf16>
      tpu.vector_store %arg18[%c1_95, %c0_96, %c0_97], %195 {strides = array<i32>} : memref<2x256x128xbf16, #tpu.memory_space<vmem>>, vector<1x256x128xbf16>,
    } else {
    }
    %c128_i32 = arith.constant 128 : i32
    %15 = arith.muli %arg1, %c128_i32 : i32
    %16 = tpu.assume_multiple %15, 128 : i32
    %c0_i32_4 = arith.constant 0 : i32
    %c0_i32_5 = arith.constant 0 : i32
    %c0_i32_6 = arith.constant 0 : i32
    %17 = tpu.memref_slice %arg3[%c0_i32_4, %c0_i32_5, %c0_i32_6] : memref<1x256x256xbf16, #tpu.memory_space<vmem>> -> memref<1x256x256xbf16, #tpu.memory_space<vmem>>
    %18 = tpu.memref_squeeze %17 : memref<1x256x256xbf16, #tpu.memory_space<vmem>> -> memref<256x256xbf16, #tpu.memory_space<vmem>>
    %19 = arith.index_cast %16 : i32 to index
    %c0_7 = arith.constant 0 : index
    %20 = vector.load %18[%19, %c0_7] : memref<256x256xbf16, #tpu.memory_space<vmem>>, vector<128x256xbf16>
    %21 = arith.extf %20 : vector<128x256xbf16> to vector<128x256xf32>
    %cst_8 = arith.constant dense<0.000000e+00> : vector<128xf32>
    %22 = vector.multi_reduction <add>, %21, %cst_8 [1] : vector<128x256xf32> to vector<128xf32>
    %23 = vector.shape_cast %22 : vector<128xf32> to vector<128x1xf32>
    %cst_9 = arith.constant 2.560000e+02 : f32
    %24 = vector.broadcast %cst_9 : f32 to vector<128x1xf32>
    %25 = arith.divf %23, %24 : vector<128x1xf32>
    %26 = vector.broadcast %25 : vector<128x1xf32> to vector<128x256xf32>
    %27 = arith.subf %21, %26 : vector<128x256xf32>
    %28 = arith.mulf %27, %27 : vector<128x256xf32>
    %cst_10 = arith.constant dense<0.000000e+00> : vector<128xf32>
    %29 = vector.multi_reduction <add>, %28, %cst_10 [1] : vector<128x256xf32> to vector<128xf32>
    %30 = vector.shape_cast %29 : vector<128xf32> to vector<128x1xf32>
    %cst_11 = arith.constant 2.560000e+02 : f32
    %31 = vector.broadcast %cst_11 : f32 to vector<128x1xf32>
    %32 = arith.divf %30, %31 : vector<128x1xf32>
    %33 = vector.broadcast %25 : vector<128x1xf32> to vector<128x256xf32>
    %34 = arith.subf %21, %33 : vector<128x256xf32>
    %cst_12 = arith.constant 9.99999997E-7 : f32
    %35 = vector.broadcast %cst_12 : f32 to vector<128x1xf32>
    %36 = arith.addf %32, %35 : vector<128x1xf32>
    %37 = math.rsqrt %36 : vector<128x1xf32>
    %38 = vector.broadcast %37 : vector<128x1xf32> to vector<128x256xf32>
    %39 = arith.mulf %34, %38 : vector<128x256xf32>
    %40 = vector.broadcast %4 : vector<1x256xf32> to vector<128x256xf32>
    %41 = arith.mulf %39, %40 : vector<128x256xf32>
    %42 = vector.broadcast %5 : vector<1x256xf32> to vector<128x256xf32>
    %43 = arith.addf %41, %42 : vector<128x256xf32>
    %44 = arith.truncf %43 : vector<128x256xf32> to vector<128x256xbf16>
    %c0_13 = arith.constant 0 : index
    %c0_14 = arith.constant 0 : index
    %45 = vector.load %arg4[%c0_13, %c0_14] : memref<256x256xbf16, #tpu.memory_space<vmem>>, vector<256x256xbf16>
    %cst_15 = arith.constant dense<0.000000e+00> : vector<128x256xf32>
    %46 = tpu.matmul %44, %45, %cst_15 {dimension_numbers = #tpu.dot_dimension_numbers<[1], [0], [0], [1], [0, 0, 1, 1], [], []>} : vector<128x256xbf16>, vector<256x256xbf16>, vector<128x256xf32> -> vector<128x256xf32>
    %c0_16 = arith.constant 0 : index
    %c0_17 = arith.constant 0 : index
    %47 = vector.load %arg5[%c0_16, %c0_17] : memref<1x256xf32, #tpu.memory_space<vmem>>, vector<1x256xf32>
    %48 = vector.broadcast %47 : vector<1x256xf32> to vector<128x256xf32>
    %49 = arith.addf %46, %48 : vector<128x256xf32>
    %cst_18 = arith.constant 0.0883883461 : f32
    %50 = vector.broadcast %cst_18 : f32 to vector<128x256xf32>
    %51 = arith.mulf %49, %50 : vector<128x256xf32>
    %52 = arith.truncf %51 : vector<128x256xf32> to vector<128x256xbf16>
    %53 = vector.extract_strided_slice %52 {offsets = [0, 0], sizes = [128, 128], strides = [1, 1]} : vector<128x256xbf16> to vector<128x128xbf16>
    %c0_19 = arith.constant 0 : index
    %c0_20 = arith.constant 0 : index
    %c0_21 = arith.constant 0 : index
    %54 = vector.load %arg19[%c0_19, %c0_20, %c0_21] : memref<2x128x128xbf16, #tpu.memory_space<vmem>>, vector<1x128x128xbf16>
    %55 = vector.shape_cast %54 : vector<1x128x128xbf16> to vector<128x128xbf16>
    %56 = vector.shape_cast %53 : vector<128x128xbf16> to vector<1x128x128xbf16>
    tpu.vector_store %arg19[%c0_19, %c0_20, %c0_21], %56 {strides = array<i32>} : memref<2x128x128xbf16, #tpu.memory_space<vmem>>, vector<1x128x128xbf16>,
    %57 = vector.extract_strided_slice %52 {offsets = [0, 128], sizes = [128, 128], strides = [1, 1]} : vector<128x256xbf16> to vector<128x128xbf16>
    %c1 = arith.constant 1 : index
    %c0_22 = arith.constant 0 : index
    %c0_23 = arith.constant 0 : index
    %58 = vector.load %arg19[%c1, %c0_22, %c0_23] : memref<2x128x128xbf16, #tpu.memory_space<vmem>>, vector<1x128x128xbf16>
    %59 = vector.shape_cast %58 : vector<1x128x128xbf16> to vector<128x128xbf16>
    %60 = vector.shape_cast %57 : vector<128x128xbf16> to vector<1x128x128xbf16>
    tpu.vector_store %arg19[%c1, %c0_22, %c0_23], %60 {strides = array<i32>} : memref<2x128x128xbf16, #tpu.memory_space<vmem>>, vector<1x128x128xbf16>,
    %c0_24 = arith.constant 0 : index
    %c0_25 = arith.constant 0 : index
    %c0_26 = arith.constant 0 : index
    %61 = vector.load %arg19[%c0_24, %c0_25, %c0_26] : memref<2x128x128xbf16, #tpu.memory_space<vmem>>, vector<2x128x128xbf16>
    %c0_27 = arith.constant 0 : index
    %c0_28 = arith.constant 0 : index
    %c0_29 = arith.constant 0 : index
    %62 = vector.load %arg17[%c0_27, %c0_28, %c0_29] : memref<2x256x128xbf16, #tpu.memory_space<vmem>>, vector<2x256x128xbf16>
    "tpu.trace_start"() <{level = 10 : i32, message = "hqd,hkd->hqk"}> : () -> ()
    %cst_30 = arith.constant dense<0.000000e+00> : vector<2x128x256xf32>
    %63 = tpu.matmul %61, %62, %cst_30 {dimension_numbers = #tpu.dot_dimension_numbers<[2], [2], [1], [1], [0, 0, 0, 1, 1, 1], [0], [0]>} : vector<2x128x128xbf16>, vector<2x256x128xbf16>, vector<2x128x256xf32> -> vector<2x128x256xf32>
    "tpu.trace_stop"() : () -> ()
    %cst_31 = arith.constant dense<0xFF800000> : vector<2x128xf32>
    %64 = vector.multi_reduction <maximumf>, %63, %cst_31 [2] : vector<2x128x256xf32> to vector<2x128xf32>
    %65 = vector.shape_cast %64 : vector<2x128xf32> to vector<2x128x1xf32>
    %66 = vector.broadcast %65 : vector<2x128x1xf32> to vector<2x128x256xf32>
    %67 = arith.subf %63, %66 : vector<2x128x256xf32>
    %68 = math.exp %67 : vector<2x128x256xf32>
    %cst_32 = arith.constant dense<0.000000e+00> : vector<2x128xf32>
    %69 = vector.multi_reduction <add>, %68, %cst_32 [2] : vector<2x128x256xf32> to vector<2x128xf32>
    %70 = vector.shape_cast %69 : vector<2x128xf32> to vector<2x128x1xf32>
    %71 = tpu.reciprocal %70 {approx = true} : vector<2x128x1xf32> -> vector<2x128x1xf32>
    %72 = vector.broadcast %71 : vector<2x128x1xf32> to vector<2x128x256xf32>
    %73 = arith.mulf %68, %72 : vector<2x128x256xf32>
    %74 = arith.truncf %73 : vector<2x128x256xf32> to vector<2x128x256xbf16>
    %c0_33 = arith.constant 0 : index
    %c0_34 = arith.constant 0 : index
    %c0_35 = arith.constant 0 : index
    %75 = vector.load %arg18[%c0_33, %c0_34, %c0_35] : memref<2x256x128xbf16, #tpu.memory_space<vmem>>, vector<2x256x128xbf16>
    "tpu.trace_start"() <{level = 10 : i32, message = "hqk,hkd->hqd"}> : () -> ()
    %cst_36 = arith.constant dense<0.000000e+00> : vector<2x128x128xf32>
    %76 = tpu.matmul %74, %75, %cst_36 {dimension_numbers = #tpu.dot_dimension_numbers<[2], [1], [1], [2], [0, 0, 0, 1, 1, 2], [0], [0]>} : vector<2x128x256xbf16>, vector<2x256x128xbf16>, vector<2x128x128xf32> -> vector<2x128x128xf32>
    "tpu.trace_stop"() : () -> ()
    %77 = vector.extract_strided_slice %76 {offsets = [0, 0, 0], sizes = [1, 128, 128], strides = [1, 1, 1]} : vector<2x128x128xf32> to vector<1x128x128xf32>
    %78 = vector.shape_cast %77 : vector<1x128x128xf32> to vector<128x128xf32>
    %79 = arith.truncf %78 : vector<128x128xf32> to vector<128x128xbf16>
    %c0_37 = arith.constant 0 : index
    %c0_38 = arith.constant 0 : index
    %80 = vector.load %arg20[%c0_37, %c0_38] : memref<128x256xbf16, #tpu.memory_space<vmem>>, vector<128x128xbf16>
    tpu.vector_store %arg20[%c0_37, %c0_38], %79 {strides = array<i32>} : memref<128x256xbf16, #tpu.memory_space<vmem>>, vector<128x128xbf16>,
    %81 = vector.extract_strided_slice %76 {offsets = [1, 0, 0], sizes = [1, 128, 128], strides = [1, 1, 1]} : vector<2x128x128xf32> to vector<1x128x128xf32>
    %82 = vector.shape_cast %81 : vector<1x128x128xf32> to vector<128x128xf32>
    %83 = arith.truncf %82 : vector<128x128xf32> to vector<128x128xbf16>
    %c0_39 = arith.constant 0 : index
    %c128 = arith.constant 128 : index
    %84 = vector.load %arg20[%c0_39, %c128] : memref<128x256xbf16, #tpu.memory_space<vmem>>, vector<128x128xbf16>
    tpu.vector_store %arg20[%c0_39, %c128], %83 {strides = array<i32>} : memref<128x256xbf16, #tpu.memory_space<vmem>>, vector<128x128xbf16>,
    %c0_40 = arith.constant 0 : index
    %c0_41 = arith.constant 0 : index
    %85 = vector.load %arg20[%c0_40, %c0_41] : memref<128x256xbf16, #tpu.memory_space<vmem>>, vector<128x256xbf16>
    %c0_42 = arith.constant 0 : index
    %c0_43 = arith.constant 0 : index
    %86 = vector.load %arg10[%c0_42, %c0_43] : memref<256x256xbf16, #tpu.memory_space<vmem>>, vector<256x256xbf16>
    %cst_44 = arith.constant dense<0.000000e+00> : vector<128x256xf32>
    %87 = tpu.matmul %85, %86, %cst_44 {dimension_numbers = #tpu.dot_dimension_numbers<[1], [0], [0], [1], [0, 0, 1, 1], [], []>} : vector<128x256xbf16>, vector<256x256xbf16>, vector<128x256xf32> -> vector<128x256xf32>
    %c0_45 = arith.constant 0 : index
    %c0_46 = arith.constant 0 : index
    %88 = vector.load %arg11[%c0_45, %c0_46] : memref<1x256xf32, #tpu.memory_space<vmem>>, vector<1x256xf32>
    %89 = vector.broadcast %88 : vector<1x256xf32> to vector<128x256xf32>
    %90 = arith.addf %87, %89 : vector<128x256xf32>
    %91 = vector.broadcast %6 : vector<1x256xf32> to vector<128x256xf32>
    %92 = arith.mulf %90, %91 : vector<128x256xf32>
    %93 = arith.addf %21, %92 : vector<128x256xf32>
    %cst_47 = arith.constant dense<0.000000e+00> : vector<128xf32>
    %94 = vector.multi_reduction <add>, %93, %cst_47 [1] : vector<128x256xf32> to vector<128xf32>
    %95 = vector.shape_cast %94 : vector<128xf32> to vector<128x1xf32>
    %cst_48 = arith.constant 2.560000e+02 : f32
    %96 = vector.broadcast %cst_48 : f32 to vector<128x1xf32>
    %97 = arith.divf %95, %96 : vector<128x1xf32>
    %98 = vector.broadcast %97 : vector<128x1xf32> to vector<128x256xf32>
    %99 = arith.subf %93, %98 : vector<128x256xf32>
    %100 = arith.mulf %99, %99 : vector<128x256xf32>
    %cst_49 = arith.constant dense<0.000000e+00> : vector<128xf32>
    %101 = vector.multi_reduction <add>, %100, %cst_49 [1] : vector<128x256xf32> to vector<128xf32>
    %102 = vector.shape_cast %101 : vector<128xf32> to vector<128x1xf32>
    %cst_50 = arith.constant 2.560000e+02 : f32
    %103 = vector.broadcast %cst_50 : f32 to vector<128x1xf32>
    %104 = arith.divf %102, %103 : vector<128x1xf32>
    %105 = vector.broadcast %97 : vector<128x1xf32> to vector<128x256xf32>
    %106 = arith.subf %93, %105 : vector<128x256xf32>
    %cst_51 = arith.constant 9.99999997E-7 : f32
    %107 = vector.broadcast %cst_51 : f32 to vector<128x1xf32>
    %108 = arith.addf %104, %107 : vector<128x1xf32>
    %109 = math.rsqrt %108 : vector<128x1xf32>
    %110 = vector.broadcast %109 : vector<128x1xf32> to vector<128x256xf32>
    %111 = arith.mulf %106, %110 : vector<128x256xf32>
    %112 = vector.broadcast %9 : vector<1x256xf32> to vector<128x256xf32>
    %113 = arith.mulf %111, %112 : vector<128x256xf32>
    %114 = vector.broadcast %10 : vector<1x256xf32> to vector<128x256xf32>
    %115 = arith.addf %113, %114 : vector<128x256xf32>
    %116 = arith.truncf %115 : vector<128x256xf32> to vector<128x256xbf16>
    %c0_52 = arith.constant 0 : index
    %c0_53 = arith.constant 0 : index
    %117 = vector.load %arg12[%c0_52, %c0_53] : memref<256x1024xbf16, #tpu.memory_space<vmem>>, vector<256x1024xbf16>
    %cst_54 = arith.constant dense<0.000000e+00> : vector<128x1024xf32>
    %118 = tpu.matmul %116, %117, %cst_54 {dimension_numbers = #tpu.dot_dimension_numbers<[1], [0], [0], [1], [0, 0, 1, 1], [], []>} : vector<128x256xbf16>, vector<256x1024xbf16>, vector<128x1024xf32> -> vector<128x1024xf32>
    %c0_55 = arith.constant 0 : index
    %c0_56 = arith.constant 0 : index
    %119 = vector.load %arg13[%c0_55, %c0_56] : memref<1x1024xf32, #tpu.memory_space<vmem>>, vector<1x1024xf32>
    %120 = vector.broadcast %119 : vector<1x1024xf32> to vector<128x1024xf32>
    %121 = arith.addf %118, %120 : vector<128x1024xf32>
    %cst_57 = arith.constant 5.000000e-01 : f32
    %122 = vector.broadcast %cst_57 : f32 to vector<128x1024xf32>
    %123 = arith.mulf %122, %121 : vector<128x1024xf32>
    %cst_58 = arith.constant 0.707106769 : f32
    %124 = vector.broadcast %cst_58 : f32 to vector<128x1024xf32>
    %125 = arith.mulf %121, %124 : vector<128x1024xf32>
    %126 = math.erf %125 : vector<128x1024xf32>
    %cst_59 = arith.constant 1.000000e+00 : f32
    %127 = vector.broadcast %cst_59 : f32 to vector<128x1024xf32>
    %128 = arith.addf %127, %126 : vector<128x1024xf32>
    %129 = arith.mulf %123, %128 : vector<128x1024xf32>
    %130 = arith.truncf %129 : vector<128x1024xf32> to vector<128x1024xbf16>
    %c0_60 = arith.constant 0 : index
    %c0_61 = arith.constant 0 : index
    %131 = vector.load %arg14[%c0_60, %c0_61] : memref<1024x256xbf16, #tpu.memory_space<vmem>>, vector<1024x256xbf16>
    %cst_62 = arith.constant dense<0.000000e+00> : vector<128x256xf32>
    %132 = tpu.matmul %130, %131, %cst_62 {dimension_numbers = #tpu.dot_dimension_numbers<[1], [0], [0], [1], [0, 0, 1, 1], [], []>} : vector<128x1024xbf16>, vector<1024x256xbf16>, vector<128x256xf32> -> vector<128x256xf32>
    %c0_63 = arith.constant 0 : index
    %c0_64 = arith.constant 0 : index
    %133 = vector.load %arg15[%c0_63, %c0_64] : memref<1x256xf32, #tpu.memory_space<vmem>>, vector<1x256xf32>
    %134 = vector.broadcast %133 : vector<1x256xf32> to vector<128x256xf32>
    %135 = arith.addf %132, %134 : vector<128x256xf32>
    %136 = vector.broadcast %11 : vector<1x256xf32> to vector<128x256xf32>
    %137 = arith.mulf %135, %136 : vector<128x256xf32>
    %138 = arith.addf %93, %137 : vector<128x256xf32>
    %c0_65 = arith.constant 0 : index
    %c0_66 = arith.constant 0 : index
    %c0_67 = arith.constant 0 : index
    %139 = vector.load %arg16[%c0_65, %c0_66, %c0_67] : memref<1x128x256xf32, #tpu.memory_space<vmem>>, vector<1x128x256xf32>
    %140 = vector.shape_cast %139 : vector<1x128x256xf32> to vector<128x256xf32>
    %141 = vector.shape_cast %138 : vector<128x256xf32> to vector<1x128x256xf32>
    tpu.vector_store %arg16[%c0_65, %c0_66, %c0_67], %141 {strides = array<i32>} : memref<1x128x256xf32, #tpu.memory_space<vmem>>, vector<1x128x256xf32>,
    return
  }
  func.func @transform_0(%arg0: i32, %arg1: i32) -> (i32, i32, i32) {
    %c0_i32 = arith.constant 0 : i32
    %c0_i32_0 = arith.constant 0 : i32
    %c0_i32_1 = arith.constant 0 : i32
    return %arg0, %c0_i32, %c0_i32_0 : i32, i32, i32
  }
  func.func @transform_1(%arg0: i32, %arg1: i32) -> (i32, i32, i32) {
    %c0_i32 = arith.constant 0 : i32
    %c0_i32_0 = arith.constant 0 : i32
    %c0_i32_1 = arith.constant 0 : i32
    return %arg0, %c0_i32, %c0_i32_0 : i32, i32, i32
  }
  func.func @transform_2(%arg0: i32, %arg1: i32) -> (i32, i32) {
    %c0_i32 = arith.constant 0 : i32
    %c0_i32_0 = arith.constant 0 : i32
    %c0_i32_1 = arith.constant 0 : i32
    return %c0_i32, %c0_i32_0 : i32, i32
  }
  func.func @transform_3(%arg0: i32, %arg1: i32) -> (i32, i32) {
    %c0_i32 = arith.constant 0 : i32
    %c0_i32_0 = arith.constant 0 : i32
    %c0_i32_1 = arith.constant 0 : i32
    return %c0_i32, %c0_i32_0 : i32, i32
  }
  func.func @transform_4(%arg0: i32, %arg1: i32) -> (i32, i32) {
    %c0_i32 = arith.constant 0 : i32
    %c0_i32_0 = arith.constant 0 : i32
    %c0_i32_1 = arith.constant 0 : i32
    return %c0_i32, %c0_i32_0 : i32, i32
  }
  func.func @transform_5(%arg0: i32, %arg1: i32) -> (i32, i32) {
    %c0_i32 = arith.constant 0 : i32
    %c0_i32_0 = arith.constant 0 : i32
    %c0_i32_1 = arith.constant 0 : i32
    return %c0_i32, %c0_i32_0 : i32, i32
  }
  func.func @transform_6(%arg0: i32, %arg1: i32) -> (i32, i32) {
    %c0_i32 = arith.constant 0 : i32
    %c0_i32_0 = arith.constant 0 : i32
    %c0_i32_1 = arith.constant 0 : i32
    return %c0_i32, %c0_i32_0 : i32, i32
  }
  func.func @transform_7(%arg0: i32, %arg1: i32) -> (i32, i32) {
    %c0_i32 = arith.constant 0 : i32
    %c0_i32_0 = arith.constant 0 : i32
    %c0_i32_1 = arith.constant 0 : i32
    return %c0_i32, %c0_i32_0 : i32, i32
  }
  func.func @transform_8(%arg0: i32, %arg1: i32) -> (i32, i32) {
    %c0_i32 = arith.constant 0 : i32
    %c0_i32_0 = arith.constant 0 : i32
    %c0_i32_1 = arith.constant 0 : i32
    return %c0_i32, %c0_i32_0 : i32, i32
  }
  func.func @transform_9(%arg0: i32, %arg1: i32) -> (i32, i32) {
    %c0_i32 = arith.constant 0 : i32
    %c0_i32_0 = arith.constant 0 : i32
    %c0_i32_1 = arith.constant 0 : i32
    return %c0_i32, %c0_i32_0 : i32, i32
  }
  func.func @transform_10(%arg0: i32, %arg1: i32) -> (i32, i32) {
    %c0_i32 = arith.constant 0 : i32
    %c0_i32_0 = arith.constant 0 : i32
    %c0_i32_1 = arith.constant 0 : i32
    return %c0_i32, %c0_i32_0 : i32, i32
  }
  func.func @transform_11(%arg0: i32, %arg1: i32) -> (i32, i32) {
    %c0_i32 = arith.constant 0 : i32
    %c0_i32_0 = arith.constant 0 : i32
    %c0_i32_1 = arith.constant 0 : i32
    return %c0_i32, %c0_i32_0 : i32, i32
  }
  func.func @transform_12(%arg0: i32, %arg1: i32) -> (i32, i32) {
    %c0_i32 = arith.constant 0 : i32
    %c0_i32_0 = arith.constant 0 : i32
    %c0_i32_1 = arith.constant 0 : i32
    return %c0_i32, %c0_i32_0 : i32, i32
  }
  func.func @transform_13(%arg0: i32, %arg1: i32) -> (i32, i32) {
    %c0_i32 = arith.constant 0 : i32
    %c0_i32_0 = arith.constant 0 : i32
    %c0_i32_1 = arith.constant 0 : i32
    return %c0_i32, %c0_i32_0 : i32, i32
  }
  func.func @transform_14(%arg0: i32, %arg1: i32) -> (i32, i32, i32) {
    %c0_i32 = arith.constant 0 : i32
    %c0_i32_0 = arith.constant 0 : i32
    return %arg0, %arg1, %c0_i32 : i32, i32, i32
  }
}

</mosaic_0001>

<bundles_post_ra>
// kernel: tpu_custom_call.1
= control target key start
LH: loop header
LB: loop body
LE: loop exit
PB: predicated region body
PF: predicated region fallthrough
CT: control target
= control target key end

     0   :  { %s15203_s0 = inlined_call_operand.vmem [shape: f32[2,6,256], index: 0, kind: input, shape index: {}]   ;;  %s15204_s1 = inlined_call_operand.hbm [shape: bf16[2,256,256], index: 1, kind: input, shape index: {}]   ;;  %s15205_s2 = inlined_call_operand.hbm [shape: bf16[256,256], index: 2, kind: input, shape index: {}]   ;;  %s15206_s3 = inlined_call_operand.vmem [shape: f32[1,256], index: 3, kind: input, shape index: {}]   ;;  %s15207_s4 = inlined_call_operand.hbm [shape: bf16[256,256], index: 4, kind: input, shape index: {}]   ;;  %s15208_s5 = inlined_call_operand.vmem [shape: f32[1,256], index: 5, kind: input, shape index: {}]   ;;  %s15209_s6 = inlined_call_operand.hbm [shape: bf16[256,256], index: 6, kind: input, shape index: {}]   ;;  %s15210_s7 = inlined_call_operand.vmem [shape: f32[1,256], index: 7, kind: input, shape index: {}]   ;;  %s15211_s8 = inlined_call_operand.hbm [shape: bf16[256,256], index: 8, kind: input, shape index: {}]   ;;  %s15212_s9 = inlined_call_operand.vmem [shape: f32[1,256], index: 9, kind: input, shape index: {}]   ;;  %s15213_s10 = inlined_call_operand.hbm [shape: bf16[256,1024], index: 10, kind: input, shape index: {}]   ;;  %s15214_s11 = inlined_call_operand.vmem [shape: f32[1,1024], index: 11, kind: input, shape index: {}]   ;;  %s15215_s12 = inlined_call_operand.hbm [shape: bf16[1024,256], index: 12, kind: input, shape index: {}]   ;;  %s15216_s13 = inlined_call_operand.vmem [shape: f32[1,256], index: 13, kind: input, shape index: {}]   ;;  %s15217_s14 = inlined_call_operand.hbm [shape: f32[2,256,256], index: 14, kind: output, shape index: {}]  }
   0x1   :  { %15465 = sst [smem:[#allocation149_spill]] %s15205_s2 }
   0x2   :  { %15466 = sst [smem:[#allocation150_spill]] %s15206_s3 }
   0x3   :  { %15467 = sst [smem:[#allocation151_spill]] %s15210_s7 }
   0x4   :  { %15468 = sst [smem:[#allocation152_spill]] %s15212_s9 }
   0x5   :  { %15469 = sst [smem:[#allocation153_spill]] %s15214_s11 }
   0x6   :  { %15470 = sst [smem:[#allocation154_spill]] %s15216_s13 }
   0x7   :  { %15471 = sst [smem:[#allocation155_spill]] %s15217_s14 }
   0x8   :  { %19 = vsyncpa [#allocation7], 0 }
   0x9   :  { %20 = vsyncpa [#allocation10], 0 }
   0xa   :  { %21 = vsyncpa [#allocation13], 0 }
   0xb   :  { %22 = vsyncpa [#allocation16], 0 }
   0xc   :  { %23 = vsyncpa [#allocation8], 0 }
   0xd   :  { %25 = vsyncpa [#allocation8 + $0x1], 0  ;;  %s10659_s29 = smov 0   ;;  %s10661_s30 = smov 0  }
   0xe   :  { %s10663_s15 = smov 0   ;;  %s10665_s16 = smov 0  }
   0xf   :  { %s10667_s17 = smov 0   ;;  %s10669_s18 = smov 0  }
  0x10   :  { %s10671_s19 = smov 0   ;;  %s10673_s20 = smov 0  }
  0x11   :  { %s10675_s21 = smov 0   ;;  %s10677_s22 = smov 0  }
  0x12   :  { %s10679_s23 = smov 0  }
  0x13 LB: > { %15472 = sst [smem:[#allocation24_spill]] %s10528_s29  ;;  %s8367_s24 = sadd.s32 4294967295, %s10568_s23   ;;  %s10568_s23 = sphi %s10679_s23, %s31_s23   ;;  %s10564_s22 = sphi %s10677_s22, %s16057_s22   ;;  %s10560_s21 = sphi %s10675_s21, %s16056_s21   ;;  %s10556_s20 = sphi %s10673_s20, %s16062_s20   ;;  %s10552_s19 = sphi %s10671_s19, %s16054_s19   ;;  %s10548_s18 = sphi %s10669_s18, %s16053_s18   ;;  %s10544_s17 = sphi %s10667_s17, %s16061_s17   ;;  %s10540_s16 = sphi %s10665_s16, %s16060_s16   ;;  %s10536_s15 = sphi %s10663_s15, %s16051_s15   ;;  %s10532_s30 = sphi %s10661_s30, %s16059_s30   ;;  %s10528_s29 = sphi %s10659_s29, %s16058_s29  }
  0x14   : > { %15473 = sst [smem:[#allocation25_spill]] %s10536_s15  ;;  %s8368_s25 = sadd.s32 4294967294, %s10568_s23  }
  0x15   : > { %15474 = sst [smem:[#allocation26_spill]] %s10548_s18  ;;  %s40_s26 = sadd.s32 1, %s10560_s21 }
  0x16   : > { %15475 = sst [smem:[#allocation27_spill]] %s10560_s21  ;;  %s43_s27 = sadd.s32 1, %s10564_s22 }
  0x17   : > { %15476 = sst [smem:[#allocation28_spill]] %s10564_s22  ;;  %p41_p0 = scmp.ge.s32.totalorder %s40_s26, 2 }
  0x18   : > { %15477 = sst [smem:[#allocation29_spill]] %s10568_s23  ;;  %s76_s28 = sadd.s32 1, %s10548_s18 }
  0x19   : > { %p10719_p1 = scmp.eq.s32.totalorder %s8367_s24, 0  ;;  %s356_s13 = sadd.s32 1, %s10536_s15 }
  0x1a   : > { %s16064_s26 = smov (%p41_p0, %s40_s26), 0  ;;  %s16066_s27 = smov (!%p41_p0, %s43_s27), %s10564_s22 }
  0x1b   : > { %s15478_s14 = scalar_select %p10719_p1, 1, 0 }
  0x1c   : > { %15479 = sst [smem:[#allocation30_spill]] %s16064_s26  ;;  %s352_s11 = ssub.s32 %s10560_s21, %s16064_s26 }
  0x1d   : > { %p366_p2 = scmp.ne.s32.totalorder %s10536_s15, %s10532_s30  ;;  %p45_p3 = scmp.ge.s32.totalorder %s16066_s27, 2 }
  0x1e   : > { %p367_p4 = scmp.eq.s32.totalorder %s8367_s24, 3  ;;  %p372_p5 = scmp.ne.s32.totalorder %s10532_s30, %s10528_s29 }
  0x1f   : > { %p373_p6 = scmp.eq.s32.totalorder %s8368_s25, 3  ;;  %s16068_s27 = smov (%p45_p3, %s16066_s27), 0 }
  0x20   : > { %15480 = sst [smem:[#allocation31_spill]] %s16068_s27  ;;  %p10735_p7 = por %p367_p4, %p366_p2 }
  0x21   : > { %p10739_p8 = por %p373_p6, %p372_p5  ;;  %s73_s7 = ssub.s32 %s10564_s22, %s16068_s27 }
  0x22   : > { %s15481_s9 = scalar_select %p10735_p7, 1, 0 }
  0x23   : > { %s15483_s3 = scalar_select %p10739_p8, 1, 0 }
  0x24   : > { %15482 = sst [smem:[#allocation32_spill]] %s15481_s9  ;;  %p8369_p9 = scmp.ge.s32.totalorder %s10568_s23, 1 }
  0x25   : > { %15484 = sst [smem:[#allocation33_spill]] %s15483_s3  ;;  %p74_p10 = scmp.eq.s32.totalorder %s73_s7, 0 }
  0x26   : > { %s353_s26 = sor.u32 %s352_s11, %s73_s7  ;;  %p380_p12 = scmp.lt.s32.totalorder %s10568_s23, 5 }
  0x27   : > { %p354_p11 = scmp.eq.s32.totalorder %s353_s26, 0  ;;  %s10570_s29 = smov [#allocation9]  }
  0x28   : > { %s10748_s24 = scalar_select %p74_p10, %s10548_s18, %s76_s28  }
  0x29   : > { %s10751_s25 = scalar_select %p354_p11, %s10536_s15, %s356_s13  }
  0x2a   : > { %15485 = sst [smem:[#allocation34_spill]] %s10748_s24  ;;  %p10753_p13 = pnand %p8369_p9, %p380_p12 }
  0x2b   : > { %15486 = sst [smem:[#allocation35_spill]] %s10751_s25  ;;  %s408_s3 = sshll.u32 %s10570_s29, 4  ;;  %s409_s3 = int_to_ptr.vmem [resolvable:$true] %s408_s3 }
  0x2c   : > { %s15487_s21 = scalar_select %p10753_p13, 1, 0 }
  0x2d   : > { %p15226_p0 = pneg %p10753_p13  ;;  %s10571_s11 = smov [#allocation12]  }
  0x2e   : > { %s440_s13 = sshll.u32 %s10571_s11, 4  ;;  %s15489_s2 = sld [smem:[#allocation149_spill]]  ;;  %s10768_s13 = int_to_ptr.vmem [resolvable:$true] %s440_s13 }
  0x2f   : > { %p10764_p2 = pnand %p15226_p0, %p10719_p1 }
  0x31   : > { %s15488_s7 = scalar_select %p10764_p2, 1, 0 }
  0x32   : > { %p10778_p4 = pneg %p10764_p2 }
  0x34   : > { %s10236_s27 = scalar_lea.hbm %s15489_s2, 4096 }
  0x35   : > { %p10237_p3 = scmp.ne.s32.totalorder %s15489_s2, %s10236_s27  ;;  %p10243_p9 = scmp.lt.u32.totalorder %s10236_s27, %s15489_s2 }
  0x36   : > { %s15490_s29 = scalar_select %p10778_p4, 1, 0 }
  0x37   : > { %p10239_p5 = pnand %p10778_p4, %p10237_p3 }
  0x39   : > { %p10240_p6 = pneg %p10239_p5 }
  0x3b   : > { %p10245_p10 = pnand %p10243_p9, %p10240_p6 }
  0x3d   : > { %10248 = shalt.err (!%p10245_p10)
}
  0x3e   : > { %s10249_s26 = scalar_lea.vmem %s409_s3, 4096  ;;  %p10257_p8 = scmp.lt.s32.totalorder %s409_s3, %s409_s3 }
  0x3f   : > { %p10250_p11 = scmp.ne.s32.totalorder %s409_s3, %s10249_s26  ;;  %p10258_p7 = scmp.lt.s32.totalorder %s10249_s26, %s10249_s26 }
  0x41   : > { %p10252_p12 = pnand %p10250_p11, %p10778_p4  ;;  %p10259_p13 = por %p10258_p7, %p10257_p8 }
  0x43   : > { %p10253_p0 = pneg %p10252_p12 }
  0x45   : > { %p10260_p1 = pnand %p10259_p13, %p10253_p0 }
  0x47   : > { %10263 = shalt.err (!%p10260_p1)
}
  0x48   : > { %s15237_s22 = smov 128   ;;  %s10573_s24 = smov 8  }
  0x49   : > { %9142 = dma.hbm_to_vmem [thread:$0]  (!%p10764_p2), %s15489_s2, 4096, %s409_s3, [#allocation10], %s15237_s22, %s15237_s22, %s10573_s24  }
  0x4a   : > { %s10264_s25 = scalar_lea.hbm %s15209_s6, 4096 }
  0x4b   : > { %p10265_p1 = scmp.ne.s32.totalorder %s15209_s6, %s10264_s25  ;;  %p10271_p13 = scmp.lt.u32.totalorder %s10264_s25, %s15209_s6 }
  0x4d   : > { %p10267_p7 = pnand %p10265_p1, %p10778_p4 }
  0x4f   : > { %p10268_p8 = pneg %p10267_p7 }
  0x51   : > { %p10273_p0 = pnand %p10271_p13, %p10268_p8 }
  0x53   : > { %10276 = shalt.err (!%p10273_p0)
}
  0x54   : > { %s10277_s3 = scalar_lea.vmem %s10768_s13, 4096  ;;  %p10285_p9 = scmp.lt.s32.totalorder %s10768_s13, %s10768_s13 }
  0x55   : > { %p10278_p3 = scmp.ne.s32.totalorder %s10768_s13, %s10277_s3  ;;  %p10286_p10 = scmp.lt.s32.totalorder %s10277_s3, %s10277_s3 }
  0x57   : > { %p10280_p5 = pnand %p10278_p3, %p10778_p4  ;;  %p10287_p11 = por %p10286_p10, %p10285_p9 }
  0x59   : > { %p10281_p6 = pneg %p10280_p5 }
  0x5b   : > { %p10288_p12 = pnand %p10287_p11, %p10281_p6 }
  0x5d   : > { %10291 = shalt.err (!%p10288_p12)
}
  0x5e   : > { %9148 = dma.hbm_to_vmem [thread:$0]  (!%p10764_p2), %s15209_s6, 4096, %s10768_s13, [#allocation13], %s15237_s22, %s15237_s22, %s10573_s24  }
  0x5f   : > { %s10574_s23 = smov [#allocation15]   ;;  %s10292_s28 = scalar_lea.hbm %s15213_s10, 16384 }
  0x60   : > { %s472_s25 = sshll.u32 %s10574_s23, 4  ;;  %p10293_p1 = scmp.ne.s32.totalorder %s15213_s10, %s10292_s28  ;;  %s473_s25 = int_to_ptr.vmem [resolvable:$true] %s472_s25 }
  0x61   : > { %p10299_p13 = scmp.lt.u32.totalorder %s10292_s28, %s15213_s10 }
  0x62   : > { %p10295_p7 = pnand %p10293_p1, %p10778_p4 }
  0x64   : > { %p10296_p8 = pneg %p10295_p7 }
  0x66   : > { %p10301_p0 = pnand %p10299_p13, %p10296_p8 }
  0x68   : > { %10304 = shalt.err (!%p10301_p0)
}
  0x69   : > { %s10305_s13 = scalar_lea.vmem %s473_s25, 16384  ;;  %p10313_p9 = scmp.lt.s32.totalorder %s473_s25, %s473_s25 }
  0x6a   : > { %p10306_p3 = scmp.ne.s32.totalorder %s473_s25, %s10305_s13  ;;  %p10314_p10 = scmp.lt.s32.totalorder %s10305_s13, %s10305_s13 }
  0x6c   : > { %p10308_p5 = pnand %p10306_p3, %p10778_p4  ;;  %p10315_p11 = por %p10314_p10, %p10313_p9 }
  0x6e   : > { %p10309_p6 = pneg %p10308_p5 }
  0x70   : > { %p10316_p12 = pnand %p10315_p11, %p10309_p6 }
  0x72   : > { %10319 = shalt.err (!%p10316_p12)
}
  0x73   : > { %s10575_s9 = smov 512   ;;  %s10576_s2 = smov 32  }
  0x74   : > { %9154 = dma.hbm_to_vmem [thread:$0]  (!%p10764_p2), %s15213_s10, 16384, %s473_s25, [#allocation16], %s10575_s9, %s10575_s9, %s10576_s2  }
  0x75   : > { %p89_p1 = scmp.ne.s32.totalorder %s10544_s17, %s10540_s16  ;;  %s8784_s18 = sshll.u32 %s10556_s20, 12 }
  0x76   : > { %s10847_s11 = scalar_lea.hbm %s15204_s1, %s8784_s18  ;;  %p15491_p7 = scmp.ne.s32.totalorder %s15478_s14, 0 }
  0x77   : > { %s10577_s3 = smov [#allocation6]   ;;  %p15493_p13 = scmp.ne.s32.totalorder %s15487_s21, 0 }
  0x78   : > { %p10851_p8 = por %p15491_p7, %p89_p1  ;;  %s395_s13 = sshll.u32 %s10577_s3, 4  ;;  %s10855_s13 = int_to_ptr.vmem [resolvable:$true] %s395_s13 }
  0x79   : > { %p15494_p0 = pneg %p15493_p13  ;;  %s10578_s25 = smov [#allocation11]  }
  0x7a   : > { %s15492_s26 = scalar_select %p10851_p8, 1, 0 }
  0x7b   : > { %p10862_p3 = pnand %p15494_p0, %p10851_p8  ;;  %s424_s9 = sshll.u32 %s10578_s25, 4  ;;  %s10866_s9 = int_to_ptr.vmem [resolvable:$true] %s424_s9 }
  0x7c   : > { %s10579_s2 = smov [#allocation14]   ;;  %s10320_s23 = scalar_lea.hbm %s10847_s11, 4096 }
  0x7d   : > { %s10868_s15 = sshll.u32 %s10579_s2, 4  ;;  %p10321_p5 = scmp.ne.s32.totalorder %s10847_s11, %s10320_s23  ;;  %s457_s15 = int_to_ptr.vmem [resolvable:$true] %s10868_s15 }
  0x7e   : > { %p10322_p6 = pneg %p10862_p3  ;;  %s10325_s28 = scalar_lea.hbm %s15204_s1, 8192 }
  0x7f   : > { %p10326_p11 = scmp.lt.u32.totalorder %s10847_s11, %s15204_s1  ;;  %p10327_p12 = scmp.lt.u32.totalorder %s10325_s28, %s10320_s23 }
  0x80   : > { %p10323_p9 = pnand %p10322_p6, %p10321_p5  ;;  %p10329_p7 = scmp.lt.u32.totalorder %s10320_s23, %s10847_s11 }
  0x81   : > { %p10328_p1 = por %p10327_p12, %p10326_p11 }
  0x82   : > { %p10324_p10 = pneg %p10323_p9 }
  0x83   : > { %p10330_p0 = por %p10329_p7, %p10328_p1 }
  0x85   : > { %p10331_p8 = pnand %p10330_p0, %p10324_p10 }
  0x87   : > { %10334 = shalt.err (!%p10331_p8)
}
  0x88   : > { %s10335_s25 = scalar_lea.vmem %s10855_s13, 4096  ;;  %p10343_p2 = scmp.lt.s32.totalorder %s10855_s13, %s10855_s13 }
  0x89   : > { %p10336_p5 = scmp.ne.s32.totalorder %s10855_s13, %s10335_s25  ;;  %p10344_p4 = scmp.lt.s32.totalorder %s10335_s25, %s10335_s25 }
  0x8b   : > { %p10338_p9 = pnand %p10336_p5, %p10322_p6  ;;  %p10345_p11 = por %p10344_p4, %p10343_p2 }
  0x8d   : > { %p10339_p13 = pneg %p10338_p9 }
  0x8f   : > { %p10346_p12 = pnand %p10345_p11, %p10339_p13 }
  0x91   : > { %10349 = shalt.err (!%p10346_p12)
}
  0x92   : > { %s15496_s22 = smov 128   ;;  %s10350_s18 = scalar_lea.hbm %s15207_s4, 4096 }
  0x93   : > { %9139 = dma.hbm_to_vmem [thread:$0]  (!%p10862_p3), %s10847_s11, 4096, %s10855_s13, [#allocation7], %s15496_s22, %s15496_s22, %s10573_s24  }
  0x94   : > { %p10351_p8 = scmp.ne.s32.totalorder %s15207_s4, %s10350_s18  ;;  %p15497_p2 = scmp.ne.s32.totalorder %s15490_s29, 0 }
  0x95   : > { %p10357_p6 = scmp.lt.u32.totalorder %s10350_s18, %s15207_s4 }
  0x96   : > { %p10353_p4 = pnand %p10351_p8, %p15497_p2 }
  0x98   : > { %p10354_p13 = pneg %p10353_p4 }
  0x9a   : > { %p10359_p10 = pnand %p10357_p6, %p10354_p13 }
  0x9c   : > { %10362 = shalt.err (!%p10359_p10)
}
  0x9d   : > { %s10363_s11 = scalar_lea.vmem %s10866_s9, 4096  ;;  %p10371_p0 = scmp.lt.s32.totalorder %s10866_s9, %s10866_s9 }
  0x9e   : > { %p10364_p3 = scmp.ne.s32.totalorder %s10866_s9, %s10363_s11  ;;  %p10372_p5 = scmp.lt.s32.totalorder %s10363_s11, %s10363_s11 }
  0xa0   : > { %p10366_p1 = pnand %p10364_p3, %p15497_p2  ;;  %p10373_p9 = por %p10372_p5, %p10371_p0 }
  0xa2   : > { %p10367_p7 = pneg %p10366_p1 }
  0xa4   : > { %p10374_p11 = pnand %p10373_p9, %p10367_p7 }
  0xa6   : > { %10377 = shalt.err (!%p10374_p11)
}
  0xa7   : > { %p15498_p12 = scmp.ne.s32.totalorder %s15488_s7, 0  ;;  %s10378_s18 = scalar_lea.hbm %s15211_s8, 4096 }
  0xa8   : > { %p10379_p8 = scmp.ne.s32.totalorder %s15211_s8, %s10378_s18  ;;  %p10385_p6 = scmp.lt.u32.totalorder %s10378_s18, %s15211_s8 }
  0xa9   : > { %9145 = dma.hbm_to_vmem [thread:$0]  (!%p15498_p12), %s15207_s4, 4096, %s10866_s9, [#allocation10], %s15496_s22, %s15496_s22, %s10573_s24  }
  0xaa   : > { %p10381_p4 = pnand %p10379_p8, %p15497_p2 }
  0xac   : > { %p10382_p13 = pneg %p10381_p4 }
  0xae   : > { %p10387_p10 = pnand %p10385_p6, %p10382_p13 }
  0xb0   : > { %10390 = shalt.err (!%p10387_p10)
}
  0xb1   : > { %s10391_s11 = scalar_lea.vmem %s457_s15, 4096  ;;  %p10399_p0 = scmp.lt.s32.totalorder %s457_s15, %s457_s15 }
  0xb2   : > { %p10392_p3 = scmp.ne.s32.totalorder %s457_s15, %s10391_s11  ;;  %p10400_p5 = scmp.lt.s32.totalorder %s10391_s11, %s10391_s11 }
  0xb4   : > { %p10394_p1 = pnand %p10392_p3, %p15497_p2  ;;  %p10401_p9 = por %p10400_p5, %p10399_p0 }
  0xb6   : > { %p10395_p7 = pneg %p10394_p1 }
  0xb8   : > { %p10402_p11 = pnand %p10401_p9, %p10395_p7 }
  0xba   : > { %10405 = shalt.err (!%p10402_p11)
}
  0xbb   : > { %9151 = dma.hbm_to_vmem [thread:$0]  (!%p15498_p12), %s15211_s8, 4096, %s457_s15, [#allocation13], %s15496_s22, %s15496_s22, %s10573_s24  }
  0xbc   : > { %s10580_s25 = smov [#allocation17]   ;;  %s10406_s27 = scalar_lea.hbm %s15215_s12, 16384 }
  0xbd   : > { %s488_s2 = sshll.u32 %s10580_s25, 4  ;;  %p10407_p8 = scmp.ne.s32.totalorder %s15215_s12, %s10406_s27  ;;  %s489_s2 = int_to_ptr.vmem [resolvable:$true] %s488_s2 }
  0xbe   : > { %p10413_p6 = scmp.lt.u32.totalorder %s10406_s27, %s15215_s12 }
  0xbf   : > { %p10409_p4 = pnand %p10407_p8, %p15497_p2 }
  0xc1   : > { %p10410_p13 = pneg %p10409_p4 }
  0xc3   : > { %p10415_p10 = pnand %p10413_p6, %p10410_p13 }
  0xc5   : > { %10418 = shalt.err (!%p10415_p10)
}
  0xc6   : > { %s10419_s15 = scalar_lea.vmem %s489_s2, 16384  ;;  %p10427_p0 = scmp.lt.s32.totalorder %s489_s2, %s489_s2 }
  0xc7   : > { %p10420_p3 = scmp.ne.s32.totalorder %s489_s2, %s10419_s15  ;;  %p10428_p5 = scmp.lt.s32.totalorder %s10419_s15, %s10419_s15 }
  0xc9   : > { %p10422_p1 = pnand %p10420_p3, %p15497_p2  ;;  %p10429_p9 = por %p10428_p5, %p10427_p0 }
  0xcb   : > { %p10423_p7 = pneg %p10422_p1 }
  0xcd   : > { %p10430_p11 = pnand %p10429_p9, %p10423_p7 }
  0xcf   : > { %10433 = shalt.err (!%p10430_p11)
}
  0xd0   : > { %9157 = dma.hbm_to_vmem [thread:$0]  (!%p15498_p12), %s15215_s12, 16384, %s489_s2, [#allocation16], %s15496_s22, %s15496_s22, %s10573_s24  }
  0xd1   : > { %p15499_p8 = scmp.ne.s32.totalorder %s15487_s21, 0 }
  0xd3   : > { %515 = sbr.rel (%p15499_p8) target bundleno = 3676 (0xe5c), region = 76 }
  0xda   : > { %p15500_p2 = scmp.ne.s32.totalorder %s15492_s26, 0 }
  0xdc   : > { %10507 = dma.done.wait (%p15500_p2), [#allocation7], 4096  }
  0xdd   : > { %10509 = vsyncadd (%p15500_p2), [#allocation7], 4294963200  ;;  %p15501_p4 = scmp.ne.s32.totalorder %s15478_s14, 0 }
  0xdf   : > { %10511 = dma.done.wait (%p15501_p4), [#allocation10], 8192  }
  0xe0   : > { %10513 = vsyncadd (%p15501_p4), [#allocation10], 4294959104 }
  0xe1   : > { %10515 = dma.done.wait (%p15501_p4), [#allocation13], 8192  }
  0xe2   : > { %10517 = vsyncadd (%p15501_p4), [#allocation13], 4294959104 }
  0xe3   : > { %10519 = dma.done.wait (%p15501_p4), [#allocation16], 32768  }
  0xe4   : > { %10521 = vsyncadd (%p15501_p4), [#allocation16], 4294934528  ;;  %p585_p12 = scmp.lt.s32.totalorder %s10556_s20, 1  ;;  %s582_s21 = sand.u32 1, %s10532_s30  }
  0xe5   : > { %s8386_s7 = sshll.u32 %s582_s21, 8  ;;  %p8389_p13 = scmp.ne.s32.totalorder %s10552_s19, 0 }
  0xe6   : > { %s586_s29 = scalar_select %p585_p12, %s10556_s20, 1 }
  0xe7   : > { %s11004_s14 = scalar_lea.vmem [#allocation18], %s8386_s7  ;;  %599 = sbr.rel (%p8389_p13) target bundleno = 973 (0x3cd), region = 108 }
  0xe8   : > { %s8785_s24 = sshll.u32 %s586_s29, 4 }
  0xe9   : > { %s589_s25 = scalar_lea.vmem %s15203_s0, %s8785_s24 }
  0xea   : > { %v10994_v0 = vld [vmem:[%s589_s25] sm:$0x3f]  ;;  %v10996_v1 = vld [vmem:[%s589_s25 + $0x8] sm:$0x3f] }
  0xeb   : > { %15502 = vst [vmem:[#allocation36_spill] sm:$0xff] %v10994_v0  ;;  %15503 = vst [vmem:[#allocation37_spill] sm:$0xff] %v10996_v1  ;;  %v10999_v2 = vadd.f32 1.0, %v10994_v0  ;;  %v11002_v3 = vadd.f32 1.0, %v10996_v1 }
  0xed   : > { %15504 = vst [vmem:[#allocation38_spill] sm:$0xff] %v10999_v2  ;;  %15505 = vst [vmem:[#allocation39_spill] sm:$0xff] %v11002_v3 }
  0xee   : > { %v11007_v4 = vld [vmem:[#allocation6] sm:$0xff]  ;;  %v11009_v5 = vld [vmem:[#allocation6 + $0x8] sm:$0xff]  ;;  %v11011_v6 = vld [vmem:[#allocation6 + $0x10] sm:$0xff]  ;;  %s15597_s28 = sld [smem:[#allocation151_spill]] }
  0xef   : > { %v632_v7 = vunpack.c.l.bf16 %v11007_v4  ;;  %v633_v8 = vunpack.c.h.bf16 %v11007_v4  ;;  %v634_v9 = vunpack.c.l.bf16 %v11009_v5  ;;  %v635_v10 = vunpack.c.h.bf16 %v11009_v5  ;;  %v11017_v11 = vld [vmem:[#allocation6 + $0x18] sm:$0xff]  ;;  %v11023_v16 = vld [vmem:[#allocation6 + $0x20] sm:$0xff]  ;;  %v11029_v18 = vld [vmem:[#allocation6 + $0x28] sm:$0xff] }
  0xf0   : > { %v636_v12 = vunpack.c.l.bf16 %v11011_v6  ;;  %v637_v13 = vunpack.c.h.bf16 %v11011_v6  ;;  %v638_v14 = vunpack.c.l.bf16 %v11017_v11  ;;  %v639_v15 = vunpack.c.h.bf16 %v11017_v11  ;;  %v11047_v26 = vld [vmem:[#allocation6 + $0x30] sm:$0xff]  ;;  %v11049_v27 = vld [vmem:[#allocation6 + $0x38] sm:$0xff]  ;;  %v11051_v28 = vld [vmem:[#allocation6 + $0x40] sm:$0xff] }
  0xf1   : > { %v696_v17 = vadd.f32 %v633_v8, %v632_v7  ;;  %v699_v20 = vadd.f32 %v635_v10, %v634_v9  ;;  %v640_v21 = vunpack.c.l.bf16 %v11023_v16  ;;  %v641_v22 = vunpack.c.h.bf16 %v11023_v16  ;;  %v11059_v32 = vld [vmem:[#allocation6 + $0x48] sm:$0xff]  ;;  %v11067_v36 = vld [vmem:[#allocation6 + $0x50] sm:$0xff]  ;;  %v11075_v40 = vld [vmem:[#allocation6 + $0x58] sm:$0xff] }
  0xf2   : > { %v702_v19 = vadd.f32 %v637_v13, %v636_v12  ;;  %v705_v23 = vadd.f32 %v639_v15, %v638_v14  ;;  %v642_v24 = vunpack.c.l.bf16 %v11029_v18  ;;  %v643_v25 = vunpack.c.h.bf16 %v11029_v18  ;;  %v11083_v44 = vld [vmem:[#allocation6 + $0x60] sm:$0xff]  ;;  %v11091_v48 = vld [vmem:[#allocation6 + $0x68] sm:$0xff]  ;;  %v11099_v52 = vld [vmem:[#allocation6 + $0x70] sm:$0xff] }
  0xf3   : > { %697 = vadd.xlane.f32.xlu0 %v696_v17  ;;  %v708_v29 = vadd.f32 %v641_v22, %v640_v21  ;;  %v644_v30 = vunpack.c.l.bf16 %v11047_v26  ;;  %v645_v31 = vunpack.c.h.bf16 %v11047_v26  ;;  %v646_v34 = vunpack.c.l.bf16 %v11049_v27  ;;  %v11107_v56 = vld [vmem:[#allocation6 + $0x78] sm:$0xff]  ;;  %v11115_v60 = vld [vmem:[#allocation6 + $0x80] sm:$0xff] }
  0xf4   : > { %703 = vadd.xlane.f32.xlu1 %v702_v19  ;;  %v711_v33 = vadd.f32 %v643_v25, %v642_v24  ;;  %v647_v35 = vunpack.c.h.bf16 %v11049_v27  ;;  %v15282_v38 = vunpack.c.l.bf16 %v11051_v28  ;;  %v15279_v39 = vunpack.c.h.bf16 %v11051_v28 }
  0xf5   : > { %v714_v37 = vadd.f32 %v645_v31, %v644_v30  ;;  %v15278_v42 = vunpack.c.l.bf16 %v11059_v32  ;;  %v15277_v43 = vunpack.c.h.bf16 %v11059_v32  ;;  %v15274_v46 = vunpack.c.l.bf16 %v11067_v36 }
  0xf6   : > { %v717_v41 = vadd.f32 %v647_v35, %v646_v34  ;;  %v720_v45 = vadd.f32 %v15279_v39, %v15282_v38  ;;  %v15269_v47 = vunpack.c.h.bf16 %v11067_v36  ;;  %v15268_v50 = vunpack.c.l.bf16 %v11075_v40  ;;  %v9335_v39 = vld [vmem:[#allocation12 + $0x90] ss:$8 sps:$4 sm:$0xff]   ;;  %v9344_v38 = vld [vmem:[#allocation12 + $0xb4] ss:$8 sps:$4 sm:$0xff]  }
  0xf7   : > { %700 = vadd.xlane.f32.xlu0 %v699_v20  ;;  %v723_v49 = vadd.f32 %v15277_v43, %v15278_v42  ;;  %v15267_v51 = vunpack.c.h.bf16 %v11075_v40  ;;  %v15260_v54 = vunpack.c.l.bf16 %v11083_v44  ;;  %v15259_v55 = vunpack.c.h.bf16 %v11083_v44  ;;  %v9332_v43 = vld [vmem:[#allocation12 + $0x94] ss:$8 sps:$4 sm:$0xff]   ;;  %v9334_v42 = vld [vmem:[#allocation11 + $0x90] ss:$8 sps:$4 sm:$0xff]  }
  0xf8   : > { %706 = vadd.xlane.f32.xlu1 %v705_v23  ;;  %v726_v53 = vadd.f32 %v15269_v47, %v15274_v46  ;;  %v15254_v58 = vunpack.c.l.bf16 %v11091_v48  ;;  %v15249_v59 = vunpack.c.h.bf16 %v11091_v48  ;;  %v15248_v62 = vunpack.c.l.bf16 %v11099_v52  ;;  %v11129_v23 = vld [vmem:[#allocation6 + $0x88] sm:$0xff] }
  0xf9   : > { %v729_v57 = vadd.f32 %v15267_v51, %v15268_v50  ;;  %v732_v61 = vadd.f32 %v15259_v55, %v15260_v54  ;;  %v15245_v63 = vunpack.c.h.bf16 %v11099_v52  ;;  %v15247_v19 = vunpack.c.l.bf16 %v11107_v56  ;;  %v9282_v55 = vld [vmem:[#allocation11 + $0x14] ss:$8 sps:$4 sm:$0xff]  }
  0xfa   : > { %v735_v17 = vadd.f32 %v15249_v59, %v15254_v58  ;;  %v15246_v20 = vunpack.c.h.bf16 %v11107_v56  ;;  %v11161_v59 = vld [vmem:[#allocation6 + $0xa8] sm:$0xff]  ;;  %v9284_v54 = vld [vmem:[#allocation12 + $0x14] ss:$8 sps:$4 sm:$0xff]  }
  0xfb   : > { %709 = vadd.xlane.f32.xlu0 %v708_v29  ;;  %v738_v29 = vadd.f32 %v15245_v63, %v15248_v62  ;;  %v15263_v58 = vunpack.c.h.bf16 %v11161_v59 }
  0xfc   : > { %712 = vadd.xlane.f32.xlu1 %v711_v33  ;;  %v15251_v33 = vunpack.c.l.bf16 %v11115_v60 }
  0xff   : > { %715 = vadd.xlane.f32.xlu0 %v714_v37  ;;  %v15250_v37 = vunpack.c.h.bf16 %v11115_v60 }
 0x100   : > { %718 = vadd.xlane.f32.xlu1 %v717_v41  ;;  %v741_v41 = vadd.f32 %v15246_v20, %v15247_v19 }
 0x103   : > { %721 = vadd.xlane.f32.xlu0 %v720_v45  ;;  %v15253_v45 = vunpack.c.l.bf16 %v11129_v23 }
 0x104   : > { %724 = vadd.xlane.f32.xlu1 %v723_v49  ;;  %v15252_v49 = vunpack.c.h.bf16 %v11129_v23 }
 0x106   : > { %v747_v20 = vadd.f32 %v15252_v49, %v15253_v45  ;;  %v15264_v45 = vunpack.c.l.bf16 %v11161_v59 }
 0x107   : > { %727 = vadd.xlane.f32.xlu0 %v726_v53  ;;  %v11143_v53 = vld [vmem:[#allocation6 + $0x90] sm:$0xff] }
 0x108   : > { %730 = vadd.xlane.f32.xlu1 %v729_v57  ;;  %v11145_v57 = vld [vmem:[#allocation6 + $0x98] sm:$0xff]  ;;  %v15255_v63 = vunpack.c.h.bf16 %v11143_v53 }
 0x109   : > { %v15257_v19 = vunpack.c.l.bf16 %v11145_v57  ;;  %v15256_v62 = vunpack.c.h.bf16 %v11145_v57 }
 0x10b   : > { %733 = vadd.xlane.f32.xlu0 %v732_v61  ;;  %v744_v61 = vadd.f32 %v15250_v37, %v15251_v33  ;;  %v753_v49 = vadd.f32 %v15256_v62, %v15257_v19  ;;  %v9278_v62 = vld [vmem:[#allocation12 + $0x4] ss:$8 sps:$4 sm:$0xff]   ;;  %v9280_v19 = vld [vmem:[#allocation11] ss:$8 sps:$4 sm:$0xff]  }
 0x10c   : > { %736 = vadd.xlane.f32.xlu1 %v735_v17  ;;  %v15258_v17 = vunpack.c.l.bf16 %v11143_v53  ;;  %2051 = vmatprep.subr.bf16.mxu1 %v9278_v62  ;;  %v9299_v62 = vld [vmem:[#allocation12 + $0x30] ss:$8 sps:$4 sm:$0xff]  }
 0x10e   : > { %v750_v37 = vadd.f32 %v15255_v63, %v15258_v17  ;;  %v9276_v63 = vld [vmem:[#allocation11 + $0x4] ss:$8 sps:$4 sm:$0xff]   ;;  %v9281_v17 = vld [vmem:[#allocation12] ss:$8 sps:$4 sm:$0xff]  }
 0x10f   : > { %739 = vadd.xlane.f32.xlu0 %v738_v29  ;;  %v11159_v29 = vld [vmem:[#allocation6 + $0xa0] sm:$0xff]  ;;  %1589 = vmatprep.subr.bf16.mxu0 %v9276_v63  ;;  %v9298_v63 = vld [vmem:[#allocation11 + $0x30] ss:$8 sps:$4 sm:$0xff]  }
 0x110   : > { %742 = vadd.xlane.f32.xlu1 %v741_v41  ;;  %v15262_v41 = vunpack.c.l.bf16 %v11159_v29  ;;  %v15261_v33 = vunpack.c.h.bf16 %v11159_v29  ;;  %1590 = vmatpush1.bf16.msra.mxu0 %v9280_v19  ;;  %v9300_v19 = vld [vmem:[#allocation11 + $0x44] ss:$8 sps:$4 sm:$0xff]  }
 0x111   : > { %2052 = vmatpush1.bf16.msra.mxu1 %v9281_v17  ;;  %1591 = vmatprep.subr.bf16.mxu0 %v9282_v55  ;;  %v9302_v17 = vld [vmem:[#allocation12 + $0x44] ss:$8 sps:$4 sm:$0xff]   ;;  %v9305_v55 = vld [vmem:[#allocation12 + $0x40] ss:$8 sps:$4 sm:$0xff]  }
 0x112   : > { %2053 = vmatprep.subr.bf16.mxu1 %v9284_v54  ;;  %v9304_v54 = vld [vmem:[#allocation11 + $0x40] ss:$8 sps:$4 sm:$0xff]  }
 0x113   : > { %745 = vadd.xlane.f32.xlu0 %v744_v61  ;;  %v756_v61 = vadd.f32 %v15261_v33, %v15262_v41  ;;  %v9287_v33 = vld [vmem:[#allocation12 + $0x10] ss:$8 sps:$4 sm:$0xff]   ;;  %v9290_v41 = vld [vmem:[#allocation12 + $0x24] ss:$8 sps:$4 sm:$0xff]  }
 0x114   : > { %748 = vadd.xlane.f32.xlu1 %v747_v20  ;;  %v759_v20 = vadd.f32 %v15263_v58, %v15264_v45  ;;  %v9294_v58 = vld [vmem:[#allocation11 + $0x34] ss:$8 sps:$4 sm:$0xff]  }
 0x115   : > { %2054 = vmatpush1.bf16.msra.mxu1 %v9287_v33  ;;  %v9296_v45 = vld [vmem:[#allocation12 + $0x34] ss:$8 sps:$4 sm:$0xff]  }
 0x116   : > { %2055 = vmatprep.subr.bf16.mxu1 %v9290_v41  ;;  %v9306_v33 = vld [vmem:[#allocation11 + $0x54] ss:$8 sps:$4 sm:$0xff]   ;;  %v9310_v41 = vld [vmem:[#allocation11 + $0x50] ss:$8 sps:$4 sm:$0xff]  }
 0x117   : > { %751 = vadd.xlane.f32.xlu0 %v750_v37  ;;  %v9286_v37 = vld [vmem:[#allocation11 + $0x10] ss:$8 sps:$4 sm:$0xff]  }
 0x118   : > { %754 = vadd.xlane.f32.xlu1 %v753_v49  ;;  %v9288_v49 = vld [vmem:[#allocation11 + $0x24] ss:$8 sps:$4 sm:$0xff]   ;;  %1592 = vmatpush1.bf16.msra.mxu0 %v9286_v37  ;;  %v9308_v37 = vld [vmem:[#allocation12 + $0x54] ss:$8 sps:$4 sm:$0xff]  }
 0x119   : > { %1593 = vmatprep.subr.bf16.mxu0 %v9288_v49  ;;  %v9311_v49 = vld [vmem:[#allocation12 + $0x50] ss:$8 sps:$4 sm:$0xff]  }
 0x11b   : > { %757 = vadd.xlane.f32.xlu0 %v756_v61  ;;  %v9292_v61 = vld [vmem:[#allocation11 + $0x20] ss:$8 sps:$4 sm:$0xff]  }
 0x11c   : > { %760 = vadd.xlane.f32.xlu1 %v759_v20  ;;  %v9293_v20 = vld [vmem:[#allocation12 + $0x20] ss:$8 sps:$4 sm:$0xff]   ;;  %1594 = vmatpush1.bf16.msra.mxu0 %v9292_v61  ;;  %v9312_v61 = vld [vmem:[#allocation11 + $0x64] ss:$8 sps:$4 sm:$0xff]  }
 0x11d   : > { %2056 = vmatpush1.bf16.msra.mxu1 %v9293_v20  ;;  %1595 = vmatprep.subr.bf16.mxu0 %v9294_v58  ;;  %v9314_v20 = vld [vmem:[#allocation12 + $0x64] ss:$8 sps:$4 sm:$0xff]   ;;  %v9316_v58 = vld [vmem:[#allocation11 + $0x60] ss:$8 sps:$4 sm:$0xff]  }
 0x11e   : > { %2057 = vmatprep.subr.bf16.mxu1 %v9296_v45  ;;  %v9317_v45 = vld [vmem:[#allocation12 + $0x60] ss:$8 sps:$4 sm:$0xff]  }
 0x120   : > { %1596 = vmatpush1.bf16.msra.mxu0 %v9298_v63  ;;  %v9318_v63 = vld [vmem:[#allocation11 + $0x74] ss:$8 sps:$4 sm:$0xff]  }
 0x121   : > { %2058 = vmatpush1.bf16.msra.mxu1 %v9299_v62  ;;  %1597 = vmatprep.subr.bf16.mxu0 %v9300_v19  ;;  %v9320_v62 = vld [vmem:[#allocation12 + $0x74] ss:$8 sps:$4 sm:$0xff]   ;;  %v9322_v19 = vld [vmem:[#allocation11 + $0x70] ss:$8 sps:$4 sm:$0xff]  }
 0x122   : > { %2059 = vmatprep.subr.bf16.mxu1 %v9302_v17  ;;  %v9323_v17 = vld [vmem:[#allocation12 + $0x70] ss:$8 sps:$4 sm:$0xff]  }
 0x124   : > { %1598 = vmatpush1.bf16.msra.mxu0 %v9304_v54  ;;  %v9324_v54 = vld [vmem:[#allocation11 + $0x84] ss:$8 sps:$4 sm:$0xff]  }
 0x125   : > { %2060 = vmatpush1.bf16.msra.mxu1 %v9305_v55  ;;  %1599 = vmatprep.subr.bf16.mxu0 %v9306_v33  ;;  %v9326_v55 = vld [vmem:[#allocation12 + $0x84] ss:$8 sps:$4 sm:$0xff]   ;;  %v9328_v33 = vld [vmem:[#allocation11 + $0x80] ss:$8 sps:$4 sm:$0xff]  }
 0x126   : > { %2061 = vmatprep.subr.bf16.mxu1 %v9308_v37  ;;  %v9329_v37 = vld [vmem:[#allocation12 + $0x80] ss:$8 sps:$4 sm:$0xff]  }
 0x128   : > { %1600 = vmatpush1.bf16.msra.mxu0 %v9310_v41  ;;  %v11183_v41 = vld [vmem:[#allocation6 + $0xb0] sm:$0xff] }
 0x129   : > { %2062 = vmatpush1.bf16.msra.mxu1 %v9311_v49  ;;  %1601 = vmatprep.subr.bf16.mxu0 %v9312_v61 }
 0x12a   : > { %2063 = vmatprep.subr.bf16.mxu1 %v9314_v20 }
 0x12c   : > { %1602 = vmatpush1.bf16.msra.mxu0 %v9316_v58 }
 0x12d   : > { %2064 = vmatpush1.bf16.msra.mxu1 %v9317_v45  ;;  %1603 = vmatprep.subr.bf16.mxu0 %v9318_v63  ;;  %v15266_v45 = vunpack.c.l.bf16 %v11183_v41  ;;  %v15265_v63 = vunpack.c.h.bf16 %v11183_v41 }
 0x12e   : > { %2065 = vmatprep.subr.bf16.mxu1 %v9320_v62 }
 0x130   : > { %1604 = vmatpush1.bf16.msra.mxu0 %v9322_v19 }
 0x131   : > { %2066 = vmatpush1.bf16.msra.mxu1 %v9323_v17  ;;  %1605 = vmatprep.subr.bf16.mxu0 %v9324_v54 }
 0x132   : > { %2067 = vmatprep.subr.bf16.mxu1 %v9326_v55 }
 0x134   : > { %1606 = vmatpush1.bf16.msra.mxu0 %v9328_v33  ;;  %v11203_v33 = vld [vmem:[#allocation6 + $0xb8] sm:$0xff] }
 0x135   : > { %2068 = vmatpush1.bf16.msra.mxu1 %v9329_v37 }
 0x136   : > { %2069 = vmatprep.subr.bf16.mxu1 %v9332_v43 }
 0x139   : > { %2070 = vmatpush1.bf16.msra.mxu1 %v9335_v39 }
 0x180   : > { %v698_v49 = vpop.xlane.xlu0 %697 }
 0x181   : > { %v793_v61 = vmul.f32 0.00390625, %v698_v49  ;;  %v704_v20 = vpop.xlane.xlu1 %703 }
 0x182   : > { %v795_v58 = vmul.f32 0.00390625, %v704_v20  ;;  %v15273_v20 = vunpack.c.l.bf16 %v11203_v33 }
 0x183   : > { %v11189_v62 = vsub.f32 %v632_v7, %v793_v61  ;;  %v11193_v19 = vsub.f32 %v633_v8, %v793_v61 }
 0x184   : > { %v701_v17 = vpop.xlane.xlu0 %700  ;;  %v11197_v54 = vsub.f32 %v636_v12, %v795_v58  ;;  %v11201_v55 = vsub.f32 %v637_v13, %v795_v58  ;;  %v762_v12 = vadd.f32 %v15265_v63, %v15266_v45  ;;  %v11231_v45 = vld [vmem:[#allocation6 + $0xc0] sm:$0xff] }
 0x185   : > { %v794_v37 = vmul.f32 0.00390625, %v701_v17  ;;  %v889_v7 = vmul.f32 %v11189_v62, %v11189_v62  ;;  %v890_v4 = vmul.f32 %v11193_v19, %v11193_v19  ;;  %v707_v8 = vpop.xlane.xlu1 %706  ;;  %v15272_v51 = vunpack.c.l.bf16 %v11231_v45 }
 0x186   : > { %v796_v49 = vmul.f32 0.00390625, %v707_v8  ;;  %v893_v8 = vmul.f32 %v11197_v54, %v11197_v54  ;;  %v894_v63 = vmul.f32 %v11201_v55, %v11201_v55  ;;  %v15271_v50 = vunpack.c.h.bf16 %v11231_v45 }
 0x187   : > { %v11215_v6 = vsub.f32 %v634_v9, %v794_v37  ;;  %v11219_v13 = vsub.f32 %v635_v10, %v794_v37  ;;  %v953_v61 = vadd.f32 %v890_v4, %v889_v7  ;;  %v15270_v9 = vunpack.c.h.bf16 %v11203_v33 }
 0x188   : > { %v11224_v58 = vsub.f32 %v638_v14, %v796_v49  ;;  %v710_v17 = vpop.xlane.xlu0 %709  ;;  %v11235_v5 = vsub.f32 %v639_v15, %v796_v49  ;;  %v959_v47 = vadd.f32 %v894_v63, %v893_v8  ;;  %v11259_v8 = vld [vmem:[#allocation6 + $0xc8] sm:$0xff] }
 0x189   : > { %954 = vadd.xlane.f32.xlu0 %v953_v61  ;;  %v891_v10 = vmul.f32 %v11215_v6, %v11215_v6  ;;  %v892_v14 = vmul.f32 %v11219_v13, %v11219_v13  ;;  %v797_v37 = vmul.f32 0.00390625, %v710_v17  ;;  %v713_v7 = vpop.xlane.xlu1 %712  ;;  %v765_v11 = vadd.f32 %v15270_v9, %v15273_v20 }
 0x18a   : > { %v798_v15 = vmul.f32 0.00390625, %v713_v7  ;;  %v895_v49 = vmul.f32 %v11224_v58, %v11224_v58  ;;  %v896_v63 = vmul.f32 %v11235_v5, %v11235_v5 }
 0x18b   : > { %v956_v4 = vadd.f32 %v892_v14, %v891_v10  ;;  %v11251_v17 = vsub.f32 %v640_v21, %v797_v37  ;;  %v11255_v10 = vsub.f32 %v641_v22, %v797_v37  ;;  %v768_v14 = vadd.f32 %v15271_v50, %v15272_v51  ;;  %v11275_v37 = vld [vmem:[#allocation6 + $0xd0] sm:$0xff] }
 0x18c   : > { %v716_v61 = vpop.xlane.xlu0 %715  ;;  %v11267_v7 = vsub.f32 %v642_v24, %v798_v15  ;;  %v11271_v16 = vsub.f32 %v643_v25, %v798_v15  ;;  %v15276_v21 = vunpack.c.l.bf16 %v11259_v8  ;;  %v15275_v22 = vunpack.c.h.bf16 %v11259_v8 }
 0x18d   : > { %763 = vadd.xlane.f32.xlu0 %v762_v12  ;;  %957 = vadd.xlane.f32.xlu1 %v956_v4  ;;  %v719_v12 = vpop.xlane.xlu1 %718  ;;  %v962_v9 = vadd.f32 %v896_v63, %v895_v49  ;;  %v799_v50 = vmul.f32 0.00390625, %v716_v61  ;;  %v897_v51 = vmul.f32 %v11251_v17, %v11251_v17  ;;  %v898_v24 = vmul.f32 %v11255_v10, %v11255_v10 }
 0x18e   : > { %15506 = vst [vmem:[#allocation40_spill] sm:$0xff] %v11267_v7  ;;  %v15281_v18 = vunpack.c.l.bf16 %v11275_v37  ;;  %v15280_v25 = vunpack.c.h.bf16 %v11275_v37  ;;  %v771_v20 = vadd.f32 %v15275_v22, %v15276_v21  ;;  %v900_v49 = vmul.f32 %v11271_v16, %v11271_v16  ;;  %v9330_v21 = vld [vmem:[#allocation11 + $0x94] ss:$8 sps:$4 sm:$0xff]  }
 0x18f   : > { %v11295_v63 = vsub.f32 %v644_v30, %v799_v50  ;;  %v11299_v46 = vsub.f32 %v645_v31, %v799_v50  ;;  %v965_v22 = vadd.f32 %v898_v24, %v897_v51  ;;  %1607 = vmatprep.subr.bf16.mxu0 %v9330_v21  ;;  %v11317_v51 = vld [vmem:[#allocation6 + $0xe0] sm:$0xff] }
 0x190   : > { %v722_v4 = vpop.xlane.xlu0 %721  ;;  %1608 = vmatpush1.bf16.msra.mxu0 %v9334_v42  ;;  %v9338_v24 = vld [vmem:[#allocation12 + $0xa4] ss:$8 sps:$4 sm:$0xff]   ;;  %v9342_v42 = vld [vmem:[#allocation11 + $0xb4] ss:$8 sps:$4 sm:$0xff]  }
 0x191   : > { %960 = vadd.xlane.f32.xlu0 %v959_v47  ;;  %766 = vadd.xlane.f32.xlu1 %v765_v11  ;;  %v725_v15 = vpop.xlane.xlu1 %724  ;;  %v800_v47 = vmul.f32 0.00390625, %v719_v12  ;;  %v899_v11 = vmul.f32 %v11267_v7, %v11267_v7  ;;  %15507 = vst [vmem:[#allocation41_spill] sm:$0xff] %v11295_v63  ;;  %15508 = vst [vmem:[#allocation42_spill] sm:$0xff] %v11299_v46  ;;  %v11301_v12 = vld [vmem:[#allocation6 + $0xd8] sm:$0xff]  ;;  %v801_v43 = vmul.f32 0.00390625, %v722_v4 }
 0x192   : > { %v15284_v31 = vunpack.c.l.bf16 %v11301_v12  ;;  %v15283_v50 = vunpack.c.h.bf16 %v11301_v12  ;;  %v902_v27 = vmul.f32 %v11299_v46, %v11299_v46  ;;  %2071 = vmatprep.subr.bf16.mxu1 %v9338_v24  ;;  %v15533_v46 = vunpack.c.h.bf16 %v11083_v44 }
 0x193   : > { %v11309_v26 = vsub.f32 %v646_v34, %v800_v47  ;;  %v11313_v30 = vsub.f32 %v647_v35, %v800_v47  ;;  %v968_v21 = vadd.f32 %v900_v49, %v899_v11  ;;  %v901_v34 = vmul.f32 %v11295_v63, %v11295_v63  ;;  %v9336_v35 = vld [vmem:[#allocation11 + $0xa4] ss:$8 sps:$4 sm:$0xff]   ;;  %v9347_v63 = vld [vmem:[#allocation12 + $0xb0] ss:$8 sps:$4 sm:$0xff]  }
 0x194   : > { %v11291_v61 = vpop.xlane.xlu0 %727  ;;  %1609 = vmatprep.subr.bf16.mxu0 %v9336_v35  ;;  %v777_v39 = vadd.f32 %v15283_v50, %v15284_v31  ;;  %v15511_v11 = vunpack.c.l.bf16 %v11051_v28  ;;  %v15513_v35 = vunpack.c.h.bf16 %v11051_v28 }
 0x195   : > { %769 = vadd.xlane.f32.xlu0 %v768_v14  ;;  %963 = vadd.xlane.f32.xlu1 %v962_v9  ;;  %v774_v9 = vadd.f32 %v15280_v25, %v15281_v18  ;;  %v731_v14 = vpop.xlane.xlu1 %730  ;;  %15509 = vst [vmem:[#allocation43_spill] sm:$0xff] %v11309_v26  ;;  %15510 = vst [vmem:[#allocation44_spill] sm:$0xff] %v11313_v30  ;;  %v9340_v25 = vld [vmem:[#allocation11 + $0xa0] ss:$8 sps:$4 sm:$0xff]   ;;  %v904_v4 = vmul.f32 %v11313_v30, %v11313_v30 }
 0x196   : > { %v9341_v18 = vld [vmem:[#allocation12 + $0xa0] ss:$8 sps:$4 sm:$0xff]   ;;  %1610 = vmatpush1.bf16.msra.mxu0 %v9340_v25  ;;  %v11335_v49 = vsub.f32 %v15511_v11, %v801_v43  ;;  %v11339_v24 = vsub.f32 %v15513_v35, %v801_v43  ;;  %v971_v50 = vadd.f32 %v902_v27, %v901_v34  ;;  %v15516_v25 = vunpack.c.h.bf16 %v11317_v51  ;;  %v11357_v35 = vld [vmem:[#allocation6 + $0xf0] sm:$0xff] }
 0x197   : > { %2072 = vmatpush1.bf16.msra.mxu1 %v9341_v18  ;;  %v15515_v18 = vunpack.c.l.bf16 %v11317_v51  ;;  %1611 = vmatprep.subr.bf16.mxu0 %v9342_v42  ;;  %v15519_v43 = vunpack.c.h.bf16 %v11059_v32  ;;  %v803_v42 = vmul.f32 0.00390625, %v11291_v61  ;;  %v15522_v11 = vunpack.c.l.bf16 %v11067_v36 }
 0x198   : > { %v734_v47 = vpop.xlane.xlu0 %733  ;;  %15512 = vst [vmem:[#allocation45_spill] sm:$0xff] %v11335_v49  ;;  %15514 = vst [vmem:[#allocation46_spill] sm:$0xff] %v11339_v24  ;;  %2073 = vmatprep.subr.bf16.mxu1 %v9344_v38 }
 0x199   : > { %772 = vadd.xlane.f32.xlu1 %v771_v20  ;;  %966 = vadd.xlane.f32.xlu0 %v965_v22  ;;  %v802_v20 = vmul.f32 0.00390625, %v725_v15  ;;  %v903_v22 = vmul.f32 %v11309_v26, %v11309_v26  ;;  %v11341_v15 = vld [vmem:[#allocation6 + $0xe8] sm:$0xff]  ;;  %v737_v31 = vpop.xlane.xlu1 %736  ;;  %v9346_v26 = vld [vmem:[#allocation11 + $0xb0] ss:$8 sps:$4 sm:$0xff]  }
 0x19a   : > { %v15290_v27 = vunpack.c.l.bf16 %v11341_v15  ;;  %1612 = vmatpush1.bf16.msra.mxu0 %v9346_v26  ;;  %v15521_v61 = vunpack.c.h.bf16 %v11341_v15 }
 0x19b   : > { %v11353_v34 = vsub.f32 %v15519_v43, %v802_v20  ;;  %2074 = vmatpush1.bf16.msra.mxu1 %v9347_v63  ;;  %v974_v38 = vadd.f32 %v904_v4, %v903_v22  ;;  %v9352_v63 = vld [vmem:[#allocation11 + $0xc0] ss:$8 sps:$4 sm:$0xff]   ;;  %v805_v22 = vmul.f32 0.00390625, %v734_v47 }
 0x19c   : > { %v740_v30 = vpop.xlane.xlu0 %739 }
 0x19d   : > { %969 = vadd.xlane.f32.xlu1 %v968_v21  ;;  %775 = vadd.xlane.f32.xlu0 %v774_v9  ;;  %v780_v9 = vadd.f32 %v15516_v25, %v15515_v18  ;;  %v15517_v21 = vunpack.c.l.bf16 %v11059_v32  ;;  %15520 = vst [vmem:[#allocation48_spill] sm:$0xff] %v11353_v34  ;;  %v905_v18 = vmul.f32 %v11335_v49, %v11335_v49  ;;  %v9350_v25 = vld [vmem:[#allocation12 + $0xc4] ss:$8 sps:$4 sm:$0xff]   ;;  %v743_v26 = vpop.xlane.xlu1 %742  ;;  %v807_v7 = vmul.f32 0.00390625, %v740_v30 }
 0x19e   : > { %v906_v32 = vmul.f32 %v11339_v24, %v11339_v24  ;;  %2075 = vmatprep.subr.bf16.mxu1 %v9350_v25  ;;  %v15524_v25 = vunpack.c.h.bf16 %v11067_v36  ;;  %v11382_v24 = vld [vmem:[#allocation6 + $0xf8] sm:$0xff]  ;;  %v15529_v36 = vunpack.c.l.bf16 %v11357_v35  ;;  %v9362_v30 = vld [vmem:[#allocation12 + $0xe4] ss:$8 sps:$4 sm:$0xff]  }
 0x19f   : > { %v11349_v28 = vsub.f32 %v15517_v21, %v802_v20  ;;  %v9348_v20 = vld [vmem:[#allocation11 + $0xc4] ss:$8 sps:$4 sm:$0xff]   ;;  %v804_v21 = vmul.f32 0.00390625, %v731_v14  ;;  %v908_v14 = vmul.f32 %v11353_v34, %v11353_v34  ;;  %v9359_v34 = vld [vmem:[#allocation12 + $0xd0] ss:$8 sps:$4 sm:$0xff]  }
 0x1a0   : > { %1613 = vmatprep.subr.bf16.mxu0 %v9348_v20  ;;  %v11376_v20 = vsub.f32 %v15522_v11, %v803_v42  ;;  %v11380_v43 = vsub.f32 %v15524_v25, %v803_v42  ;;  %v977_v49 = vadd.f32 %v906_v32, %v905_v18  ;;  %v746_v47 = vpop.xlane.xlu0 %745  ;;  %v15530_v42 = vunpack.c.h.bf16 %v11357_v35  ;;  %v9358_v25 = vld [vmem:[#allocation11 + $0xd0] ss:$8 sps:$4 sm:$0xff]  }
 0x1a1   : > { %15518 = vst [vmem:[#allocation47_spill] sm:$0xff] %v11349_v28  ;;  %778 = vadd.xlane.f32.xlu1 %v777_v39  ;;  %972 = vadd.xlane.f32.xlu0 %v971_v50  ;;  %v9353_v50 = vld [vmem:[#allocation12 + $0xc0] ss:$8 sps:$4 sm:$0xff]   ;;  %v783_v39 = vadd.f32 %v15521_v61, %v15290_v27  ;;  %v907_v4 = vmul.f32 %v11349_v28, %v11349_v28  ;;  %v9354_v61 = vld [vmem:[#allocation11 + $0xd4] ss:$8 sps:$4 sm:$0xff]   ;;  %v15525_v28 = vunpack.c.l.bf16 %v11075_v40  ;;  %v806_v32 = vmul.f32 0.00390625, %v737_v31 }
 0x1a2   : > { %15523 = vst [vmem:[#allocation49_spill] sm:$0xff] %v11376_v20  ;;  %1614 = vmatpush1.bf16.msra.mxu0 %v9352_v63  ;;  %2076 = vmatpush1.bf16.msra.mxu1 %v9353_v50  ;;  %v9356_v27 = vld [vmem:[#allocation12 + $0xd4] ss:$8 sps:$4 sm:$0xff]   ;;  %v786_v18 = vadd.f32 %v15530_v42, %v15529_v36  ;;  %v15531_v63 = vunpack.c.l.bf16 %v11083_v44  ;;  %v15299_v31 = vunpack.c.h.bf16 %v11382_v24  ;;  %v910_v36 = vmul.f32 %v11380_v43, %v11380_v43  ;;  %v749_v42 = vpop.xlane.xlu1 %748 }
 0x1a3   : > { %1615 = vmatprep.subr.bf16.mxu0 %v9354_v61  ;;  %2077 = vmatprep.subr.bf16.mxu1 %v9356_v27  ;;  %v808_v44 = vmul.f32 0.00390625, %v743_v26  ;;  %v9364_v61 = vld [vmem:[#allocation11 + $0xe0] ss:$8 sps:$4 sm:$0xff]  }
 0x1a4   : > { %v11398_v50 = vsub.f32 %v15531_v63, %v805_v22  ;;  %v9365_v26 = vld [vmem:[#allocation12 + $0xe0] ss:$8 sps:$4 sm:$0xff]  }
 0x1a5   : > { %975 = vadd.xlane.f32.xlu1 %v974_v38  ;;  %781 = vadd.xlane.f32.xlu0 %v780_v9  ;;  %v11386_v38 = vsub.f32 %v15525_v28, %v804_v21  ;;  %v15527_v9 = vunpack.c.h.bf16 %v11075_v40  ;;  %v11402_v28 = vsub.f32 %v15533_v46, %v805_v22  ;;  %v15300_v40 = vunpack.c.l.bf16 %v11382_v24  ;;  %v9360_v46 = vld [vmem:[#allocation11 + $0xe4] ss:$8 sps:$4 sm:$0xff]  }
 0x1a6   : > { %15532 = vst [vmem:[#allocation52_spill] sm:$0xff] %v11398_v50  ;;  %1616 = vmatpush1.bf16.msra.mxu0 %v9358_v25  ;;  %2078 = vmatpush1.bf16.msra.mxu1 %v9359_v34  ;;  %v15534_v22 = vunpack.c.l.bf16 %v11091_v48  ;;  %v15536_v34 = vunpack.c.l.bf16 %v11099_v52  ;;  %v913_v63 = vmul.f32 %v11398_v50, %v11398_v50  ;;  %v15538_v50 = vunpack.c.l.bf16 %v11107_v56 }
 0x1a7   : > { %15526 = vst [vmem:[#allocation50_spill] sm:$0xff] %v11386_v38  ;;  %v11390_v11 = vsub.f32 %v15527_v9, %v804_v21  ;;  %v980_v21 = vadd.f32 %v908_v14, %v907_v4  ;;  %v909_v9 = vmul.f32 %v11376_v20, %v11376_v20  ;;  %v911_v4 = vmul.f32 %v11386_v38, %v11386_v38 }
 0x1a8   : > { %v11412_v27 = vsub.f32 %v15534_v22, %v806_v32  ;;  %v11424_v25 = vsub.f32 %v15536_v34, %v807_v7  ;;  %1617 = vmatprep.subr.bf16.mxu0 %v9360_v46  ;;  %2079 = vmatprep.subr.bf16.mxu1 %v9362_v30  ;;  %v15537_v22 = vunpack.c.h.bf16 %v11099_v52  ;;  %v789_v34 = vadd.f32 %v15299_v31, %v15300_v40  ;;  %v9366_v46 = vld [vmem:[#allocation11 + $0xf4] ss:$8 sps:$4 sm:$0xff]   ;;  %v755_v31 = vpop.xlane.xlu1 %754 }
 0x1a9   : > { %15528 = vst [vmem:[#allocation51_spill] sm:$0xff] %v11390_v11  ;;  %784 = vadd.xlane.f32.xlu1 %v783_v39  ;;  %978 = vadd.xlane.f32.xlu0 %v977_v49  ;;  %v15535_v49 = vunpack.c.h.bf16 %v11091_v48  ;;  %v912_v14 = vmul.f32 %v11390_v11, %v11390_v11  ;;  %v914_v48 = vmul.f32 %v11402_v28, %v11402_v28  ;;  %v809_v11 = vmul.f32 0.00390625, %v746_v47  ;;  %v9371_v47 = vld [vmem:[#allocation12 + $0xf0] ss:$8 sps:$4 sm:$0xff]  }
 0x1aa   : > { %v983_v38 = vadd.f32 %v910_v36, %v909_v9  ;;  %v11440_v20 = vsub.f32 %v15538_v50, %v808_v44  ;;  %1618 = vmatpush1.bf16.msra.mxu0 %v9364_v61  ;;  %2080 = vmatpush1.bf16.msra.mxu1 %v9365_v26  ;;  %v810_v30 = vmul.f32 0.00390625, %v749_v42  ;;  %v9370_v9 = vld [vmem:[#allocation11 + $0xf0] ss:$8 sps:$4 sm:$0xff]   ;;  %v917_v61 = vmul.f32 %v11424_v25, %v11424_v25 }
 0x1ab   : > { %v11416_v39 = vsub.f32 %v15535_v49, %v806_v32  ;;  %v752_v32 = vpop.xlane.xlu0 %751  ;;  %v11432_v49 = vsub.f32 %v15537_v22, %v807_v7  ;;  %v986_v7 = vadd.f32 %v912_v14, %v911_v4  ;;  %v915_v22 = vmul.f32 %v11412_v27, %v11412_v27  ;;  %1619 = vmatprep.subr.bf16.mxu0 %v9366_v46 }
 0x1ac   : > { %v989_v36 = vadd.f32 %v914_v48, %v913_v63  ;;  %v811_v40 = vmul.f32 0.00390625, %v752_v32  ;;  %v919_v63 = vmul.f32 %v11440_v20, %v11440_v20  ;;  %v15542_v48 = vunpack.c.l.bf16 %v11129_v23 }
 0x1ad   : > { %981 = vadd.xlane.f32.xlu1 %v980_v21  ;;  %787 = vadd.xlane.f32.xlu0 %v786_v18  ;;  %v9368_v21 = vld [vmem:[#allocation12 + $0xf4] ss:$8 sps:$4 sm:$0xff]   ;;  %v15539_v18 = vunpack.c.h.bf16 %v11107_v56  ;;  %v916_v50 = vmul.f32 %v11416_v39, %v11416_v39  ;;  %v15540_v56 = vunpack.c.l.bf16 %v11115_v60  ;;  %v918_v14 = vmul.f32 %v11432_v49, %v11432_v49 }
 0x1ae   : > { %2081 = vmatprep.subr.bf16.mxu1 %v9368_v21  ;;  %1620 = vmatpush1.bf16.msra.mxu0 %v9370_v9  ;;  %v15543_v32 = vunpack.c.h.bf16 %v11129_v23  ;;  %v15544_v46 = vunpack.c.l.bf16 %v11143_v53 }
 0x1af   : > { %v11444_v52 = vsub.f32 %v15539_v18, %v808_v44  ;;  %v11454_v42 = vsub.f32 %v15540_v56, %v809_v11  ;;  %v15541_v44 = vunpack.c.h.bf16 %v11115_v60  ;;  %v758_v26 = vpop.xlane.xlu0 %757  ;;  %2082 = vmatpush1.bf16.msra.mxu1 %v9371_v47  ;;  %v812_v60 = vmul.f32 0.00390625, %v755_v31 }
 0x1b0   : > { %v11476_v21 = vsub.f32 %v15544_v46, %v811_v40  ;;  %v15545_v18 = vunpack.c.h.bf16 %v11143_v53  ;;  %v992_v47 = vadd.f32 %v916_v50, %v915_v22  ;;  %v995_v56 = vadd.f32 %v918_v14, %v917_v61 }
 0x1b1   : > { %790 = vadd.xlane.f32.xlu1 %v789_v34  ;;  %984 = vadd.xlane.f32.xlu0 %v983_v38  ;;  %v11458_v4 = vsub.f32 %v15541_v44, %v809_v11  ;;  %v11466_v38 = vsub.f32 %v15542_v48, %v810_v30  ;;  %v11470_v34 = vsub.f32 %v15543_v32, %v810_v30  ;;  %v813_v44 = vmul.f32 0.00390625, %v758_v26  ;;  %v761_v30 = vpop.xlane.xlu1 %760 }
 0x1b2   : > { %v920_v11 = vmul.f32 %v11444_v52, %v11444_v52  ;;  %v11480_v9 = vsub.f32 %v15545_v18, %v811_v40  ;;  %v921_v23 = vmul.f32 %v11454_v42, %v11454_v42  ;;  %v15546_v48 = vunpack.c.l.bf16 %v11145_v57 }
 0x1b3   : > { %v922_v31 = vmul.f32 %v11458_v4, %v11458_v4  ;;  %v923_v53 = vmul.f32 %v11466_v38, %v11466_v38  ;;  %v924_v40 = vmul.f32 %v11470_v34, %v11470_v34  ;;  %v925_v50 = vmul.f32 %v11476_v21, %v11476_v21 }
 0x1b4   : > { %v11488_v32 = vsub.f32 %v15546_v48, %v812_v60  ;;  %v998_v46 = vadd.f32 %v920_v11, %v919_v63  ;;  %v926_v61 = vmul.f32 %v11480_v9, %v11480_v9  ;;  %v15548_v14 = vunpack.c.l.bf16 %v11159_v29 }
 0x1b5   : > { %987 = vadd.xlane.f32.xlu1 %v986_v7  ;;  %990 = vadd.xlane.f32.xlu0 %v989_v36  ;;  %v15547_v7 = vunpack.c.h.bf16 %v11145_v57  ;;  %v814_v36 = vmul.f32 0.00390625, %v761_v30  ;;  %v15549_v63 = vunpack.c.h.bf16 %v11159_v29  ;;  %v1001_v57 = vadd.f32 %v922_v31, %v921_v23 }
 0x1b6   : > { %v11504_v26 = vsub.f32 %v15548_v14, %v813_v44  ;;  %v15550_v18 = vunpack.c.l.bf16 %v11161_v59  ;;  %v1007_v48 = vadd.f32 %v926_v61, %v925_v50  ;;  %v1209_v61 = vlaneseq }
 0x1b7   : > { %v11496_v22 = vsub.f32 %v15547_v7, %v812_v60  ;;  %v11508_v11 = vsub.f32 %v15549_v63, %v813_v44  ;;  %v1004_v60 = vadd.f32 %v924_v40, %v923_v53  ;;  %v927_v7 = vmul.f32 %v11488_v32, %v11488_v32 }
 0x1b8   : > { %v11512_v30 = vsub.f32 %v15550_v18, %v814_v36  ;;  %v929_v44 = vmul.f32 %v11504_v26, %v11504_v26 }
 0x1b9   : > { %993 = vadd.xlane.f32.xlu1 %v992_v47  ;;  %996 = vadd.xlane.f32.xlu0 %v995_v56  ;;  %v928_v47 = vmul.f32 %v11496_v22, %v11496_v22  ;;  %v15551_v56 = vunpack.c.h.bf16 %v11161_v59  ;;  %v930_v23 = vmul.f32 %v11508_v11, %v11508_v11 }
 0x1ba   : > { %v931_v40 = vmul.f32 %v11512_v30, %v11512_v30 }
 0x1bb   : > { %v11520_v29 = vsub.f32 %v15551_v56, %v814_v36  ;;  %v1010_v31 = vadd.f32 %v928_v47, %v927_v7  ;;  %v1013_v53 = vadd.f32 %v930_v23, %v929_v44  ;;  %v15552_v47 = vunpack.c.l.bf16 %v11183_v41 }
 0x1bc   : > { %v15553_v44 = vunpack.c.h.bf16 %v11183_v41  ;;  %v15557_v41 = vunpack.c.h.bf16 %v11203_v33 }
 0x1bd   : > { %999 = vadd.xlane.f32.xlu1 %v998_v46  ;;  %1002 = vadd.xlane.f32.xlu0 %v1001_v57  ;;  %v932_v46 = vmul.f32 %v11520_v29, %v11520_v29 }
 0x1bf   : > { %v1016_v59 = vadd.f32 %v932_v46, %v931_v40 }
 0x1c1   : > { %1005 = vadd.xlane.f32.xlu1 %v1004_v60  ;;  %1008 = vadd.xlane.f32.xlu0 %v1007_v48  ;;  %v1210_v48 = vshrl.u32 %v1209_v61, 7  ;;  %v15555_v61 = vunpack.c.l.bf16 %v11203_v33 }
 0x1c3   : > { %v11560_v33 = vsub.s32 1, %v1210_v48 }
 0x1c5   : > { %1011 = vadd.xlane.f32.xlu1 %v1010_v31  ;;  %1014 = vadd.xlane.f32.xlu0 %v1013_v53  ;;  %15559 = vst [vmem:[#allocation56_spill] sm:$0xff] %v11560_v33 }
 0x1c9   : > { %1017 = vadd.xlane.f32.xlu1 %v1016_v59 }
 0x216   : > { %v955_v36 = vpop.xlane.xlu0 %954 }
 0x217   : > { %v1049_v50 = vmul.f32 0.00390625, %v955_v36 }
 0x219   : > { %v1081_v14 = vadd.f32 1e-06, %v1049_v50  ;;  %v11542_v50 = vsub.s32 0, %v1210_v48 }
 0x21a   : > { %v958_v63 = vpop.xlane.xlu1 %957  ;;  %v764_v57 = vpop.xlane.xlu0 %763 }
 0x21b   : > { %9372 = vrsqrt.f32 %v1081_v14  ;;  %v1050_v60 = vmul.f32 0.00390625, %v958_v63  ;;  %v815_v18 = vmul.f32 0.00390625, %v764_v57  ;;  %15554 = vst [vmem:[#allocation53_spill] sm:$0xff] %v11542_v50 }
 0x21d   : > { %v1082_v7 = vadd.f32 1e-06, %v1050_v60  ;;  %v11532_v56 = vsub.f32 %v15552_v47, %v815_v18  ;;  %v11536_v23 = vsub.f32 %v15553_v44, %v815_v18 }
 0x21e   : > { %v767_v31 = vpop.xlane.xlu1 %766  ;;  %v961_v53 = vpop.xlane.xlu0 %960 }
 0x21f   : > { %9374 = vrsqrt.f32 %v1082_v7  ;;  %v816_v40 = vmul.f32 0.00390625, %v767_v31  ;;  %v1051_v46 = vmul.f32 0.00390625, %v961_v53  ;;  %v933_v59 = vmul.f32 %v11532_v56, %v11532_v56 }
 0x220   : > { %v934_v36 = vmul.f32 %v11536_v23, %v11536_v23 }
 0x221   : > { %v11546_v14 = vsub.f32 %v15555_v61, %v816_v40  ;;  %v11550_v63 = vsub.f32 %v15557_v41, %v816_v40  ;;  %v1083_v57 = vadd.f32 1e-06, %v1051_v46  ;;  %v11558_v61 = vrot.slane %v11002_v3, %v11542_v50 }
 0x222   : > { %v964_v60 = vpop.xlane.xlu1 %963  ;;  %v770_v18 = vpop.xlane.xlu0 %769  ;;  %v1019_v7 = vadd.f32 %v934_v36, %v933_v59  ;;  %v15560_v59 = vunpack.c.l.bf16 %v11231_v45  ;;  %v15561_v41 = vunpack.c.h.bf16 %v11231_v45 }
 0x223   : > { %15556 = vst [vmem:[#allocation54_spill] sm:$0xff] %v11546_v14  ;;  %15558 = vst [vmem:[#allocation55_spill] sm:$0xff] %v11550_v63  ;;  %9376 = vrsqrt.f32 %v1083_v57  ;;  %v1052_v47 = vmul.f32 0.00390625, %v964_v60  ;;  %v817_v44 = vmul.f32 0.00390625, %v770_v18  ;;  %v935_v31 = vmul.f32 %v11546_v14, %v11546_v14 }
 0x224   : > { %1020 = vadd.xlane.f32.xlu0 %v1019_v7  ;;  %v936_v53 = vmul.f32 %v11550_v63, %v11550_v63  ;;  %v11572_v60 = vrot.slane %v10999_v2, %v11542_v50 }
 0x225   : > { %v9373_v40 = vpop.eup %9372  ;;  %v1084_v46 = vadd.f32 1e-06, %v1052_v47  ;;  %v11564_v36 = vsub.f32 %v15560_v59, %v817_v44  ;;  %v11568_v57 = vsub.f32 %v15561_v41, %v817_v44  ;;  %v11583_v41 = vrot.slane %v10996_v1, %v11560_v33 }
 0x226   : > { %v773_v18 = vpop.xlane.xlu1 %772  ;;  %v967_v7 = vpop.xlane.xlu0 %966  ;;  %v1022_v3 = vadd.f32 %v936_v53, %v935_v31  ;;  %v1146_v48 = vmul.f32 %v9373_v40, %v11193_v19  ;;  %v1145_v14 = vmul.f32 %v9373_v40, %v11189_v62  ;;  %v11587_v19 = vrot.slane %v10994_v0, %v11560_v33 }
 0x227   : > { %9378 = vrsqrt.f32 %v1084_v46  ;;  %v818_v47 = vmul.f32 0.00390625, %v773_v18  ;;  %v1053_v63 = vmul.f32 0.00390625, %v967_v7  ;;  %v937_v59 = vmul.f32 %v11564_v36, %v11564_v36 }
 0x228   : > { %1023 = vadd.xlane.f32.xlu1 %v1022_v3  ;;  %v938_v45 = vmul.f32 %v11568_v57, %v11568_v57  ;;  %v1218_v44 = vmul.f32 %v11558_v61, %v1146_v48  ;;  %v15562_v31 = vunpack.c.l.bf16 %v11259_v8  ;;  %v15564_v3 = vunpack.c.h.bf16 %v11259_v8 }
 0x229   : > { %v9375_v62 = vpop.eup %9374  ;;  %v1085_v46 = vadd.f32 1e-06, %v1053_v63  ;;  %v1217_v18 = vmul.f32 %v11572_v60, %v1145_v14 }
 0x22a   : > { %v11591_v53 = vsub.f32 %v15562_v31, %v818_v47  ;;  %v11595_v40 = vsub.f32 %v15564_v3, %v818_v47  ;;  %v970_v7 = vpop.xlane.xlu1 %969  ;;  %v776_v48 = vpop.xlane.xlu0 %775  ;;  %v1025_v1 = vadd.f32 %v938_v45, %v937_v59  ;;  %v1148_v2 = vmul.f32 %v9375_v62, %v11219_v13 }
 0x22b   : > { %v1147_v0 = vmul.f32 %v9375_v62, %v11215_v6  ;;  %9380 = vrsqrt.f32 %v1085_v46  ;;  %v1054_v33 = vmul.f32 0.00390625, %v970_v7  ;;  %v819_v50 = vmul.f32 0.00390625, %v776_v48 }
 0x22c   : > { %15563 = vst [vmem:[#allocation57_spill] sm:$0xff] %v11591_v53  ;;  %v939_v31 = vmul.f32 %v11591_v53, %v11591_v53  ;;  %1026 = vadd.xlane.f32.xlu0 %v1025_v1  ;;  %v940_v8 = vmul.f32 %v11595_v40, %v11595_v40  ;;  %v1220_v63 = vmul.f32 %v11558_v61, %v1148_v2  ;;  %v15565_v6 = vunpack.c.l.bf16 %v11275_v37 }
 0x22d   : > { %v1290_v14 = vadd.f32 %v11583_v41, %v1218_v44  ;;  %v1219_v47 = vmul.f32 %v11572_v60, %v1147_v0  ;;  %v9377_v59 = vpop.eup %9376  ;;  %v1086_v13 = vadd.f32 1e-06, %v1054_v33  ;;  %v15566_v62 = vunpack.c.h.bf16 %v11275_v37 }
 0x22e   : > { %v11609_v45 = vsub.f32 %v15565_v6, %v819_v50  ;;  %v1289_v1 = vadd.f32 %v11587_v19, %v1217_v18  ;;  %v779_v46 = vpop.xlane.xlu1 %778  ;;  %v973_v7 = vpop.xlane.xlu0 %972  ;;  %v1028_v48 = vadd.f32 %v940_v8, %v939_v31  ;;  %v1292_v2 = vadd.f32 %v11583_v41, %v1220_v63 }
 0x22f   : > { %v11613_v3 = vsub.f32 %v15566_v62, %v819_v50  ;;  %v1291_v44 = vadd.f32 %v11587_v19, %v1219_v47  ;;  %v1150_v0 = vmul.f32 %v9377_v59, %v11201_v55  ;;  %9382 = vrsqrt.f32 %v1086_v13 }
 0x230   : > { %v820_v33 = vmul.f32 0.00390625, %v779_v46  ;;  %v1055_v53 = vmul.f32 0.00390625, %v973_v7  ;;  %v941_v6 = vmul.f32 %v11609_v45, %v11609_v45  ;;  %1029 = vadd.xlane.f32.xlu1 %v1028_v48  ;;  %v1354_v37 = vpack.c.bf16 %v1292_v2, %v1290_v14 }
 0x231   : > { %v1353_v50 = vpack.c.bf16 %v1291_v44, %v1289_v1  ;;  %v942_v18 = vmul.f32 %v11613_v3, %v11613_v3  ;;  %v1222_v31 = vmul.f32 %v11558_v61, %v1150_v0  ;;  %v9379_v8 = vpop.eup %9378  ;;  %v15567_v63 = vunpack.c.l.bf16 %v11301_v12 }
 0x232   : > { %v15568_v55 = vunpack.c.h.bf16 %v11301_v12  ;;  %v1087_v62 = vadd.f32 1e-06, %v1055_v53  ;;  %v1149_v46 = vmul.f32 %v9377_v59, %v11197_v54  ;;  %v976_v7 = vpop.xlane.xlu1 %975  ;;  %1621 = vmatprep.mubr.bf16.mxu0 %v1354_v37  ;;  %2083 = vmatprep.mubr.bf16.mxu1 %v1354_v37  ;;  %v782_v14 = vpop.xlane.xlu0 %781  ;;  %v1152_v48 = vmul.f32 %v9379_v8, %v11235_v5 }
 0x233   : > { %v11626_v47 = vsub.f32 %v15567_v63, %v820_v33  ;;  %v1031_v1 = vadd.f32 %v942_v18, %v941_v6  ;;  %v1056_v2 = vmul.f32 0.00390625, %v976_v7  ;;  %v821_v44 = vmul.f32 0.00390625, %v782_v14  ;;  %1622 = vmatmul.mubr.bf16.vlgmr.msra.gmra.mrb[0].mxu0 %v1353_v50  ;;  %2084 = vmatmul.mubr.bf16.vlgmr.msra.gmra.mrb[0].mxu1 %v1353_v50 }
 0x234   : > { %v11630_v13 = vsub.f32 %v15568_v55, %v820_v33  ;;  %v1294_v12 = vadd.f32 %v11583_v41, %v1222_v31  ;;  %v1224_v53 = vmul.f32 %v11558_v61, %v1152_v48  ;;  %v1151_v59 = vmul.f32 %v9379_v8, %v11224_v58 }
 0x235   : > { %v943_v0 = vmul.f32 %v11626_v47, %v11626_v47  ;;  %1032 = vadd.xlane.f32.xlu0 %v1031_v1  ;;  %v1221_v33 = vmul.f32 %v11572_v60, %v1149_v46  ;;  %v9381_v5 = vpop.eup %9380  ;;  %9384 = vrsqrt.f32 %v1087_v62  ;;  %v1088_v6 = vadd.f32 1e-06, %v1056_v2 }
 0x236   : > { %v944_v54 = vmul.f32 %v11630_v13, %v11630_v13  ;;  %v15569_v37 = vunpack.c.l.bf16 %v11317_v51  ;;  %v15570_v18 = vunpack.c.h.bf16 %v11317_v51  ;;  %v785_v63 = vpop.xlane.xlu1 %784  ;;  %v979_v55 = vpop.xlane.xlu0 %978  ;;  %v1296_v14 = vadd.f32 %v11583_v41, %v1224_v53 }
 0x237   : > { %v1223_v58 = vmul.f32 %v11572_v60, %v1151_v59  ;;  %v1293_v8 = vadd.f32 %v11587_v19, %v1221_v33  ;;  %9386 = vrsqrt.f32 %v1088_v6  ;;  %v822_v62 = vmul.f32 0.00390625, %v785_v63 }
 0x238   : > { %v11644_v50 = vsub.f32 %v15569_v37, %v821_v44  ;;  %v11648_v31 = vsub.f32 %v15570_v18, %v821_v44  ;;  %v1034_v7 = vadd.f32 %v944_v54, %v943_v0  ;;  %v1057_v46 = vmul.f32 0.00390625, %v979_v55 }
 0x239   : > { %v1356_v48 = vpack.c.bf16 %v1296_v14, %v1294_v12  ;;  %v1295_v51 = vadd.f32 %v11587_v19, %v1223_v58  ;;  %v1154_v44 = vmul.f32 %v9381_v5, %v11255_v10  ;;  %v9383_v0 = vpop.eup %9382  ;;  %v15571_v54 = vunpack.c.l.bf16 %v11341_v15 }
 0x23a   : > { %v945_v1 = vmul.f32 %v11644_v50, %v11644_v50  ;;  %1035 = vadd.xlane.f32.xlu1 %v1034_v7  ;;  %v946_v2 = vmul.f32 %v11648_v31, %v11648_v31  ;;  %v15572_v59 = vunpack.c.h.bf16 %v11341_v15  ;;  %v1089_v6 = vadd.f32 1e-06, %v1057_v46  ;;  %v982_v12 = vpop.xlane.xlu1 %981  ;;  %v788_v18 = vpop.xlane.xlu0 %787 }
 0x23b   : > { %v11661_v53 = vsub.f32 %v15571_v54, %v822_v62  ;;  %v1153_v37 = vmul.f32 %v9381_v5, %v11251_v17  ;;  %1631 = vmatprep.mubr.bf16.mxu0 %v1356_v48  ;;  %2093 = vmatprep.mubr.bf16.mxu1 %v1356_v48  ;;  %v1355_v63 = vpack.c.bf16 %v1295_v51, %v1293_v8  ;;  %v1058_v7 = vmul.f32 0.00390625, %v982_v12  ;;  %v15575_v48 = vld [vmem:[#allocation40_spill] sm:$0xff] }
 0x23c   : > { %v11665_v33 = vsub.f32 %v15572_v59, %v822_v62  ;;  %v1037_v55 = vadd.f32 %v946_v2, %v945_v1  ;;  %v1156_v10 = vmul.f32 %v9383_v0, %v11271_v16  ;;  %9388 = vrsqrt.f32 %v1089_v6 }
 0x23d   : > { %v823_v14 = vmul.f32 0.00390625, %v788_v18  ;;  %v947_v58 = vmul.f32 %v11661_v53, %v11661_v53  ;;  %1632 = vmatmul.mubr.bf16.gmra.mrb[4].mxu0 %v1355_v63  ;;  %2094 = vmatmul.mubr.bf16.gmra.mrb[4].mxu1 %v1355_v63  ;;  %v1226_v17 = vmul.f32 %v11558_v61, %v1154_v44  ;;  %v1090_v62 = vadd.f32 1e-06, %v1058_v7 }
 0x23e   : > { %v948_v15 = vmul.f32 %v11665_v33, %v11665_v33  ;;  %v1228_v5 = vmul.f32 %v11558_v61, %v1156_v10  ;;  %v15573_v8 = vunpack.c.l.bf16 %v11357_v35  ;;  %v15574_v16 = vunpack.c.h.bf16 %v11357_v35  ;;  %1038 = vadd.xlane.f32.xlu0 %v1037_v55  ;;  %v791_v2 = vpop.xlane.xlu1 %790  ;;  %v985_v54 = vpop.xlane.xlu0 %984 }
 0x23f   : > { %v1155_v51 = vmul.f32 %v9383_v0, %v15575_v48  ;;  %v1298_v6 = vadd.f32 %v11583_v41, %v1226_v17  ;;  %v1225_v12 = vmul.f32 %v11572_v60, %v1153_v37  ;;  %v9385_v18 = vpop.eup %9384  ;;  %9390 = vrsqrt.f32 %v1090_v62 }
 0x240   : > { %v11677_v46 = vsub.f32 %v15573_v8, %v823_v14  ;;  %v11681_v1 = vsub.f32 %v15574_v16, %v823_v14  ;;  %v1040_v59 = vadd.f32 %v948_v15, %v947_v58  ;;  %v1300_v44 = vadd.f32 %v11583_v41, %v1228_v5 }
 0x241   : > { %v824_v63 = vmul.f32 0.00390625, %v791_v2  ;;  %v1059_v10 = vmul.f32 0.00390625, %v985_v54  ;;  %v1227_v35 = vmul.f32 %v11572_v60, %v1155_v51  ;;  %v1297_v55 = vadd.f32 %v11587_v19, %v1225_v12  ;;  %v9387_v58 = vpop.eup %9386  ;;  %v15580_v2 = vld [vmem:[#allocation42_spill] sm:$0xff] }
 0x242   : > { %1041 = vadd.xlane.f32.xlu1 %v1040_v59  ;;  %v1358_v7 = vpack.c.bf16 %v1300_v44, %v1298_v6  ;;  %v949_v0 = vmul.f32 %v11677_v46, %v11677_v46  ;;  %v950_v14 = vmul.f32 %v11681_v1, %v11681_v1  ;;  %v15576_v15 = vunpack.c.l.bf16 %v11382_v24  ;;  %v988_v16 = vpop.xlane.xlu1 %987  ;;  %v991_v48 = vpop.xlane.xlu0 %990  ;;  %v15581_v59 = vld [vmem:[#allocation44_spill] sm:$0xff] }
 0x243   : > { %v15578_v17 = vunpack.c.h.bf16 %v11382_v24  ;;  %v1091_v62 = vadd.f32 1e-06, %v1059_v10  ;;  %v1299_v8 = vadd.f32 %v11587_v19, %v1227_v35  ;;  %v1158_v54 = vmul.f32 %v9385_v18, %v15580_v2 }
 0x244   : > { %v11695_v37 = vsub.f32 %v15576_v15, %v824_v63  ;;  %1641 = vmatprep.mubr.bf16.mxu0 %v1358_v7  ;;  %2103 = vmatprep.mubr.bf16.mxu1 %v1358_v7  ;;  %v1043_v51 = vadd.f32 %v950_v14, %v949_v0  ;;  %v1160_v6 = vmul.f32 %v9387_v58, %v15581_v59  ;;  %v1060_v44 = vmul.f32 0.00390625, %v988_v16  ;;  %v15583_v16 = vld [vmem:[#allocation43_spill] sm:$0xff] }
 0x245   : > { %v11699_v5 = vsub.f32 %v15578_v17, %v824_v63  ;;  %9392 = vrsqrt.f32 %v1091_v62  ;;  %v1061_v12 = vmul.f32 0.00390625, %v991_v48  ;;  %v1357_v15 = vpack.c.bf16 %v1299_v8, %v1297_v55  ;;  %v15582_v17 = vld [vmem:[#allocation41_spill] sm:$0xff] }
 0x246   : > { %15577 = vst [vmem:[#allocation40_spill] sm:$0xff] %v11695_v37  ;;  %1044 = vadd.xlane.f32.xlu0 %v1043_v51  ;;  %v951_v24 = vmul.f32 %v11695_v37, %v11695_v37  ;;  %v1230_v10 = vmul.f32 %v11558_v61, %v1158_v54  ;;  %v1232_v35 = vmul.f32 %v11558_v61, %v1160_v6  ;;  %v9389_v7 = vpop.eup %9388  ;;  %v1092_v0 = vadd.f32 1e-06, %v1060_v44  ;;  %v994_v8 = vpop.xlane.xlu1 %993  ;;  %v15584_v37 = vld [vmem:[#allocation46_spill] sm:$0xff] }
 0x247   : > { %15579 = vst [vmem:[#allocation58_spill] sm:$0xff] %v11699_v5  ;;  %v952_v63 = vmul.f32 %v11699_v5, %v11699_v5  ;;  %v1093_v14 = vadd.f32 1e-06, %v1061_v12  ;;  %1642 = vmatmul.mubr.bf16.gmra.mrb[8].mxu0 %v1357_v15  ;;  %2104 = vmatmul.mubr.bf16.gmra.mrb[8].mxu1 %v1357_v15  ;;  %v1157_v62 = vmul.f32 %v9385_v18, %v15582_v17  ;;  %v997_v48 = vpop.xlane.xlu0 %996  ;;  %v1062_v6 = vmul.f32 0.00390625, %v994_v8 }
 0x248   : > { %v1159_v55 = vmul.f32 %v9387_v58, %v15583_v16  ;;  %v1302_v2 = vadd.f32 %v11583_v41, %v1230_v10  ;;  %v1304_v59 = vadd.f32 %v11583_v41, %v1232_v35  ;;  %v1162_v54 = vmul.f32 %v9389_v7, %v15584_v37 }
 0x249   : > { %v1046_v51 = vadd.f32 %v952_v63, %v951_v24  ;;  %9394 = vrsqrt.f32 %v1092_v0  ;;  %v1063_v5 = vmul.f32 0.00390625, %v997_v48  ;;  %v1229_v44 = vmul.f32 %v11572_v60, %v1157_v62  ;;  %v9391_v58 = vpop.eup %9390  ;;  %v15585_v63 = vld [vmem:[#allocation45_spill] sm:$0xff]  ;;  %v15586_v62 = vld [vmem:[#allocation48_spill] sm:$0xff] }
 0x24a   : > { %9396 = vrsqrt.f32 %v1093_v14  ;;  %v1360_v12 = vpack.c.bf16 %v1304_v59, %v1302_v2  ;;  %v1231_v18 = vmul.f32 %v11572_v60, %v1159_v55  ;;  %v1094_v15 = vadd.f32 1e-06, %v1062_v6  ;;  %v1000_v35 = vpop.xlane.xlu1 %999  ;;  %v15587_v55 = vld [vmem:[#allocation47_spill] sm:$0xff] }
 0x24b   : > { %1047 = vadd.xlane.f32.xlu1 %v1046_v51  ;;  %v1234_v24 = vmul.f32 %v11558_v61, %v1162_v54  ;;  %v1161_v10 = vmul.f32 %v9389_v7, %v15585_v63  ;;  %v1095_v17 = vadd.f32 1e-06, %v1063_v5  ;;  %v1301_v37 = vadd.f32 %v11587_v19, %v1229_v44  ;;  %v1003_v8 = vpop.xlane.xlu0 %1002 }
 0x24c   : > { %1651 = vmatprep.mubr.bf16.mxu0 %v1360_v12  ;;  %2113 = vmatprep.mubr.bf16.mxu1 %v1360_v12  ;;  %v1303_v0 = vadd.f32 %v11587_v19, %v1231_v18  ;;  %v1164_v14 = vmul.f32 %v9391_v58, %v15586_v62  ;;  %9398 = vrsqrt.f32 %v1094_v15  ;;  %v1064_v16 = vmul.f32 0.00390625, %v1000_v35 }
 0x24d   : > { %v1163_v48 = vmul.f32 %v9391_v58, %v15587_v55  ;;  %v1233_v7 = vmul.f32 %v11572_v60, %v1161_v10  ;;  %v1306_v54 = vadd.f32 %v11583_v41, %v1234_v24  ;;  %9400 = vrsqrt.f32 %v1095_v17 }
 0x24e   : > { %v1359_v51 = vpack.c.bf16 %v1303_v0, %v1301_v37  ;;  %v1236_v2 = vmul.f32 %v11558_v61, %v1164_v14  ;;  %v1096_v59 = vadd.f32 1e-06, %v1064_v16  ;;  %v1065_v44 = vmul.f32 0.00390625, %v1003_v8  ;;  %v1006_v12 = vpop.xlane.xlu1 %1005  ;;  %v15588_v37 = vld [vmem:[#allocation49_spill] sm:$0xff] }
 0x24f   : > { %v9393_v5 = vpop.eup %9392  ;;  %v1235_v6 = vmul.f32 %v11572_v60, %v1163_v48  ;;  %v1066_v15 = vmul.f32 0.00390625, %v1006_v12  ;;  %v1305_v35 = vadd.f32 %v11587_v19, %v1233_v7  ;;  %v1009_v8 = vpop.xlane.xlu0 %1008  ;;  %v15589_v48 = vld [vmem:[#allocation51_spill] sm:$0xff] }
 0x250   : > { %1652 = vmatmul.mubr.bf16.gmra.mrb[12].mxu0 %v1359_v51  ;;  %2114 = vmatmul.mubr.bf16.gmra.mrb[12].mxu1 %v1359_v51  ;;  %v1308_v18 = vadd.f32 %v11583_v41, %v1236_v2  ;;  %v1166_v58 = vmul.f32 %v9393_v5, %v11380_v43  ;;  %9402 = vrsqrt.f32 %v1096_v59  ;;  %v1165_v24 = vmul.f32 %v9393_v5, %v15588_v37  ;;  %v15590_v2 = vld [vmem:[#allocation50_spill] sm:$0xff] }
 0x251   : > { %v1307_v63 = vadd.f32 %v11587_v19, %v1235_v6  ;;  %v1098_v62 = vadd.f32 1e-06, %v1066_v15  ;;  %v1097_v16 = vadd.f32 1e-06, %v1065_v44 }
 0x252   : > { %v1362_v10 = vpack.c.bf16 %v1308_v18, %v1306_v54  ;;  %v1238_v17 = vmul.f32 %v11558_v61, %v1166_v58  ;;  %v1012_v55 = vpop.xlane.xlu1 %1011  ;;  %v1237_v7 = vmul.f32 %v11572_v60, %v1165_v24  ;;  %v1067_v18 = vmul.f32 0.00390625, %v1009_v8 }
 0x253   : > { %v9395_v0 = vpop.eup %9394  ;;  %v1361_v43 = vpack.c.bf16 %v1307_v63, %v1305_v35  ;;  %9404 = vrsqrt.f32 %v1098_v62  ;;  %v1068_v54 = vmul.f32 0.00390625, %v1012_v55 }
 0x254   : > { %v9397_v14 = vpop.eup %9396  ;;  %1661 = vmatprep.mubr.bf16.mxu0 %v1362_v10  ;;  %2123 = vmatprep.mubr.bf16.mxu1 %v1362_v10  ;;  %v1168_v51 = vmul.f32 %v9395_v0, %v15589_v48  ;;  %v1167_v59 = vmul.f32 %v9395_v0, %v15590_v2  ;;  %v1310_v58 = vadd.f32 %v11583_v41, %v1238_v17  ;;  %9406 = vrsqrt.f32 %v1097_v16 }
 0x255   : > { %v1170_v12 = vmul.f32 %v9397_v14, %v11402_v28  ;;  %v1309_v35 = vadd.f32 %v11587_v19, %v1237_v7  ;;  %v1100_v0 = vadd.f32 1e-06, %v1068_v54  ;;  %v1015_v7 = vpop.xlane.xlu0 %1014 }
 0x256   : > { %v1240_v5 = vmul.f32 %v11558_v61, %v1168_v51  ;;  %v1239_v6 = vmul.f32 %v11572_v60, %v1167_v59  ;;  %v9399_v44 = vpop.eup %9398  ;;  %v1018_v8 = vpop.xlane.xlu1 %1017  ;;  %v1099_v51 = vadd.f32 1e-06, %v1067_v18 }
 0x257   : > { %v1172_v10 = vmul.f32 %v9399_v44, %v11416_v39  ;;  %v1242_v37 = vmul.f32 %v11558_v61, %v1170_v12  ;;  %v9401_v24 = vpop.eup %9400  ;;  %v1171_v17 = vmul.f32 %v9399_v44, %v11412_v27  ;;  %9408 = vrsqrt.f32 %v1100_v0 }
 0x258   : > { %1662 = vmatmul.mubr.bf16.gmra.mrb[16].mxu0 %v1361_v43  ;;  %2124 = vmatmul.mubr.bf16.gmra.mrb[16].mxu1 %v1361_v43  ;;  %v1312_v15 = vadd.f32 %v11583_v41, %v1240_v5  ;;  %v1311_v63 = vadd.f32 %v11587_v19, %v1239_v6  ;;  %v15591_v43 = vld [vmem:[#allocation52_spill] sm:$0xff]  ;;  %v1174_v54 = vmul.f32 %v9401_v24, %v11432_v49  ;;  %v1070_v5 = vmul.f32 0.00390625, %v1018_v8 }
 0x259   : > { %v1244_v62 = vmul.f32 %v11558_v61, %v1172_v10  ;;  %v1169_v48 = vmul.f32 %v9397_v14, %v15591_v43  ;;  %v1314_v39 = vadd.f32 %v11583_v41, %v1242_v37  ;;  %v1243_v6 = vmul.f32 %v11572_v60, %v1171_v17 }
 0x25a   : > { %v1364_v28 = vpack.c.bf16 %v1312_v15, %v1310_v58  ;;  %v9403_v16 = vpop.eup %9402  ;;  %v1363_v55 = vpack.c.bf16 %v1311_v63, %v1309_v35  ;;  %9410 = vrsqrt.f32 %v1099_v51  ;;  %v1069_v44 = vmul.f32 0.00390625, %v1015_v7 }
 0x25b   : > { %v1316_v2 = vadd.f32 %v11583_v41, %v1244_v62  ;;  %v1176_v59 = vmul.f32 %v9403_v16, %v11444_v52  ;;  %v1241_v18 = vmul.f32 %v11572_v60, %v1169_v48  ;;  %v1246_v52 = vmul.f32 %v11558_v61, %v1174_v54 }
 0x25c   : > { %1671 = vmatprep.mubr.bf16.mxu0 %v1364_v28  ;;  %2133 = vmatprep.mubr.bf16.mxu1 %v1364_v28  ;;  %v1102_v49 = vadd.f32 1e-06, %v1070_v5  ;;  %v1315_v15 = vadd.f32 %v11587_v19, %v1243_v6  ;;  %v1175_v63 = vmul.f32 %v9403_v16, %v11440_v20  ;;  %v1101_v37 = vadd.f32 1e-06, %v1069_v44 }
 0x25d   : > { %v1366_v27 = vpack.c.bf16 %v1316_v2, %v1314_v39  ;;  %v9405_v12 = vpop.eup %9404  ;;  %v1248_v14 = vmul.f32 %v11558_v61, %v1176_v59  ;;  %v1313_v0 = vadd.f32 %v11587_v19, %v1241_v18  ;;  %v1173_v28 = vmul.f32 %v9401_v24, %v11424_v25 }
 0x25e   : > { %v9407_v58 = vpop.eup %9406  ;;  %v1180_v35 = vmul.f32 %v9405_v12, %v11470_v34  ;;  %v1318_v62 = vadd.f32 %v11583_v41, %v1246_v52  ;;  %9412 = vrsqrt.f32 %v1102_v49  ;;  %v1179_v48 = vmul.f32 %v9405_v12, %v11466_v38 }
 0x25f   : > { %v1320_v10 = vadd.f32 %v11583_v41, %v1248_v14  ;;  %v1178_v17 = vmul.f32 %v9407_v58, %v11458_v4  ;;  %v1365_v8 = vpack.c.bf16 %v1315_v15, %v1313_v0  ;;  %9414 = vrsqrt.f32 %v1101_v37 }
 0x260   : > { %1672 = vmatmul.mubr.bf16.gmra.mrb[20].mxu0 %v1363_v55  ;;  %2134 = vmatmul.mubr.bf16.gmra.mrb[20].mxu1 %v1363_v55  ;;  %v1247_v55 = vmul.f32 %v11572_v60, %v1175_v63  ;;  %v1252_v20 = vmul.f32 %v11558_v61, %v1180_v35  ;;  %v1245_v34 = vmul.f32 %v11572_v60, %v1173_v28 }
 0x261   : > { %1681 = vmatprep.mubr.bf16.mxu0 %v1366_v27  ;;  %2143 = vmatprep.mubr.bf16.mxu1 %v1366_v27  ;;  %v1368_v43 = vpack.c.bf16 %v1320_v10, %v1318_v62  ;;  %v9409_v16 = vpop.eup %9408  ;;  %v1250_v25 = vmul.f32 %v11558_v61, %v1178_v17  ;;  %v1177_v59 = vmul.f32 %v9407_v58, %v11454_v42 }
 0x262   : > { %v1319_v4 = vadd.f32 %v11587_v19, %v1247_v55  ;;  %v1324_v51 = vadd.f32 %v11583_v41, %v1252_v20  ;;  %v1184_v39 = vmul.f32 %v9409_v16, %v11496_v22  ;;  %v1317_v2 = vadd.f32 %v11587_v19, %v1245_v34 }
 0x263   : > { %v1322_v7 = vadd.f32 %v11583_v41, %v1250_v25  ;;  %v1251_v27 = vmul.f32 %v11572_v60, %v1179_v48  ;;  %v1249_v38 = vmul.f32 %v11572_v60, %v1177_v59 }
 0x264   : > { %v9411_v24 = vpop.eup %9410  ;;  %v1367_v5 = vpack.c.bf16 %v1319_v4, %v1317_v2  ;;  %v1256_v14 = vmul.f32 %v11558_v61, %v1184_v39 }
 0x265   : > { %v1182_v54 = vmul.f32 %v9411_v24, %v11480_v9  ;;  %v1370_v6 = vpack.c.bf16 %v1324_v51, %v1322_v7  ;;  %v1323_v12 = vadd.f32 %v11587_v19, %v1251_v27  ;;  %v1183_v9 = vmul.f32 %v9409_v16, %v11488_v32 }
 0x266   : > { %v1328_v18 = vadd.f32 %v11583_v41, %v1256_v14  ;;  %v1321_v58 = vadd.f32 %v11587_v19, %v1249_v38  ;;  %v1181_v49 = vmul.f32 %v9411_v24, %v11476_v21 }
 0x267   : > { %v1254_v22 = vmul.f32 %v11558_v61, %v1182_v54  ;;  %v1255_v35 = vmul.f32 %v11572_v60, %v1183_v9 }
 0x268   : > { %1682 = vmatmul.mubr.bf16.gmra.mrb[24].mxu0 %v1365_v8  ;;  %2144 = vmatmul.mubr.bf16.gmra.mrb[24].mxu1 %v1365_v8  ;;  %v9413_v44 = vpop.eup %9412  ;;  %v1369_v10 = vpack.c.bf16 %v1323_v12, %v1321_v58  ;;  %v1253_v32 = vmul.f32 %v11572_v60, %v1181_v49  ;;  %v15592_v58 = vld [vmem:[#allocation55_spill] sm:$0xff] }
 0x269   : > { %1691 = vmatprep.mubr.bf16.mxu0 %v1368_v43  ;;  %2153 = vmatprep.mubr.bf16.mxu1 %v1368_v43  ;;  %v9415_v42 = vpop.eup %9414  ;;  %v1188_v52 = vmul.f32 %v9413_v44, %v11520_v29  ;;  %v1326_v15 = vadd.f32 %v11583_v41, %v1254_v22  ;;  %v1327_v21 = vadd.f32 %v11587_v19, %v1255_v35 }
 0x26a   : > { %v1186_v63 = vmul.f32 %v9415_v42, %v11508_v11  ;;  %v1187_v28 = vmul.f32 %v9413_v44, %v11512_v30  ;;  %v1325_v62 = vadd.f32 %v11587_v19, %v1253_v32  ;;  %v1185_v17 = vmul.f32 %v9415_v42, %v11504_v26 }
 0x26b   : > { %v1372_v37 = vpack.c.bf16 %v1328_v18, %v1326_v15  ;;  %v1260_v0 = vmul.f32 %v11558_v61, %v1188_v52  ;;  %v15593_v15 = vld [vmem:[#allocation54_spill] sm:$0xff] }
 0x26c   : > { %v1258_v29 = vmul.f32 %v11558_v61, %v1186_v63  ;;  %v1371_v55 = vpack.c.bf16 %v1327_v21, %v1325_v62  ;;  %v1259_v43 = vmul.f32 %v11572_v60, %v1187_v28  ;;  %v1257_v16 = vmul.f32 %v11572_v60, %v1185_v17 }
 0x26d   : > { %v1332_v11 = vadd.f32 %v11583_v41, %v1260_v0 }
 0x26e   : > { %v1330_v8 = vadd.f32 %v11583_v41, %v1258_v29  ;;  %v1331_v30 = vadd.f32 %v11587_v19, %v1259_v43  ;;  %v1329_v34 = vadd.f32 %v11587_v19, %v1257_v16 }
 0x270   : > { %1692 = vmatmul.mubr.bf16.gmra.mrb[28].mxu0 %v1367_v5  ;;  %2154 = vmatmul.mubr.bf16.gmra.mrb[28].mxu1 %v1367_v5  ;;  %v1374_v20 = vpack.c.bf16 %v1332_v11, %v1330_v8  ;;  %v1373_v25 = vpack.c.bf16 %v1331_v30, %v1329_v34 }
 0x271   : > { %1701 = vmatprep.mubr.bf16.mxu0 %v1370_v6  ;;  %2163 = vmatprep.mubr.bf16.mxu1 %v1370_v6 }
 0x278   : > { %1702 = vmatmul.mubr.bf16.gmra.mrb[32].mxu0 %v1369_v10  ;;  %2164 = vmatmul.mubr.bf16.gmra.mrb[32].mxu1 %v1369_v10 }
 0x279   : > { %1711 = vmatprep.mubr.bf16.mxu0 %v1372_v37  ;;  %2173 = vmatprep.mubr.bf16.mxu1 %v1372_v37 }
 0x280   : > { %1712 = vmatmul.mubr.bf16.gmra.mrb[36].mxu0 %v1371_v55  ;;  %2174 = vmatmul.mubr.bf16.gmra.mrb[36].mxu1 %v1371_v55 }
 0x281   : > { %1721 = vmatprep.mubr.bf16.mxu0 %v1374_v20  ;;  %2183 = vmatprep.mubr.bf16.mxu1 %v1374_v20 }
 0x288   : > { %1722 = vmatmul.mubr.bf16.gmra.mrb[40].mxu0 %v1373_v25  ;;  %2184 = vmatmul.mubr.bf16.gmra.mrb[40].mxu1 %v1373_v25 }
 0x2b1   : > { %v1021_v26 = vpop.xlane.xlu0 %1020 }
 0x2b2   : > { %v1071_v24 = vmul.f32 0.00390625, %v1021_v26  ;;  %v15594_v26 = vld [vmem:[#allocation57_spill] sm:$0xff] }
 0x2b4   : > { %v1103_v4 = vadd.f32 1e-06, %v1071_v24 }
 0x2b5   : > { %v1024_v48 = vpop.xlane.xlu1 %1023 }
 0x2b6   : > { %9416 = vrsqrt.f32 %v1103_v4  ;;  %v1072_v51 = vmul.f32 0.00390625, %v1024_v48 }
 0x2b8   : > { %v1104_v39 = vadd.f32 1e-06, %v1072_v51 }
 0x2b9   : > { %v1027_v2 = vpop.xlane.xlu0 %1026 }
 0x2ba   : > { %9418 = vrsqrt.f32 %v1104_v39  ;;  %v1073_v59 = vmul.f32 0.00390625, %v1027_v2 }
 0x2bc   : > { %v1105_v7 = vadd.f32 1e-06, %v1073_v59 }
 0x2bd   : > { %v1030_v54 = vpop.xlane.xlu1 %1029 }
 0x2be   : > { %9420 = vrsqrt.f32 %v1105_v7  ;;  %v1074_v5 = vmul.f32 0.00390625, %v1030_v54 }
 0x2c0   : > { %v9417_v27 = vpop.eup %9416  ;;  %v1106_v6 = vadd.f32 1e-06, %v1074_v5 }
 0x2c1   : > { %v1190_v44 = vmul.f32 %v9417_v27, %v11536_v23  ;;  %v1189_v38 = vmul.f32 %v9417_v27, %v11532_v56 }
 0x2c2   : > { %v1033_v14 = vpop.xlane.xlu0 %1032  ;;  %9422 = vrsqrt.f32 %v1106_v6 }
 0x2c3   : > { %v1075_v22 = vmul.f32 0.00390625, %v1033_v14  ;;  %v1262_v9 = vmul.f32 %v11558_v61, %v1190_v44  ;;  %v1261_v18 = vmul.f32 %v11572_v60, %v1189_v38 }
 0x2c4   : > { %v9419_v42 = vpop.eup %9418 }
 0x2c5   : > { %v1107_v12 = vadd.f32 1e-06, %v1075_v22  ;;  %v1192_v49 = vmul.f32 %v9419_v42, %v15592_v58  ;;  %v1191_v63 = vmul.f32 %v9419_v42, %v15593_v15  ;;  %v1334_v0 = vadd.f32 %v11583_v41, %v1262_v9 }
 0x2c6   : > { %v1333_v32 = vadd.f32 %v11587_v19, %v1261_v18 }
 0x2c7   : > { %v1036_v52 = vpop.xlane.xlu1 %1035  ;;  %9424 = vrsqrt.f32 %v1107_v12  ;;  %v1264_v35 = vmul.f32 %v11558_v61, %v1192_v49  ;;  %v1263_v23 = vmul.f32 %v11572_v60, %v1191_v63 }
 0x2c8   : > { %v1076_v10 = vmul.f32 0.00390625, %v1036_v52  ;;  %v9421_v56 = vpop.eup %9420 }
 0x2c9   : > { %v1336_v29 = vadd.f32 %v11583_v41, %v1264_v35  ;;  %v1335_v21 = vadd.f32 %v11587_v19, %v1263_v23  ;;  %v1194_v28 = vmul.f32 %v9421_v56, %v11568_v57  ;;  %v1193_v11 = vmul.f32 %v9421_v56, %v11564_v36 }
 0x2ca   : > { %v1108_v37 = vadd.f32 1e-06, %v1076_v10 }
 0x2cb   : > { %v1039_v62 = vpop.xlane.xlu0 %1038  ;;  %v1376_v8 = vpack.c.bf16 %v1336_v29, %v1334_v0  ;;  %v1375_v55 = vpack.c.bf16 %v1335_v21, %v1333_v32  ;;  %v1266_v20 = vmul.f32 %v11558_v61, %v1194_v28  ;;  %v1265_v16 = vmul.f32 %v11572_v60, %v1193_v11 }
 0x2cc   : > { %9426 = vrsqrt.f32 %v1108_v37  ;;  %v1077_v17 = vmul.f32 0.00390625, %v1039_v62  ;;  %v9423_v43 = vpop.eup %9422 }
 0x2cd   : > { %1731 = vmatprep.mubr.bf16.mxu0 %v1376_v8  ;;  %2193 = vmatprep.mubr.bf16.mxu1 %v1376_v8  ;;  %v1196_v25 = vmul.f32 %v9423_v43, %v11595_v40  ;;  %v1195_v57 = vmul.f32 %v9423_v43, %v15594_v26  ;;  %v1338_v39 = vadd.f32 %v11583_v41, %v1266_v20 }
 0x2ce   : > { %v1109_v30 = vadd.f32 1e-06, %v1077_v17  ;;  %1732 = vmatmul.mubr.bf16.gmra.mrb[44].mxu0 %v1375_v55  ;;  %2194 = vmatmul.mubr.bf16.gmra.mrb[44].mxu1 %v1375_v55  ;;  %v1337_v2 = vadd.f32 %v11587_v19, %v1265_v16 }
 0x2cf   : > { %v1042_v34 = vpop.xlane.xlu1 %1041  ;;  %v1268_v36 = vmul.f32 %v11558_v61, %v1196_v25  ;;  %v1267_v4 = vmul.f32 %v11572_v60, %v1195_v57  ;;  %v15596_v25 = vld [vmem:[#allocation40_spill] sm:$0xff] }
 0x2d0   : > { %v1078_v24 = vmul.f32 0.00390625, %v1042_v34  ;;  %9428 = vrsqrt.f32 %v1109_v30  ;;  %v15595_v30 = vld [vmem:[#allocation58_spill] sm:$0xff] }
 0x2d1   : > { %v9425_v48 = vpop.eup %9424  ;;  %v1340_v7 = vadd.f32 %v11583_v41, %v1268_v36  ;;  %v1339_v40 = vadd.f32 %v11587_v19, %v1267_v4 }
 0x2d2   : > { %v1110_v51 = vadd.f32 1e-06, %v1078_v24  ;;  %v1198_v54 = vmul.f32 %v9425_v48, %v11613_v3  ;;  %v1197_v5 = vmul.f32 %v9425_v48, %v11609_v45 }
 0x2d3   : > { %v1045_v59 = vpop.xlane.xlu0 %1044  ;;  %v1378_v6 = vpack.c.bf16 %v1340_v7, %v1338_v39  ;;  %v1377_v14 = vpack.c.bf16 %v1339_v40, %v1337_v2  ;;  %v15598_v2 = vld [vmem:[#allocation53_spill] sm:$0xff]  ;;  %v15599_v40 = vld [vmem:[#allocation56_spill] sm:$0xff] }
 0x2d4   : > { %9430 = vrsqrt.f32 %v1110_v51  ;;  %v1079_v27 = vmul.f32 0.00390625, %v1045_v59  ;;  %v1270_v22 = vmul.f32 %v11558_v61, %v1198_v54  ;;  %v1269_v18 = vmul.f32 %v11572_v60, %v1197_v5 }
 0x2d5   : > { %1741 = vmatprep.mubr.bf16.mxu0 %v1378_v6  ;;  %2203 = vmatprep.mubr.bf16.mxu1 %v1378_v6 }
 0x2d6   : > { %v9427_v44 = vpop.eup %9426  ;;  %v1111_v38 = vadd.f32 1e-06, %v1079_v27  ;;  %1742 = vmatmul.mubr.bf16.gmra.mrb[48].mxu0 %v1377_v14  ;;  %2204 = vmatmul.mubr.bf16.gmra.mrb[48].mxu1 %v1377_v14  ;;  %v1342_v15 = vadd.f32 %v11583_v41, %v1270_v22 }
 0x2d7   : > { %v1200_v12 = vmul.f32 %v9427_v44, %v11630_v13  ;;  %v1199_v9 = vmul.f32 %v9427_v44, %v11626_v47  ;;  %v1341_v13 = vadd.f32 %v11587_v19, %v1269_v18 }
 0x2d8   : > { %v1048_v42 = vpop.xlane.xlu1 %1047  ;;  %9432 = vrsqrt.f32 %v1111_v38 }
 0x2d9   : > { %v1080_v3 = vmul.f32 0.00390625, %v1048_v42  ;;  %v1272_v45 = vmul.f32 %v11558_v61, %v1200_v12  ;;  %v1271_v52 = vmul.f32 %v11572_v60, %v1199_v9 }
 0x2da   : > { %v9429_v49 = vpop.eup %9428 }
 0x2db   : > { %v1112_v58 = vadd.f32 1e-06, %v1080_v3  ;;  %v1344_v63 = vadd.f32 %v11583_v41, %v1272_v45  ;;  %v1343_v47 = vadd.f32 %v11587_v19, %v1271_v52  ;;  %v1202_v10 = vmul.f32 %v9429_v49, %v11648_v31 }
 0x2dc   : > { %v1201_v35 = vmul.f32 %v9429_v49, %v11644_v50 }
 0x2dd   : > { %9434 = vrsqrt.f32 %v1112_v58  ;;  %v1380_v23 = vpack.c.bf16 %v1344_v63, %v1342_v15  ;;  %v1379_v56 = vpack.c.bf16 %v1343_v47, %v1341_v13  ;;  %v1274_v0 = vmul.f32 %v11558_v61, %v1202_v10 }
 0x2de   : > { %v9431_v37 = vpop.eup %9430  ;;  %v1273_v32 = vmul.f32 %v11572_v60, %v1201_v35 }
 0x2df   : > { %1751 = vmatprep.mubr.bf16.mxu0 %v1380_v23  ;;  %2213 = vmatprep.mubr.bf16.mxu1 %v1380_v23  ;;  %v1204_v29 = vmul.f32 %v9431_v37, %v11665_v33  ;;  %v1203_v21 = vmul.f32 %v9431_v37, %v11661_v53  ;;  %v1346_v11 = vadd.f32 %v11583_v41, %v1274_v0 }
 0x2e0   : > { %1752 = vmatmul.mubr.bf16.gmra.mrb[52].mxu0 %v1379_v56  ;;  %2214 = vmatmul.mubr.bf16.gmra.mrb[52].mxu1 %v1379_v56  ;;  %v1345_v62 = vadd.f32 %v11587_v19, %v1273_v32 }
 0x2e1   : > { %v1276_v28 = vmul.f32 %v11558_v61, %v1204_v29  ;;  %v1275_v31 = vmul.f32 %v11572_v60, %v1203_v21 }
 0x2e2   : > { %v9433_v50 = vpop.eup %9432 }
 0x2e3   : > { %v1348_v17 = vadd.f32 %v11583_v41, %v1276_v28  ;;  %v1347_v8 = vadd.f32 %v11587_v19, %v1275_v31  ;;  %v1206_v55 = vmul.f32 %v9433_v50, %v11681_v1  ;;  %v1205_v33 = vmul.f32 %v9433_v50, %v11677_v46 }
 0x2e5   : > { %v1382_v53 = vpack.c.bf16 %v1348_v17, %v1346_v11  ;;  %v1381_v43 = vpack.c.bf16 %v1347_v8, %v1345_v62  ;;  %v1278_v16 = vmul.f32 %v11558_v61, %v1206_v55  ;;  %v1277_v57 = vmul.f32 %v11572_v60, %v1205_v33 }
 0x2e7   : > { %v9435_v20 = vpop.eup %9434  ;;  %1761 = vmatprep.mubr.bf16.mxu0 %v1382_v53  ;;  %2223 = vmatprep.mubr.bf16.mxu1 %v1382_v53  ;;  %v1350_v46 = vadd.f32 %v11583_v41, %v1278_v16  ;;  %v1349_v4 = vadd.f32 %v11587_v19, %v1277_v57 }
 0x2e8   : > { %v1208_v34 = vmul.f32 %v9435_v20, %v15595_v30  ;;  %v1207_v26 = vmul.f32 %v9435_v20, %v15596_v25  ;;  %1762 = vmatmul.mubr.bf16.gmra.mrb[56].mxu0 %v1381_v43  ;;  %2224 = vmatmul.mubr.bf16.gmra.mrb[56].mxu1 %v1381_v43 }
 0x2ea   : > { %v1280_v24 = vmul.f32 %v11558_v61, %v1208_v34  ;;  %v1279_v1 = vmul.f32 %v11572_v60, %v1207_v26  ;;  %v1417_v61 = vld [vmem:[%s15208_s5] sm:$0x3] }
 0x2eb   : > { %v1879_v60 = vld [vmem:[%s15597_s28] sm:$0x3]  ;;  %v11875_v54 = vrot.slane %v1417_v61, %v15599_v40 }
 0x2ec   : > { %v1352_v36 = vadd.f32 %v11583_v41, %v1280_v24  ;;  %v1351_v48 = vadd.f32 %v11587_v19, %v1279_v1  ;;  %v11869_v41 = vrot.slane %v1417_v61, %v15598_v2  ;;  %v11872_v59 = vrot.slane %v1879_v60, %v15598_v2 }
 0x2ed   : > { %v11878_v5 = vrot.slane %v1879_v60, %v15599_v40 }
 0x2ee   : > { %v1384_v51 = vpack.c.bf16 %v1352_v36, %v1350_v46  ;;  %v1383_v39 = vpack.c.bf16 %v1351_v48, %v1349_v4 }
 0x2f0   : > { %1771 = vmatprep.mubr.bf16.mxu0 %v1384_v51  ;;  %2233 = vmatprep.mubr.bf16.mxu1 %v1384_v51 }
 0x2f1   : > { %1772 = vmatmul.mubr.bf16.gmra.mrb[60].mxu0 %v1383_v39  ;;  %2234 = vmatmul.mubr.bf16.gmra.mrb[60].mxu1 %v1383_v39 }
 0x306   : > { %v1623_v19 = vpop.f32.mrb[0].mxu0  ;;  %v2085_v7 = vpop.f32.mrb[0].mxu1 }
 0x307   : > { %v1625_v27 = vpop.f32.mrb[1].mxu0  ;;  %v2087_v6 = vpop.f32.mrb[1].mxu1  ;;  %v1624_v38 = vadd.f32 %v1623_v19, %v11869_v41  ;;  %v2086_v22 = vadd.f32 %v2085_v7, %v11872_v59 }
 0x308   : > { %v1627_v14 = vpop.f32.mrb[2].mxu0  ;;  %v2089_v44 = vpop.f32.mrb[2].mxu1  ;;  %v1626_v3 = vadd.f32 %v1625_v27, %v11875_v54  ;;  %v2088_v45 = vadd.f32 %v2087_v6, %v11878_v5 }
 0x309   : > { %v1628_v42 = vadd.f32 %v1627_v14, %v11869_v41  ;;  %v2090_v12 = vadd.f32 %v2089_v44, %v11872_v59  ;;  %v1629_v9 = vpop.f32.mrb[3].mxu0  ;;  %v2091_v18 = vpop.f32.mrb[3].mxu1 }
 0x30a   : > { %v1630_v52 = vadd.f32 %v1629_v9, %v11875_v54  ;;  %v2092_v58 = vadd.f32 %v2091_v18, %v11878_v5 }
 0x30b   : > { %v1782_v49 = vpack.c.bf16 %v1628_v42, %v1624_v38  ;;  %v2244_v15 = vpack.c.bf16 %v2090_v12, %v2086_v22 }
 0x30c   : > { %v1783_v63 = vpack.c.bf16 %v1630_v52, %v1626_v3  ;;  %v2245_v13 = vpack.c.bf16 %v2092_v58, %v2088_v45 }
 0x30d   : > { %1814 = vst [vmem:[#allocation2] sm:$0xff] %v1782_v49  ;;  %2276 = vst [vmem:[#allocation3] sm:$0xff] %v2244_v15 }
 0x30e   : > { %1831 = vst [vmem:[#allocation2 + $0x80] sm:$0xff] %v1783_v63  ;;  %2293 = vst [vmem:[#allocation3 + $0x80] sm:$0xff] %v2245_v13 }
 0x310   : > { %v1633_v47 = vpop.f32.mrb[4].mxu0  ;;  %v2095_v10 = vpop.f32.mrb[4].mxu1 }
 0x311   : > { %v1635_v35 = vpop.f32.mrb[5].mxu0  ;;  %v2097_v23 = vpop.f32.mrb[5].mxu1  ;;  %v1634_v0 = vadd.f32 %v1633_v47, %v11869_v41  ;;  %v2096_v32 = vadd.f32 %v2095_v10, %v11872_v59 }
 0x312   : > { %v1637_v56 = vpop.f32.mrb[6].mxu0  ;;  %v2099_v37 = vpop.f32.mrb[6].mxu1  ;;  %v1636_v50 = vadd.f32 %v1635_v35, %v11875_v54  ;;  %v2098_v11 = vadd.f32 %v2097_v23, %v11878_v5 }
 0x313   : > { %v1638_v29 = vadd.f32 %v1637_v56, %v11869_v41  ;;  %v2100_v21 = vadd.f32 %v2099_v37, %v11872_v59  ;;  %v1639_v28 = vpop.f32.mrb[7].mxu0  ;;  %v2101_v31 = vpop.f32.mrb[7].mxu1 }
 0x314   : > { %v1640_v62 = vadd.f32 %v1639_v28, %v11875_v54  ;;  %v2102_v17 = vadd.f32 %v2101_v31, %v11878_v5 }
 0x315   : > { %v1784_v8 = vpack.c.bf16 %v1638_v29, %v1634_v0  ;;  %v2246_v55 = vpack.c.bf16 %v2100_v21, %v2096_v32 }
 0x316   : > { %v1785_v33 = vpack.c.bf16 %v1640_v62, %v1636_v50  ;;  %v2247_v53 = vpack.c.bf16 %v2102_v17, %v2098_v11 }
 0x317   : > { %1815 = vst [vmem:[#allocation2 + $0x8] sm:$0xff] %v1784_v8  ;;  %2277 = vst [vmem:[#allocation3 + $0x8] sm:$0xff] %v2246_v55 }
 0x318   : > { %1832 = vst [vmem:[#allocation2 + $0x88] sm:$0xff] %v1785_v33  ;;  %2294 = vst [vmem:[#allocation3 + $0x88] sm:$0xff] %v2247_v53 }
 0x31a   : > { %v1643_v43 = vpop.f32.mrb[8].mxu0  ;;  %v2105_v20 = vpop.f32.mrb[8].mxu1 }
 0x31b   : > { %v1645_v16 = vpop.f32.mrb[9].mxu0  ;;  %v2107_v30 = vpop.f32.mrb[9].mxu1  ;;  %v1644_v26 = vadd.f32 %v1643_v43, %v11869_v41  ;;  %v2106_v57 = vadd.f32 %v2105_v20, %v11872_v59 }
 0x31c   : > { %v1647_v34 = vpop.f32.mrb[10].mxu0  ;;  %v2109_v25 = vpop.f32.mrb[10].mxu1  ;;  %v1646_v4 = vadd.f32 %v1645_v16, %v11875_v54  ;;  %v2108_v48 = vadd.f32 %v2107_v30, %v11878_v5 }
 0x31d   : > { %v1648_v24 = vadd.f32 %v1647_v34, %v11869_v41  ;;  %v2110_v1 = vadd.f32 %v2109_v25, %v11872_v59  ;;  %v1649_v46 = vpop.f32.mrb[11].mxu0  ;;  %v2111_v36 = vpop.f32.mrb[11].mxu1 }
 0x31e   : > { %v1650_v51 = vadd.f32 %v1649_v46, %v11875_v54  ;;  %v2112_v39 = vadd.f32 %v2111_v36, %v11878_v5 }
 0x31f   : > { %v1786_v61 = vpack.c.bf16 %v1648_v24, %v1644_v26  ;;  %v2248_v60 = vpack.c.bf16 %v2110_v1, %v2106_v57 }
 0x320   : > { %v1787_v2 = vpack.c.bf16 %v1650_v51, %v1646_v4  ;;  %v2249_v19 = vpack.c.bf16 %v2112_v39, %v2108_v48 }
 0x321   : > { %1816 = vst [vmem:[#allocation2 + $0x10] sm:$0xff] %v1786_v61  ;;  %2278 = vst [vmem:[#allocation3 + $0x10] sm:$0xff] %v2248_v60 }
 0x322   : > { %1833 = vst [vmem:[#allocation2 + $0x90] sm:$0xff] %v1787_v2  ;;  %2295 = vst [vmem:[#allocation3 + $0x90] sm:$0xff] %v2249_v19 }
 0x323   : > { %v1653_v7 = vpop.f32.mrb[12].mxu0  ;;  %v2115_v40 = vpop.f32.mrb[12].mxu1 }
 0x324   : > { %v1655_v27 = vpop.f32.mrb[13].mxu0  ;;  %v2117_v6 = vpop.f32.mrb[13].mxu1  ;;  %v1654_v38 = vadd.f32 %v1653_v7, %v11869_v41  ;;  %v2116_v22 = vadd.f32 %v2115_v40, %v11872_v59 }
 0x325   : > { %v1657_v14 = vpop.f32.mrb[14].mxu0  ;;  %v2119_v44 = vpop.f32.mrb[14].mxu1  ;;  %v1656_v3 = vadd.f32 %v1655_v27, %v11875_v54  ;;  %v2118_v45 = vadd.f32 %v2117_v6, %v11878_v5 }
 0x326   : > { %v1658_v42 = vadd.f32 %v1657_v14, %v11869_v41  ;;  %v2120_v12 = vadd.f32 %v2119_v44, %v11872_v59  ;;  %v1659_v9 = vpop.f32.mrb[15].mxu0  ;;  %v2121_v18 = vpop.f32.mrb[15].mxu1 }
 0x327   : > { %v1660_v52 = vadd.f32 %v1659_v9, %v11875_v54  ;;  %v2122_v58 = vadd.f32 %v2121_v18, %v11878_v5 }
 0x328   : > { %v1788_v49 = vpack.c.bf16 %v1658_v42, %v1654_v38  ;;  %v2250_v15 = vpack.c.bf16 %v2120_v12, %v2116_v22 }
 0x329   : > { %v1789_v63 = vpack.c.bf16 %v1660_v52, %v1656_v3  ;;  %v2251_v13 = vpack.c.bf16 %v2122_v58, %v2118_v45 }
 0x32a   : > { %1817 = vst [vmem:[#allocation2 + $0x18] sm:$0xff] %v1788_v49  ;;  %2279 = vst [vmem:[#allocation3 + $0x18] sm:$0xff] %v2250_v15 }
 0x32b   : > { %1834 = vst [vmem:[#allocation2 + $0x98] sm:$0xff] %v1789_v63  ;;  %2296 = vst [vmem:[#allocation3 + $0x98] sm:$0xff] %v2251_v13  ;;  %v1663_v47 = vpop.f32.mrb[16].mxu0  ;;  %v2125_v10 = vpop.f32.mrb[16].mxu1 }
 0x32c   : > { %v1665_v35 = vpop.f32.mrb[17].mxu0  ;;  %v2127_v23 = vpop.f32.mrb[17].mxu1  ;;  %v1664_v0 = vadd.f32 %v1663_v47, %v11869_v41  ;;  %v2126_v32 = vadd.f32 %v2125_v10, %v11872_v59 }
 0x32d   : > { %v1667_v56 = vpop.f32.mrb[18].mxu0  ;;  %v2129_v37 = vpop.f32.mrb[18].mxu1  ;;  %v1666_v50 = vadd.f32 %v1665_v35, %v11875_v54  ;;  %v2128_v11 = vadd.f32 %v2127_v23, %v11878_v5 }
 0x32e   : > { %v1668_v29 = vadd.f32 %v1667_v56, %v11869_v41  ;;  %v2130_v21 = vadd.f32 %v2129_v37, %v11872_v59  ;;  %v1669_v28 = vpop.f32.mrb[19].mxu0  ;;  %v2131_v31 = vpop.f32.mrb[19].mxu1 }
 0x32f   : > { %v1670_v62 = vadd.f32 %v1669_v28, %v11875_v54  ;;  %v2132_v17 = vadd.f32 %v2131_v31, %v11878_v5 }
 0x330   : > { %v1790_v8 = vpack.c.bf16 %v1668_v29, %v1664_v0  ;;  %v2252_v55 = vpack.c.bf16 %v2130_v21, %v2126_v32 }
 0x331   : > { %v1791_v33 = vpack.c.bf16 %v1670_v62, %v1666_v50  ;;  %v2253_v53 = vpack.c.bf16 %v2132_v17, %v2128_v11 }
 0x332   : > { %1818 = vst [vmem:[#allocation2 + $0x20] sm:$0xff] %v1790_v8  ;;  %2280 = vst [vmem:[#allocation3 + $0x20] sm:$0xff] %v2252_v55 }
 0x333   : > { %1835 = vst [vmem:[#allocation2 + $0xa0] sm:$0xff] %v1791_v33  ;;  %2297 = vst [vmem:[#allocation3 + $0xa0] sm:$0xff] %v2253_v53  ;;  %v1673_v43 = vpop.f32.mrb[20].mxu0  ;;  %v2135_v20 = vpop.f32.mrb[20].mxu1 }
 0x334   : > { %v1675_v16 = vpop.f32.mrb[21].mxu0  ;;  %v2137_v30 = vpop.f32.mrb[21].mxu1  ;;  %v1674_v26 = vadd.f32 %v1673_v43, %v11869_v41  ;;  %v2136_v57 = vadd.f32 %v2135_v20, %v11872_v59 }
 0x335   : > { %v1677_v34 = vpop.f32.mrb[22].mxu0  ;;  %v2139_v25 = vpop.f32.mrb[22].mxu1  ;;  %v1676_v4 = vadd.f32 %v1675_v16, %v11875_v54  ;;  %v2138_v48 = vadd.f32 %v2137_v30, %v11878_v5 }
 0x336   : > { %v1678_v24 = vadd.f32 %v1677_v34, %v11869_v41  ;;  %v2140_v1 = vadd.f32 %v2139_v25, %v11872_v59  ;;  %v1679_v46 = vpop.f32.mrb[23].mxu0  ;;  %v2141_v36 = vpop.f32.mrb[23].mxu1 }
 0x337   : > { %v1680_v51 = vadd.f32 %v1679_v46, %v11875_v54  ;;  %v2142_v39 = vadd.f32 %v2141_v36, %v11878_v5 }
 0x338   : > { %v1792_v61 = vpack.c.bf16 %v1678_v24, %v1674_v26  ;;  %v2254_v60 = vpack.c.bf16 %v2140_v1, %v2136_v57 }
 0x339   : > { %v1793_v2 = vpack.c.bf16 %v1680_v51, %v1676_v4  ;;  %v2255_v19 = vpack.c.bf16 %v2142_v39, %v2138_v48 }
 0x33a   : > { %1819 = vst [vmem:[#allocation2 + $0x28] sm:$0xff] %v1792_v61  ;;  %2281 = vst [vmem:[#allocation3 + $0x28] sm:$0xff] %v2254_v60 }
 0x33b   : > { %1836 = vst [vmem:[#allocation2 + $0xa8] sm:$0xff] %v1793_v2  ;;  %2298 = vst [vmem:[#allocation3 + $0xa8] sm:$0xff] %v2255_v19  ;;  %v1683_v7 = vpop.f32.mrb[24].mxu0  ;;  %v2145_v40 = vpop.f32.mrb[24].mxu1 }
 0x33c   : > { %v1685_v27 = vpop.f32.mrb[25].mxu0  ;;  %v2147_v6 = vpop.f32.mrb[25].mxu1  ;;  %v1684_v38 = vadd.f32 %v1683_v7, %v11869_v41  ;;  %v2146_v22 = vadd.f32 %v2145_v40, %v11872_v59 }
 0x33d   : > { %v1687_v14 = vpop.f32.mrb[26].mxu0  ;;  %v2149_v44 = vpop.f32.mrb[26].mxu1  ;;  %v1686_v3 = vadd.f32 %v1685_v27, %v11875_v54  ;;  %v2148_v45 = vadd.f32 %v2147_v6, %v11878_v5 }
 0x33e   : > { %v1688_v42 = vadd.f32 %v1687_v14, %v11869_v41  ;;  %v2150_v12 = vadd.f32 %v2149_v44, %v11872_v59  ;;  %v1689_v9 = vpop.f32.mrb[27].mxu0  ;;  %v2151_v18 = vpop.f32.mrb[27].mxu1 }
 0x33f   : > { %v1690_v52 = vadd.f32 %v1689_v9, %v11875_v54  ;;  %v2152_v58 = vadd.f32 %v2151_v18, %v11878_v5 }
 0x340   : > { %v1794_v49 = vpack.c.bf16 %v1688_v42, %v1684_v38  ;;  %v2256_v15 = vpack.c.bf16 %v2150_v12, %v2146_v22 }
 0x341   : > { %v1795_v63 = vpack.c.bf16 %v1690_v52, %v1686_v3  ;;  %v2257_v13 = vpack.c.bf16 %v2152_v58, %v2148_v45 }
 0x342   : > { %1820 = vst [vmem:[#allocation2 + $0x30] sm:$0xff] %v1794_v49  ;;  %2282 = vst [vmem:[#allocation3 + $0x30] sm:$0xff] %v2256_v15 }
 0x343   : > { %1837 = vst [vmem:[#allocation2 + $0xb0] sm:$0xff] %v1795_v63  ;;  %2299 = vst [vmem:[#allocation3 + $0xb0] sm:$0xff] %v2257_v13  ;;  %v1693_v47 = vpop.f32.mrb[28].mxu0  ;;  %v2155_v10 = vpop.f32.mrb[28].mxu1 }
 0x344   : > { %v1695_v35 = vpop.f32.mrb[29].mxu0  ;;  %v2157_v23 = vpop.f32.mrb[29].mxu1  ;;  %v1694_v0 = vadd.f32 %v1693_v47, %v11869_v41  ;;  %v2156_v32 = vadd.f32 %v2155_v10, %v11872_v59 }
 0x345   : > { %v1697_v56 = vpop.f32.mrb[30].mxu0  ;;  %v2159_v37 = vpop.f32.mrb[30].mxu1  ;;  %v1696_v50 = vadd.f32 %v1695_v35, %v11875_v54  ;;  %v2158_v11 = vadd.f32 %v2157_v23, %v11878_v5 }
 0x346   : > { %v1698_v29 = vadd.f32 %v1697_v56, %v11869_v41  ;;  %v2160_v21 = vadd.f32 %v2159_v37, %v11872_v59  ;;  %v1699_v28 = vpop.f32.mrb[31].mxu0  ;;  %v2161_v31 = vpop.f32.mrb[31].mxu1 }
 0x347   : > { %v1700_v62 = vadd.f32 %v1699_v28, %v11875_v54  ;;  %v2162_v17 = vadd.f32 %v2161_v31, %v11878_v5 }
 0x348   : > { %v1796_v8 = vpack.c.bf16 %v1698_v29, %v1694_v0  ;;  %v2258_v55 = vpack.c.bf16 %v2160_v21, %v2156_v32 }
 0x349   : > { %v1797_v33 = vpack.c.bf16 %v1700_v62, %v1696_v50  ;;  %v2259_v53 = vpack.c.bf16 %v2162_v17, %v2158_v11 }
 0x34a   : > { %1821 = vst [vmem:[#allocation2 + $0x38] sm:$0xff] %v1796_v8  ;;  %2283 = vst [vmem:[#allocation3 + $0x38] sm:$0xff] %v2258_v55 }
 0x34b   : > { %1838 = vst [vmem:[#allocation2 + $0xb8] sm:$0xff] %v1797_v33  ;;  %2300 = vst [vmem:[#allocation3 + $0xb8] sm:$0xff] %v2259_v53  ;;  %v1703_v43 = vpop.f32.mrb[32].mxu0  ;;  %v2165_v20 = vpop.f32.mrb[32].mxu1 }
 0x34c   : > { %v1705_v16 = vpop.f32.mrb[33].mxu0  ;;  %v2167_v30 = vpop.f32.mrb[33].mxu1  ;;  %v1704_v26 = vadd.f32 %v1703_v43, %v11869_v41  ;;  %v2166_v57 = vadd.f32 %v2165_v20, %v11872_v59 }
 0x34d   : > { %v1707_v34 = vpop.f32.mrb[34].mxu0  ;;  %v2169_v25 = vpop.f32.mrb[34].mxu1  ;;  %v1706_v4 = vadd.f32 %v1705_v16, %v11875_v54  ;;  %v2168_v48 = vadd.f32 %v2167_v30, %v11878_v5 }
 0x34e   : > { %v1708_v24 = vadd.f32 %v1707_v34, %v11869_v41  ;;  %v2170_v1 = vadd.f32 %v2169_v25, %v11872_v59  ;;  %v1709_v46 = vpop.f32.mrb[35].mxu0  ;;  %v2171_v36 = vpop.f32.mrb[35].mxu1 }
 0x34f   : > { %v1710_v51 = vadd.f32 %v1709_v46, %v11875_v54  ;;  %v2172_v39 = vadd.f32 %v2171_v36, %v11878_v5 }
 0x350   : > { %v1798_v61 = vpack.c.bf16 %v1708_v24, %v1704_v26  ;;  %v2260_v60 = vpack.c.bf16 %v2170_v1, %v2166_v57 }
 0x351   : > { %v1799_v2 = vpack.c.bf16 %v1710_v51, %v1706_v4  ;;  %v2261_v19 = vpack.c.bf16 %v2172_v39, %v2168_v48 }
 0x352   : > { %1822 = vst [vmem:[#allocation2 + $0x40] sm:$0xff] %v1798_v61  ;;  %2284 = vst [vmem:[#allocation3 + $0x40] sm:$0xff] %v2260_v60 }
 0x353   : > { %1839 = vst [vmem:[#allocation2 + $0xc0] sm:$0xff] %v1799_v2  ;;  %2301 = vst [vmem:[#allocation3 + $0xc0] sm:$0xff] %v2261_v19  ;;  %v1713_v7 = vpop.f32.mrb[36].mxu0  ;;  %v2175_v40 = vpop.f32.mrb[36].mxu1 }
 0x354   : > { %v1715_v27 = vpop.f32.mrb[37].mxu0  ;;  %v2177_v6 = vpop.f32.mrb[37].mxu1  ;;  %v1714_v38 = vadd.f32 %v1713_v7, %v11869_v41  ;;  %v2176_v22 = vadd.f32 %v2175_v40, %v11872_v59 }
 0x355   : > { %v1717_v14 = vpop.f32.mrb[38].mxu0  ;;  %v2179_v44 = vpop.f32.mrb[38].mxu1  ;;  %v1716_v3 = vadd.f32 %v1715_v27, %v11875_v54  ;;  %v2178_v45 = vadd.f32 %v2177_v6, %v11878_v5 }
 0x356   : > { %v1718_v42 = vadd.f32 %v1717_v14, %v11869_v41  ;;  %v2180_v12 = vadd.f32 %v2179_v44, %v11872_v59  ;;  %v1719_v9 = vpop.f32.mrb[39].mxu0  ;;  %v2181_v18 = vpop.f32.mrb[39].mxu1 }
 0x357   : > { %v1720_v52 = vadd.f32 %v1719_v9, %v11875_v54  ;;  %v2182_v58 = vadd.f32 %v2181_v18, %v11878_v5 }
 0x358   : > { %v1800_v49 = vpack.c.bf16 %v1718_v42, %v1714_v38  ;;  %v2262_v15 = vpack.c.bf16 %v2180_v12, %v2176_v22 }
 0x359   : > { %v1801_v63 = vpack.c.bf16 %v1720_v52, %v1716_v3  ;;  %v2263_v13 = vpack.c.bf16 %v2182_v58, %v2178_v45 }
 0x35a   : > { %1823 = vst [vmem:[#allocation2 + $0x48] sm:$0xff] %v1800_v49  ;;  %2285 = vst [vmem:[#allocation3 + $0x48] sm:$0xff] %v2262_v15 }
 0x35b   : > { %1840 = vst [vmem:[#allocation2 + $0xc8] sm:$0xff] %v1801_v63  ;;  %2302 = vst [vmem:[#allocation3 + $0xc8] sm:$0xff] %v2263_v13  ;;  %v1723_v47 = vpop.f32.mrb[40].mxu0  ;;  %v2185_v10 = vpop.f32.mrb[40].mxu1 }
 0x35c   : > { %v1725_v35 = vpop.f32.mrb[41].mxu0  ;;  %v2187_v23 = vpop.f32.mrb[41].mxu1  ;;  %v1724_v0 = vadd.f32 %v1723_v47, %v11869_v41  ;;  %v2186_v32 = vadd.f32 %v2185_v10, %v11872_v59 }
 0x35d   : > { %v1727_v56 = vpop.f32.mrb[42].mxu0  ;;  %v2189_v37 = vpop.f32.mrb[42].mxu1  ;;  %v1726_v50 = vadd.f32 %v1725_v35, %v11875_v54  ;;  %v2188_v11 = vadd.f32 %v2187_v23, %v11878_v5 }
 0x35e   : > { %v1728_v29 = vadd.f32 %v1727_v56, %v11869_v41  ;;  %v2190_v21 = vadd.f32 %v2189_v37, %v11872_v59  ;;  %v1729_v28 = vpop.f32.mrb[43].mxu0  ;;  %v2191_v31 = vpop.f32.mrb[43].mxu1 }
 0x35f   : > { %v1730_v62 = vadd.f32 %v1729_v28, %v11875_v54  ;;  %v2192_v17 = vadd.f32 %v2191_v31, %v11878_v5 }
 0x360   : > { %v1802_v8 = vpack.c.bf16 %v1728_v29, %v1724_v0  ;;  %v2264_v55 = vpack.c.bf16 %v2190_v21, %v2186_v32 }
 0x361   : > { %v1803_v33 = vpack.c.bf16 %v1730_v62, %v1726_v50  ;;  %v2265_v53 = vpack.c.bf16 %v2192_v17, %v2188_v11 }
 0x362   : > { %1824 = vst [vmem:[#allocation2 + $0x50] sm:$0xff] %v1802_v8  ;;  %2286 = vst [vmem:[#allocation3 + $0x50] sm:$0xff] %v2264_v55 }
 0x363   : > { %1841 = vst [vmem:[#allocation2 + $0xd0] sm:$0xff] %v1803_v33  ;;  %2303 = vst [vmem:[#allocation3 + $0xd0] sm:$0xff] %v2265_v53 }
 0x3a1   : > { %v1733_v43 = vpop.f32.mrb[44].mxu0  ;;  %v2195_v20 = vpop.f32.mrb[44].mxu1 }
 0x3a2   : > { %v1735_v16 = vpop.f32.mrb[45].mxu0  ;;  %v2197_v30 = vpop.f32.mrb[45].mxu1  ;;  %v1734_v26 = vadd.f32 %v1733_v43, %v11869_v41  ;;  %v2196_v57 = vadd.f32 %v2195_v20, %v11872_v59 }
 0x3a3   : > { %v1737_v34 = vpop.f32.mrb[46].mxu0  ;;  %v2199_v25 = vpop.f32.mrb[46].mxu1  ;;  %v1736_v4 = vadd.f32 %v1735_v16, %v11875_v54  ;;  %v2198_v48 = vadd.f32 %v2197_v30, %v11878_v5 }
 0x3a4   : > { %v1738_v24 = vadd.f32 %v1737_v34, %v11869_v41  ;;  %v2200_v1 = vadd.f32 %v2199_v25, %v11872_v59  ;;  %v1739_v46 = vpop.f32.mrb[47].mxu0  ;;  %v2201_v36 = vpop.f32.mrb[47].mxu1 }
 0x3a5   : > { %v1740_v51 = vadd.f32 %v1739_v46, %v11875_v54  ;;  %v2202_v39 = vadd.f32 %v2201_v36, %v11878_v5 }
 0x3a6   : > { %v1804_v61 = vpack.c.bf16 %v1738_v24, %v1734_v26  ;;  %v2266_v60 = vpack.c.bf16 %v2200_v1, %v2196_v57 }
 0x3a7   : > { %v1805_v2 = vpack.c.bf16 %v1740_v51, %v1736_v4  ;;  %v2267_v19 = vpack.c.bf16 %v2202_v39, %v2198_v48 }
 0x3a8   : > { %1825 = vst [vmem:[#allocation2 + $0x58] sm:$0xff] %v1804_v61  ;;  %2287 = vst [vmem:[#allocation3 + $0x58] sm:$0xff] %v2266_v60 }
 0x3a9   : > { %1842 = vst [vmem:[#allocation2 + $0xd8] sm:$0xff] %v1805_v2  ;;  %2304 = vst [vmem:[#allocation3 + $0xd8] sm:$0xff] %v2267_v19  ;;  %v1743_v7 = vpop.f32.mrb[48].mxu0  ;;  %v2205_v40 = vpop.f32.mrb[48].mxu1 }
 0x3aa   : > { %v1745_v27 = vpop.f32.mrb[49].mxu0  ;;  %v2207_v6 = vpop.f32.mrb[49].mxu1  ;;  %v1744_v38 = vadd.f32 %v1743_v7, %v11869_v41  ;;  %v2206_v22 = vadd.f32 %v2205_v40, %v11872_v59 }
 0x3ab   : > { %v1747_v14 = vpop.f32.mrb[50].mxu0  ;;  %v2209_v44 = vpop.f32.mrb[50].mxu1  ;;  %v1746_v3 = vadd.f32 %v1745_v27, %v11875_v54  ;;  %v2208_v45 = vadd.f32 %v2207_v6, %v11878_v5 }
 0x3ac   : > { %v1748_v42 = vadd.f32 %v1747_v14, %v11869_v41  ;;  %v2210_v12 = vadd.f32 %v2209_v44, %v11872_v59  ;;  %v1749_v9 = vpop.f32.mrb[51].mxu0  ;;  %v2211_v18 = vpop.f32.mrb[51].mxu1 }
 0x3ad   : > { %v1750_v52 = vadd.f32 %v1749_v9, %v11875_v54  ;;  %v2212_v58 = vadd.f32 %v2211_v18, %v11878_v5 }
 0x3ae   : > { %v1806_v49 = vpack.c.bf16 %v1748_v42, %v1744_v38  ;;  %v2268_v15 = vpack.c.bf16 %v2210_v12, %v2206_v22 }
 0x3af   : > { %v1807_v63 = vpack.c.bf16 %v1750_v52, %v1746_v3  ;;  %v2269_v13 = vpack.c.bf16 %v2212_v58, %v2208_v45 }
 0x3b0   : > { %1826 = vst [vmem:[#allocation2 + $0x60] sm:$0xff] %v1806_v49  ;;  %2288 = vst [vmem:[#allocation3 + $0x60] sm:$0xff] %v2268_v15 }
 0x3b1   : > { %1843 = vst [vmem:[#allocation2 + $0xe0] sm:$0xff] %v1807_v63  ;;  %2305 = vst [vmem:[#allocation3 + $0xe0] sm:$0xff] %v2269_v13 }
 0x3b3   : > { %v1753_v47 = vpop.f32.mrb[52].mxu0  ;;  %v2215_v10 = vpop.f32.mrb[52].mxu1 }
 0x3b4   : > { %v1755_v35 = vpop.f32.mrb[53].mxu0  ;;  %v2217_v23 = vpop.f32.mrb[53].mxu1  ;;  %v1754_v0 = vadd.f32 %v1753_v47, %v11869_v41  ;;  %v2216_v32 = vadd.f32 %v2215_v10, %v11872_v59 }
 0x3b5   : > { %v1757_v56 = vpop.f32.mrb[54].mxu0  ;;  %v2219_v37 = vpop.f32.mrb[54].mxu1  ;;  %v1756_v50 = vadd.f32 %v1755_v35, %v11875_v54  ;;  %v2218_v11 = vadd.f32 %v2217_v23, %v11878_v5 }
 0x3b6   : > { %v1758_v29 = vadd.f32 %v1757_v56, %v11869_v41  ;;  %v2220_v21 = vadd.f32 %v2219_v37, %v11872_v59  ;;  %v1759_v28 = vpop.f32.mrb[55].mxu0  ;;  %v2221_v31 = vpop.f32.mrb[55].mxu1 }
 0x3b7   : > { %v1760_v62 = vadd.f32 %v1759_v28, %v11875_v54  ;;  %v2222_v17 = vadd.f32 %v2221_v31, %v11878_v5 }
 0x3b8   : > { %v1808_v8 = vpack.c.bf16 %v1758_v29, %v1754_v0  ;;  %v2270_v55 = vpack.c.bf16 %v2220_v21, %v2216_v32 }
 0x3b9   : > { %v1809_v33 = vpack.c.bf16 %v1760_v62, %v1756_v50  ;;  %v2271_v53 = vpack.c.bf16 %v2222_v17, %v2218_v11 }
 0x3ba   : > { %1827 = vst [vmem:[#allocation2 + $0x68] sm:$0xff] %v1808_v8  ;;  %2289 = vst [vmem:[#allocation3 + $0x68] sm:$0xff] %v2270_v55 }
 0x3bb   : > { %1844 = vst [vmem:[#allocation2 + $0xe8] sm:$0xff] %v1809_v33  ;;  %2306 = vst [vmem:[#allocation3 + $0xe8] sm:$0xff] %v2271_v53  ;;  %v1763_v43 = vpop.f32.mrb[56].mxu0  ;;  %v2225_v20 = vpop.f32.mrb[56].mxu1 }
 0x3bc   : > { %v1765_v16 = vpop.f32.mrb[57].mxu0  ;;  %v2227_v30 = vpop.f32.mrb[57].mxu1  ;;  %v1764_v26 = vadd.f32 %v1763_v43, %v11869_v41  ;;  %v2226_v57 = vadd.f32 %v2225_v20, %v11872_v59 }
 0x3bd   : > { %v1767_v34 = vpop.f32.mrb[58].mxu0  ;;  %v2229_v25 = vpop.f32.mrb[58].mxu1  ;;  %v1766_v4 = vadd.f32 %v1765_v16, %v11875_v54  ;;  %v2228_v48 = vadd.f32 %v2227_v30, %v11878_v5 }
 0x3be   : > { %v1768_v24 = vadd.f32 %v1767_v34, %v11869_v41  ;;  %v2230_v1 = vadd.f32 %v2229_v25, %v11872_v59  ;;  %v1769_v46 = vpop.f32.mrb[59].mxu0  ;;  %v2231_v36 = vpop.f32.mrb[59].mxu1 }
 0x3bf   : > { %v1770_v51 = vadd.f32 %v1769_v46, %v11875_v54  ;;  %v2232_v39 = vadd.f32 %v2231_v36, %v11878_v5 }
 0x3c0   : > { %v1810_v61 = vpack.c.bf16 %v1768_v24, %v1764_v26  ;;  %v2272_v60 = vpack.c.bf16 %v2230_v1, %v2226_v57 }
 0x3c1   : > { %v1811_v2 = vpack.c.bf16 %v1770_v51, %v1766_v4  ;;  %v2273_v19 = vpack.c.bf16 %v2232_v39, %v2228_v48 }
 0x3c2   : > { %1828 = vst [vmem:[#allocation2 + $0x70] sm:$0xff] %v1810_v61  ;;  %2290 = vst [vmem:[#allocation3 + $0x70] sm:$0xff] %v2272_v60 }
 0x3c3   : > { %1845 = vst [vmem:[#allocation2 + $0xf0] sm:$0xff] %v1811_v2  ;;  %2307 = vst [vmem:[#allocation3 + $0xf0] sm:$0xff] %v2273_v19 }
 0x3c4   : > { %v1773_v7 = vpop.f32.mrb[60].mxu0  ;;  %v2235_v40 = vpop.f32.mrb[60].mxu1 }
 0x3c5   : > { %v1775_v27 = vpop.f32.mrb[61].mxu0  ;;  %v2237_v6 = vpop.f32.mrb[61].mxu1  ;;  %v1774_v38 = vadd.f32 %v1773_v7, %v11869_v41  ;;  %v2236_v22 = vadd.f32 %v2235_v40, %v11872_v59 }
 0x3c6   : > { %v1777_v14 = vpop.f32.mrb[62].mxu0  ;;  %v2239_v44 = vpop.f32.mrb[62].mxu1  ;;  %v1776_v3 = vadd.f32 %v1775_v27, %v11875_v54  ;;  %v2238_v45 = vadd.f32 %v2237_v6, %v11878_v5 }
 0x3c7   : > { %v1778_v42 = vadd.f32 %v1777_v14, %v11869_v41  ;;  %v2240_v12 = vadd.f32 %v2239_v44, %v11872_v59  ;;  %v1779_v9 = vpop.f32.mrb[63].mxu0  ;;  %v2241_v18 = vpop.f32.mrb[63].mxu1 }
 0x3c8   : > { %v1780_v52 = vadd.f32 %v1779_v9, %v11875_v54  ;;  %v2242_v58 = vadd.f32 %v2241_v18, %v11878_v5 }
 0x3c9   : > { %v1812_v49 = vpack.c.bf16 %v1778_v42, %v1774_v38  ;;  %v2274_v15 = vpack.c.bf16 %v2240_v12, %v2236_v22 }
 0x3ca   : > { %v1813_v63 = vpack.c.bf16 %v1780_v52, %v1776_v3  ;;  %v2275_v13 = vpack.c.bf16 %v2242_v58, %v2238_v45 }
 0x3cb   : > { %1829 = vst [vmem:[#allocation2 + $0x78] sm:$0xff] %v1812_v49  ;;  %2291 = vst [vmem:[#allocation3 + $0x78] sm:$0xff] %v2274_v15 }
 0x3cc   : > { %1846 = vst [vmem:[#allocation2 + $0xf8] sm:$0xff] %v1813_v63  ;;  %2308 = vst [vmem:[#allocation3 + $0xf8] sm:$0xff] %v2275_v13 }
 0x3cd PF: > { %s8454_s3 = sshll.u32 %s10552_s19, 7  ;;  %s15639_s9 = sld [smem:[#allocation150_spill]] }
 0x3ce   : > { %s12009_s16 = scalar_lea.vmem [#allocation6], %s8454_s3  ;;  %s15706_s29 = sld [smem:[#allocation152_spill]] }
 0x3cf   : > { %v2315_v41 = vld [vmem:[%s12009_s16] sm:$0xff]  ;;  %v2317_v59 = vld [vmem:[%s12009_s16 + $0x10] sm:$0xff]  ;;  %v2316_v54 = vld [vmem:[%s12009_s16 + $0x8] sm:$0xff]  ;;  %s15780_s22 = sld [smem:[#allocation153_spill]]  ;;  %s16004_s23 = sld [smem:[#allocation154_spill]] }
 0x3d0   : > { %v12014_v5 = vunpack.c.l.bf16 %v2315_v41  ;;  %v12016_v47 = vunpack.c.h.bf16 %v2315_v41  ;;  %v12018_v10 = vunpack.c.l.bf16 %v2317_v59  ;;  %v12020_v35 = vunpack.c.h.bf16 %v2317_v59  ;;  %v2318_v23 = vld [vmem:[%s12009_s16 + $0x18] sm:$0xff]  ;;  %v2319_v56 = vld [vmem:[%s12009_s16 + $0x20] sm:$0xff]  ;;  %v2320_v21 = vld [vmem:[%s12009_s16 + $0x28] sm:$0xff]  ;;  %s8787_s18 = sshll.u32 %s10552_s19, 5  ;;  %s8780_s27 = sshll.u32 %s10556_s20, 6 }
 0x3d1   : > { %v12024_v37 = vunpack.c.l.bf16 %v2316_v54  ;;  %v12026_v0 = vunpack.c.h.bf16 %v2316_v54  ;;  %v12028_v32 = vunpack.c.l.bf16 %v2318_v23  ;;  %v12030_v29 = vunpack.c.h.bf16 %v2318_v23  ;;  %v2321_v62 = vld [vmem:[%s12009_s16 + $0x30] sm:$0xff]  ;;  %v2322_v53 = vld [vmem:[%s12009_s16 + $0x38] sm:$0xff]  ;;  %v2323_v43 = vld [vmem:[%s12009_s16 + $0x40] sm:$0xff]  ;;  %s8215_s28 = sadd.s32 %s8787_s18, %s8780_s27  ;;  %s8218_s19 = sshll.u32 %s11004_s14, 4  ;;  %s15129_s19 = int_to_ptr.vmem [resolvable:$true] %s8218_s19 }
 0x3d2   : > { %15600 = vst [vmem:[#allocation59_spill] sm:$0xff] %v12014_v5  ;;  %15601 = vst [vmem:[#allocation60_spill] sm:$0xff] %v12016_v47  ;;  %v2363_v28 = vadd.f32 %v12016_v47, %v12014_v5  ;;  %v2369_v31 = vadd.f32 %v12020_v35, %v12018_v10  ;;  %v12037_v50 = vunpack.c.l.bf16 %v2319_v56  ;;  %v12039_v11 = vunpack.c.h.bf16 %v2319_v56  ;;  %v2324_v30 = vld [vmem:[%s12009_s16 + $0x48] sm:$0xff]  ;;  %v2325_v24 = vld [vmem:[%s12009_s16 + $0x50] sm:$0xff]  ;;  %s16039_s20 = sld [smem:[#allocation32_spill]]  ;;  %s8781_s3 = sshll.u32 %s8215_s28, 7 }
 0x3d3   : > { %15602 = vst [vmem:[#allocation61_spill] sm:$0xff] %v12018_v10  ;;  %15603 = vst [vmem:[#allocation62_spill] sm:$0xff] %v12020_v35  ;;  %v2366_v17 = vadd.f32 %v12026_v0, %v12024_v37  ;;  %v2372_v8 = vadd.f32 %v12030_v29, %v12028_v32  ;;  %v12046_v55 = vunpack.c.l.bf16 %v2320_v21  ;;  %v12048_v33 = vunpack.c.h.bf16 %v2320_v21  ;;  %v2326_v36 = vld [vmem:[%s12009_s16 + $0x58] sm:$0xff]  ;;  %v2327_v61 = vld [vmem:[%s12009_s16 + $0x60] sm:$0xff]  ;;  %s16043_s15 = sld [smem:[#allocation155_spill]]  ;;  %s15142_s7 = scalar_lea.sflag [#allocation8], %s582_s21 }
 0x3d4   : > { %15604 = vst [vmem:[#allocation63_spill] sm:$0xff] %v12024_v37  ;;  %15605 = vst [vmem:[#allocation64_spill] sm:$0xff] %v12026_v0  ;;  %2364 = vadd.xlane.f32.xlu0 %v2363_v28  ;;  %2370 = vadd.xlane.f32.xlu1 %v2369_v31  ;;  %v2375_v20 = vadd.f32 %v12039_v11, %v12037_v50  ;;  %v12054_v16 = vunpack.c.l.bf16 %v2321_v62  ;;  %v12059_v25 = vunpack.c.h.bf16 %v2321_v62  ;;  %v12061_v26 = vunpack.c.l.bf16 %v2322_v53  ;;  %v2328_v19 = vld [vmem:[%s12009_s16 + $0x68] sm:$0xff]  ;;  %v2329_v14 = vld [vmem:[%s12009_s16 + $0x70] sm:$0xff]  ;;  %s10581_s24 = smov [#allocation18]  }
 0x3d5   : > { %15606 = vst [vmem:[#allocation65_spill] sm:$0xff] %v12028_v32  ;;  %15607 = vst [vmem:[#allocation66_spill] sm:$0xff] %v12030_v29  ;;  %v2378_v34 = vadd.f32 %v12048_v33, %v12046_v55  ;;  %v12063_v57 = vunpack.c.h.bf16 %v2322_v53  ;;  %v12066_v1 = vunpack.c.l.bf16 %v2323_v43  ;;  %v12068_v46 = vunpack.c.h.bf16 %v2323_v43  ;;  %v2330_v22 = vld [vmem:[%s12009_s16 + $0x78] sm:$0xff]  ;;  %v9436_v41 = vld [vmem:[#allocation9 + $0x4] ss:$8 sps:$4 sm:$0xff]   ;;  %s10438_s26 = sshll.u32 %s10581_s24, 4  ;;  %s10439_s26 = int_to_ptr.vmem [resolvable:$false] %s10438_s26 }
 0x3d6   : > { %15608 = vst [vmem:[#allocation67_spill] sm:$0xff] %v12037_v50  ;;  %15609 = vst [vmem:[#allocation68_spill] sm:$0xff] %v12039_v11  ;;  %v2381_v4 = vadd.f32 %v12059_v25, %v12054_v16  ;;  %v12075_v51 = vunpack.c.l.bf16 %v2324_v30  ;;  %v12077_v39 = vunpack.c.h.bf16 %v2324_v30  ;;  %v12082_v2 = vunpack.c.l.bf16 %v2325_v24  ;;  %v9438_v59 = vld [vmem:[#allocation9] ss:$8 sps:$4 sm:$0xff]   ;;  %v9439_v54 = vld [vmem:[#allocation9 + $0x14] ss:$8 sps:$4 sm:$0xff]   ;;  %2920 = vmatprep.subr.bf16.mxu1 %v9436_v41  ;;  %p10441_p7 = scmp.lt.s32.totalorder %s15129_s19, %s10439_s26 }
 0x3d7   : > { %15610 = vst [vmem:[#allocation69_spill] sm:$0xff] %v12046_v55  ;;  %15611 = vst [vmem:[#allocation70_spill] sm:$0xff] %v12048_v33  ;;  %v2384_v48 = vadd.f32 %v12063_v57, %v12061_v26  ;;  %v2387_v60 = vadd.f32 %v12068_v46, %v12066_v1  ;;  %v12087_v40 = vunpack.c.h.bf16 %v2325_v24  ;;  %v12089_v27 = vunpack.c.l.bf16 %v2326_v36  ;;  %2921 = vmatpush1.bf16.msra.mxu1 %v9438_v59  ;;  %v9441_v23 = vld [vmem:[#allocation9 + $0x10] ss:$8 sps:$4 sm:$0xff]   ;;  %v9442_v56 = vld [vmem:[#allocation9 + $0x24] ss:$8 sps:$4 sm:$0xff]  }
 0x3d8   : > { %15612 = vst [vmem:[#allocation71_spill] sm:$0xff] %v12054_v16  ;;  %2367 = vadd.xlane.f32.xlu0 %v2366_v17  ;;  %2373 = vadd.xlane.f32.xlu1 %v2372_v8  ;;  %15613 = vst [vmem:[#allocation72_spill] sm:$0xff] %v12059_v25  ;;  %v2390_v7 = vadd.f32 %v12077_v39, %v12075_v51  ;;  %v12091_v6 = vunpack.c.h.bf16 %v2326_v36  ;;  %v12094_v44 = vunpack.c.l.bf16 %v2327_v61  ;;  %v12096_v38 = vunpack.c.h.bf16 %v2327_v61  ;;  %v9444_v21 = vld [vmem:[#allocation9 + $0x20] ss:$8 sps:$4 sm:$0xff]   ;;  %v9445_v28 = vld [vmem:[#allocation9 + $0x34] ss:$8 sps:$4 sm:$0xff]  }
 0x3d9   : > { %15614 = vst [vmem:[#allocation73_spill] sm:$0xff] %v12061_v26  ;;  %15615 = vst [vmem:[#allocation74_spill] sm:$0xff] %v12063_v57  ;;  %v2393_v42 = vadd.f32 %v12087_v40, %v12082_v2  ;;  %v12103_v9 = vunpack.c.l.bf16 %v2328_v19  ;;  %v12105_v18 = vunpack.c.h.bf16 %v2328_v19  ;;  %v12109_v45 = vunpack.c.l.bf16 %v2329_v14  ;;  %2922 = vmatprep.subr.bf16.mxu1 %v9439_v54  ;;  %v9447_v31 = vld [vmem:[#allocation9 + $0x30] ss:$8 sps:$4 sm:$0xff]   ;;  %v9448_v62 = vld [vmem:[#allocation9 + $0x44] ss:$8 sps:$4 sm:$0xff]   ;;  %s15136_s13 = scalar_lea.hbm %s16043_s15, %s8781_s3 }
 0x3da   : > { %15616 = vst [vmem:[#allocation75_spill] sm:$0xff] %v12066_v1  ;;  %15617 = vst [vmem:[#allocation76_spill] sm:$0xff] %v12068_v46  ;;  %v2396_v12 = vadd.f32 %v12091_v6, %v12089_v27  ;;  %v2399_v3 = vadd.f32 %v12096_v38, %v12094_v44  ;;  %v12113_v58 = vunpack.c.h.bf16 %v2329_v14  ;;  %v12115_v49 = vunpack.c.l.bf16 %v2330_v22  ;;  %v9450_v17 = vld [vmem:[#allocation9 + $0x40] ss:$8 sps:$4 sm:$0xff]   ;;  %v9451_v8 = vld [vmem:[#allocation9 + $0x54] ss:$8 sps:$4 sm:$0xff]  }
 0x3db   : > { %15618 = vst [vmem:[#allocation77_spill] sm:$0xff] %v12075_v51  ;;  %15619 = vst [vmem:[#allocation78_spill] sm:$0xff] %v12077_v39  ;;  %v2402_v52 = vadd.f32 %v12105_v18, %v12103_v9  ;;  %v12117_v15 = vunpack.c.h.bf16 %v2330_v22  ;;  %2923 = vmatpush1.bf16.msra.mxu1 %v9441_v23  ;;  %v9453_v53 = vld [vmem:[#allocation9 + $0x50] ss:$8 sps:$4 sm:$0xff]   ;;  %v9454_v43 = vld [vmem:[#allocation9 + $0x64] ss:$8 sps:$4 sm:$0xff]  }
 0x3dc   : > { %2376 = vadd.xlane.f32.xlu0 %v2375_v20  ;;  %2379 = vadd.xlane.f32.xlu1 %v2378_v34  ;;  %15620 = vst [vmem:[#allocation79_spill] sm:$0xff] %v12082_v2  ;;  %15621 = vst [vmem:[#allocation80_spill] sm:$0xff] %v12087_v40  ;;  %v2405_v63 = vadd.f32 %v12113_v58, %v12109_v45  ;;  %v9456_v20 = vld [vmem:[#allocation9 + $0x60] ss:$8 sps:$4 sm:$0xff]   ;;  %v9457_v30 = vld [vmem:[#allocation9 + $0x74] ss:$8 sps:$4 sm:$0xff]  }
 0x3dd   : > { %15622 = vst [vmem:[#allocation81_spill] sm:$0xff] %v12089_v27  ;;  %15623 = vst [vmem:[#allocation82_spill] sm:$0xff] %v12091_v6  ;;  %v2408_v13 = vadd.f32 %v12117_v15, %v12115_v49  ;;  %2924 = vmatprep.subr.bf16.mxu1 %v9442_v56  ;;  %v9459_v34 = vld [vmem:[#allocation9 + $0x70] ss:$8 sps:$4 sm:$0xff]   ;;  %v9460_v24 = vld [vmem:[#allocation9 + $0x84] ss:$8 sps:$4 sm:$0xff]  }
 0x3de   : > { %15624 = vst [vmem:[#allocation83_spill] sm:$0xff] %v12094_v44  ;;  %15625 = vst [vmem:[#allocation84_spill] sm:$0xff] %v12096_v38  ;;  %v9462_v36 = vld [vmem:[#allocation9 + $0x80] ss:$8 sps:$4 sm:$0xff]   ;;  %p16045_p10 = scmp.ne.s32.totalorder %s16039_s20, 0 }
 0x3df   : > { %15626 = vst [vmem:[#allocation85_spill] sm:$0xff] %v12103_v9  ;;  %15627 = vst [vmem:[#allocation86_spill] sm:$0xff] %v12105_v18  ;;  %2925 = vmatpush1.bf16.msra.mxu1 %v9444_v21 }
 0x3e0   : > { %2382 = vadd.xlane.f32.xlu0 %v2381_v4  ;;  %2385 = vadd.xlane.f32.xlu1 %v2384_v48  ;;  %15628 = vst [vmem:[#allocation87_spill] sm:$0xff] %v12109_v45  ;;  %15629 = vst [vmem:[#allocation88_spill] sm:$0xff] %v12113_v58 }
 0x3e1   : > { %15630 = vst [vmem:[#allocation89_spill] sm:$0xff] %v12115_v49  ;;  %15631 = vst [vmem:[#allocation90_spill] sm:$0xff] %v12117_v15  ;;  %2926 = vmatprep.subr.bf16.mxu1 %v9445_v28 }
 0x3e3   : > { %2927 = vmatpush1.bf16.msra.mxu1 %v9447_v31 }
 0x3e4   : > { %2388 = vadd.xlane.f32.xlu0 %v2387_v60  ;;  %2391 = vadd.xlane.f32.xlu1 %v2390_v7 }
 0x3e5   : > { %2928 = vmatprep.subr.bf16.mxu1 %v9448_v62 }
 0x3e7   : > { %2929 = vmatpush1.bf16.msra.mxu1 %v9450_v17 }
 0x3e8   : > { %2394 = vadd.xlane.f32.xlu0 %v2393_v42  ;;  %2397 = vadd.xlane.f32.xlu1 %v2396_v12 }
 0x3e9   : > { %2930 = vmatprep.subr.bf16.mxu1 %v9451_v8 }
 0x3eb   : > { %2931 = vmatpush1.bf16.msra.mxu1 %v9453_v53 }
 0x3ec   : > { %2400 = vadd.xlane.f32.xlu0 %v2399_v3  ;;  %2403 = vadd.xlane.f32.xlu1 %v2402_v52 }
 0x3ed   : > { %2932 = vmatprep.subr.bf16.mxu1 %v9454_v43 }
 0x3ef   : > { %2933 = vmatpush1.bf16.msra.mxu1 %v9456_v20 }
 0x3f0   : > { %2406 = vadd.xlane.f32.xlu0 %v2405_v63  ;;  %2409 = vadd.xlane.f32.xlu1 %v2408_v13 }
 0x3f1   : > { %2934 = vmatprep.subr.bf16.mxu1 %v9457_v30 }
 0x3f3   : > { %2935 = vmatpush1.bf16.msra.mxu1 %v9459_v34 }
 0x3f4   : > { %2936 = vmatprep.subr.bf16.mxu1 %v9460_v24 }
 0x3f7   : > { %2937 = vmatpush1.bf16.msra.mxu1 %v9462_v36 }
 0x461   : > { %v2365_v4 = vpop.xlane.xlu0 %2364  ;;  %v2371_v48 = vpop.xlane.xlu1 %2370 }
 0x462   : > { %v2412_v61 = vmul.f32 0.00390625, %v2365_v4  ;;  %v2414_v60 = vmul.f32 0.00390625, %v2371_v48 }
 0x464   : > { %v12124_v19 = vsub.f32 %v12014_v5, %v2412_v61  ;;  %v12127_v7 = vsub.f32 %v12016_v47, %v2412_v61  ;;  %v12130_v14 = vsub.f32 %v12018_v10, %v2414_v60  ;;  %v12133_v22 = vsub.f32 %v12020_v35, %v2414_v60  ;;  %v3114_v10 = vld [vmem:[#allocation2] sm:$0xff] }
 0x465   : > { %v2368_v42 = vpop.xlane.xlu0 %2367  ;;  %v2374_v12 = vpop.xlane.xlu1 %2373 }
 0x466   : > { %v2413_v3 = vmul.f32 0.00390625, %v2368_v42  ;;  %v2415_v52 = vmul.f32 0.00390625, %v2374_v12  ;;  %v2460_v63 = vmul.f32 %v12124_v19, %v12124_v19  ;;  %v2461_v13 = vmul.f32 %v12127_v7, %v12127_v7 }
 0x467   : > { %v2464_v41 = vmul.f32 %v12130_v14, %v12130_v14  ;;  %v2465_v59 = vmul.f32 %v12133_v22, %v12133_v22 }
 0x468   : > { %v12144_v54 = vsub.f32 %v12024_v37, %v2413_v3  ;;  %v12147_v23 = vsub.f32 %v12026_v0, %v2413_v3  ;;  %v12150_v56 = vsub.f32 %v12028_v32, %v2415_v52  ;;  %v12153_v21 = vsub.f32 %v12030_v29, %v2415_v52 }
 0x469   : > { %v2377_v28 = vpop.xlane.xlu0 %2376  ;;  %v2492_v31 = vadd.f32 %v2461_v13, %v2460_v63  ;;  %v2380_v62 = vpop.xlane.xlu1 %2379  ;;  %v2498_v20 = vadd.f32 %v2465_v59, %v2464_v41 }
 0x46a   : > { %v2416_v17 = vmul.f32 0.00390625, %v2377_v28  ;;  %v2417_v8 = vmul.f32 0.00390625, %v2380_v62  ;;  %v2462_v53 = vmul.f32 %v12144_v54, %v12144_v54  ;;  %v2463_v43 = vmul.f32 %v12147_v23, %v12147_v23 }
 0x46b   : > { %2493 = vadd.xlane.f32.xlu0 %v2492_v31  ;;  %v2466_v30 = vmul.f32 %v12150_v56, %v12150_v56  ;;  %v2467_v34 = vmul.f32 %v12153_v21, %v12153_v21 }
 0x46c   : > { %v12164_v24 = vsub.f32 %v12037_v50, %v2416_v17  ;;  %v12167_v36 = vsub.f32 %v12039_v11, %v2416_v17  ;;  %v12170_v4 = vsub.f32 %v12046_v55, %v2417_v8  ;;  %v12173_v48 = vsub.f32 %v12048_v33, %v2417_v8 }
 0x46d   : > { %v2383_v61 = vpop.xlane.xlu0 %2382  ;;  %v2495_v60 = vadd.f32 %v2463_v43, %v2462_v53  ;;  %v2386_v42 = vpop.xlane.xlu1 %2385  ;;  %v2501_v13 = vadd.f32 %v2467_v34, %v2466_v30 }
 0x46e   : > { %v2418_v12 = vmul.f32 0.00390625, %v2383_v61  ;;  %v2419_v3 = vmul.f32 0.00390625, %v2386_v42  ;;  %v2468_v52 = vmul.f32 %v12164_v24, %v12164_v24  ;;  %v2469_v63 = vmul.f32 %v12167_v36, %v12167_v36 }
 0x46f   : > { %2499 = vadd.xlane.f32.xlu0 %v2498_v20  ;;  %2496 = vadd.xlane.f32.xlu1 %v2495_v60  ;;  %v2470_v41 = vmul.f32 %v12170_v4, %v12170_v4  ;;  %v2471_v59 = vmul.f32 %v12173_v48, %v12173_v48 }
 0x470   : > { %v12184_v28 = vsub.f32 %v12054_v16, %v2418_v12  ;;  %v12187_v31 = vsub.f32 %v12059_v25, %v2418_v12  ;;  %v12190_v62 = vsub.f32 %v12061_v26, %v2419_v3  ;;  %v12193_v17 = vsub.f32 %v12063_v57, %v2419_v3 }
 0x471   : > { %v2389_v8 = vpop.xlane.xlu0 %2388  ;;  %v2504_v53 = vadd.f32 %v2469_v63, %v2468_v52  ;;  %v2392_v43 = vpop.xlane.xlu1 %2391  ;;  %v2507_v60 = vadd.f32 %v2471_v59, %v2470_v41 }
 0x472   : > { %v2420_v20 = vmul.f32 0.00390625, %v2389_v8  ;;  %v2421_v30 = vmul.f32 0.00390625, %v2392_v43  ;;  %v2472_v34 = vmul.f32 %v12184_v28, %v12184_v28  ;;  %v2473_v61 = vmul.f32 %v12187_v31, %v12187_v31 }
 0x473   : > { %2502 = vadd.xlane.f32.xlu1 %v2501_v13  ;;  %2505 = vadd.xlane.f32.xlu0 %v2504_v53  ;;  %v2474_v42 = vmul.f32 %v12190_v62, %v12190_v62  ;;  %v2475_v12 = vmul.f32 %v12193_v17, %v12193_v17 }
 0x474   : > { %v12204_v3 = vsub.f32 %v12066_v1, %v2420_v20  ;;  %v12207_v52 = vsub.f32 %v12068_v46, %v2420_v20  ;;  %v12210_v63 = vsub.f32 %v12075_v51, %v2421_v30  ;;  %v12213_v8 = vsub.f32 %v12077_v39, %v2421_v30  ;;  %v9463_v39 = vld [vmem:[#allocation9 + $0x94] ss:$8 sps:$4 sm:$0xff]  }
 0x475   : > { %v2395_v13 = vpop.xlane.xlu0 %2394  ;;  %v2510_v41 = vadd.f32 %v2473_v61, %v2472_v34  ;;  %v2398_v59 = vpop.xlane.xlu1 %2397  ;;  %v2513_v20 = vadd.f32 %v2475_v12, %v2474_v42  ;;  %v9465_v42 = vld [vmem:[#allocation9 + $0x90] ss:$8 sps:$4 sm:$0xff]   ;;  %2938 = vmatprep.subr.bf16.mxu1 %v9463_v39 }
 0x476   : > { %v2422_v53 = vmul.f32 0.00390625, %v2395_v13  ;;  %v2423_v43 = vmul.f32 0.00390625, %v2398_v59  ;;  %v2476_v57 = vmul.f32 %v12204_v3, %v12204_v3  ;;  %v2477_v1 = vmul.f32 %v12207_v52, %v12207_v52  ;;  %2939 = vmatpush1.bf16.msra.mxu1 %v9465_v42 }
 0x477   : > { %2508 = vadd.xlane.f32.xlu1 %v2507_v60  ;;  %2511 = vadd.xlane.f32.xlu0 %v2510_v41  ;;  %v2478_v51 = vmul.f32 %v12210_v63, %v12210_v63  ;;  %v2479_v30 = vmul.f32 %v12213_v8, %v12213_v8 }
 0x478   : > { %v12224_v34 = vsub.f32 %v12082_v2, %v2422_v53  ;;  %v12227_v61 = vsub.f32 %v12087_v40, %v2422_v53  ;;  %v12230_v13 = vsub.f32 %v12089_v27, %v2423_v43  ;;  %v12233_v60 = vsub.f32 %v12091_v6, %v2423_v43 }
 0x479   : > { %v2401_v12 = vpop.xlane.xlu0 %2400  ;;  %v2516_v41 = vadd.f32 %v2477_v1, %v2476_v57  ;;  %v2404_v59 = vpop.xlane.xlu1 %2403  ;;  %v2519_v27 = vadd.f32 %v2479_v30, %v2478_v51 }
 0x47a   : > { %v2424_v46 = vmul.f32 0.00390625, %v2401_v12  ;;  %v2425_v26 = vmul.f32 0.00390625, %v2404_v59  ;;  %v2480_v2 = vmul.f32 %v12224_v34, %v12224_v34  ;;  %v2481_v53 = vmul.f32 %v12227_v61, %v12227_v61  ;;  %v9468_v59 = vld [vmem:[#allocation9 + $0xa0] ss:$8 sps:$4 sm:$0xff]  }
 0x47b   : > { %2514 = vadd.xlane.f32.xlu1 %v2513_v20  ;;  %2517 = vadd.xlane.f32.xlu0 %v2516_v41  ;;  %v2482_v43 = vmul.f32 %v12230_v13, %v12230_v13  ;;  %v2483_v57 = vmul.f32 %v12233_v60, %v12233_v60  ;;  %v9466_v20 = vld [vmem:[#allocation9 + $0xa4] ss:$8 sps:$4 sm:$0xff]  }
 0x47c   : > { %v12244_v1 = vsub.f32 %v12094_v44, %v2424_v46  ;;  %v12247_v39 = vsub.f32 %v12096_v38, %v2424_v46  ;;  %v12250_v12 = vsub.f32 %v12103_v9, %v2425_v26  ;;  %v12253_v42 = vsub.f32 %v12105_v18, %v2425_v26  ;;  %2940 = vmatprep.subr.bf16.mxu1 %v9466_v20 }
 0x47d   : > { %v2407_v51 = vpop.xlane.xlu0 %2406  ;;  %v2522_v30 = vadd.f32 %v2481_v53, %v2480_v2  ;;  %v2410_v41 = vpop.xlane.xlu1 %2409  ;;  %v2525_v9 = vadd.f32 %v2483_v57, %v2482_v43  ;;  %2941 = vmatpush1.bf16.msra.mxu1 %v9468_v59  ;;  %v9471_v57 = vld [vmem:[#allocation9 + $0xb0] ss:$8 sps:$4 sm:$0xff]  }
 0x47e   : > { %v2426_v6 = vmul.f32 0.00390625, %v2407_v51  ;;  %v2427_v40 = vmul.f32 0.00390625, %v2410_v41  ;;  %v2484_v44 = vmul.f32 %v12244_v1, %v12244_v1  ;;  %v2485_v46 = vmul.f32 %v12247_v39, %v12247_v39 }
 0x47f   : > { %2520 = vadd.xlane.f32.xlu1 %v2519_v27  ;;  %2523 = vadd.xlane.f32.xlu0 %v2522_v30  ;;  %v2486_v26 = vmul.f32 %v12250_v12, %v12250_v12  ;;  %v2487_v2 = vmul.f32 %v12253_v42, %v12253_v42  ;;  %v9469_v27 = vld [vmem:[#allocation9 + $0xb4] ss:$8 sps:$4 sm:$0xff]  }
 0x480   : > { %v12264_v53 = vsub.f32 %v12109_v45, %v2426_v6  ;;  %v12267_v51 = vsub.f32 %v12113_v58, %v2426_v6  ;;  %v12270_v41 = vsub.f32 %v12115_v49, %v2427_v40  ;;  %v12273_v20 = vsub.f32 %v12117_v15, %v2427_v40  ;;  %2942 = vmatprep.subr.bf16.mxu1 %v9469_v27  ;;  %v9475_v58 = vld [vmem:[#allocation9 + $0xd4] ss:$8 sps:$4 sm:$0xff]   ;;  %v9477_v27 = vld [vmem:[#allocation9 + $0xd0] ss:$8 sps:$4 sm:$0xff]  }
 0x481   : > { %v2528_v43 = vadd.f32 %v2485_v46, %v2484_v44  ;;  %v2531_v6 = vadd.f32 %v2487_v2, %v2486_v26  ;;  %2943 = vmatpush1.bf16.msra.mxu1 %v9471_v57  ;;  %v9472_v44 = vld [vmem:[#allocation9 + $0xc4] ss:$8 sps:$4 sm:$0xff]   ;;  %v9474_v46 = vld [vmem:[#allocation9 + $0xc0] ss:$8 sps:$4 sm:$0xff]   ;;  %v9481_v2 = vld [vmem:[#allocation9 + $0xf4] ss:$8 sps:$4 sm:$0xff]  }
 0x482   : > { %v2488_v30 = vmul.f32 %v12264_v53, %v12264_v53  ;;  %v2489_v45 = vmul.f32 %v12267_v51, %v12267_v51  ;;  %v2490_v49 = vmul.f32 %v12270_v41, %v12270_v41  ;;  %v2491_v40 = vmul.f32 %v12273_v20, %v12273_v20  ;;  %2944 = vmatprep.subr.bf16.mxu1 %v9472_v44  ;;  %v9480_v26 = vld [vmem:[#allocation9 + $0xe0] ss:$8 sps:$4 sm:$0xff]  }
 0x483   : > { %2526 = vadd.xlane.f32.xlu1 %v2525_v9  ;;  %2529 = vadd.xlane.f32.xlu0 %v2528_v43  ;;  %v9478_v9 = vld [vmem:[#allocation9 + $0xe4] ss:$8 sps:$4 sm:$0xff]   ;;  %v9483_v43 = vld [vmem:[#allocation9 + $0xf0] ss:$8 sps:$4 sm:$0xff]  }
 0x484   : > { %v2534_v59 = vadd.f32 %v2489_v45, %v2488_v30  ;;  %v2537_v15 = vadd.f32 %v2491_v40, %v2490_v49  ;;  %v3122_v45 = vld [vmem:[#allocation2 + $0x40] sm:$0xff]  ;;  %v2620_v49 = vlaneseq }
 0x485   : > { %2945 = vmatpush1.bf16.msra.mxu1 %v9474_v46 }
 0x486   : > { %2946 = vmatprep.subr.bf16.mxu1 %v9475_v58 }
 0x487   : > { %2532 = vadd.xlane.f32.xlu1 %v2531_v6  ;;  %2535 = vadd.xlane.f32.xlu0 %v2534_v59 }
 0x489   : > { %2947 = vmatpush1.bf16.msra.mxu1 %v9477_v27  ;;  %v12283_v27 = vshrl.u32 %v2620_v49, 7 }
 0x48a   : > { %2948 = vmatprep.subr.bf16.mxu1 %v9478_v9 }
 0x48b   : > { %2538 = vadd.xlane.f32.xlu1 %v2537_v15  ;;  %15632 = vst [vmem:[#allocation91_spill] sm:$0xff] %v12283_v27 }
 0x48d   : > { %2949 = vmatpush1.bf16.msra.mxu1 %v9480_v26 }
 0x48e   : > { %2950 = vmatprep.subr.bf16.mxu1 %v9481_v2 }
 0x491   : > { %2951 = vmatpush1.bf16.msra.mxu1 %v9483_v43 }
 0x492   : > { %8788 = vmatprep.subr.bf16.mxu1 %v3122_v45 }
 0x4f8   : > { %v2494_v57 = vpop.xlane.xlu0 %2493 }
 0x4f9   : > { %v2540_v30 = vmul.f32 0.00390625, %v2494_v57  ;;  %v12286_v57 = vsub.s32 0, %v12283_v27 }
 0x4fb   : > { %v2556_v6 = vadd.f32 1e-06, %v2540_v30  ;;  %15633 = vst [vmem:[#allocation92_spill] sm:$0xff] %v12286_v57 }
 0x4fc   : > { %v2497_v40 = vpop.xlane.xlu1 %2496  ;;  %v2500_v59 = vpop.xlane.xlu0 %2499 }
 0x4fd   : > { %9724 = vrsqrt.f32 %v2556_v6  ;;  %v2541_v58 = vmul.f32 0.00390625, %v2497_v40  ;;  %v2542_v15 = vmul.f32 0.00390625, %v2500_v59  ;;  %v12289_v59 = vsub.s32 1, %v12283_v27 }
 0x4ff   : > { %v2557_v44 = vadd.f32 1e-06, %v2541_v58  ;;  %v2558_v46 = vadd.f32 1e-06, %v2542_v15  ;;  %15634 = vst [vmem:[#allocation93_spill] sm:$0xff] %v12289_v59  ;;  %v15635_v15 = vld [vmem:[#allocation39_spill] sm:$0xff] }
 0x500   : > { %v2503_v9 = vpop.xlane.xlu1 %2502  ;;  %v2506_v26 = vpop.xlane.xlu0 %2505 }
 0x501   : > { %9726 = vrsqrt.f32 %v2557_v44  ;;  %v2543_v2 = vmul.f32 0.00390625, %v2503_v9  ;;  %v2544_v43 = vmul.f32 0.00390625, %v2506_v26  ;;  %v12293_v44 = vrot.slane %v15635_v15, %v12286_v57 }
 0x502   : > { %9728 = vrsqrt.f32 %v2558_v46  ;;  %v15636_v46 = vld [vmem:[#allocation38_spill] sm:$0xff] }
 0x503   : > { %v2559_v45 = vadd.f32 1e-06, %v2543_v2  ;;  %v2560_v18 = vadd.f32 1e-06, %v2544_v43  ;;  %v12297_v9 = vrot.slane %v15636_v46, %v12286_v57 }
 0x504   : > { %v2509_v30 = vpop.xlane.xlu1 %2508  ;;  %v2512_v38 = vpop.xlane.xlu0 %2511 }
 0x505   : > { %9730 = vrsqrt.f32 %v2559_v45  ;;  %v2545_v6 = vmul.f32 0.00390625, %v2509_v30  ;;  %v2546_v40 = vmul.f32 0.00390625, %v2512_v38 }
 0x506   : > { %9732 = vrsqrt.f32 %v2560_v18  ;;  %v15637_v18 = vld [vmem:[#allocation37_spill] sm:$0xff] }
 0x507   : > { %v9725_v49 = vpop.eup %9724  ;;  %v2561_v58 = vadd.f32 1e-06, %v2545_v6  ;;  %v2562_v26 = vadd.f32 1e-06, %v2546_v40  ;;  %v12303_v6 = vrot.slane %v15637_v18, %v12289_v59  ;;  %v15638_v40 = vld [vmem:[#allocation36_spill] sm:$0xff] }
 0x508   : > { %v2515_v2 = vpop.xlane.xlu1 %2514  ;;  %v2589_v43 = vmul.f32 %v9725_v49, %v12127_v7  ;;  %v2588_v38 = vmul.f32 %v9725_v49, %v12124_v19  ;;  %v2518_v30 = vpop.xlane.xlu0 %2517  ;;  %v12309_v33 = vrot.slane %v15638_v40, %v12289_v59 }
 0x509   : > { %9734 = vrsqrt.f32 %v2561_v58  ;;  %v2547_v45 = vmul.f32 0.00390625, %v2515_v2  ;;  %v2548_v2 = vmul.f32 0.00390625, %v2518_v30 }
 0x50a   : > { %v2629_v16 = vmul.f32 %v12293_v44, %v2589_v43  ;;  %v2628_v46 = vmul.f32 %v12297_v9, %v2588_v38  ;;  %9736 = vrsqrt.f32 %v2562_v26 }
 0x50b   : > { %v9727_v25 = vpop.eup %9726  ;;  %v2563_v15 = vadd.f32 1e-06, %v2547_v45 }
 0x50c   : > { %v9729_v7 = vpop.eup %9728  ;;  %v2521_v19 = vpop.xlane.xlu1 %2520  ;;  %v2591_v49 = vmul.f32 %v9727_v25, %v12147_v23  ;;  %v2590_v58 = vmul.f32 %v9727_v25, %v12144_v54  ;;  %v2669_v29 = vadd.f32 %v12303_v6, %v2629_v16  ;;  %v2668_v26 = vadd.f32 %v12309_v33, %v2628_v46 }
 0x50d   : > { %9738 = vrsqrt.f32 %v2563_v15  ;;  %v2549_v55 = vmul.f32 0.00390625, %v2521_v19  ;;  %v2593_v45 = vmul.f32 %v9729_v7, %v12133_v22  ;;  %v2564_v19 = vadd.f32 1e-06, %v2548_v2 }
 0x50e   : > { %v2631_v43 = vmul.f32 %v12293_v44, %v2591_v49  ;;  %v2630_v38 = vmul.f32 %v12297_v9, %v2590_v58  ;;  %v2592_v49 = vmul.f32 %v9729_v7, %v12130_v14  ;;  %v3123_v7 = vld [vmem:[#allocation2 + $0x48] sm:$0xff] }
 0x50f   : > { %v9731_v11 = vpop.eup %9730  ;;  %v2565_v50 = vadd.f32 1e-06, %v2549_v55  ;;  %v2633_v32 = vmul.f32 %v12293_v44, %v2593_v45  ;;  %v2524_v55 = vpop.xlane.xlu0 %2523 }
 0x510   : > { %v2527_v23 = vpop.xlane.xlu1 %2526  ;;  %v2671_v25 = vadd.f32 %v12303_v6, %v2631_v43  ;;  %v2670_v54 = vadd.f32 %v12309_v33, %v2630_v38  ;;  %v2595_v15 = vmul.f32 %v9731_v11, %v12153_v21  ;;  %v2594_v22 = vmul.f32 %v9731_v11, %v12150_v56  ;;  %v9733_v30 = vpop.eup %9732 }
 0x511   : > { %9740 = vrsqrt.f32 %v2565_v50  ;;  %v2551_v45 = vmul.f32 0.00390625, %v2527_v23  ;;  %v2673_v21 = vadd.f32 %v12303_v6, %v2633_v32  ;;  %v2597_v56 = vmul.f32 %v9733_v30, %v12167_v36 }
 0x512   : > { %v2701_v58 = vpack.c.bf16 %v2671_v25, %v2669_v29  ;;  %v2700_v16 = vpack.c.bf16 %v2670_v54, %v2668_v26  ;;  %v2635_v46 = vmul.f32 %v12293_v44, %v2595_v15  ;;  %v2634_v43 = vmul.f32 %v12297_v9, %v2594_v22 }
 0x513   : > { %v9735_v35 = vpop.eup %9734  ;;  %9742 = vrsqrt.f32 %v2564_v19  ;;  %v2550_v29 = vmul.f32 0.00390625, %v2524_v55  ;;  %v2632_v2 = vmul.f32 %v12297_v9, %v2592_v49  ;;  %v2637_v26 = vmul.f32 %v12293_v44, %v2597_v56  ;;  %v2530_v55 = vpop.xlane.xlu0 %2529 }
 0x514   : > { %2952 = vmatprep.mubr.bf16.mxu1 %v2701_v58  ;;  %v2675_v11 = vadd.f32 %v12303_v6, %v2635_v46  ;;  %v2599_v14 = vmul.f32 %v9735_v35, %v12173_v48  ;;  %v9737_v50 = vpop.eup %9736  ;;  %v2567_v25 = vadd.f32 1e-06, %v2551_v45  ;;  %v2674_v32 = vadd.f32 %v12309_v33, %v2634_v43  ;;  %v2533_v48 = vpop.xlane.xlu1 %2532 }
 0x515   : > { %2953 = vmatmul.mubr.bf16.vlgmr.msra.gmra.mrb[0].mxu1 %v2700_v16  ;;  %v2598_v36 = vmul.f32 %v9735_v35, %v12170_v4  ;;  %v2566_v15 = vadd.f32 1e-06, %v2550_v29  ;;  %v2672_v22 = vadd.f32 %v12309_v33, %v2632_v2  ;;  %v2596_v49 = vmul.f32 %v9733_v30, %v12164_v24  ;;  %v3124_v30 = vld [vmem:[#allocation2 + $0x50] sm:$0xff] }
 0x516   : > { %v2703_v38 = vpack.c.bf16 %v2675_v11, %v2673_v21  ;;  %8789 = vmatpush3.bf16.xpose.msra.mxu1 %v3114_v10  ;;  %v2639_v54 = vmul.f32 %v12293_v44, %v2599_v14  ;;  %v2677_v10 = vadd.f32 %v12303_v6, %v2637_v26  ;;  %v2601_v58 = vmul.f32 %v9737_v50, %v12187_v31  ;;  %v3115_v21 = vld [vmem:[#allocation2 + $0x8] sm:$0xff] }
 0x517   : > { %v9739_v23 = vpop.eup %9738  ;;  %8790 = vmatprep.subr.bf16.mxu1 %v3123_v7  ;;  %9744 = vrsqrt.f32 %v2567_v25  ;;  %v2553_v46 = vmul.f32 0.00390625, %v2533_v48  ;;  %v2702_v35 = vpack.c.bf16 %v2674_v32, %v2672_v22  ;;  %v2638_v4 = vmul.f32 %v12297_v9, %v2598_v36  ;;  %v2536_v36 = vpop.xlane.xlu0 %2535 }
 0x518   : > { %2962 = vmatprep.mubr.bf16.mxu1 %v2703_v38  ;;  %v2679_v19 = vadd.f32 %v12303_v6, %v2639_v54  ;;  %v2603_v16 = vmul.f32 %v9739_v23, %v12193_v17  ;;  %9746 = vrsqrt.f32 %v2566_v15  ;;  %v2552_v56 = vmul.f32 0.00390625, %v2530_v55  ;;  %v2539_v2 = vpop.xlane.xlu1 %2538 }
 0x519   : > { %v2636_v24 = vmul.f32 %v12297_v9, %v2596_v49  ;;  %v2641_v31 = vmul.f32 %v12293_v44, %v2601_v58  ;;  %v2569_v14 = vadd.f32 1e-06, %v2553_v46  ;;  %v2678_v7 = vadd.f32 %v12309_v33, %v2638_v4 }
 0x51a   : > { %v2705_v45 = vpack.c.bf16 %v2679_v19, %v2677_v10  ;;  %v2643_v43 = vmul.f32 %v12293_v44, %v2603_v16  ;;  %v2602_v29 = vmul.f32 %v9739_v23, %v12190_v62  ;;  %v2568_v25 = vadd.f32 1e-06, %v2552_v56 }
 0x51b   : > { %v9741_v11 = vpop.eup %9740  ;;  %v2676_v32 = vadd.f32 %v12309_v33, %v2636_v24  ;;  %v2600_v54 = vmul.f32 %v9737_v50, %v12184_v28  ;;  %v2681_v48 = vadd.f32 %v12303_v6, %v2641_v31  ;;  %9748 = vrsqrt.f32 %v2569_v14  ;;  %v3125_v50 = vld [vmem:[#allocation2 + $0x58] sm:$0xff] }
 0x51c   : > { %v2683_v38 = vadd.f32 %v12303_v6, %v2643_v43  ;;  %v2607_v26 = vmul.f32 %v9741_v11, %v12213_v8  ;;  %v2555_v22 = vmul.f32 0.00390625, %v2539_v2  ;;  %v2642_v23 = vmul.f32 %v12297_v9, %v2602_v29  ;;  %v3116_v8 = vld [vmem:[#allocation2 + $0x10] sm:$0xff]  ;;  %v3126_v2 = vld [vmem:[#allocation2 + $0x60] sm:$0xff] }
 0x51d   : > { %2963 = vmatmul.mubr.bf16.gmra.mrb[4].mxu1 %v2702_v35  ;;  %v9743_v17 = vpop.eup %9742  ;;  %v2704_v62 = vpack.c.bf16 %v2678_v7, %v2676_v32  ;;  %9750 = vrsqrt.f32 %v2568_v25  ;;  %v2554_v10 = vmul.f32 0.00390625, %v2536_v36  ;;  %v2640_v28 = vmul.f32 %v12297_v9, %v2600_v54  ;;  %v3117_v7 = vld [vmem:[#allocation2 + $0x18] sm:$0xff] }
 0x51e   : > { %2972 = vmatprep.mubr.bf16.mxu1 %v2705_v45  ;;  %8791 = vmatpush3.bf16.xpose.msra.mxu1 %v3115_v21  ;;  %v2605_v15 = vmul.f32 %v9743_v17, %v12207_v52  ;;  %v2707_v19 = vpack.c.bf16 %v2683_v38, %v2681_v48  ;;  %v2647_v49 = vmul.f32 %v12293_v44, %v2607_v26  ;;  %v2571_v16 = vadd.f32 1e-06, %v2555_v22 }
 0x51f   : > { %8792 = vmatprep.subr.bf16.mxu1 %v3124_v30  ;;  %v2682_v46 = vadd.f32 %v12309_v33, %v2642_v23  ;;  %v2606_v35 = vmul.f32 %v9741_v11, %v12210_v63  ;;  %v2570_v43 = vadd.f32 1e-06, %v2554_v10  ;;  %v2680_v21 = vadd.f32 %v12309_v33, %v2640_v28  ;;  %v3118_v23 = vld [vmem:[#allocation2 + $0x20] sm:$0xff] }
 0x520   : > { %v2645_v58 = vmul.f32 %v12293_v44, %v2605_v15  ;;  %v2687_v4 = vadd.f32 %v12303_v6, %v2647_v49  ;;  %v2604_v56 = vmul.f32 %v9743_v17, %v12204_v3  ;;  %9752 = vrsqrt.f32 %v2571_v16  ;;  %v3127_v49 = vld [vmem:[#allocation2 + $0x68] sm:$0xff] }
 0x521   : > { %v9745_v55 = vpop.eup %9744  ;;  %v2706_v31 = vpack.c.bf16 %v2682_v46, %v2680_v21  ;;  %v2646_v14 = vmul.f32 %v12297_v9, %v2606_v35  ;;  %9754 = vrsqrt.f32 %v2570_v43 }
 0x522   : > { %v9747_v52 = vpop.eup %9746  ;;  %v2611_v45 = vmul.f32 %v9745_v55, %v12233_v60  ;;  %v2685_v24 = vadd.f32 %v12303_v6, %v2645_v58  ;;  %v2644_v60 = vmul.f32 %v12297_v9, %v2604_v56  ;;  %v2610_v38 = vmul.f32 %v9745_v55, %v12230_v13 }
 0x523   : > { %v2609_v30 = vmul.f32 %v9747_v52, %v12227_v61  ;;  %v2686_v61 = vadd.f32 %v12309_v33, %v2646_v14  ;;  %v2608_v54 = vmul.f32 %v9747_v52, %v12224_v34 }
 0x524   : > { %v2709_v63 = vpack.c.bf16 %v2687_v4, %v2685_v24  ;;  %v2651_v11 = vmul.f32 %v12293_v44, %v2611_v45  ;;  %v2684_v32 = vadd.f32 %v12309_v33, %v2644_v60  ;;  %v2650_v22 = vmul.f32 %v12297_v9, %v2610_v38  ;;  %v3119_v45 = vld [vmem:[#allocation2 + $0x28] sm:$0xff] }
 0x525   : > { %2973 = vmatmul.mubr.bf16.gmra.mrb[8].mxu1 %v2704_v62  ;;  %v9749_v29 = vpop.eup %9748  ;;  %v2649_v3 = vmul.f32 %v12293_v44, %v2609_v30 }
 0x526   : > { %2982 = vmatprep.mubr.bf16.mxu1 %v2707_v19  ;;  %8793 = vmatpush3.bf16.xpose.msra.mxu1 %v3116_v8  ;;  %v2691_v26 = vadd.f32 %v12303_v6, %v2651_v11  ;;  %v2615_v25 = vmul.f32 %v9749_v29, %v12253_v42  ;;  %v2708_v15 = vpack.c.bf16 %v2686_v61, %v2684_v32 }
 0x527   : > { %8794 = vmatprep.subr.bf16.mxu1 %v3125_v50  ;;  %v9751_v17 = vpop.eup %9750  ;;  %v2689_v36 = vadd.f32 %v12303_v6, %v2649_v3  ;;  %v2648_v42 = vmul.f32 %v12297_v9, %v2608_v54  ;;  %v2690_v55 = vadd.f32 %v12309_v33, %v2650_v22  ;;  %v2748_v3 = vld [vmem:[%s15639_s9] sm:$0x3]  ;;  %s16044_s9 = smov %s16043_s15 }
 0x528   : > { %v2613_v48 = vmul.f32 %v9751_v17, %v12247_v39  ;;  %v2655_v13 = vmul.f32 %v12293_v44, %v2615_v25  ;;  %v2614_v39 = vmul.f32 %v9749_v29, %v12250_v12  ;;  %v2612_v58 = vmul.f32 %v9751_v17, %v12244_v1 }
 0x529   : > { %v2711_v62 = vpack.c.bf16 %v2691_v26, %v2689_v36  ;;  %v2688_v50 = vadd.f32 %v12309_v33, %v2648_v42  ;;  %v12410_v17 = vrot.slane %v2748_v3, %v12289_v59  ;;  %v3130_v42 = vld [vmem:[#allocation2 + $0x80] sm:$0xff] }
 0x52a   : > { %v9753_v19 = vpop.eup %9752  ;;  %v2653_v8 = vmul.f32 %v12293_v44, %v2613_v48  ;;  %v2695_v10 = vadd.f32 %v12303_v6, %v2655_v13  ;;  %v2654_v35 = vmul.f32 %v12297_v9, %v2614_v39  ;;  %v2652_v43 = vmul.f32 %v12297_v9, %v2612_v58 }
 0x52b   : > { %v9755_v34 = vpop.eup %9754  ;;  %v2619_v28 = vmul.f32 %v9753_v19, %v12273_v20  ;;  %v2710_v46 = vpack.c.bf16 %v2690_v55, %v2688_v50  ;;  %v3128_v20 = vld [vmem:[#allocation2 + $0x70] sm:$0xff]  ;;  %v2618_v56 = vmul.f32 %v9753_v19, %v12270_v41 }
 0x52c   : > { %v2693_v52 = vadd.f32 %v12303_v6, %v2653_v8  ;;  %v2617_v16 = vmul.f32 %v9755_v34, %v12267_v51  ;;  %v2694_v1 = vadd.f32 %v12309_v33, %v2654_v35  ;;  %v2692_v24 = vadd.f32 %v12309_v33, %v2652_v43 }
 0x52d   : > { %2983 = vmatmul.mubr.bf16.gmra.mrb[12].mxu1 %v2706_v31  ;;  %v2659_v12 = vmul.f32 %v12293_v44, %v2619_v28  ;;  %v2616_v30 = vmul.f32 %v9755_v34, %v12264_v53  ;;  %v3121_v53 = vld [vmem:[#allocation2 + $0x38] sm:$0xff]  ;;  %v3139_v34 = vld [vmem:[#allocation2 + $0xc8] sm:$0xff] }
 0x52e   : > { %2992 = vmatprep.mubr.bf16.mxu1 %v2709_v63  ;;  %8795 = vmatpush3.bf16.xpose.msra.mxu1 %v3117_v7  ;;  %v2713_v4 = vpack.c.bf16 %v2695_v10, %v2693_v52  ;;  %v2657_v21 = vmul.f32 %v12293_v44, %v2617_v16  ;;  %v2712_v14 = vpack.c.bf16 %v2694_v1, %v2692_v24  ;;  %v3120_v7 = vld [vmem:[#allocation2 + $0x30] sm:$0xff] }
 0x52f   : > { %8796 = vmatprep.subr.bf16.mxu1 %v3126_v2  ;;  %v2699_v51 = vadd.f32 %v12303_v6, %v2659_v12  ;;  %v2658_v63 = vmul.f32 %v12297_v9, %v2618_v56  ;;  %v2656_v44 = vmul.f32 %v12297_v9, %v2616_v30  ;;  %v3129_v2 = vld [vmem:[#allocation2 + $0x78] sm:$0xff]  ;;  %v12407_v9 = vrot.slane %v2748_v3, %v12286_v57 }
 0x530   : > { %v2697_v31 = vadd.f32 %v12303_v6, %v2657_v21  ;;  %v3138_v6 = vld [vmem:[#allocation2 + $0xc0] sm:$0xff]  ;;  %v3140_v21 = vld [vmem:[#allocation2 + $0xd0] sm:$0xff] }
 0x531   : > { %v2698_v41 = vadd.f32 %v12309_v33, %v2658_v63  ;;  %v2696_v29 = vadd.f32 %v12309_v33, %v2656_v44 }
 0x532   : > { %v2715_v11 = vpack.c.bf16 %v2699_v51, %v2697_v31 }
 0x533   : > { %v2714_v60 = vpack.c.bf16 %v2698_v41, %v2696_v29  ;;  %v3132_v29 = vld [vmem:[#allocation2 + $0x90] sm:$0xff] }
 0x535   : > { %2993 = vmatmul.mubr.bf16.gmra.mrb[16].mxu1 %v2708_v15 }
 0x536   : > { %3002 = vmatprep.mubr.bf16.mxu1 %v2711_v62  ;;  %8797 = vmatpush3.bf16.xpose.msra.mxu1 %v3118_v23 }
 0x537   : > { %8798 = vmatprep.subr.bf16.mxu1 %v3127_v49 }
 0x53d   : > { %3003 = vmatmul.mubr.bf16.gmra.mrb[20].mxu1 %v2710_v46 }
 0x53e   : > { %3012 = vmatprep.mubr.bf16.mxu1 %v2713_v4  ;;  %8799 = vmatpush3.bf16.xpose.msra.mxu1 %v3119_v45  ;;  %v3131_v45 = vld [vmem:[#allocation2 + $0x88] sm:$0xff] }
 0x53f   : > { %8800 = vmatprep.subr.bf16.mxu1 %v3128_v20 }
 0x545   : > { %3013 = vmatmul.mubr.bf16.gmra.mrb[24].mxu1 %v2712_v14 }
 0x546   : > { %3022 = vmatprep.mubr.bf16.mxu1 %v2715_v11  ;;  %8801 = vmatpush3.bf16.xpose.msra.mxu1 %v3120_v7 }
 0x547   : > { %8802 = vmatprep.subr.bf16.mxu1 %v3129_v2 }
 0x54d   : > { %3023 = vmatmul.mubr.bf16.gmra.mrb[28].mxu1 %v2714_v60 }
 0x54e   : > { %8803 = vmatpush3.bf16.xpose.msra.mxu1 %v3121_v53  ;;  %v3141_v53 = vld [vmem:[#allocation2 + $0xd8] sm:$0xff] }
 0x54f   : > { %8820 = vmatprep.subr.bf16.mxu1 %v3138_v6 }
 0x5e8   : > { %v2954_v61 = vpop.f32.mrb[0].mxu1 }
 0x5e9   : > { %v2955_v33 = vadd.f32 %v2954_v61, %v12407_v9  ;;  %v2956_v38 = vpop.f32.mrb[1].mxu1 }
 0x5ea   : > { %v2957_v26 = vadd.f32 %v2956_v38, %v12410_v17  ;;  %v2958_v25 = vpop.f32.mrb[2].mxu1 }
 0x5eb   : > { %v2959_v32 = vadd.f32 %v2958_v25, %v12407_v9  ;;  %v2960_v54 = vpop.f32.mrb[3].mxu1  ;;  %v3033_v48 = vmul.f32 0.088388346, %v2955_v33 }
 0x5ec   : > { %v2961_v36 = vadd.f32 %v2960_v54, %v12410_v17  ;;  %v3034_v22 = vmul.f32 0.088388346, %v2957_v26 }
 0x5ed   : > { %v3035_v15 = vmul.f32 0.088388346, %v2959_v32 }
 0x5ee   : > { %v3036_v62 = vmul.f32 0.088388346, %v2961_v36 }
 0x5ef   : > { %v3065_v13 = vpack.c.bf16 %v3035_v15, %v3033_v48 }
 0x5f0   : > { %v12416_v23 = vpack.c.bf16 %v3036_v62, %v3034_v22  ;;  %v2964_v19 = vpop.f32.mrb[4].mxu1  ;;  %v3133_v22 = vld [vmem:[#allocation2 + $0x98] sm:$0xff] }
 0x5f1   : > { %v2965_v49 = vadd.f32 %v2964_v19, %v12407_v9  ;;  %v2966_v8 = vpop.f32.mrb[5].mxu1  ;;  %8804 = vmatprep.mubr.bf16.mxu1 %v3065_v13  ;;  %v3142_v19 = vld [vmem:[#allocation2 + $0xe0] sm:$0xff] }
 0x5f2   : > { %v2967_v55 = vadd.f32 %v2966_v8, %v12410_v17  ;;  %v2968_v39 = vpop.f32.mrb[6].mxu1  ;;  %8805 = vmatmul.mubr.bf16.vlgmr.msra.gmra.mrb[32].mxu1 %v3065_v13 }
 0x5f3   : > { %v2969_v10 = vadd.f32 %v2968_v39, %v12407_v9  ;;  %8821 = vmatpush3.bf16.xpose.msra.mxu1 %v3130_v42  ;;  %v2970_v28 = vpop.f32.mrb[7].mxu1  ;;  %v3037_v58 = vmul.f32 0.088388346, %v2965_v49 }
 0x5f4   : > { %v2971_v50 = vadd.f32 %v2970_v28, %v12410_v17  ;;  %8822 = vmatprep.subr.bf16.mxu1 %v3139_v34  ;;  %v3038_v16 = vmul.f32 0.088388346, %v2967_v55 }
 0x5f5   : > { %v3039_v52 = vmul.f32 0.088388346, %v2969_v10 }
 0x5f6   : > { %v3040_v46 = vmul.f32 0.088388346, %v2971_v50 }
 0x5f7   : > { %v3067_v35 = vpack.c.bf16 %v3039_v52, %v3037_v58 }
 0x5f8   : > { %v12422_v4 = vpack.c.bf16 %v3040_v46, %v3038_v16  ;;  %v2974_v12 = vpop.f32.mrb[8].mxu1  ;;  %v3134_v46 = vld [vmem:[#allocation2 + $0xa0] sm:$0xff] }
 0x5f9   : > { %v2975_v43 = vadd.f32 %v2974_v12, %v12407_v9  ;;  %v2976_v20 = vpop.f32.mrb[9].mxu1  ;;  %8806 = vmatprep.mubr.bf16.mxu1 %v3067_v35 }
 0x5fa   : > { %v2977_v1 = vadd.f32 %v2976_v20, %v12410_v17  ;;  %v2978_v56 = vpop.f32.mrb[10].mxu1  ;;  %8807 = vmatmul.mubr.bf16.gmra.mrb[36].mxu1 %v3067_v35 }
 0x5fb   : > { %v2979_v51 = vadd.f32 %v2978_v56, %v12407_v9  ;;  %8823 = vmatpush3.bf16.xpose.msra.mxu1 %v3131_v45  ;;  %v2980_v24 = vpop.f32.mrb[11].mxu1  ;;  %v3041_v31 = vmul.f32 0.088388346, %v2975_v43  ;;  %v3143_v45 = vld [vmem:[#allocation2 + $0xe8] sm:$0xff] }
 0x5fc   : > { %v2981_v30 = vadd.f32 %v2980_v24, %v12410_v17  ;;  %8824 = vmatprep.subr.bf16.mxu1 %v3140_v21  ;;  %v3042_v63 = vmul.f32 0.088388346, %v2977_v1 }
 0x5fd   : > { %v3043_v14 = vmul.f32 0.088388346, %v2979_v51 }
 0x5fe   : > { %v3044_v11 = vmul.f32 0.088388346, %v2981_v30 }
 0x5ff   : > { %v3069_v7 = vpack.c.bf16 %v3043_v14, %v3041_v31 }
 0x600   : > { %v12428_v44 = vpack.c.bf16 %v3044_v11, %v3042_v63  ;;  %v2984_v41 = vpop.f32.mrb[12].mxu1 }
 0x601   : > { %v2985_v60 = vadd.f32 %v2984_v41, %v12407_v9  ;;  %v2986_v2 = vpop.f32.mrb[13].mxu1  ;;  %8808 = vmatprep.mubr.bf16.mxu1 %v3069_v7 }
 0x602   : > { %v2987_v6 = vadd.f32 %v2986_v2, %v12410_v17  ;;  %v2988_v3 = vpop.f32.mrb[14].mxu1  ;;  %8809 = vmatmul.mubr.bf16.gmra.mrb[40].mxu1 %v3069_v7  ;;  %v3135_v7 = vld [vmem:[#allocation2 + $0xa8] sm:$0xff] }
 0x603   : > { %v2989_v61 = vadd.f32 %v2988_v3, %v12407_v9  ;;  %8825 = vmatpush3.bf16.xpose.msra.mxu1 %v3132_v29  ;;  %v2990_v33 = vpop.f32.mrb[15].mxu1  ;;  %v3045_v26 = vmul.f32 0.088388346, %v2985_v60  ;;  %v3144_v60 = vld [vmem:[#allocation2 + $0xf0] sm:$0xff] }
 0x604   : > { %v2991_v38 = vadd.f32 %v2990_v33, %v12410_v17  ;;  %8826 = vmatprep.subr.bf16.mxu1 %v3141_v53  ;;  %v3046_v32 = vmul.f32 0.088388346, %v2987_v6 }
 0x605   : > { %v3047_v25 = vmul.f32 0.088388346, %v2989_v61 }
 0x606   : > { %v3048_v54 = vmul.f32 0.088388346, %v2991_v38 }
 0x607   : > { %v3071_v36 = vpack.c.bf16 %v3047_v25, %v3045_v26 }
 0x608   : > { %v12434_v48 = vpack.c.bf16 %v3048_v54, %v3046_v32  ;;  %v2994_v15 = vpop.f32.mrb[16].mxu1 }
 0x609   : > { %v2995_v62 = vadd.f32 %v2994_v15, %v12407_v9  ;;  %v2996_v13 = vpop.f32.mrb[17].mxu1  ;;  %8810 = vmatprep.mubr.bf16.mxu1 %v3071_v36  ;;  %v3136_v15 = vld [vmem:[#allocation2 + $0xb0] sm:$0xff] }
 0x60a   : > { %v2997_v42 = vadd.f32 %v2996_v13, %v12410_v17  ;;  %v2998_v49 = vpop.f32.mrb[18].mxu1  ;;  %8811 = vmatmul.mubr.bf16.gmra.mrb[44].mxu1 %v3071_v36  ;;  %v3145_v13 = vld [vmem:[#allocation2 + $0xf8] sm:$0xff] }
 0x60b   : > { %v2999_v8 = vadd.f32 %v2998_v49, %v12407_v9  ;;  %8827 = vmatpush3.bf16.xpose.msra.mxu1 %v3133_v22  ;;  %v3000_v34 = vpop.f32.mrb[19].mxu1  ;;  %v3049_v39 = vmul.f32 0.088388346, %v2995_v62 }
 0x60c   : > { %v3001_v55 = vadd.f32 %v3000_v34, %v12410_v17  ;;  %8828 = vmatprep.subr.bf16.mxu1 %v3142_v19  ;;  %v3050_v28 = vmul.f32 0.088388346, %v2997_v42 }
 0x60d   : > { %v3051_v10 = vmul.f32 0.088388346, %v2999_v8 }
 0x60e   : > { %v3052_v50 = vmul.f32 0.088388346, %v3001_v55 }
 0x60f   : > { %v3073_v58 = vpack.c.bf16 %v3051_v10, %v3049_v39 }
 0x610   : > { %v12440_v52 = vpack.c.bf16 %v3052_v50, %v3050_v28  ;;  %v3004_v16 = vpop.f32.mrb[20].mxu1 }
 0x611   : > { %v3005_v35 = vadd.f32 %v3004_v16, %v12407_v9  ;;  %v3006_v12 = vpop.f32.mrb[21].mxu1  ;;  %8812 = vmatprep.mubr.bf16.mxu1 %v3073_v58  ;;  %v3137_v16 = vld [vmem:[#allocation2 + $0xb8] sm:$0xff] }
 0x612   : > { %v3007_v43 = vadd.f32 %v3006_v12, %v12410_v17  ;;  %v3008_v20 = vpop.f32.mrb[22].mxu1  ;;  %8813 = vmatmul.mubr.bf16.gmra.mrb[48].mxu1 %v3073_v58 }
 0x613   : > { %v3009_v21 = vadd.f32 %v3008_v20, %v12407_v9  ;;  %8829 = vmatpush3.bf16.xpose.msra.mxu1 %v3134_v46  ;;  %v3010_v1 = vpop.f32.mrb[23].mxu1  ;;  %v3053_v51 = vmul.f32 0.088388346, %v3005_v35 }
 0x614   : > { %v3011_v56 = vadd.f32 %v3010_v1, %v12410_v17  ;;  %8830 = vmatprep.subr.bf16.mxu1 %v3143_v45  ;;  %v3054_v30 = vmul.f32 0.088388346, %v3007_v43 }
 0x615   : > { %v3055_v24 = vmul.f32 0.088388346, %v3009_v21 }
 0x616   : > { %v3056_v31 = vmul.f32 0.088388346, %v3011_v56 }
 0x617   : > { %v3075_v14 = vpack.c.bf16 %v3055_v24, %v3053_v51 }
 0x618   : > { %v3076_v63 = vpack.c.bf16 %v3056_v31, %v3054_v30  ;;  %v3014_v11 = vpop.f32.mrb[24].mxu1 }
 0x619   : > { %v3015_v41 = vadd.f32 %v3014_v11, %v12407_v9  ;;  %v3016_v29 = vpop.f32.mrb[25].mxu1  ;;  %8814 = vmatprep.mubr.bf16.mxu1 %v3075_v14 }
 0x61a   : > { %v3017_v2 = vadd.f32 %v3016_v29, %v12410_v17  ;;  %v3018_v53 = vpop.f32.mrb[26].mxu1  ;;  %8815 = vmatmul.mubr.bf16.gmra.mrb[52].mxu1 %v3075_v14 }
 0x61b   : > { %v3019_v6 = vadd.f32 %v3018_v53, %v12407_v9  ;;  %8831 = vmatpush3.bf16.xpose.msra.mxu1 %v3135_v7  ;;  %v3020_v3 = vpop.f32.mrb[27].mxu1  ;;  %v3057_v33 = vmul.f32 0.088388346, %v3015_v41 }
 0x61c   : > { %v3021_v61 = vadd.f32 %v3020_v3, %v12410_v17  ;;  %8832 = vmatprep.subr.bf16.mxu1 %v3144_v60  ;;  %v3058_v26 = vmul.f32 0.088388346, %v3017_v2 }
 0x61d   : > { %v3059_v38 = vmul.f32 0.088388346, %v3019_v6 }
 0x61e   : > { %v3060_v25 = vmul.f32 0.088388346, %v3021_v61 }
 0x61f   : > { %v3077_v32 = vpack.c.bf16 %v3059_v38, %v3057_v33 }
 0x620   : > { %v3078_v54 = vpack.c.bf16 %v3060_v25, %v3058_v26  ;;  %v3024_v36 = vpop.f32.mrb[28].mxu1 }
 0x621   : > { %v3025_v22 = vadd.f32 %v3024_v36, %v12407_v9  ;;  %v3026_v62 = vpop.f32.mrb[29].mxu1  ;;  %8816 = vmatprep.mubr.bf16.mxu1 %v3077_v32 }
 0x622   : > { %v3027_v19 = vadd.f32 %v3026_v62, %v12410_v17  ;;  %v3028_v42 = vpop.f32.mrb[30].mxu1  ;;  %8817 = vmatmul.mubr.bf16.gmra.mrb[56].mxu1 %v3077_v32 }
 0x623   : > { %v3029_v49 = vadd.f32 %v3028_v42, %v12407_v9  ;;  %8833 = vmatpush3.bf16.xpose.msra.mxu1 %v3136_v15  ;;  %v3030_v8 = vpop.f32.mrb[31].mxu1  ;;  %v3061_v55 = vmul.f32 0.088388346, %v3025_v22 }
 0x624   : > { %v3031_v34 = vadd.f32 %v3030_v8, %v12410_v17  ;;  %8834 = vmatprep.subr.bf16.mxu1 %v3145_v13  ;;  %v3062_v10 = vmul.f32 0.088388346, %v3027_v19 }
 0x625   : > { %v3063_v39 = vmul.f32 0.088388346, %v3029_v49 }
 0x626   : > { %v3064_v28 = vmul.f32 0.088388346, %v3031_v34 }
 0x627   : > { %v3079_v50 = vpack.c.bf16 %v3063_v39, %v3061_v55 }
 0x628   : > { %v3080_v58 = vpack.c.bf16 %v3064_v28, %v3062_v10 }
 0x629   : > { %8818 = vmatprep.mubr.bf16.mxu1 %v3079_v50 }
 0x62a   : > { %8819 = vmatmul.mubr.bf16.gmra.mrb[60].mxu1 %v3079_v50 }
 0x62b   : > { %8835 = vmatpush3.bf16.xpose.msra.mxu1 %v3137_v16  ;;  %8836 = vmatprep.mubr.bf16.mxu1 %v12416_v23 }
 0x632   : > { %8837 = vmatmul.mubr.bf16.vlgmr.msra.gmra.mrb[64].mxu1 %v12416_v23 }
 0x633   : > { %8838 = vmatprep.mubr.bf16.mxu1 %v12422_v4 }
 0x63a   : > { %8839 = vmatmul.mubr.bf16.gmra.mrb[68].mxu1 %v12422_v4 }
 0x63b   : > { %8840 = vmatprep.mubr.bf16.mxu1 %v12428_v44 }
 0x642   : > { %8841 = vmatmul.mubr.bf16.gmra.mrb[72].mxu1 %v12428_v44 }
 0x643   : > { %8842 = vmatprep.mubr.bf16.mxu1 %v12434_v48 }
 0x64a   : > { %8843 = vmatmul.mubr.bf16.gmra.mrb[76].mxu1 %v12434_v48 }
 0x64b   : > { %8844 = vmatprep.mubr.bf16.mxu1 %v12440_v52 }
 0x652   : > { %8845 = vmatmul.mubr.bf16.gmra.mrb[80].mxu1 %v12440_v52 }
 0x653   : > { %8846 = vmatprep.mubr.bf16.mxu1 %v3076_v63 }
 0x65a   : > { %8847 = vmatmul.mubr.bf16.gmra.mrb[84].mxu1 %v3076_v63 }
 0x65b   : > { %8848 = vmatprep.mubr.bf16.mxu1 %v3078_v54 }
 0x662   : > { %8849 = vmatmul.mubr.bf16.gmra.mrb[88].mxu1 %v3078_v54 }
 0x663   : > { %8850 = vmatprep.mubr.bf16.mxu1 %v3080_v58 }
 0x66a   : > { %8851 = vmatmul.mubr.bf16.gmra.mrb[92].mxu1 %v3080_v58 }
 0x6c5   : > { %v12464_v9 = vpop.f32.mrb[32].mxu1 }
 0x6c6   : > { %v12466_v17 = vpop.f32.mrb[33].mxu1 }
 0x6c7   : > { %v12468_v23 = vpop.f32.mrb[34].mxu1  ;;  %v3372_v4 = vmax.f32 %v12464_v9, %v12466_v17 }
 0x6c8   : > { %v12472_v44 = vpop.f32.mrb[35].mxu1 }
 0x6c9   : > { %v3375_v48 = vmax.f32 %v12468_v23, %v12472_v44 }
 0x6cd   : > { %v12476_v52 = vpop.f32.mrb[36].mxu1 }
 0x6ce   : > { %v12478_v46 = vpop.f32.mrb[37].mxu1 }
 0x6cf   : > { %v12480_v35 = vpop.f32.mrb[38].mxu1  ;;  %v3378_v12 = vmax.f32 %v12476_v52, %v12478_v46 }
 0x6d0   : > { %v12484_v45 = vpop.f32.mrb[39].mxu1 }
 0x6d1   : > { %v3381_v43 = vmax.f32 %v12480_v35, %v12484_v45 }
 0x6d5   : > { %v12488_v20 = vpop.f32.mrb[40].mxu1 }
 0x6d6   : > { %v12490_v21 = vpop.f32.mrb[41].mxu1 }
 0x6d7   : > { %v12492_v1 = vpop.f32.mrb[42].mxu1  ;;  %v3384_v56 = vmax.f32 %v12488_v20, %v12490_v21 }
 0x6d8   : > { %v12496_v51 = vpop.f32.mrb[43].mxu1 }
 0x6d9   : > { %v3387_v24 = vmax.f32 %v12492_v1, %v12496_v51 }
 0x6dd   : > { %v12500_v30 = vpop.f32.mrb[44].mxu1 }
 0x6de   : > { %v12502_v31 = vpop.f32.mrb[45].mxu1 }
 0x6df   : > { %v12504_v14 = vpop.f32.mrb[46].mxu1  ;;  %v3390_v63 = vmax.f32 %v12500_v30, %v12502_v31 }
 0x6e0   : > { %v12508_v11 = vpop.f32.mrb[47].mxu1 }
 0x6e1   : > { %v3393_v7 = vmax.f32 %v12504_v14, %v12508_v11 }
 0x6e5   : > { %v12512_v41 = vpop.f32.mrb[48].mxu1 }
 0x6e6   : > { %v12514_v29 = vpop.f32.mrb[49].mxu1 }
 0x6e7   : > { %v12516_v60 = vpop.f32.mrb[50].mxu1 }
 0x6e8   : > { %v12520_v53 = vpop.f32.mrb[51].mxu1 }
 0x6ed   : > { %v12524_v3 = vpop.f32.mrb[52].mxu1 }
 0x6ee   : > { %v12526_v61 = vpop.f32.mrb[53].mxu1 }
 0x6ef   : > { %15640 = vst [vmem:[#allocation94_spill] sm:$0xff] %v12526_v61  ;;  %v12528_v33 = vpop.f32.mrb[54].mxu1 }
 0x6f0   : > { %v12532_v26 = vpop.f32.mrb[55].mxu1 }
 0x6f1   : > { %15641 = vst [vmem:[#allocation95_spill] sm:$0xff] %v12532_v26 }
 0x6f5   : > { %v12536_v32 = vpop.f32.mrb[56].mxu1 }
 0x6f6   : > { %v12538_v54 = vpop.f32.mrb[57].mxu1 }
 0x6f7   : > { %15642 = vst [vmem:[#allocation96_spill] sm:$0xff] %v12538_v54  ;;  %v12540_v36 = vpop.f32.mrb[58].mxu1 }
 0x6f8   : > { %15643 = vst [vmem:[#allocation97_spill] sm:$0xff] %v12540_v36  ;;  %v12544_v22 = vpop.f32.mrb[59].mxu1 }
 0x6f9   : > { %15644 = vst [vmem:[#allocation98_spill] sm:$0xff] %v12544_v22 }
 0x6fd   : > { %v12548_v13 = vpop.f32.mrb[60].mxu1 }
 0x6fe   : > { %15645 = vst [vmem:[#allocation99_spill] sm:$0xff] %v12548_v13  ;;  %v12550_v19 = vpop.f32.mrb[61].mxu1 }
 0x6ff   : > { %15646 = vst [vmem:[#allocation100_spill] sm:$0xff] %v12550_v19  ;;  %v12552_v42 = vpop.f32.mrb[62].mxu1 }
 0x700   : > { %15647 = vst [vmem:[#allocation101_spill] sm:$0xff] %v12552_v42  ;;  %v12556_v8 = vpop.f32.mrb[63].mxu1 }
 0x701   : > { %15648 = vst [vmem:[#allocation102_spill] sm:$0xff] %v12556_v8 }
 0x705   : > { %v12560_v55 = vpop.f32.mrb[64].mxu1 }
 0x706   : > { %v12562_v39 = vpop.f32.mrb[65].mxu1 }
 0x707   : > { %v12564_v10 = vpop.f32.mrb[66].mxu1  ;;  %v3420_v28 = vmax.f32 %v12560_v55, %v12562_v39 }
 0x708   : > { %v12568_v50 = vpop.f32.mrb[67].mxu1 }
 0x709   : > { %3421 = vmax.xlane.f32.xlu0 %v3420_v28  ;;  %v3423_v58 = vmax.f32 %v12564_v10, %v12568_v50 }
 0x70b   : > { %3424 = vmax.xlane.f32.xlu1 %v3423_v58 }
 0x70d   : > { %3373 = vmax.xlane.f32.xlu0 %v3372_v4  ;;  %v12572_v16 = vpop.f32.mrb[68].mxu1 }
 0x70e   : > { %v12574_v34 = vpop.f32.mrb[69].mxu1 }
 0x70f   : > { %3376 = vmax.xlane.f32.xlu1 %v3375_v48  ;;  %v12576_v49 = vpop.f32.mrb[70].mxu1  ;;  %v3426_v62 = vmax.f32 %v12572_v16, %v12574_v34 }
 0x710   : > { %v12580_v15 = vpop.f32.mrb[71].mxu1 }
 0x711   : > { %3427 = vmax.xlane.f32.xlu0 %v3426_v62  ;;  %v3429_v28 = vmax.f32 %v12576_v49, %v12580_v15 }
 0x713   : > { %3430 = vmax.xlane.f32.xlu1 %v3429_v28 }
 0x715   : > { %3379 = vmax.xlane.f32.xlu0 %v3378_v12  ;;  %v12584_v58 = vpop.f32.mrb[72].mxu1 }
 0x716   : > { %v12586_v4 = vpop.f32.mrb[73].mxu1 }
 0x717   : > { %3382 = vmax.xlane.f32.xlu1 %v3381_v43  ;;  %v12588_v25 = vpop.f32.mrb[74].mxu1  ;;  %v3432_v48 = vmax.f32 %v12584_v58, %v12586_v4 }
 0x718   : > { %v12592_v38 = vpop.f32.mrb[75].mxu1 }
 0x719   : > { %3433 = vmax.xlane.f32.xlu0 %v3432_v48  ;;  %v3435_v62 = vmax.f32 %v12588_v25, %v12592_v38 }
 0x71b   : > { %3436 = vmax.xlane.f32.xlu1 %v3435_v62 }
 0x71d   : > { %3385 = vmax.xlane.f32.xlu0 %v3384_v56  ;;  %v12596_v28 = vpop.f32.mrb[76].mxu1 }
 0x71e   : > { %v12598_v12 = vpop.f32.mrb[77].mxu1 }
 0x71f   : > { %3388 = vmax.xlane.f32.xlu1 %v3387_v24  ;;  %v12600_v6 = vpop.f32.mrb[78].mxu1  ;;  %v3438_v43 = vmax.f32 %v12596_v28, %v12598_v12 }
 0x720   : > { %v12604_v2 = vpop.f32.mrb[79].mxu1 }
 0x721   : > { %3439 = vmax.xlane.f32.xlu0 %v3438_v43  ;;  %v3441_v48 = vmax.f32 %v12600_v6, %v12604_v2 }
 0x723   : > { %3442 = vmax.xlane.f32.xlu1 %v3441_v48 }
 0x725   : > { %3391 = vmax.xlane.f32.xlu0 %v3390_v63  ;;  %v12611_v56 = vpop.f32.mrb[80].mxu1  ;;  %v15649_v63 = vmax.f32 %v12512_v41, %v12514_v29 }
 0x726   : > { %v12613_v62 = vpop.f32.mrb[81].mxu1 }
 0x727   : > { %3394 = vmax.xlane.f32.xlu1 %v3393_v7  ;;  %v12618_v24 = vpop.f32.mrb[82].mxu1  ;;  %v3444_v43 = vmax.f32 %v12611_v56, %v12613_v62  ;;  %v15650_v7 = vmax.f32 %v12516_v60, %v12520_v53 }
 0x728   : > { %v12622_v0 = vpop.f32.mrb[83].mxu1 }
 0x729   : > { %3445 = vmax.xlane.f32.xlu0 %v3444_v43  ;;  %v3447_v48 = vmax.f32 %v12618_v24, %v12622_v0 }
 0x72b   : > { %3448 = vmax.xlane.f32.xlu1 %v3447_v48 }
 0x72d   : > { %3397 = vmax.xlane.f32.xlu0 %v15649_v63  ;;  %v12629_v37 = vpop.f32.mrb[84].mxu1  ;;  %v15651_v63 = vmax.f32 %v12524_v3, %v12526_v61 }
 0x72e   : > { %v12631_v47 = vpop.f32.mrb[85].mxu1 }
 0x72f   : > { %3400 = vmax.xlane.f32.xlu1 %v15650_v7  ;;  %v12636_v5 = vpop.f32.mrb[86].mxu1  ;;  %v3450_v43 = vmax.f32 %v12629_v37, %v12631_v47  ;;  %v15654_v7 = vmax.f32 %v12528_v33, %v12532_v26 }
 0x730   : > { %v12640_v18 = vpop.f32.mrb[87].mxu1 }
 0x731   : > { %3451 = vmax.xlane.f32.xlu0 %v3450_v43  ;;  %v3453_v48 = vmax.f32 %v12636_v5, %v12640_v18 }
 0x733   : > { %3454 = vmax.xlane.f32.xlu1 %v3453_v48 }
 0x735   : > { %3403 = vmax.xlane.f32.xlu0 %v15651_v63  ;;  %v12647_v40 = vpop.f32.mrb[88].mxu1  ;;  %v15655_v63 = vmax.f32 %v12536_v32, %v12538_v54  ;;  %v3893_v54 = vld [vmem:[#allocation3 + $0x48] sm:$0xff] }
 0x736   : > { %15652 = vst [vmem:[#allocation103_spill] sm:$0xff] %v12647_v40  ;;  %v12649_v59 = vpop.f32.mrb[89].mxu1 }
 0x737   : > { %15653 = vst [vmem:[#allocation104_spill] sm:$0xff] %v12649_v59  ;;  %3406 = vmax.xlane.f32.xlu1 %v15654_v7  ;;  %v12654_v57 = vpop.f32.mrb[90].mxu1  ;;  %v3456_v43 = vmax.f32 %v12647_v40, %v12649_v59  ;;  %v15658_v7 = vmax.f32 %v12540_v36, %v12544_v22  ;;  %v15661_v22 = vmax.f32 %v12552_v42, %v12556_v8  ;;  %v3884_v36 = vld [vmem:[#allocation3] sm:$0xff]  ;;  %v3886_v8 = vld [vmem:[#allocation3 + $0x10] sm:$0xff] }
 0x738   : > { %v12658_v27 = vpop.f32.mrb[91].mxu1  ;;  %v3902_v42 = vld [vmem:[#allocation3 + $0x90] sm:$0xff] }
 0x739   : > { %3457 = vmax.xlane.f32.xlu0 %v3456_v43  ;;  %v3459_v48 = vmax.f32 %v12654_v57, %v12658_v27 }
 0x73b   : > { %3460 = vmax.xlane.f32.xlu1 %v3459_v48 }
 0x73d   : > { %3409 = vmax.xlane.f32.xlu0 %v15655_v63  ;;  %v12665_v61 = vpop.f32.mrb[92].mxu1  ;;  %v15660_v63 = vmax.f32 %v12548_v13, %v12550_v19  ;;  %v3901_v19 = vld [vmem:[#allocation3 + $0x88] sm:$0xff] }
 0x73e   : > { %15656 = vst [vmem:[#allocation105_spill] sm:$0xff] %v12665_v61  ;;  %v12667_v26 = vpop.f32.mrb[93].mxu1 }
 0x73f   : > { %15657 = vst [vmem:[#allocation106_spill] sm:$0xff] %v12667_v26  ;;  %3412 = vmax.xlane.f32.xlu1 %v15658_v7  ;;  %v12672_v59 = vpop.f32.mrb[94].mxu1  ;;  %v3462_v43 = vmax.f32 %v12665_v61, %v12667_v26  ;;  %v3892_v7 = vld [vmem:[#allocation3 + $0x40] sm:$0xff] }
 0x740   : > { %v12676_v40 = vpop.f32.mrb[95].mxu1  ;;  %8852 = vmatprep.subr.bf16.mxu1 %v3892_v7  ;;  %v3908_v26 = vld [vmem:[#allocation3 + $0xc0] sm:$0xff] }
 0x741   : > { %15659 = vst [vmem:[#allocation107_spill] sm:$0xff] %v12676_v40  ;;  %3463 = vmax.xlane.f32.xlu0 %v3462_v43  ;;  %v3465_v48 = vmax.f32 %v12672_v59, %v12676_v40  ;;  %8853 = vmatpush3.bf16.msra.mxu1 %v3884_v36  ;;  %v3885_v43 = vld [vmem:[#allocation3 + $0x8] sm:$0xff]  ;;  %v3900_v61 = vld [vmem:[#allocation3 + $0x80] sm:$0xff]  ;;  %v3894_v40 = vld [vmem:[#allocation3 + $0x50] sm:$0xff] }
 0x742   : > { %8854 = vmatprep.subr.bf16.mxu1 %v3893_v54  ;;  %8916 = vmatprep.subr.bf16.mxu0 %v3908_v26  ;;  %v3911_v36 = vld [vmem:[#allocation3 + $0xd8] sm:$0xff]  ;;  %v3896_v7 = vld [vmem:[#allocation3 + $0x60] sm:$0xff] }
 0x743   : > { %3466 = vmax.xlane.f32.xlu1 %v3465_v48  ;;  %8917 = vmatpush3.bf16.msra.mxu0 %v3900_v61  ;;  %v3909_v48 = vld [vmem:[#allocation3 + $0xc8] sm:$0xff]  ;;  %v3887_v54 = vld [vmem:[#allocation3 + $0x18] sm:$0xff]  ;;  %v3888_v61 = vld [vmem:[#allocation3 + $0x20] sm:$0xff] }
 0x744   : > { %8918 = vmatprep.subr.bf16.mxu0 %v3909_v48  ;;  %v3903_v26 = vld [vmem:[#allocation3 + $0x98] sm:$0xff]  ;;  %v3897_v48 = vld [vmem:[#allocation3 + $0x68] sm:$0xff] }
 0x745   : > { %3415 = vmax.xlane.f32.xlu0 %v15660_v63  ;;  %8855 = vmatpush3.bf16.msra.mxu1 %v3885_v43  ;;  %v3910_v63 = vld [vmem:[#allocation3 + $0xd0] sm:$0xff] }
 0x746   : > { %8856 = vmatprep.subr.bf16.mxu1 %v3894_v40  ;;  %v3889_v40 = vld [vmem:[#allocation3 + $0x28] sm:$0xff] }
 0x747   : > { %3418 = vmax.xlane.f32.xlu1 %v15661_v22  ;;  %v3895_v22 = vld [vmem:[#allocation3 + $0x58] sm:$0xff]  ;;  %8919 = vmatpush3.bf16.msra.mxu0 %v3901_v19 }
 0x748   : > { %8920 = vmatprep.subr.bf16.mxu0 %v3910_v63 }
 0x749   : > { %8857 = vmatpush3.bf16.msra.mxu1 %v3886_v8 }
 0x74a   : > { %8858 = vmatprep.subr.bf16.mxu1 %v3895_v22 }
 0x74b   : > { %8921 = vmatpush3.bf16.msra.mxu0 %v3902_v42 }
 0x74c   : > { %8922 = vmatprep.subr.bf16.mxu0 %v3911_v36 }
 0x74d   : > { %8859 = vmatpush3.bf16.msra.mxu1 %v3887_v54 }
 0x74e   : > { %8860 = vmatprep.subr.bf16.mxu1 %v3896_v7 }
 0x74f   : > { %8923 = vmatpush3.bf16.msra.mxu0 %v3903_v26 }
 0x751   : > { %8861 = vmatpush3.bf16.msra.mxu1 %v3888_v61 }
 0x752   : > { %8862 = vmatprep.subr.bf16.mxu1 %v3897_v48 }
 0x755   : > { %8863 = vmatpush3.bf16.msra.mxu1 %v3889_v40 }
 0x796   : > { %v3422_v19 = vpop.xlane.xlu0 %3421 }
 0x797   : > { %v3500_v43 = vsub.f32 %v12560_v55, %v3422_v19  ;;  %v3501_v8 = vsub.f32 %v12562_v39, %v3422_v19 }
 0x798   : > { %v3425_v63 = vpop.xlane.xlu1 %3424 }
 0x799   : > { %v3596_v22 = vmul.f32 1.442695, %v3500_v43  ;;  %v3598_v13 = vmul.f32 1.442695, %v3501_v8  ;;  %v3502_v42 = vsub.f32 %v12564_v10, %v3425_v63  ;;  %v3503_v36 = vsub.f32 %v12568_v50, %v3425_v63 }
 0x79a   : > { %v3374_v54 = vpop.xlane.xlu0 %3373 }
 0x79b   : > { %9756 = vpow2.f32 %v3596_v22  ;;  %v3600_v7 = vmul.f32 1.442695, %v3502_v42  ;;  %v3602_v26 = vmul.f32 1.442695, %v3503_v36  ;;  %v3468_v61 = vsub.f32 %v12464_v9, %v3374_v54 }
 0x79c   : > { %9758 = vpow2.f32 %v3598_v13  ;;  %v3469_v48 = vsub.f32 %v12466_v17, %v3374_v54  ;;  %v3377_v40 = vpop.xlane.xlu1 %3376 }
 0x79d   : > { %9760 = vpow2.f32 %v3600_v7  ;;  %v3532_v55 = vmul.f32 1.442695, %v3468_v61  ;;  %v3470_v39 = vsub.f32 %v12468_v23, %v3377_v40  ;;  %v3471_v19 = vsub.f32 %v12472_v44, %v3377_v40 }
 0x79e   : > { %9762 = vpow2.f32 %v3602_v26  ;;  %v3534_v10 = vmul.f32 1.442695, %v3469_v48  ;;  %v3428_v43 = vpop.xlane.xlu0 %3427 }
 0x79f   : > { %9764 = vpow2.f32 %v3532_v55  ;;  %v3536_v50 = vmul.f32 1.442695, %v3470_v39  ;;  %v3538_v8 = vmul.f32 1.442695, %v3471_v19  ;;  %v3504_v63 = vsub.f32 %v12572_v16, %v3428_v43 }
 0x7a0   : > { %9766 = vpow2.f32 %v3534_v10  ;;  %v3505_v9 = vsub.f32 %v12574_v34, %v3428_v43  ;;  %v3431_v13 = vpop.xlane.xlu1 %3430 }
 0x7a1   : > { %9768 = vpow2.f32 %v3536_v50  ;;  %v3604_v17 = vmul.f32 1.442695, %v3504_v63  ;;  %v3506_v22 = vsub.f32 %v12576_v49, %v3431_v13  ;;  %v3507_v23 = vsub.f32 %v12580_v15, %v3431_v13 }
 0x7a2   : > { %9770 = vpow2.f32 %v3538_v8  ;;  %v3606_v44 = vmul.f32 1.442695, %v3505_v9  ;;  %v3380_v42 = vpop.xlane.xlu0 %3379 }
 0x7a3   : > { %9772 = vpow2.f32 %v3604_v17  ;;  %v3608_v36 = vmul.f32 1.442695, %v3506_v22  ;;  %v3610_v54 = vmul.f32 1.442695, %v3507_v23  ;;  %v3472_v7 = vsub.f32 %v12476_v52, %v3380_v42 }
 0x7a4   : > { %9774 = vpow2.f32 %v3606_v44  ;;  %v3473_v16 = vsub.f32 %v12478_v46, %v3380_v42  ;;  %v3383_v26 = vpop.xlane.xlu1 %3382 }
 0x7a5   : > { %v12700_v34 = vpop.eup %9756  ;;  %9776 = vpow2.f32 %v3608_v36  ;;  %v3540_v61 = vmul.f32 1.442695, %v3472_v7  ;;  %v3474_v49 = vsub.f32 %v12480_v35, %v3383_v26  ;;  %v3475_v15 = vsub.f32 %v12484_v45, %v3383_v26 }
 0x7a6   : > { %v12704_v48 = vpop.eup %9758  ;;  %9778 = vpow2.f32 %v3610_v54  ;;  %v3542_v40 = vmul.f32 1.442695, %v3473_v16  ;;  %v3434_v55 = vpop.xlane.xlu0 %3433 }
 0x7a7   : > { %v12706_v39 = vpop.eup %9760  ;;  %9780 = vpow2.f32 %v3540_v61  ;;  %v3544_v52 = vmul.f32 1.442695, %v3474_v49  ;;  %v3546_v19 = vmul.f32 1.442695, %v3475_v15  ;;  %v3508_v46 = vsub.f32 %v12584_v58, %v3434_v55 }
 0x7a8   : > { %v12709_v10 = vpop.eup %9762  ;;  %9782 = vpow2.f32 %v3542_v40  ;;  %v3509_v43 = vsub.f32 %v12586_v4, %v3434_v55  ;;  %v3437_v35 = vpop.xlane.xlu1 %3436  ;;  %v3708_v45 = vadd.f32 %v12704_v48, %v12700_v34 }
 0x7a9   : > { %v12714_v50 = vpop.eup %9764  ;;  %9784 = vpow2.f32 %v3544_v52  ;;  %v3612_v8 = vmul.f32 1.442695, %v3508_v46  ;;  %v3510_v63 = vsub.f32 %v12588_v25, %v3437_v35  ;;  %v3511_v9 = vsub.f32 %v12592_v38, %v3437_v35 }
 0x7aa   : > { %v12718_v13 = vpop.eup %9766  ;;  %9786 = vpow2.f32 %v3546_v19  ;;  %v3614_v58 = vmul.f32 1.442695, %v3509_v43  ;;  %3709 = vadd.xlane.f32.xlu0 %v3708_v45  ;;  %v3386_v17 = vpop.xlane.xlu0 %3385  ;;  %v3711_v4 = vadd.f32 %v12709_v10, %v12706_v39 }
 0x7ab   : > { %v12722_v22 = vpop.eup %9768  ;;  %9788 = vpow2.f32 %v3612_v8  ;;  %v3616_v23 = vmul.f32 1.442695, %v3510_v63  ;;  %v3618_v44 = vmul.f32 1.442695, %v3511_v9  ;;  %v3476_v42 = vsub.f32 %v12488_v20, %v3386_v17 }
 0x7ac   : > { %v12725_v36 = vpop.eup %9770  ;;  %9790 = vpow2.f32 %v3614_v58  ;;  %v3477_v38 = vsub.f32 %v12490_v21, %v3386_v17  ;;  %3712 = vadd.xlane.f32.xlu1 %v3711_v4  ;;  %v3389_v25 = vpop.xlane.xlu1 %3388  ;;  %v3660_v54 = vadd.f32 %v12718_v13, %v12714_v50 }
 0x7ad   : > { %v12730_v7 = vpop.eup %9772  ;;  %9792 = vpow2.f32 %v3616_v23  ;;  %v3548_v16 = vmul.f32 1.442695, %v3476_v42  ;;  %v3478_v26 = vsub.f32 %v12492_v1, %v3389_v25  ;;  %v3479_v61 = vsub.f32 %v12496_v51, %v3389_v25 }
 0x7ae   : > { %v12734_v49 = vpop.eup %9774  ;;  %9794 = vpow2.f32 %v3618_v44  ;;  %v3550_v20 = vmul.f32 1.442695, %v3477_v38  ;;  %3661 = vadd.xlane.f32.xlu0 %v3660_v54  ;;  %v3440_v15 = vpop.xlane.xlu0 %3439  ;;  %v3663_v21 = vadd.f32 %v12725_v36, %v12722_v22 }
 0x7af   : > { %v12738_v40 = vpop.eup %9776  ;;  %9796 = vpow2.f32 %v3548_v16  ;;  %v3552_v55 = vmul.f32 1.442695, %v3478_v26  ;;  %v3554_v52 = vmul.f32 1.442695, %v3479_v61  ;;  %v3512_v19 = vsub.f32 %v12596_v28, %v3440_v15 }
 0x7b0   : > { %v12741_v46 = vpop.eup %9778  ;;  %9798 = vpow2.f32 %v3550_v20  ;;  %v3513_v1 = vsub.f32 %v12598_v12, %v3440_v15  ;;  %3664 = vadd.xlane.f32.xlu1 %v3663_v21  ;;  %v3443_v51 = vpop.xlane.xlu1 %3442  ;;  %v3714_v43 = vadd.f32 %v12734_v49, %v12730_v7 }
 0x7b1   : > { %v12746_v35 = vpop.eup %9780  ;;  %9800 = vpow2.f32 %v3552_v55  ;;  %v3620_v45 = vmul.f32 1.442695, %v3512_v19  ;;  %v3514_v8 = vsub.f32 %v12600_v6, %v3443_v51  ;;  %v3515_v63 = vsub.f32 %v12604_v2, %v3443_v51 }
 0x7b2   : > { %v12750_v9 = vpop.eup %9782  ;;  %9802 = vpow2.f32 %v3554_v52  ;;  %v3622_v28 = vmul.f32 1.442695, %v3513_v1  ;;  %3715 = vadd.xlane.f32.xlu0 %v3714_v43  ;;  %v3392_v58 = vpop.xlane.xlu0 %3391  ;;  %v3717_v12 = vadd.f32 %v12741_v46, %v12738_v40 }
 0x7b3   : > { %v12754_v17 = vpop.eup %9784  ;;  %9804 = vpow2.f32 %v3620_v45  ;;  %v3624_v4 = vmul.f32 1.442695, %v3514_v8  ;;  %v3626_v23 = vmul.f32 1.442695, %v3515_v63  ;;  %v3480_v44 = vsub.f32 %v12500_v30, %v3392_v58 }
 0x7b4   : > { %v12757_v42 = vpop.eup %9786  ;;  %9806 = vpow2.f32 %v3622_v28  ;;  %v3481_v2 = vsub.f32 %v12502_v31, %v3392_v58  ;;  %3718 = vadd.xlane.f32.xlu1 %v3717_v12  ;;  %v3395_v6 = vpop.xlane.xlu1 %3394  ;;  %v3666_v38 = vadd.f32 %v12750_v9, %v12746_v35  ;;  %v3912_v58 = vld [vmem:[#allocation3 + $0xe0] sm:$0xff] }
 0x7b5   : > { %v12762_v25 = vpop.eup %9788  ;;  %9808 = vpow2.f32 %v3624_v4  ;;  %v3556_v54 = vmul.f32 1.442695, %v3480_v44  ;;  %v3482_v16 = vsub.f32 %v12504_v14, %v3395_v6  ;;  %v3483_v26 = vsub.f32 %v12508_v11, %v3395_v6  ;;  %v3904_v12 = vld [vmem:[#allocation3 + $0xa0] sm:$0xff]  ;;  %8924 = vmatprep.subr.bf16.mxu0 %v3912_v58  ;;  %v3913_v58 = vld [vmem:[#allocation3 + $0xe8] sm:$0xff] }
 0x7b6   : > { %v12766_v61 = vpop.eup %9790  ;;  %9810 = vpow2.f32 %v3626_v23  ;;  %v3558_v30 = vmul.f32 1.442695, %v3481_v2  ;;  %3667 = vadd.xlane.f32.xlu0 %v3666_v38  ;;  %v3446_v20 = vpop.xlane.xlu0 %3445  ;;  %v3669_v31 = vadd.f32 %v12757_v42, %v12754_v17  ;;  %8925 = vmatpush3.bf16.msra.mxu0 %v3904_v12 }
 0x7b7   : > { %v12770_v15 = vpop.eup %9792  ;;  %9812 = vpow2.f32 %v3556_v54  ;;  %v3560_v21 = vmul.f32 1.442695, %v3482_v16  ;;  %v3562_v55 = vmul.f32 1.442695, %v3483_v26  ;;  %v3516_v52 = vsub.f32 %v12611_v56, %v3446_v20  ;;  %8926 = vmatprep.subr.bf16.mxu0 %v3913_v58 }
 0x7b8   : > { %v12773_v19 = vpop.eup %9794  ;;  %9814 = vpow2.f32 %v3558_v30  ;;  %v3517_v14 = vsub.f32 %v12613_v62, %v3446_v20  ;;  %3670 = vadd.xlane.f32.xlu1 %v3669_v31  ;;  %v3449_v11 = vpop.xlane.xlu1 %3448  ;;  %v3720_v1 = vadd.f32 %v12766_v61, %v12762_v25 }
 0x7b9   : > { %v12778_v51 = vpop.eup %9796  ;;  %9816 = vpow2.f32 %v3560_v21  ;;  %v3628_v43 = vmul.f32 1.442695, %v3516_v52  ;;  %v3518_v45 = vsub.f32 %v12618_v24, %v3449_v11  ;;  %v3519_v8 = vsub.f32 %v12622_v0, %v3449_v11 }
 0x7ba   : > { %v12782_v63 = vpop.eup %9798  ;;  %9818 = vpow2.f32 %v3562_v55  ;;  %v3630_v56 = vmul.f32 1.442695, %v3517_v14  ;;  %3721 = vadd.xlane.f32.xlu0 %v3720_v1  ;;  %v3398_v28 = vpop.xlane.xlu0 %3397  ;;  %v3723_v62 = vadd.f32 %v12773_v19, %v12770_v15 }
 0x7bb   : > { %v12786_v4 = vpop.eup %9800  ;;  %9820 = vpow2.f32 %v3628_v43  ;;  %v3632_v23 = vmul.f32 1.442695, %v3518_v45  ;;  %v3634_v44 = vmul.f32 1.442695, %v3519_v8  ;;  %v3484_v24 = vsub.f32 %v12512_v41, %v3398_v28 }
 0x7bc   : > { %v12789_v0 = vpop.eup %9802  ;;  %9822 = vpow2.f32 %v3630_v56  ;;  %v3485_v2 = vsub.f32 %v12514_v29, %v3398_v28  ;;  %3724 = vadd.xlane.f32.xlu1 %v3723_v62  ;;  %v3401_v6 = vpop.xlane.xlu1 %3400  ;;  %v3672_v38 = vadd.f32 %v12782_v63, %v12778_v51 }
 0x7bd   : > { %v12794_v54 = vpop.eup %9804  ;;  %9824 = vpow2.f32 %v3632_v23  ;;  %v3564_v16 = vmul.f32 1.442695, %v3484_v24  ;;  %v3486_v26 = vsub.f32 %v12516_v60, %v3401_v6  ;;  %v3487_v41 = vsub.f32 %v12520_v53, %v3401_v6 }
 0x7be   : > { %v12798_v30 = vpop.eup %9806  ;;  %9826 = vpow2.f32 %v3634_v44  ;;  %v3566_v20 = vmul.f32 1.442695, %v3485_v2  ;;  %3673 = vadd.xlane.f32.xlu0 %v3672_v38  ;;  %v3452_v29 = vpop.xlane.xlu0 %3451  ;;  %v3675_v31 = vadd.f32 %v12789_v0, %v12786_v4  ;;  %v15662_v2 = vld [vmem:[#allocation94_spill] sm:$0xff] }
 0x7bf   : > { %v12802_v21 = vpop.eup %9808  ;;  %9828 = vpow2.f32 %v3564_v16  ;;  %v3568_v55 = vmul.f32 1.442695, %v3486_v26  ;;  %v3570_v52 = vmul.f32 1.442695, %v3487_v41  ;;  %v3520_v14 = vsub.f32 %v12629_v37, %v3452_v29 }
 0x7c0   : > { %v12805_v11 = vpop.eup %9810  ;;  %9830 = vpow2.f32 %v3566_v20  ;;  %v3521_v60 = vsub.f32 %v12631_v47, %v3452_v29  ;;  %3676 = vadd.xlane.f32.xlu1 %v3675_v31  ;;  %v3455_v53 = vpop.xlane.xlu1 %3454  ;;  %v3726_v1 = vadd.f32 %v12798_v30, %v12794_v54 }
 0x7c1   : > { %v12810_v43 = vpop.eup %9812  ;;  %9832 = vpow2.f32 %v3568_v55  ;;  %v3636_v45 = vmul.f32 1.442695, %v3520_v14  ;;  %v3522_v8 = vsub.f32 %v12636_v5, %v3455_v53  ;;  %v3523_v56 = vsub.f32 %v12640_v18, %v3455_v53  ;;  %v3905_v5 = vld [vmem:[#allocation3 + $0xa8] sm:$0xff] }
 0x7c2   : > { %v12814_v28 = vpop.eup %9814  ;;  %9834 = vpow2.f32 %v3570_v52  ;;  %v3638_v37 = vmul.f32 1.442695, %v3521_v60  ;;  %3727 = vadd.xlane.f32.xlu0 %v3726_v1  ;;  %v3404_v62 = vpop.xlane.xlu0 %3403  ;;  %v3729_v47 = vadd.f32 %v12805_v11, %v12802_v21  ;;  %8927 = vmatpush3.bf16.msra.mxu0 %v3905_v5  ;;  %v3914_v60 = vld [vmem:[#allocation3 + $0xf0] sm:$0xff] }
 0x7c3   : > { %v12818_v12 = vpop.eup %9816  ;;  %9836 = vpow2.f32 %v3636_v45  ;;  %v3640_v23 = vmul.f32 1.442695, %v3522_v8  ;;  %v3642_v44 = vmul.f32 1.442695, %v3523_v56  ;;  %v3488_v24 = vsub.f32 %v12524_v3, %v3404_v62  ;;  %v15663_v3 = vld [vmem:[#allocation95_spill] sm:$0xff]  ;;  %8928 = vmatprep.subr.bf16.mxu0 %v3914_v60 }
 0x7c4   : > { %v12821_v18 = vpop.eup %9818  ;;  %9838 = vpow2.f32 %v3638_v37  ;;  %v3489_v6 = vsub.f32 %v15662_v2, %v3404_v62  ;;  %3730 = vadd.xlane.f32.xlu1 %v3729_v47  ;;  %v3407_v38 = vpop.xlane.xlu1 %3406  ;;  %v3678_v16 = vadd.f32 %v12814_v28, %v12810_v43  ;;  %v15664_v8 = vld [vmem:[#allocation103_spill] sm:$0xff]  ;;  %v3906_v37 = vld [vmem:[#allocation3 + $0xb0] sm:$0xff]  ;;  %v15665_v47 = vld [vmem:[#allocation104_spill] sm:$0xff] }
 0x7c5   : > { %v12826_v26 = vpop.eup %9820  ;;  %9840 = vpow2.f32 %v3640_v23  ;;  %v3572_v41 = vmul.f32 1.442695, %v3488_v24  ;;  %v3490_v20 = vsub.f32 %v12528_v33, %v3407_v38  ;;  %v3491_v29 = vsub.f32 %v15663_v3, %v3407_v38  ;;  %v3898_v33 = vld [vmem:[#allocation3 + $0x70] sm:$0xff] }
 0x7c6   : > { %v12830_v31 = vpop.eup %9822  ;;  %9842 = vpow2.f32 %v3642_v44  ;;  %v3574_v55 = vmul.f32 1.442695, %v3489_v6  ;;  %3679 = vadd.xlane.f32.xlu0 %v3678_v16  ;;  %v3458_v52 = vpop.xlane.xlu0 %3457  ;;  %v3681_v14 = vadd.f32 %v12821_v18, %v12818_v12  ;;  %8864 = vmatprep.subr.bf16.mxu1 %v3898_v33  ;;  %v3890_v38 = vld [vmem:[#allocation3 + $0x30] sm:$0xff]  ;;  %v3899_v16 = vld [vmem:[#allocation3 + $0x78] sm:$0xff] }
 0x7c7   : > { %v12834_v53 = vpop.eup %9824  ;;  %9844 = vpow2.f32 %v3572_v41  ;;  %v3576_v1 = vmul.f32 1.442695, %v3490_v20  ;;  %v3578_v45 = vmul.f32 1.442695, %v3491_v29  ;;  %v3524_v56 = vsub.f32 %v15664_v8, %v3458_v52  ;;  %8929 = vmatpush3.bf16.msra.mxu0 %v3906_v37  ;;  %8865 = vmatpush3.bf16.msra.mxu1 %v3890_v38  ;;  %v15666_v8 = vld [vmem:[#allocation96_spill] sm:$0xff] }
 0x7c8   : > { %v12837_v62 = vpop.eup %9826  ;;  %9846 = vpow2.f32 %v3574_v55  ;;  %v3525_v58 = vsub.f32 %v15665_v47, %v3458_v52  ;;  %3682 = vadd.xlane.f32.xlu1 %v3681_v14  ;;  %v3461_v23 = vpop.xlane.xlu1 %3460  ;;  %v3732_v44 = vadd.f32 %v12830_v31, %v12826_v26  ;;  %v3915_v55 = vld [vmem:[#allocation3 + $0xf8] sm:$0xff]  ;;  %8866 = vmatprep.subr.bf16.mxu1 %v3899_v16 }
 0x7c9   : > { %v12842_v24 = vpop.eup %9828  ;;  %9848 = vpow2.f32 %v3576_v1  ;;  %v3644_v5 = vmul.f32 1.442695, %v3524_v56  ;;  %v3526_v2 = vsub.f32 %v12654_v57, %v3461_v23  ;;  %v3527_v6 = vsub.f32 %v12658_v27, %v3461_v23  ;;  %v3907_v52 = vld [vmem:[#allocation3 + $0xb8] sm:$0xff]  ;;  %8930 = vmatprep.subr.bf16.mxu0 %v3915_v55  ;;  %v15668_v23 = vld [vmem:[#allocation97_spill] sm:$0xff] }
 0x7ca   : > { %v12846_v41 = vpop.eup %9830  ;;  %9850 = vpow2.f32 %v3578_v45  ;;  %v3646_v20 = vmul.f32 1.442695, %v3525_v58  ;;  %3733 = vadd.xlane.f32.xlu0 %v3732_v44  ;;  %v3410_v3 = vpop.xlane.xlu0 %3409  ;;  %v3735_v29 = vadd.f32 %v12837_v62, %v12834_v53  ;;  %v3891_v1 = vld [vmem:[#allocation3 + $0x38] sm:$0xff]  ;;  %v15671_v55 = vld [vmem:[#allocation105_spill] sm:$0xff] }
 0x7cb   : > { %v12850_v14 = vpop.eup %9832  ;;  %9852 = vpow2.f32 %v3644_v5  ;;  %v3648_v57 = vmul.f32 1.442695, %v3526_v2  ;;  %v3650_v27 = vmul.f32 1.442695, %v3527_v6  ;;  %v3492_v60 = vsub.f32 %v12536_v32, %v3410_v3  ;;  %v15669_v32 = vld [vmem:[#allocation98_spill] sm:$0xff]  ;;  %8931 = vmatpush3.bf16.msra.mxu0 %v3907_v52  ;;  %8867 = vmatpush3.bf16.msra.mxu1 %v3891_v1 }
 0x7cc   : > { %v12853_v45 = vpop.eup %9834  ;;  %9854 = vpow2.f32 %v3646_v20  ;;  %v3493_v56 = vsub.f32 %v15666_v8, %v3410_v3  ;;  %3736 = vadd.xlane.f32.xlu1 %v3735_v29  ;;  %v3413_v33 = vpop.xlane.xlu1 %3412  ;;  %v3684_v37 = vadd.f32 %v12846_v41, %v12842_v24  ;;  %v15672_v52 = vld [vmem:[#allocation106_spill] sm:$0xff] }
 0x7cd   : > { %v12858_v47 = vpop.eup %9836  ;;  %9856 = vpow2.f32 %v3648_v57  ;;  %v3580_v58 = vmul.f32 1.442695, %v3492_v60  ;;  %v3494_v44 = vsub.f32 %v15668_v23, %v3413_v33  ;;  %v3495_v5 = vsub.f32 %v15669_v32, %v3413_v33 }
 0x7ce   : > { %15667 = vst [vmem:[#allocation94_spill] sm:$0xff] %v12858_v47  ;;  %v12862_v2 = vpop.eup %9838  ;;  %9858 = vpow2.f32 %v3650_v27  ;;  %v3582_v6 = vmul.f32 1.442695, %v3493_v56  ;;  %3685 = vadd.xlane.f32.xlu0 %v3684_v37  ;;  %v3464_v38 = vpop.xlane.xlu0 %3463  ;;  %v3687_v16 = vadd.f32 %v12853_v45, %v12850_v14 }
 0x7cf   : > { %v12866_v20 = vpop.eup %9840  ;;  %9860 = vpow2.f32 %v3580_v58  ;;  %v3584_v3 = vmul.f32 1.442695, %v3494_v44  ;;  %v3586_v29 = vmul.f32 1.442695, %v3495_v5  ;;  %v3528_v57 = vsub.f32 %v15671_v55, %v3464_v38  ;;  %v15673_v58 = vld [vmem:[#allocation107_spill] sm:$0xff] }
 0x7d0   : > { %15670 = vst [vmem:[#allocation95_spill] sm:$0xff] %v12866_v20  ;;  %v12869_v60 = vpop.eup %9842  ;;  %9862 = vpow2.f32 %v3582_v6  ;;  %v3529_v8 = vsub.f32 %v15672_v52, %v3464_v38  ;;  %3688 = vadd.xlane.f32.xlu1 %v3687_v16  ;;  %v3738_v27 = vadd.f32 %v12862_v2, %v12858_v47  ;;  %v3467_v56 = vpop.xlane.xlu1 %3466 }
 0x7d1   : > { %v12874_v33 = vpop.eup %9844  ;;  %9864 = vpow2.f32 %v3584_v3  ;;  %v3652_v1 = vmul.f32 1.442695, %v3528_v57  ;;  %v3530_v37 = vsub.f32 %v12672_v59, %v3467_v56  ;;  %v3531_v23 = vsub.f32 %v15673_v58, %v3467_v56  ;;  %v15674_v3 = vld [vmem:[#allocation99_spill] sm:$0xff]  ;;  %v15675_v59 = vld [vmem:[#allocation100_spill] sm:$0xff] }
 0x7d2   : > { %v12878_v44 = vpop.eup %9846  ;;  %9866 = vpow2.f32 %v3586_v29  ;;  %v3654_v32 = vmul.f32 1.442695, %v3529_v8  ;;  %3739 = vadd.xlane.f32.xlu0 %v3738_v27  ;;  %v3416_v5 = vpop.xlane.xlu0 %3415  ;;  %v3741_v6 = vadd.f32 %v12869_v60, %v12866_v20  ;;  %v15676_v20 = vld [vmem:[#allocation101_spill] sm:$0xff] }
 0x7d3   : > { %v12882_v38 = vpop.eup %9848  ;;  %9868 = vpow2.f32 %v3652_v1  ;;  %v3656_v16 = vmul.f32 1.442695, %v3530_v37  ;;  %v3658_v55 = vmul.f32 1.442695, %v3531_v23  ;;  %v3496_v57 = vsub.f32 %v15674_v3, %v3416_v5  ;;  %v15677_v37 = vld [vmem:[#allocation102_spill] sm:$0xff] }
 0x7d4   : > { %v12885_v52 = vpop.eup %9850  ;;  %9870 = vpow2.f32 %v3654_v32  ;;  %v3497_v56 = vsub.f32 %v15675_v59, %v3416_v5  ;;  %3742 = vadd.xlane.f32.xlu1 %v3741_v6  ;;  %v3690_v29 = vadd.f32 %v12878_v44, %v12874_v33  ;;  %v3419_v8 = vpop.xlane.xlu1 %3418 }
 0x7d5   : > { %v12890_v27 = vpop.eup %9852  ;;  %9872 = vpow2.f32 %v3656_v16  ;;  %v3588_v58 = vmul.f32 1.442695, %v3496_v57  ;;  %v3498_v1 = vsub.f32 %v15676_v20, %v3419_v8  ;;  %v3499_v23 = vsub.f32 %v15677_v37, %v3419_v8 }
 0x7d6   : > { %v12894_v47 = vpop.eup %9854  ;;  %9874 = vpow2.f32 %v3658_v55  ;;  %v3590_v3 = vmul.f32 1.442695, %v3497_v56  ;;  %3691 = vadd.xlane.f32.xlu0 %v3690_v29  ;;  %v3693_v32 = vadd.f32 %v12885_v52, %v12882_v38 }
 0x7d7   : > { %v12898_v5 = vpop.eup %9856  ;;  %9876 = vpow2.f32 %v3588_v58  ;;  %v3592_v6 = vmul.f32 1.442695, %v3498_v1  ;;  %v3594_v59 = vmul.f32 1.442695, %v3499_v23  ;;  %v3744_v16 = vadd.f32 %v12894_v47, %v12890_v27 }
 0x7d8   : > { %15678 = vst [vmem:[#allocation103_spill] sm:$0xff] %v12898_v5  ;;  %v12902_v57 = vpop.eup %9858  ;;  %9878 = vpow2.f32 %v3590_v3  ;;  %3694 = vadd.xlane.f32.xlu1 %v3693_v32 }
 0x7d9   : > { %v12904_v20 = vpop.eup %9860  ;;  %9880 = vpow2.f32 %v3592_v6  ;;  %v3747_v55 = vadd.f32 %v12902_v57, %v12898_v5 }
 0x7da   : > { %15679 = vst [vmem:[#allocation104_spill] sm:$0xff] %v12904_v20  ;;  %v12908_v56 = vpop.eup %9862  ;;  %9882 = vpow2.f32 %v3594_v59  ;;  %3745 = vadd.xlane.f32.xlu0 %v3744_v16 }
 0x7db   : > { %15680 = vst [vmem:[#allocation96_spill] sm:$0xff] %v12908_v56  ;;  %v12910_v29 = vpop.eup %9864  ;;  %v3696_v8 = vadd.f32 %v12908_v56, %v12904_v20 }
 0x7dc   : > { %15681 = vst [vmem:[#allocation97_spill] sm:$0xff] %v12910_v29  ;;  %v12914_v58 = vpop.eup %9866  ;;  %3748 = vadd.xlane.f32.xlu1 %v3747_v55 }
 0x7dd   : > { %15682 = vst [vmem:[#allocation98_spill] sm:$0xff] %v12914_v58  ;;  %v12916_v1 = vpop.eup %9868  ;;  %v3699_v37 = vadd.f32 %v12914_v58, %v12910_v29 }
 0x7de   : > { %15683 = vst [vmem:[#allocation105_spill] sm:$0xff] %v12916_v1  ;;  %v12920_v23 = vpop.eup %9870  ;;  %3697 = vadd.xlane.f32.xlu0 %v3696_v8 }
 0x7df   : > { %15684 = vst [vmem:[#allocation106_spill] sm:$0xff] %v12920_v23  ;;  %v12922_v3 = vpop.eup %9872  ;;  %v3750_v32 = vadd.f32 %v12920_v23, %v12916_v1 }
 0x7e0   : > { %15685 = vst [vmem:[#allocation107_spill] sm:$0xff] %v12922_v3  ;;  %v12926_v6 = vpop.eup %9874  ;;  %3700 = vadd.xlane.f32.xlu1 %v3699_v37  ;;  %v9486_v37 = vld [vmem:[#allocation14 + $0x4] ss:$8 sps:$4 sm:$0xff]  }
 0x7e1   : > { %15686 = vst [vmem:[#allocation99_spill] sm:$0xff] %v12926_v6  ;;  %v12928_v59 = vpop.eup %9876  ;;  %v3753_v16 = vadd.f32 %v12926_v6, %v12922_v3  ;;  %4362 = vmatprep.subr.bf16.mxu1 %v9486_v37 }
 0x7e2   : > { %15687 = vst [vmem:[#allocation100_spill] sm:$0xff] %v12928_v59  ;;  %v12932_v55 = vpop.eup %9878  ;;  %3751 = vadd.xlane.f32.xlu0 %v3750_v32 }
 0x7e3   : > { %15688 = vst [vmem:[#allocation101_spill] sm:$0xff] %v12932_v55  ;;  %v12934_v29 = vpop.eup %9880  ;;  %v3702_v8 = vadd.f32 %v12932_v55, %v12928_v59 }
 0x7e4   : > { %15689 = vst [vmem:[#allocation102_spill] sm:$0xff] %v12934_v29  ;;  %v12938_v20 = vpop.eup %9882  ;;  %3754 = vadd.xlane.f32.xlu1 %v3753_v16 }
 0x7e5   : > { %15690 = vst [vmem:[#allocation108_spill] sm:$0xff] %v12938_v20  ;;  %v3705_v1 = vadd.f32 %v12938_v20, %v12934_v29 }
 0x7e6   : > { %3703 = vadd.xlane.f32.xlu0 %v3702_v8 }
 0x7e8   : > { %3706 = vadd.xlane.f32.xlu1 %v3705_v1 }
 0x837   : > { %v3710_v23 = vpop.xlane.xlu0 %3709 }
 0x838   : > { %9884 = vrcp.f32 %v3710_v23 }
 0x839   : > { %v3713_v3 = vpop.xlane.xlu1 %3712 }
 0x83a   : > { %9886 = vrcp.f32 %v3713_v3 }
 0x83b   : > { %v3662_v32 = vpop.xlane.xlu0 %3661 }
 0x83c   : > { %9888 = vrcp.f32 %v3662_v32 }
 0x83d   : > { %v3665_v6 = vpop.xlane.xlu1 %3664 }
 0x83e   : > { %9890 = vrcp.f32 %v3665_v6 }
 0x83f   : > { %v3716_v58 = vpop.xlane.xlu0 %3715 }
 0x840   : > { %9892 = vrcp.f32 %v3716_v58 }
 0x841   : > { %v3719_v59 = vpop.xlane.xlu1 %3718 }
 0x842   : > { %v9885_v55 = vpop.eup %9884  ;;  %9894 = vrcp.f32 %v3719_v59 }
 0x843   : > { %v3668_v16 = vpop.xlane.xlu0 %3667  ;;  %v3821_v1 = vmul.f32 %v9885_v55, %v12704_v48  ;;  %v3820_v23 = vmul.f32 %v9885_v55, %v12700_v34 }
 0x844   : > { %v9887_v56 = vpop.eup %9886  ;;  %9896 = vrcp.f32 %v3668_v16 }
 0x845   : > { %v3671_v8 = vpop.xlane.xlu1 %3670  ;;  %v3823_v37 = vmul.f32 %v9887_v56, %v12709_v10  ;;  %v3822_v3 = vmul.f32 %v9887_v56, %v12706_v39 }
 0x846   : > { %v9889_v32 = vpop.eup %9888  ;;  %9898 = vrcp.f32 %v3671_v8  ;;  %v9484_v8 = vld [vmem:[#allocation14] ss:$8 sps:$4 sm:$0xff]  }
 0x847   : > { %v3722_v6 = vpop.xlane.xlu0 %3721  ;;  %v3869_v29 = vpack.c.bf16 %v3823_v37, %v3821_v1  ;;  %v3868_v58 = vpack.c.bf16 %v3822_v3, %v3820_v23  ;;  %v3788_v59 = vmul.f32 %v9889_v32, %v12714_v50  ;;  %v3789_v48 = vmul.f32 %v9889_v32, %v12718_v13  ;;  %v9489_v37 = vld [vmem:[#allocation14 + $0x14] ss:$8 sps:$4 sm:$0xff]   ;;  %v9487_v32 = vld [vmem:[#allocation14 + $0x10] ss:$8 sps:$4 sm:$0xff]  }
 0x848   : > { %v9891_v20 = vpop.eup %9890  ;;  %9900 = vrcp.f32 %v3722_v6 }
 0x849   : > { %v3790_v16 = vmul.f32 %v9891_v20, %v12722_v22  ;;  %4045 = vmatprep.mubr.bf16.mxu0 %v3869_v29  ;;  %v3725_v5 = vpop.xlane.xlu1 %3724  ;;  %v3791_v10 = vmul.f32 %v9891_v20, %v12725_v36 }
 0x84a   : > { %v9893_v34 = vpop.eup %9892  ;;  %9902 = vrcp.f32 %v3725_v5  ;;  %4046 = vmatmul.mubr.bf16.vlgmr.msra.gmra.mrb[0].mxu0 %v3868_v58  ;;  %v9492_v58 = vld [vmem:[#allocation14 + $0x24] ss:$8 sps:$4 sm:$0xff]  }
 0x84b   : > { %v3674_v39 = vpop.xlane.xlu0 %3673  ;;  %v3853_v56 = vpack.c.bf16 %v3791_v10, %v3789_v48  ;;  %v3852_v55 = vpack.c.bf16 %v3790_v16, %v3788_v59  ;;  %v3825_v22 = vmul.f32 %v9893_v34, %v12734_v49  ;;  %v3824_v13 = vmul.f32 %v9893_v34, %v12730_v7 }
 0x84c   : > { %v9895_v1 = vpop.eup %9894  ;;  %9904 = vrcp.f32 %v3674_v39  ;;  %v9490_v39 = vld [vmem:[#allocation14 + $0x20] ss:$8 sps:$4 sm:$0xff]  }
 0x84d   : > { %3948 = vmatprep.mubr.bf16.mxu1 %v3853_v56  ;;  %v3677_v50 = vpop.xlane.xlu1 %3676  ;;  %v3827_v29 = vmul.f32 %v9895_v1, %v12741_v46  ;;  %v3826_v36 = vmul.f32 %v9895_v1, %v12738_v40 }
 0x84e   : > { %v9897_v20 = vpop.eup %9896  ;;  %9906 = vrcp.f32 %v3677_v50  ;;  %3949 = vmatmul.mubr.bf16.vlgmr.msra.gmra.mrb[96].mxu1 %v3852_v55  ;;  %v9495_v55 = vld [vmem:[#allocation14 + $0x34] ss:$8 sps:$4 sm:$0xff]  }
 0x84f   : > { %v3728_v5 = vpop.xlane.xlu0 %3727  ;;  %v3871_v23 = vpack.c.bf16 %v3827_v29, %v3825_v22  ;;  %v3870_v3 = vpack.c.bf16 %v3826_v36, %v3824_v13  ;;  %4363 = vmatpush1.bf16.msra.mxu1 %v9484_v8  ;;  %v3793_v46 = vmul.f32 %v9897_v20, %v12750_v9  ;;  %v3792_v40 = vmul.f32 %v9897_v20, %v12746_v35  ;;  %v9493_v29 = vld [vmem:[#allocation14 + $0x30] ss:$8 sps:$4 sm:$0xff]   ;;  %v9498_v36 = vld [vmem:[#allocation14 + $0x44] ss:$8 sps:$4 sm:$0xff]  }
 0x850   : > { %v9899_v6 = vpop.eup %9898  ;;  %9908 = vrcp.f32 %v3728_v5  ;;  %4364 = vmatprep.subr.bf16.mxu1 %v9489_v37 }
 0x851   : > { %4053 = vmatprep.mubr.bf16.mxu0 %v3871_v23  ;;  %v3731_v49 = vpop.xlane.xlu1 %3730  ;;  %v3795_v7 = vmul.f32 %v9899_v6, %v12757_v42  ;;  %v3794_v59 = vmul.f32 %v9899_v6, %v12754_v17  ;;  %v9496_v6 = vld [vmem:[#allocation14 + $0x40] ss:$8 sps:$4 sm:$0xff]  }
 0x852   : > { %v9901_v16 = vpop.eup %9900  ;;  %9910 = vrcp.f32 %v3731_v49  ;;  %4054 = vmatmul.mubr.bf16.gmra.mrb[4].mxu0 %v3870_v3  ;;  %v9501_v49 = vld [vmem:[#allocation14 + $0x54] ss:$8 sps:$4 sm:$0xff]  }
 0x853   : > { %v3680_v48 = vpop.xlane.xlu0 %3679  ;;  %v3855_v10 = vpack.c.bf16 %v3795_v7, %v3793_v46  ;;  %v3854_v34 = vpack.c.bf16 %v3794_v59, %v3792_v40  ;;  %4365 = vmatpush1.bf16.msra.mxu1 %v9487_v32  ;;  %v3829_v42 = vmul.f32 %v9901_v16, %v12766_v61  ;;  %v3828_v17 = vmul.f32 %v9901_v16, %v12762_v25 }
 0x854   : > { %v9903_v56 = vpop.eup %9902  ;;  %9912 = vrcp.f32 %v3680_v48  ;;  %4366 = vmatprep.subr.bf16.mxu1 %v9492_v58  ;;  %v9499_v48 = vld [vmem:[#allocation14 + $0x50] ss:$8 sps:$4 sm:$0xff]  }
 0x855   : > { %3956 = vmatprep.mubr.bf16.mxu1 %v3855_v10  ;;  %v3683_v9 = vpop.xlane.xlu1 %3682  ;;  %v3831_v35 = vmul.f32 %v9903_v56, %v12773_v19  ;;  %v3830_v8 = vmul.f32 %v9903_v56, %v12770_v15 }
 0x856   : > { %v9905_v1 = vpop.eup %9904  ;;  %9914 = vrcp.f32 %v3683_v9  ;;  %3957 = vmatmul.mubr.bf16.gmra.mrb[100].mxu1 %v3854_v34  ;;  %v9504_v34 = vld [vmem:[#allocation14 + $0x64] ss:$8 sps:$4 sm:$0xff]  }
 0x857   : > { %v3734_v37 = vpop.xlane.xlu0 %3733  ;;  %v3873_v50 = vpack.c.bf16 %v3831_v35, %v3829_v42  ;;  %v3872_v22 = vpack.c.bf16 %v3830_v8, %v3828_v17  ;;  %4367 = vmatpush1.bf16.msra.mxu1 %v9490_v39  ;;  %v3797_v19 = vmul.f32 %v9905_v1, %v12782_v63  ;;  %v3796_v15 = vmul.f32 %v9905_v1, %v12778_v51  ;;  %v9502_v35 = vld [vmem:[#allocation14 + $0x60] ss:$8 sps:$4 sm:$0xff]   ;;  %v9507_v8 = vld [vmem:[#allocation14 + $0x74] ss:$8 sps:$4 sm:$0xff]  }
 0x858   : > { %v9907_v13 = vpop.eup %9906  ;;  %9916 = vrcp.f32 %v3734_v37  ;;  %4368 = vmatprep.subr.bf16.mxu1 %v9495_v55 }
 0x859   : > { %4061 = vmatprep.mubr.bf16.mxu0 %v3873_v50  ;;  %v3737_v61 = vpop.xlane.xlu1 %3736  ;;  %v3799_v25 = vmul.f32 %v9907_v13, %v12789_v0  ;;  %v3798_v20 = vmul.f32 %v9907_v13, %v12786_v4  ;;  %v9505_v13 = vld [vmem:[#allocation14 + $0x70] ss:$8 sps:$4 sm:$0xff]  }
 0x85a   : > { %v9909_v5 = vpop.eup %9908  ;;  %9918 = vrcp.f32 %v3737_v61  ;;  %4062 = vmatmul.mubr.bf16.gmra.mrb[8].mxu0 %v3872_v22  ;;  %v9510_v61 = vld [vmem:[#allocation14 + $0x84] ss:$8 sps:$4 sm:$0xff]  }
 0x85b   : > { %v3686_v23 = vpop.xlane.xlu0 %3685  ;;  %v3857_v3 = vpack.c.bf16 %v3799_v25, %v3797_v19  ;;  %v3856_v32 = vpack.c.bf16 %v3798_v20, %v3796_v15  ;;  %4369 = vmatpush1.bf16.msra.mxu1 %v9493_v29  ;;  %v3833_v0 = vmul.f32 %v9909_v5, %v12798_v30  ;;  %v3832_v4 = vmul.f32 %v9909_v5, %v12794_v54 }
 0x85c   : > { %v9911_v58 = vpop.eup %9910  ;;  %9920 = vrcp.f32 %v3686_v23  ;;  %4370 = vmatprep.subr.bf16.mxu1 %v9498_v36  ;;  %v9508_v23 = vld [vmem:[#allocation14 + $0x80] ss:$8 sps:$4 sm:$0xff]  }
 0x85d   : > { %3964 = vmatprep.mubr.bf16.mxu1 %v3857_v3  ;;  %v3689_v63 = vpop.xlane.xlu1 %3688  ;;  %v3835_v51 = vmul.f32 %v9911_v58, %v12805_v11  ;;  %v3834_v46 = vmul.f32 %v9911_v58, %v12802_v21  ;;  %v15692_v58 = vld [vmem:[#allocation95_spill] sm:$0xff] }
 0x85e   : > { %v9913_v7 = vpop.eup %9912  ;;  %9922 = vrcp.f32 %v3689_v63  ;;  %3965 = vmatmul.mubr.bf16.gmra.mrb[104].mxu1 %v3856_v32  ;;  %v9513_v32 = vld [vmem:[#allocation14 + $0x94] ss:$8 sps:$4 sm:$0xff]  }
 0x85f   : > { %v3740_v40 = vpop.xlane.xlu0 %3739  ;;  %v3875_v59 = vpack.c.bf16 %v3835_v51, %v3833_v0  ;;  %v3874_v16 = vpack.c.bf16 %v3834_v46, %v3832_v4  ;;  %4371 = vmatpush1.bf16.msra.mxu1 %v9496_v6  ;;  %v3801_v11 = vmul.f32 %v9913_v7, %v12814_v28  ;;  %v3800_v21 = vmul.f32 %v9913_v7, %v12810_v43  ;;  %v15691_v6 = vld [vmem:[#allocation94_spill] sm:$0xff] }
 0x860   : > { %v9915_v10 = vpop.eup %9914  ;;  %9924 = vrcp.f32 %v3740_v40  ;;  %4372 = vmatprep.subr.bf16.mxu1 %v9501_v49  ;;  %v9511_v46 = vld [vmem:[#allocation14 + $0x90] ss:$8 sps:$4 sm:$0xff]   ;;  %v9516_v40 = vld [vmem:[#allocation14 + $0xa4] ss:$8 sps:$4 sm:$0xff]  }
 0x861   : > { %4069 = vmatprep.mubr.bf16.mxu0 %v3875_v59  ;;  %v3743_v30 = vpop.xlane.xlu1 %3742  ;;  %v3803_v54 = vmul.f32 %v9915_v10, %v12821_v18  ;;  %v3802_v39 = vmul.f32 %v9915_v10, %v12818_v12 }
 0x862   : > { %v9917_v56 = vpop.eup %9916  ;;  %9926 = vrcp.f32 %v3743_v30  ;;  %4070 = vmatmul.mubr.bf16.gmra.mrb[12].mxu0 %v3874_v16 }
 0x863   : > { %v3692_v55 = vpop.xlane.xlu0 %3691  ;;  %v3859_v9 = vpack.c.bf16 %v3803_v54, %v3801_v11  ;;  %v3858_v42 = vpack.c.bf16 %v3802_v39, %v3800_v21  ;;  %4373 = vmatpush1.bf16.msra.mxu1 %v9499_v48  ;;  %v3837_v18 = vmul.f32 %v9917_v56, %v12830_v31  ;;  %v3836_v12 = vmul.f32 %v9917_v56, %v12826_v26  ;;  %v9514_v54 = vld [vmem:[#allocation14 + $0xa0] ss:$8 sps:$4 sm:$0xff]   ;;  %v9519_v39 = vld [vmem:[#allocation14 + $0xb4] ss:$8 sps:$4 sm:$0xff]  }
 0x864   : > { %v9919_v17 = vpop.eup %9918  ;;  %9928 = vrcp.f32 %v3692_v55  ;;  %4374 = vmatprep.subr.bf16.mxu1 %v9504_v34  ;;  %v15693_v56 = vld [vmem:[#allocation103_spill] sm:$0xff] }
 0x865   : > { %3972 = vmatprep.mubr.bf16.mxu1 %v3859_v9  ;;  %v3695_v28 = vpop.xlane.xlu1 %3694  ;;  %v3839_v43 = vmul.f32 %v9919_v17, %v12837_v62  ;;  %v3838_v1 = vmul.f32 %v9919_v17, %v12834_v53  ;;  %v9517_v17 = vld [vmem:[#allocation14 + $0xb0] ss:$8 sps:$4 sm:$0xff]  }
 0x866   : > { %v9921_v37 = vpop.eup %9920  ;;  %9930 = vrcp.f32 %v3695_v28  ;;  %3973 = vmatmul.mubr.bf16.gmra.mrb[108].mxu1 %v3858_v42  ;;  %v9522_v28 = vld [vmem:[#allocation14 + $0xc4] ss:$8 sps:$4 sm:$0xff]  }
 0x867   : > { %v3746_v50 = vpop.xlane.xlu0 %3745  ;;  %v3877_v22 = vpack.c.bf16 %v3839_v43, %v3837_v18  ;;  %v3876_v29 = vpack.c.bf16 %v3838_v1, %v3836_v12  ;;  %4375 = vmatpush1.bf16.msra.mxu1 %v9502_v35  ;;  %v3805_v62 = vmul.f32 %v9921_v37, %v12846_v41  ;;  %v3804_v53 = vmul.f32 %v9921_v37, %v12842_v24  ;;  %v15694_v18 = vld [vmem:[#allocation96_spill] sm:$0xff] }
 0x868   : > { %v9923_v36 = vpop.eup %9922  ;;  %9932 = vrcp.f32 %v3746_v50  ;;  %4376 = vmatprep.subr.bf16.mxu1 %v9507_v8 }
 0x869   : > { %4077 = vmatprep.mubr.bf16.mxu0 %v3877_v22  ;;  %v3749_v31 = vpop.xlane.xlu1 %3748  ;;  %v3807_v26 = vmul.f32 %v9923_v36, %v12853_v45  ;;  %v3806_v19 = vmul.f32 %v9923_v36, %v12850_v14 }
 0x86a   : > { %v9925_v25 = vpop.eup %9924  ;;  %9934 = vrcp.f32 %v3749_v31  ;;  %4078 = vmatmul.mubr.bf16.gmra.mrb[16].mxu0 %v3876_v29  ;;  %v15698_v31 = vld [vmem:[#allocation106_spill] sm:$0xff] }
 0x86b   : > { %v3698_v15 = vpop.xlane.xlu0 %3697  ;;  %v3861_v20 = vpack.c.bf16 %v3807_v26, %v3805_v62  ;;  %v3860_v5 = vpack.c.bf16 %v3806_v19, %v3804_v53  ;;  %4377 = vmatpush1.bf16.msra.mxu1 %v9505_v13  ;;  %v3841_v45 = vmul.f32 %v9925_v25, %v12862_v2  ;;  %v3840_v14 = vmul.f32 %v9925_v25, %v15691_v6  ;;  %v9520_v13 = vld [vmem:[#allocation14 + $0xc0] ss:$8 sps:$4 sm:$0xff]   ;;  %v15700_v19 = vld [vmem:[#allocation105_spill] sm:$0xff] }
 0x86c   : > { %v9927_v3 = vpop.eup %9926  ;;  %9936 = vrcp.f32 %v3698_v15  ;;  %4378 = vmatprep.subr.bf16.mxu1 %v9510_v61  ;;  %v9525_v61 = vld [vmem:[#allocation14 + $0xd4] ss:$8 sps:$4 sm:$0xff]   ;;  %v15699_v26 = vld [vmem:[#allocation99_spill] sm:$0xff]  ;;  %v15703_v6 = vld [vmem:[#allocation108_spill] sm:$0xff] }
 0x86d   : > { %3980 = vmatprep.mubr.bf16.mxu1 %v3861_v20  ;;  %v3701_v41 = vpop.xlane.xlu1 %3700  ;;  %v3843_v24 = vmul.f32 %v9927_v3, %v12869_v60  ;;  %v3842_v49 = vmul.f32 %v9927_v3, %v15692_v58  ;;  %v15701_v15 = vld [vmem:[#allocation107_spill] sm:$0xff]  ;;  %v15704_v58 = vld [vmem:[#allocation100_spill] sm:$0xff] }
 0x86e   : > { %v9929_v63 = vpop.eup %9928  ;;  %9938 = vrcp.f32 %v3701_v41  ;;  %3981 = vmatmul.mubr.bf16.gmra.mrb[112].mxu1 %v3860_v5 }
 0x86f   : > { %v3752_v0 = vpop.xlane.xlu0 %3751  ;;  %v3879_v51 = vpack.c.bf16 %v3843_v24, %v3841_v45  ;;  %v3878_v4 = vpack.c.bf16 %v3842_v49, %v3840_v14  ;;  %4379 = vmatpush1.bf16.msra.mxu1 %v9508_v23  ;;  %v3809_v60 = vmul.f32 %v9929_v63, %v12878_v44  ;;  %v3808_v16 = vmul.f32 %v9929_v63, %v12874_v33  ;;  %v15702_v45 = vld [vmem:[#allocation101_spill] sm:$0xff]  ;;  %v15705_v63 = vld [vmem:[#allocation102_spill] sm:$0xff] }
 0x870   : > { %v9931_v7 = vpop.eup %9930  ;;  %9940 = vrcp.f32 %v3752_v0  ;;  %4380 = vmatprep.subr.bf16.mxu1 %v9513_v32  ;;  %v9523_v32 = vld [vmem:[#allocation14 + $0xd0] ss:$8 sps:$4 sm:$0xff]  }
 0x871   : > { %4085 = vmatprep.mubr.bf16.mxu0 %v3879_v51  ;;  %v3755_v2 = vpop.xlane.xlu1 %3754  ;;  %v3811_v59 = vmul.f32 %v9931_v7, %v12885_v52  ;;  %v3810_v48 = vmul.f32 %v9931_v7, %v12882_v38  ;;  %v9528_v7 = vld [vmem:[#allocation14 + $0xe4] ss:$8 sps:$4 sm:$0xff]  }
 0x872   : > { %v9933_v10 = vpop.eup %9932  ;;  %9942 = vrcp.f32 %v3755_v2  ;;  %4086 = vmatmul.mubr.bf16.gmra.mrb[20].mxu0 %v3878_v4  ;;  %v9531_v2 = vld [vmem:[#allocation14 + $0xf4] ss:$8 sps:$4 sm:$0xff]  }
 0x873   : > { %v3704_v34 = vpop.xlane.xlu0 %3703  ;;  %v3863_v30 = vpack.c.bf16 %v3811_v59, %v3809_v60  ;;  %v3862_v11 = vpack.c.bf16 %v3810_v48, %v3808_v16  ;;  %4381 = vmatpush1.bf16.msra.mxu1 %v9511_v46  ;;  %v3845_v52 = vmul.f32 %v9933_v10, %v12894_v47  ;;  %v3844_v38 = vmul.f32 %v9933_v10, %v12890_v27  ;;  %v15695_v47 = vld [vmem:[#allocation98_spill] sm:$0xff]  ;;  %v15697_v27 = vld [vmem:[#allocation97_spill] sm:$0xff]  ;;  %v9526_v46 = vld [vmem:[#allocation14 + $0xe0] ss:$8 sps:$4 sm:$0xff]  }
 0x874   : > { %v9935_v21 = vpop.eup %9934  ;;  %9944 = vrcp.f32 %v3704_v34  ;;  %4382 = vmatprep.subr.bf16.mxu1 %v9516_v40  ;;  %v9529_v40 = vld [vmem:[#allocation14 + $0xf0] ss:$8 sps:$4 sm:$0xff]  }
 0x875   : > { %3988 = vmatprep.mubr.bf16.mxu1 %v3863_v30  ;;  %v3707_v44 = vpop.xlane.xlu1 %3706  ;;  %v3847_v33 = vmul.f32 %v9935_v21, %v12902_v57  ;;  %v3846_v55 = vmul.f32 %v9935_v21, %v15693_v56  ;;  %v15696_v57 = vld [vmem:[#allocation104_spill] sm:$0xff] }
 0x876   : > { %v9937_v9 = vpop.eup %9936  ;;  %9946 = vrcp.f32 %v3707_v44  ;;  %3989 = vmatmul.mubr.bf16.gmra.mrb[116].mxu1 %v3862_v11 }
 0x877   : > { %v3881_v42 = vpack.c.bf16 %v3847_v33, %v3845_v52  ;;  %v3880_v35 = vpack.c.bf16 %v3846_v55, %v3844_v38  ;;  %4383 = vmatpush1.bf16.msra.mxu1 %v9514_v54  ;;  %v3813_v43 = vmul.f32 %v9937_v9, %v15694_v18  ;;  %v3812_v1 = vmul.f32 %v9937_v9, %v15696_v57 }
 0x878   : > { %v9939_v8 = vpop.eup %9938  ;;  %4384 = vmatprep.subr.bf16.mxu1 %v9519_v39 }
 0x879   : > { %4093 = vmatprep.mubr.bf16.mxu0 %v3881_v42  ;;  %v3815_v12 = vmul.f32 %v9939_v8, %v15695_v47  ;;  %v3814_v37 = vmul.f32 %v9939_v8, %v15697_v27 }
 0x87a   : > { %v9941_v50 = vpop.eup %9940  ;;  %4094 = vmatmul.mubr.bf16.gmra.mrb[24].mxu0 %v3880_v35 }
 0x87b   : > { %v3865_v22 = vpack.c.bf16 %v3815_v12, %v3813_v43  ;;  %v3864_v29 = vpack.c.bf16 %v3814_v37, %v3812_v1  ;;  %4385 = vmatpush1.bf16.msra.mxu1 %v9517_v17  ;;  %v3849_v62 = vmul.f32 %v9941_v50, %v15698_v31  ;;  %v3848_v25 = vmul.f32 %v9941_v50, %v15700_v19 }
 0x87c   : > { %v9943_v36 = vpop.eup %9942  ;;  %4386 = vmatprep.subr.bf16.mxu1 %v9522_v28 }
 0x87d   : > { %3996 = vmatprep.mubr.bf16.mxu1 %v3865_v22  ;;  %v3851_v53 = vmul.f32 %v9943_v36, %v15699_v26  ;;  %v3850_v20 = vmul.f32 %v9943_v36, %v15701_v15 }
 0x87e   : > { %v9945_v5 = vpop.eup %9944  ;;  %3997 = vmatmul.mubr.bf16.gmra.mrb[120].mxu1 %v3864_v29 }
 0x87f   : > { %v3883_v23 = vpack.c.bf16 %v3851_v53, %v3849_v62  ;;  %v3882_v3 = vpack.c.bf16 %v3850_v20, %v3848_v25  ;;  %4387 = vmatpush1.bf16.msra.mxu1 %v9520_v13  ;;  %v3817_v24 = vmul.f32 %v9945_v5, %v15702_v45  ;;  %v3816_v49 = vmul.f32 %v9945_v5, %v15704_v58 }
 0x880   : > { %v9947_v41 = vpop.eup %9946  ;;  %4388 = vmatprep.subr.bf16.mxu1 %v9525_v61 }
 0x881   : > { %4101 = vmatprep.mubr.bf16.mxu0 %v3883_v23  ;;  %v3819_v14 = vmul.f32 %v9947_v41, %v15703_v6  ;;  %v3818_v0 = vmul.f32 %v9947_v41, %v15705_v63 }
 0x882   : > { %4102 = vmatmul.mubr.bf16.gmra.mrb[28].mxu0 %v3882_v3 }
 0x883   : > { %v3867_v51 = vpack.c.bf16 %v3819_v14, %v3817_v24  ;;  %v3866_v4 = vpack.c.bf16 %v3818_v0, %v3816_v49  ;;  %4389 = vmatpush1.bf16.msra.mxu1 %v9523_v32 }
 0x884   : > { %4390 = vmatprep.subr.bf16.mxu1 %v9528_v7 }
 0x885   : > { %4004 = vmatprep.mubr.bf16.mxu1 %v3867_v51 }
 0x886   : > { %4005 = vmatmul.mubr.bf16.gmra.mrb[124].mxu1 %v3866_v4 }
 0x887   : > { %4391 = vmatpush1.bf16.msra.mxu1 %v9526_v46 }
 0x888   : > { %4392 = vmatprep.subr.bf16.mxu1 %v9531_v2 }
 0x88b   : > { %4393 = vmatpush1.bf16.msra.mxu1 %v9529_v40 }
 0x91d   : > { %v8932_v60 = vpop.f32.mrb[0].mxu0 }
 0x91e   : > { %v8933_v59 = vpop.f32.mrb[1].mxu0 }
 0x91f   : > { %v8934_v16 = vadd.f32 %v8933_v59, %v8932_v60  ;;  %v8935_v48 = vpop.f32.mrb[2].mxu0 }
 0x920   : > { %v8936_v10 = vpop.f32.mrb[3].mxu0 }
 0x921   : > { %v8937_v34 = vadd.f32 %v8936_v10, %v8935_v48  ;;  %v8868_v30 = vpop.f32.mrb[96].mxu1 }
 0x922   : > { %v8869_v11 = vpop.f32.mrb[97].mxu1 }
 0x923   : > { %v4126_v54 = vpack.c.bf16 %v8937_v34, %v8934_v16  ;;  %v8870_v21 = vadd.f32 %v8869_v11, %v8868_v30  ;;  %v8871_v39 = vpop.f32.mrb[98].mxu1 }
 0x924   : > { %v8872_v44 = vpop.f32.mrb[99].mxu1 }
 0x925   : > { %v8873_v52 = vadd.f32 %v8872_v44, %v8871_v39  ;;  %v8938_v33 = vpop.f32.mrb[4].mxu0  ;;  %4394 = vmatprep.mubr.bf16.mxu1 %v4126_v54 }
 0x926   : > { %v8939_v38 = vpop.f32.mrb[5].mxu0 }
 0x927   : > { %v4110_v56 = vpack.c.bf16 %v8873_v52, %v8870_v21  ;;  %v8940_v55 = vadd.f32 %v8939_v38, %v8938_v33  ;;  %v8941_v9 = vpop.f32.mrb[6].mxu0 }
 0x928   : > { %v8942_v42 = vpop.f32.mrb[7].mxu0 }
 0x929   : > { %v8943_v35 = vadd.f32 %v8942_v42, %v8941_v9  ;;  %v8874_v17 = vpop.f32.mrb[100].mxu1  ;;  %4395 = vmatmul.mubr.bf16.vlgmr.msra.gmra.mrb[128].mxu1 %v4110_v56 }
 0x92a   : > { %v8875_v8 = vpop.f32.mrb[101].mxu1 }
 0x92b   : > { %v4127_v28 = vpack.c.bf16 %v8943_v35, %v8940_v55  ;;  %v8876_v18 = vadd.f32 %v8875_v8, %v8874_v17  ;;  %v8877_v43 = vpop.f32.mrb[102].mxu1 }
 0x92c   : > { %v8878_v47 = vpop.f32.mrb[103].mxu1 }
 0x92d   : > { %v8879_v12 = vadd.f32 %v8878_v47, %v8877_v43  ;;  %v8944_v57 = vpop.f32.mrb[8].mxu0  ;;  %4404 = vmatprep.mubr.bf16.mxu1 %v4127_v28 }
 0x92e   : > { %v8945_v1 = vpop.f32.mrb[9].mxu0 }
 0x92f   : > { %v4111_v27 = vpack.c.bf16 %v8879_v12, %v8876_v18  ;;  %v8946_v37 = vadd.f32 %v8945_v1, %v8944_v57  ;;  %v8947_v50 = vpop.f32.mrb[10].mxu0 }
 0x930   : > { %v8948_v22 = vpop.f32.mrb[11].mxu0 }
 0x931   : > { %v8949_v29 = vadd.f32 %v8948_v22, %v8947_v50  ;;  %v8880_v13 = vpop.f32.mrb[104].mxu1  ;;  %4405 = vmatmul.mubr.bf16.gmra.mrb[132].mxu1 %v4111_v27 }
 0x932   : > { %v8881_v36 = vpop.f32.mrb[105].mxu1 }
 0x933   : > { %v4128_v61 = vpack.c.bf16 %v8949_v29, %v8946_v37  ;;  %v8882_v31 = vadd.f32 %v8881_v36, %v8880_v13  ;;  %v8883_v62 = vpop.f32.mrb[106].mxu1 }
 0x934   : > { %v8884_v26 = vpop.f32.mrb[107].mxu1 }
 0x935   : > { %v8885_v53 = vadd.f32 %v8884_v26, %v8883_v62  ;;  %v8950_v19 = vpop.f32.mrb[12].mxu0  ;;  %4414 = vmatprep.mubr.bf16.mxu1 %v4128_v61 }
 0x936   : > { %v8951_v25 = vpop.f32.mrb[13].mxu0 }
 0x937   : > { %v4112_v15 = vpack.c.bf16 %v8885_v53, %v8882_v31  ;;  %v8952_v20 = vadd.f32 %v8951_v25, %v8950_v19  ;;  %v8953_v5 = vpop.f32.mrb[14].mxu0 }
 0x938   : > { %v8954_v23 = vpop.f32.mrb[15].mxu0 }
 0x939   : > { %v8955_v3 = vadd.f32 %v8954_v23, %v8953_v5  ;;  %v8886_v32 = vpop.f32.mrb[108].mxu1  ;;  %4415 = vmatmul.mubr.bf16.gmra.mrb[136].mxu1 %v4112_v15 }
 0x93a   : > { %v8887_v41 = vpop.f32.mrb[109].mxu1 }
 0x93b   : > { %v4129_v45 = vpack.c.bf16 %v8955_v3, %v8952_v20  ;;  %v8888_v24 = vadd.f32 %v8887_v41, %v8886_v32  ;;  %v8889_v6 = vpop.f32.mrb[110].mxu1  ;;  %v4190_v32 = vld [vmem:[%s15706_s29] sm:$0x3]  ;;  %s10434_s29 = scalar_lea.vmem %s15129_s19, 4096 }
 0x93c   : > { %v8890_v14 = vpop.f32.mrb[111].mxu1  ;;  %v15707_v41 = vld [vmem:[#allocation91_spill] sm:$0xff]  ;;  %p10435_p6 = scmp.ne.s32.totalorder %s15129_s19, %s10434_s29 }
 0x93d   : > { %v8891_v58 = vadd.f32 %v8890_v14, %v8889_v6  ;;  %v8956_v49 = vpop.f32.mrb[16].mxu0  ;;  %4424 = vmatprep.mubr.bf16.mxu1 %v4129_v45  ;;  %v13010_v45 = vsub.s32 2, %v15707_v41  ;;  %v15709_v14 = vld [vmem:[#allocation93_spill] sm:$0xff] }
 0x93e   : > { %v8957_v63 = vpop.f32.mrb[17].mxu0  ;;  %p10436_p3 = pnand %p10435_p6, %p16045_p10 }
 0x93f   : > { %v4113_v0 = vpack.c.bf16 %v8891_v58, %v8888_v24  ;;  %v8958_v51 = vadd.f32 %v8957_v63, %v8956_v49  ;;  %v8959_v4 = vpop.f32.mrb[18].mxu0  ;;  %v15708_v24 = vld [vmem:[#allocation92_spill] sm:$0xff]  ;;  %v13016_v58 = vrot.slane %v4190_v32, %v15709_v14  ;;  %v15710_v49 = vld [vmem:[#allocation36_spill] sm:$0xff] }
 0x940   : > { %v8960_v46 = vpop.f32.mrb[19].mxu0  ;;  %v13013_v6 = vrot.slane %v4190_v32, %v15708_v24  ;;  %v13020_v63 = vrot.slane %v15710_v49, %v13010_v45  ;;  %p10437_p1 = pneg %p10436_p3 }
 0x941   : > { %v8961_v7 = vadd.f32 %v8960_v46, %v8959_v4  ;;  %v8892_v40 = vpop.f32.mrb[112].mxu1  ;;  %4425 = vmatmul.mubr.bf16.gmra.mrb[140].mxu1 %v4113_v0 }
 0x942   : > { %v8893_v2 = vpop.f32.mrb[113].mxu1 }
 0x943   : > { %v4130_v60 = vpack.c.bf16 %v8961_v7, %v8958_v51  ;;  %v8894_v59 = vadd.f32 %v8893_v2, %v8892_v40  ;;  %v8895_v16 = vpop.f32.mrb[114].mxu1  ;;  %v15711_v51 = vld [vmem:[#allocation37_spill] sm:$0xff] }
 0x944   : > { %v8896_v48 = vpop.f32.mrb[115].mxu1  ;;  %v13024_v4 = vrot.slane %v15711_v51, %v13010_v45 }
 0x945   : > { %v8897_v10 = vadd.f32 %v8896_v48, %v8895_v16  ;;  %v8962_v34 = vpop.f32.mrb[20].mxu0  ;;  %4434 = vmatprep.mubr.bf16.mxu1 %v4130_v60 }
 0x946   : > { %v8963_v30 = vpop.f32.mrb[21].mxu0 }
 0x947   : > { %v4114_v11 = vpack.c.bf16 %v8897_v10, %v8894_v59  ;;  %v8964_v54 = vadd.f32 %v8963_v30, %v8962_v34  ;;  %v8965_v21 = vpop.f32.mrb[22].mxu0  ;;  %v15712_v34 = vld [vmem:[#allocation59_spill] sm:$0xff] }
 0x948   : > { %v8966_v39 = vpop.f32.mrb[23].mxu0 }
 0x949   : > { %v8967_v44 = vadd.f32 %v8966_v39, %v8965_v21  ;;  %v8898_v52 = vpop.f32.mrb[116].mxu1  ;;  %4435 = vmatmul.mubr.bf16.gmra.mrb[144].mxu1 %v4114_v11 }
 0x94a   : > { %v8899_v33 = vpop.f32.mrb[117].mxu1 }
 0x94b   : > { %v4131_v38 = vpack.c.bf16 %v8967_v44, %v8964_v54  ;;  %v8900_v56 = vadd.f32 %v8899_v33, %v8898_v52  ;;  %v8901_v55 = vpop.f32.mrb[118].mxu1  ;;  %v15714_v54 = vld [vmem:[#allocation60_spill] sm:$0xff]  ;;  %v15716_v44 = vld [vmem:[#allocation63_spill] sm:$0xff] }
 0x94c   : > { %v8902_v9 = vpop.f32.mrb[119].mxu1  ;;  %v15718_v33 = vld [vmem:[#allocation64_spill] sm:$0xff] }
 0x94d   : > { %v8903_v42 = vadd.f32 %v8902_v9, %v8901_v55  ;;  %v8968_v35 = vpop.f32.mrb[24].mxu0  ;;  %4444 = vmatprep.mubr.bf16.mxu1 %v4131_v38 }
 0x94e   : > { %v8969_v17 = vpop.f32.mrb[25].mxu0 }
 0x94f   : > { %v4115_v8 = vpack.c.bf16 %v8903_v42, %v8900_v56  ;;  %v8970_v28 = vadd.f32 %v8969_v17, %v8968_v35  ;;  %v8971_v18 = vpop.f32.mrb[26].mxu0 }
 0x950   : > { %v8972_v43 = vpop.f32.mrb[27].mxu0 }
 0x951   : > { %v8973_v47 = vadd.f32 %v8972_v43, %v8971_v18  ;;  %v8904_v12 = vpop.f32.mrb[120].mxu1  ;;  %4445 = vmatmul.mubr.bf16.gmra.mrb[148].mxu1 %v4115_v8 }
 0x952   : > { %v8905_v57 = vpop.f32.mrb[121].mxu1 }
 0x953   : > { %v4132_v1 = vpack.c.bf16 %v8973_v47, %v8970_v28  ;;  %v8906_v27 = vadd.f32 %v8905_v57, %v8904_v12  ;;  %v8907_v37 = vpop.f32.mrb[122].mxu1  ;;  %v15720_v57 = vld [vmem:[#allocation61_spill] sm:$0xff] }
 0x954   : > { %v8908_v50 = vpop.f32.mrb[123].mxu1 }
 0x955   : > { %v8909_v22 = vadd.f32 %v8908_v50, %v8907_v37  ;;  %v8974_v29 = vpop.f32.mrb[28].mxu0  ;;  %4454 = vmatprep.mubr.bf16.mxu1 %v4132_v1  ;;  %v15722_v37 = vld [vmem:[#allocation62_spill] sm:$0xff] }
 0x956   : > { %v8975_v13 = vpop.f32.mrb[29].mxu0 }
 0x957   : > { %v4116_v36 = vpack.c.bf16 %v8909_v22, %v8906_v27  ;;  %v8976_v61 = vadd.f32 %v8975_v13, %v8974_v29  ;;  %v8977_v31 = vpop.f32.mrb[30].mxu0  ;;  %v15724_v29 = vld [vmem:[#allocation65_spill] sm:$0xff] }
 0x958   : > { %v8978_v62 = vpop.f32.mrb[31].mxu0 }
 0x959   : > { %v8979_v26 = vadd.f32 %v8978_v62, %v8977_v31  ;;  %v8910_v53 = vpop.f32.mrb[124].mxu1  ;;  %4455 = vmatmul.mubr.bf16.gmra.mrb[152].mxu1 %v4116_v36  ;;  %v15726_v36 = vld [vmem:[#allocation66_spill] sm:$0xff] }
 0x95a   : > { %v8911_v19 = vpop.f32.mrb[125].mxu1 }
 0x95b   : > { %v4133_v25 = vpack.c.bf16 %v8979_v26, %v8976_v61  ;;  %v8912_v15 = vadd.f32 %v8911_v19, %v8910_v53  ;;  %v8913_v20 = vpop.f32.mrb[126].mxu1 }
 0x95c   : > { %v8914_v5 = vpop.f32.mrb[127].mxu1 }
 0x95d   : > { %v8915_v23 = vadd.f32 %v8914_v5, %v8913_v20  ;;  %4464 = vmatprep.mubr.bf16.mxu1 %v4133_v25 }
 0x95f   : > { %v4117_v3 = vpack.c.bf16 %v8915_v23, %v8912_v15 }
 0x961   : > { %4465 = vmatmul.mubr.bf16.gmra.mrb[156].mxu1 %v4117_v3 }
 0x9fc   : > { %v4396_v0 = vpop.f32.mrb[128].mxu1 }
 0x9fd   : > { %v4397_v46 = vadd.f32 %v4396_v0, %v13013_v6  ;;  %v4398_v7 = vpop.f32.mrb[129].mxu1  ;;  %v15728_v0 = vld [vmem:[#allocation67_spill] sm:$0xff] }
 0x9fe   : > { %v4399_v40 = vadd.f32 %v4398_v7, %v13016_v58  ;;  %v4400_v2 = vpop.f32.mrb[130].mxu1 }
 0x9ff   : > { %v4483_v60 = vmul.f32 %v13020_v63, %v4397_v46  ;;  %v4401_v59 = vadd.f32 %v4400_v2, %v13013_v6  ;;  %v4402_v16 = vpop.f32.mrb[131].mxu1 }
 0xa00   : > { %v4484_v48 = vmul.f32 %v13024_v4, %v4399_v40  ;;  %v4403_v10 = vadd.f32 %v4402_v16, %v13016_v58  ;;  %v15730_v40 = vld [vmem:[#allocation68_spill] sm:$0xff] }
 0xa01   : > { %v13033_v30 = vadd.f32 %v4483_v60, %v15712_v34  ;;  %v4485_v11 = vmul.f32 %v13020_v63, %v4401_v59  ;;  %v15732_v59 = vld [vmem:[#allocation69_spill] sm:$0xff] }
 0xa02   : > { %v13037_v21 = vadd.f32 %v4484_v48, %v15714_v54  ;;  %v4486_v39 = vmul.f32 %v13024_v4, %v4403_v10  ;;  %v15734_v48 = vld [vmem:[#allocation70_spill] sm:$0xff] }
 0xa03   : > { %15713 = vst [vmem:[#allocation94_spill] sm:$0xff] %v13033_v30  ;;  %v13041_v52 = vadd.f32 %v4485_v11, %v15716_v44 }
 0xa04   : > { %15715 = vst [vmem:[#allocation95_spill] sm:$0xff] %v13037_v21  ;;  %v13044_v38 = vadd.f32 %v4486_v39, %v15718_v33  ;;  %v4406_v56 = vpop.f32.mrb[132].mxu1  ;;  %v4547_v55 = vadd.f32 %v13037_v21, %v13033_v30 }
 0xa05   : > { %15717 = vst [vmem:[#allocation103_spill] sm:$0xff] %v13041_v52  ;;  %v4407_v9 = vadd.f32 %v4406_v56, %v13013_v6  ;;  %v4408_v42 = vpop.f32.mrb[133].mxu1 }
 0xa06   : > { %15719 = vst [vmem:[#allocation96_spill] sm:$0xff] %v13044_v38  ;;  %v4409_v35 = vadd.f32 %v4408_v42, %v13016_v58  ;;  %v4410_v17 = vpop.f32.mrb[134].mxu1  ;;  %4548 = vadd.xlane.f32.xlu0 %v4547_v55  ;;  %v4550_v8 = vadd.f32 %v13044_v38, %v13041_v52 }
 0xa07   : > { %v4487_v28 = vmul.f32 %v13020_v63, %v4407_v9  ;;  %v4411_v18 = vadd.f32 %v4410_v17, %v13013_v6  ;;  %v4412_v43 = vpop.f32.mrb[135].mxu1 }
 0xa08   : > { %v4488_v47 = vmul.f32 %v13024_v4, %v4409_v35  ;;  %v4413_v12 = vadd.f32 %v4412_v43, %v13016_v58  ;;  %4551 = vadd.xlane.f32.xlu1 %v4550_v8  ;;  %v15736_v8 = vld [vmem:[#allocation71_spill] sm:$0xff]  ;;  %v15738_v43 = vld [vmem:[#allocation72_spill] sm:$0xff] }
 0xa09   : > { %v13057_v1 = vadd.f32 %v4487_v28, %v15720_v57  ;;  %v4489_v27 = vmul.f32 %v13020_v63, %v4411_v18  ;;  %v15740_v57 = vld [vmem:[#allocation73_spill] sm:$0xff] }
 0xa0a   : > { %v13061_v50 = vadd.f32 %v4488_v47, %v15722_v37  ;;  %v4490_v22 = vmul.f32 %v13024_v4, %v4413_v12  ;;  %v15742_v37 = vld [vmem:[#allocation74_spill] sm:$0xff] }
 0xa0b   : > { %15721 = vst [vmem:[#allocation98_spill] sm:$0xff] %v13057_v1  ;;  %v13065_v13 = vadd.f32 %v4489_v27, %v15724_v29 }
 0xa0c   : > { %15723 = vst [vmem:[#allocation104_spill] sm:$0xff] %v13061_v50  ;;  %v13068_v61 = vadd.f32 %v4490_v22, %v15726_v36  ;;  %v4416_v31 = vpop.f32.mrb[136].mxu1  ;;  %v4553_v62 = vadd.f32 %v13061_v50, %v13057_v1 }
 0xa0d   : > { %15725 = vst [vmem:[#allocation97_spill] sm:$0xff] %v13065_v13  ;;  %v4417_v26 = vadd.f32 %v4416_v31, %v13013_v6  ;;  %v4418_v53 = vpop.f32.mrb[137].mxu1 }
 0xa0e   : > { %15727 = vst [vmem:[#allocation106_spill] sm:$0xff] %v13068_v61  ;;  %v4419_v19 = vadd.f32 %v4418_v53, %v13016_v58  ;;  %v4420_v25 = vpop.f32.mrb[138].mxu1  ;;  %4554 = vadd.xlane.f32.xlu0 %v4553_v62  ;;  %v4556_v15 = vadd.f32 %v13068_v61, %v13065_v13 }
 0xa0f   : > { %v4491_v20 = vmul.f32 %v13020_v63, %v4417_v26  ;;  %v4421_v5 = vadd.f32 %v4420_v25, %v13013_v6  ;;  %v4422_v23 = vpop.f32.mrb[139].mxu1 }
 0xa10   : > { %v4492_v3 = vmul.f32 %v13024_v4, %v4419_v19  ;;  %v4423_v32 = vadd.f32 %v4422_v23, %v13016_v58  ;;  %4557 = vadd.xlane.f32.xlu1 %v4556_v15 }
 0xa11   : > { %v13081_v46 = vadd.f32 %v4491_v20, %v15728_v0  ;;  %v4493_v7 = vmul.f32 %v13020_v63, %v4421_v5 }
 0xa12   : > { %v13085_v2 = vadd.f32 %v4492_v3, %v15730_v40  ;;  %v4494_v60 = vmul.f32 %v13024_v4, %v4423_v32  ;;  %v15744_v3 = vld [vmem:[#allocation75_spill] sm:$0xff] }
 0xa13   : > { %15729 = vst [vmem:[#allocation99_spill] sm:$0xff] %v13081_v46  ;;  %v13089_v16 = vadd.f32 %v4493_v7, %v15732_v59  ;;  %v15746_v7 = vld [vmem:[#allocation76_spill] sm:$0xff]  ;;  %v15748_v59 = vld [vmem:[#allocation77_spill] sm:$0xff] }
 0xa14   : > { %15731 = vst [vmem:[#allocation105_spill] sm:$0xff] %v13085_v2  ;;  %v13092_v10 = vadd.f32 %v4494_v60, %v15734_v48  ;;  %v4426_v34 = vpop.f32.mrb[140].mxu1  ;;  %v4559_v11 = vadd.f32 %v13085_v2, %v13081_v46 }
 0xa15   : > { %15733 = vst [vmem:[#allocation107_spill] sm:$0xff] %v13089_v16  ;;  %v4427_v54 = vadd.f32 %v4426_v34, %v13013_v6  ;;  %v4428_v39 = vpop.f32.mrb[141].mxu1  ;;  %v15750_v34 = vld [vmem:[#allocation78_spill] sm:$0xff] }
 0xa16   : > { %15735 = vst [vmem:[#allocation101_spill] sm:$0xff] %v13092_v10  ;;  %v4429_v44 = vadd.f32 %v4428_v39, %v13016_v58  ;;  %v4430_v33 = vpop.f32.mrb[142].mxu1  ;;  %4560 = vadd.xlane.f32.xlu0 %v4559_v11  ;;  %v4562_v56 = vadd.f32 %v13092_v10, %v13089_v16 }
 0xa17   : > { %v4495_v55 = vmul.f32 %v13020_v63, %v4427_v54  ;;  %v4431_v9 = vadd.f32 %v4430_v33, %v13013_v6  ;;  %v4432_v42 = vpop.f32.mrb[143].mxu1 }
 0xa18   : > { %v4496_v35 = vmul.f32 %v13024_v4, %v4429_v44  ;;  %v4433_v17 = vadd.f32 %v4432_v42, %v13016_v58  ;;  %4563 = vadd.xlane.f32.xlu1 %v4562_v56 }
 0xa19   : > { %v13105_v28 = vadd.f32 %v4495_v55, %v15736_v8  ;;  %v4497_v18 = vmul.f32 %v13020_v63, %v4431_v9 }
 0xa1a   : > { %v13109_v47 = vadd.f32 %v4496_v35, %v15738_v43  ;;  %v4498_v12 = vmul.f32 %v13024_v4, %v4433_v17  ;;  %v15752_v43 = vld [vmem:[#allocation79_spill] sm:$0xff] }
 0xa1b   : > { %15737 = vst [vmem:[#allocation108_spill] sm:$0xff] %v13105_v28  ;;  %v13113_v27 = vadd.f32 %v4497_v18, %v15740_v57 }
 0xa1c   : > { %15739 = vst [vmem:[#allocation100_spill] sm:$0xff] %v13109_v47  ;;  %v13116_v22 = vadd.f32 %v4498_v12, %v15742_v37  ;;  %v4436_v29 = vpop.f32.mrb[144].mxu1  ;;  %v4565_v36 = vadd.f32 %v13109_v47, %v13105_v28  ;;  %v15754_v37 = vld [vmem:[#allocation80_spill] sm:$0xff] }
 0xa1d   : > { %15741 = vst [vmem:[#allocation102_spill] sm:$0xff] %v13113_v27  ;;  %v4437_v31 = vadd.f32 %v4436_v29, %v13013_v6  ;;  %v4438_v62 = vpop.f32.mrb[145].mxu1 }
 0xa1e   : > { %15743 = vst [vmem:[#allocation91_spill] sm:$0xff] %v13116_v22  ;;  %v4439_v26 = vadd.f32 %v4438_v62, %v13016_v58  ;;  %v4440_v53 = vpop.f32.mrb[146].mxu1  ;;  %4566 = vadd.xlane.f32.xlu0 %v4565_v36  ;;  %v4568_v19 = vadd.f32 %v13116_v22, %v13113_v27 }
 0xa1f   : > { %v4499_v25 = vmul.f32 %v13020_v63, %v4437_v31  ;;  %v4441_v15 = vadd.f32 %v4440_v53, %v13013_v6  ;;  %v4442_v20 = vpop.f32.mrb[147].mxu1  ;;  %v15756_v31 = vld [vmem:[#allocation81_spill] sm:$0xff] }
 0xa20   : > { %v4500_v5 = vmul.f32 %v13024_v4, %v4439_v26  ;;  %v4443_v23 = vadd.f32 %v4442_v20, %v13016_v58  ;;  %4569 = vadd.xlane.f32.xlu1 %v4568_v19  ;;  %v15758_v26 = vld [vmem:[#allocation82_spill] sm:$0xff] }
 0xa21   : > { %v13129_v32 = vadd.f32 %v4499_v25, %v15744_v3  ;;  %v4501_v0 = vmul.f32 %v13020_v63, %v4441_v15 }
 0xa22   : > { %v13133_v40 = vadd.f32 %v4500_v5, %v15746_v7  ;;  %v4502_v60 = vmul.f32 %v13024_v4, %v4443_v23 }
 0xa23   : > { %15745 = vst [vmem:[#allocation59_spill] sm:$0xff] %v13129_v32  ;;  %v13137_v48 = vadd.f32 %v4501_v0, %v15748_v59 }
 0xa24   : > { %15747 = vst [vmem:[#allocation60_spill] sm:$0xff] %v13133_v40  ;;  %v13140_v11 = vadd.f32 %v4502_v60, %v15750_v34  ;;  %v4446_v54 = vpop.f32.mrb[148].mxu1  ;;  %v4571_v39 = vadd.f32 %v13133_v40, %v13129_v32 }
 0xa25   : > { %15749 = vst [vmem:[#allocation63_spill] sm:$0xff] %v13137_v48  ;;  %v4447_v44 = vadd.f32 %v4446_v54, %v13013_v6  ;;  %v4448_v33 = vpop.f32.mrb[149].mxu1  ;;  %v15760_v54 = vld [vmem:[#allocation83_spill] sm:$0xff] }
 0xa26   : > { %15751 = vst [vmem:[#allocation64_spill] sm:$0xff] %v13140_v11  ;;  %v4449_v56 = vadd.f32 %v4448_v33, %v13016_v58  ;;  %v4450_v55 = vpop.f32.mrb[150].mxu1  ;;  %4572 = vadd.xlane.f32.xlu0 %v4571_v39  ;;  %v4574_v9 = vadd.f32 %v13140_v11, %v13137_v48  ;;  %v15762_v33 = vld [vmem:[#allocation84_spill] sm:$0xff] }
 0xa27   : > { %v4503_v42 = vmul.f32 %v13020_v63, %v4447_v44  ;;  %v4451_v35 = vadd.f32 %v4450_v55, %v13013_v6  ;;  %v4452_v17 = vpop.f32.mrb[151].mxu1 }
 0xa28   : > { %v4504_v8 = vmul.f32 %v13024_v4, %v4449_v56  ;;  %v4453_v18 = vadd.f32 %v4452_v17, %v13016_v58  ;;  %4575 = vadd.xlane.f32.xlu1 %v4574_v9  ;;  %v15764_v9 = vld [vmem:[#allocation85_spill] sm:$0xff] }
 0xa29   : > { %v13153_v12 = vadd.f32 %v4503_v42, %v15752_v43  ;;  %v4505_v57 = vmul.f32 %v13020_v63, %v4451_v35  ;;  %v15766_v35 = vld [vmem:[#allocation86_spill] sm:$0xff] }
 0xa2a   : > { %v13157_v29 = vadd.f32 %v4504_v8, %v15754_v37  ;;  %v4506_v36 = vmul.f32 %v13024_v4, %v4453_v18 }
 0xa2b   : > { %15753 = vst [vmem:[#allocation61_spill] sm:$0xff] %v13153_v12  ;;  %v13161_v62 = vadd.f32 %v4505_v57, %v15756_v31 }
 0xa2c   : > { %15755 = vst [vmem:[#allocation62_spill] sm:$0xff] %v13157_v29  ;;  %v13164_v53 = vadd.f32 %v4506_v36, %v15758_v26  ;;  %v4456_v19 = vpop.f32.mrb[152].mxu1  ;;  %v4577_v25 = vadd.f32 %v13157_v29, %v13153_v12 }
 0xa2d   : > { %15757 = vst [vmem:[#allocation65_spill] sm:$0xff] %v13161_v62  ;;  %v4457_v15 = vadd.f32 %v4456_v19, %v13013_v6  ;;  %v4458_v20 = vpop.f32.mrb[153].mxu1 }
 0xa2e   : > { %15759 = vst [vmem:[#allocation66_spill] sm:$0xff] %v13164_v53  ;;  %v4459_v5 = vadd.f32 %v4458_v20, %v13016_v58  ;;  %v4460_v23 = vpop.f32.mrb[154].mxu1  ;;  %4578 = vadd.xlane.f32.xlu0 %v4577_v25  ;;  %v4580_v3 = vadd.f32 %v13164_v53, %v13161_v62 }
 0xa2f   : > { %v4507_v0 = vmul.f32 %v13020_v63, %v4457_v15  ;;  %v4461_v7 = vadd.f32 %v4460_v23, %v13013_v6  ;;  %v4462_v60 = vpop.f32.mrb[155].mxu1 }
 0xa30   : > { %v4508_v59 = vmul.f32 %v13024_v4, %v4459_v5  ;;  %v4463_v34 = vadd.f32 %v4462_v60, %v13016_v58  ;;  %4581 = vadd.xlane.f32.xlu1 %v4580_v3  ;;  %v15768_v5 = vld [vmem:[#allocation87_spill] sm:$0xff] }
 0xa31   : > { %v13177_v39 = vadd.f32 %v4507_v0, %v15760_v54  ;;  %v4509_v44 = vmul.f32 %v13020_v63, %v4461_v7  ;;  %v15770_v0 = vld [vmem:[#allocation88_spill] sm:$0xff] }
 0xa32   : > { %v13181_v56 = vadd.f32 %v4508_v59, %v15762_v33  ;;  %v4510_v55 = vmul.f32 %v13024_v4, %v4463_v34  ;;  %v15772_v59 = vld [vmem:[#allocation89_spill] sm:$0xff]  ;;  %v4903_v33 = vld [vmem:[#allocation15 + $0x20] sm:$0xff] }
 0xa33   : > { %15761 = vst [vmem:[#allocation67_spill] sm:$0xff] %v13177_v39  ;;  %v13185_v42 = vadd.f32 %v4509_v44, %v15764_v9 }
 0xa34   : > { %15763 = vst [vmem:[#allocation68_spill] sm:$0xff] %v13181_v56  ;;  %v13188_v17 = vadd.f32 %v4510_v55, %v15766_v35  ;;  %v4466_v8 = vpop.f32.mrb[156].mxu1  ;;  %v4583_v18 = vadd.f32 %v13181_v56, %v13177_v39  ;;  %v4900_v55 = vld [vmem:[#allocation15 + $0x8] sm:$0xff] }
 0xa35   : > { %15765 = vst [vmem:[#allocation69_spill] sm:$0xff] %v13185_v42  ;;  %v4467_v43 = vadd.f32 %v4466_v8, %v13013_v6  ;;  %v4468_v57 = vpop.f32.mrb[157].mxu1  ;;  %v4907_v8 = vld [vmem:[#allocation15 + $0x40] sm:$0xff] }
 0xa36   : > { %15767 = vst [vmem:[#allocation70_spill] sm:$0xff] %v13188_v17  ;;  %v4469_v37 = vadd.f32 %v4468_v57, %v13016_v58  ;;  %4584 = vadd.xlane.f32.xlu0 %v4583_v18  ;;  %v4470_v36 = vpop.f32.mrb[158].mxu1  ;;  %v4586_v31 = vadd.f32 %v13188_v17, %v13185_v42  ;;  %v4911_v18 = vld [vmem:[#allocation15 + $0x60] sm:$0xff] }
 0xa37   : > { %v4511_v26 = vmul.f32 %v13020_v63, %v4467_v43  ;;  %v4471_v19 = vadd.f32 %v4470_v36, %v13013_v6  ;;  %v4472_v25 = vpop.f32.mrb[159].mxu1  ;;  %v15774_v6 = vld [vmem:[#allocation90_spill] sm:$0xff]  ;;  %v4908_v36 = vld [vmem:[#allocation15 + $0x48] sm:$0xff] }
 0xa38   : > { %v4512_v15 = vmul.f32 %v13024_v4, %v4469_v37  ;;  %v4473_v20 = vadd.f32 %v4472_v25, %v13016_v58  ;;  %4587 = vadd.xlane.f32.xlu1 %v4586_v31  ;;  %v8530_v37 = vcombine.high %v4907_v8, %v4911_v18  ;;  %v4912_v31 = vld [vmem:[#allocation15 + $0x68] sm:$0xff]  ;;  %v4919_v25 = vld [vmem:[#allocation15 + $0xa0] sm:$0xff] }
 0xa39   : > { %v13201_v23 = vadd.f32 %v4511_v26, %v15768_v5  ;;  %v4513_v3 = vmul.f32 %v13020_v63, %v4471_v19  ;;  %v4899_v63 = vld [vmem:[#allocation15] sm:$0xff]  ;;  %v8532_v19 = vcombine.high %v4908_v36, %v4912_v31  ;;  %v8529_v5 = vcombine.low %v4907_v8, %v4911_v18  ;;  %v4932_v8 = vld [vmem:[#allocation15 + $0x108] sm:$0xff] }
 0xa3a   : > { %v13205_v7 = vadd.f32 %v4512_v15, %v15770_v0  ;;  %v4514_v60 = vmul.f32 %v13024_v4, %v4473_v20  ;;  %v8521_v9 = vcombine.low %v4899_v63, %v4903_v33  ;;  %v8522_v35 = vcombine.high %v4899_v63, %v4903_v33  ;;  %v4904_v4 = vld [vmem:[#allocation15 + $0x28] sm:$0xff]  ;;  %v4915_v26 = vld [vmem:[#allocation15 + $0x80] sm:$0xff] }
 0xa3b   : > { %15769 = vst [vmem:[#allocation71_spill] sm:$0xff] %v13201_v23  ;;  %v13209_v34 = vadd.f32 %v4513_v3, %v15772_v59  ;;  %v8523_v43 = vcombine.low %v4900_v55, %v4904_v4  ;;  %v8524_v57 = vcombine.high %v4900_v55, %v4904_v4  ;;  %v4916_v15 = vld [vmem:[#allocation15 + $0x88] sm:$0xff]  ;;  %v8531_v3 = vcombine.low %v4908_v36, %v4912_v31  ;;  %v4923_v59 = vld [vmem:[#allocation15 + $0xc0] sm:$0xff] }
 0xa3c   : > { %15771 = vst [vmem:[#allocation72_spill] sm:$0xff] %v13205_v7  ;;  %v13212_v54 = vadd.f32 %v4514_v60, %v15774_v6  ;;  %v4589_v58 = vadd.f32 %v13205_v7, %v13201_v23  ;;  %5709 = vmatprep.subr.bf16.mxu0 %v8522_v35  ;;  %v4920_v20 = vld [vmem:[#allocation15 + $0xa8] sm:$0xff]  ;;  %v8538_v0 = vcombine.high %v4915_v26, %v4919_v25  ;;  %v4927_v6 = vld [vmem:[#allocation15 + $0xe0] sm:$0xff] }
 0xa3d   : > { %15773 = vst [vmem:[#allocation73_spill] sm:$0xff] %v13209_v34  ;;  %5710 = vmatpush1.bf16.msra.mxu0 %v8521_v9  ;;  %5822 = vmatprep.subr.bf16.mxu1 %v8524_v57  ;;  %v8540_v60 = vcombine.high %v4916_v15, %v4920_v20  ;;  %v8537_v63 = vcombine.low %v4915_v26, %v4919_v25  ;;  %v4931_v35 = vld [vmem:[#allocation15 + $0x100] sm:$0xff]  ;;  %v4936_v18 = vld [vmem:[#allocation15 + $0x128] sm:$0xff] }
 0xa3e   : > { %15775 = vst [vmem:[#allocation74_spill] sm:$0xff] %v13212_v54  ;;  %4590 = vadd.xlane.f32.xlu0 %v4589_v58  ;;  %v4592_v44 = vadd.f32 %v13212_v54, %v13209_v34  ;;  %5823 = vmatpush1.bf16.msra.mxu1 %v8523_v43  ;;  %v4924_v58 = vld [vmem:[#allocation15 + $0xc8] sm:$0xff]  ;;  %v8539_v33 = vcombine.low %v4916_v15, %v4920_v20  ;;  %v4935_v4 = vld [vmem:[#allocation15 + $0x120] sm:$0xff] }
 0xa3f   : > { %5711 = vmatprep.subr.bf16.mxu0 %v8530_v37  ;;  %5824 = vmatprep.subr.bf16.mxu1 %v8532_v19  ;;  %v8546_v55 = vcombine.high %v4923_v59, %v4927_v6  ;;  %v8545_v43 = vcombine.low %v4923_v59, %v4927_v6  ;;  %v8554_v37 = vcombine.high %v4931_v35, %v4935_v4  ;;  %v4939_v31 = vld [vmem:[#allocation15 + $0x140] sm:$0xff]  ;;  %v4940_v19 = vld [vmem:[#allocation15 + $0x148] sm:$0xff] }
 0xa40   : > { %4593 = vadd.xlane.f32.xlu1 %v4592_v44  ;;  %v4928_v44 = vld [vmem:[#allocation15 + $0xe8] sm:$0xff]  ;;  %v8556_v36 = vcombine.high %v4932_v8, %v4936_v18  ;;  %v4943_v26 = vld [vmem:[#allocation15 + $0x160] sm:$0xff]  ;;  %v8553_v15 = vcombine.low %v4931_v35, %v4935_v4  ;;  %v8555_v20 = vcombine.low %v4932_v8, %v4936_v18 }
 0xa41   : > { %5712 = vmatpush1.bf16.msra.mxu0 %v8529_v5  ;;  %v8548_v9 = vcombine.high %v4924_v58, %v4928_v44  ;;  %v8547_v57 = vcombine.low %v4924_v58, %v4928_v44  ;;  %v4944_v25 = vld [vmem:[#allocation15 + $0x168] sm:$0xff]  ;;  %v8562_v5 = vcombine.high %v4939_v31, %v4943_v26  ;;  %v8561_v58 = vcombine.low %v4939_v31, %v4943_v26 }
 0xa42   : > { %5825 = vmatpush1.bf16.msra.mxu1 %v8531_v3  ;;  %5713 = vmatprep.subr.bf16.mxu0 %v8538_v0  ;;  %v8564_v3 = vcombine.high %v4940_v19, %v4944_v25  ;;  %v4947_v0 = vld [vmem:[#allocation15 + $0x180] sm:$0xff]  ;;  %v4948_v59 = vld [vmem:[#allocation15 + $0x188] sm:$0xff]  ;;  %v8563_v44 = vcombine.low %v4940_v19, %v4944_v25 }
 0xa43   : > { %5826 = vmatprep.subr.bf16.mxu1 %v8540_v60  ;;  %v4951_v60 = vld [vmem:[#allocation15 + $0x1a0] sm:$0xff]  ;;  %v4952_v6 = vld [vmem:[#allocation15 + $0x1a8] sm:$0xff] }
 0xa44   : > { %v4956_v35 = vld [vmem:[#allocation15 + $0x1c8] sm:$0xff]  ;;  %v8569_v8 = vcombine.low %v4947_v0, %v4951_v60  ;;  %v8571_v18 = vcombine.low %v4948_v59, %v4952_v6 }
 0xa45   : > { %5714 = vmatpush1.bf16.msra.mxu0 %v8537_v63  ;;  %v8570_v63 = vcombine.high %v4947_v0, %v4951_v60  ;;  %v4960_v4 = vld [vmem:[#allocation15 + $0x1e8] sm:$0xff] }
 0xa46   : > { %5827 = vmatpush1.bf16.msra.mxu1 %v8539_v33  ;;  %5715 = vmatprep.subr.bf16.mxu0 %v8546_v55  ;;  %v8572_v33 = vcombine.high %v4948_v59, %v4952_v6  ;;  %v4955_v55 = vld [vmem:[#allocation15 + $0x1c0] sm:$0xff]  ;;  %v4964_v31 = vld [vmem:[#allocation15 + $0x208] sm:$0xff]  ;;  %v8579_v25 = vcombine.low %v4956_v35, %v4960_v4 }
 0xa47   : > { %5828 = vmatprep.subr.bf16.mxu1 %v8548_v9  ;;  %v4959_v9 = vld [vmem:[#allocation15 + $0x1e0] sm:$0xff]  ;;  %v4968_v26 = vld [vmem:[#allocation15 + $0x228] sm:$0xff] }
 0xa48   : > { %v8577_v19 = vcombine.low %v4955_v55, %v4959_v9  ;;  %v4972_v0 = vld [vmem:[#allocation15 + $0x248] sm:$0xff]  ;;  %v8587_v6 = vcombine.low %v4964_v31, %v4968_v26 }
 0xa49   : > { %5716 = vmatpush1.bf16.msra.mxu0 %v8545_v43  ;;  %v8578_v43 = vcombine.high %v4955_v55, %v4959_v9  ;;  %v4976_v60 = vld [vmem:[#allocation15 + $0x268] sm:$0xff] }
 0xa4a   : > { %5829 = vmatpush1.bf16.msra.mxu1 %v8547_v57  ;;  %5717 = vmatprep.subr.bf16.mxu0 %v8554_v37  ;;  %v8580_v57 = vcombine.high %v4956_v35, %v4960_v4  ;;  %v4963_v37 = vld [vmem:[#allocation15 + $0x200] sm:$0xff] }
 0xa4b   : > { %5830 = vmatprep.subr.bf16.mxu1 %v8556_v36  ;;  %v4967_v36 = vld [vmem:[#allocation15 + $0x220] sm:$0xff] }
 0xa4c   : > { %v8585_v59 = vcombine.low %v4963_v37, %v4967_v36 }
 0xa4d   : > { %5718 = vmatpush1.bf16.msra.mxu0 %v8553_v15  ;;  %v8586_v15 = vcombine.high %v4963_v37, %v4967_v36 }
 0xa4e   : > { %5831 = vmatpush1.bf16.msra.mxu1 %v8555_v20  ;;  %5719 = vmatprep.subr.bf16.mxu0 %v8562_v5  ;;  %v8588_v20 = vcombine.high %v4964_v31, %v4968_v26  ;;  %v4971_v5 = vld [vmem:[#allocation15 + $0x240] sm:$0xff] }
 0xa4f   : > { %5832 = vmatprep.subr.bf16.mxu1 %v8564_v3  ;;  %v4975_v3 = vld [vmem:[#allocation15 + $0x260] sm:$0xff] }
 0xa51   : > { %5720 = vmatpush1.bf16.msra.mxu0 %v8561_v58  ;;  %v8594_v58 = vcombine.high %v4971_v5, %v4975_v3 }
 0xa52   : > { %5833 = vmatpush1.bf16.msra.mxu1 %v8563_v44  ;;  %5721 = vmatprep.subr.bf16.mxu0 %v8570_v63  ;;  %v8596_v44 = vcombine.high %v4972_v0, %v4976_v60  ;;  %v8593_v63 = vcombine.low %v4971_v5, %v4975_v3 }
 0xa53   : > { %5834 = vmatprep.subr.bf16.mxu1 %v8572_v33  ;;  %v8595_v33 = vcombine.low %v4972_v0, %v4976_v60 }
 0xa55   : > { %5722 = vmatpush1.bf16.msra.mxu0 %v8569_v8 }
 0xa56   : > { %5835 = vmatpush1.bf16.msra.mxu1 %v8571_v18  ;;  %5723 = vmatprep.subr.bf16.mxu0 %v8578_v43 }
 0xa57   : > { %5836 = vmatprep.subr.bf16.mxu1 %v8580_v57 }
 0xa59   : > { %5724 = vmatpush1.bf16.msra.mxu0 %v8577_v19 }
 0xa5a   : > { %5837 = vmatpush1.bf16.msra.mxu1 %v8579_v25  ;;  %5725 = vmatprep.subr.bf16.mxu0 %v8586_v15 }
 0xa5b   : > { %5838 = vmatprep.subr.bf16.mxu1 %v8588_v20 }
 0xa5d   : > { %5726 = vmatpush1.bf16.msra.mxu0 %v8585_v59 }
 0xa5e   : > { %5839 = vmatpush1.bf16.msra.mxu1 %v8587_v6  ;;  %5727 = vmatprep.subr.bf16.mxu0 %v8594_v58 }
 0xa5f   : > { %5840 = vmatprep.subr.bf16.mxu1 %v8596_v44 }
 0xa61   : > { %5728 = vmatpush1.bf16.msra.mxu0 %v8593_v63 }
 0xa62   : > { %5841 = vmatpush1.bf16.msra.mxu1 %v8595_v33 }
 0xa93   : > { %v4549_v55 = vpop.xlane.xlu0 %4548 }
 0xa94   : > { %v4595_v9 = vmul.f32 0.00390625, %v4549_v55 }
 0xa95   : > { %v4552_v35 = vpop.xlane.xlu1 %4551 }
 0xa96   : > { %v13219_v4 = vsub.f32 %v13033_v30, %v4595_v9  ;;  %v13222_v8 = vsub.f32 %v13037_v21, %v4595_v9  ;;  %v4596_v18 = vmul.f32 0.00390625, %v4552_v35  ;;  %v4910_v21 = vld [vmem:[#allocation15 + $0x58] sm:$0xff] }
 0xa98   : > { %v4643_v43 = vmul.f32 %v13219_v4, %v13219_v4  ;;  %v4644_v57 = vmul.f32 %v13222_v8, %v13222_v8  ;;  %v13229_v37 = vsub.f32 %v13041_v52, %v4596_v18  ;;  %v13232_v36 = vsub.f32 %v13044_v38, %v4596_v18  ;;  %v4909_v38 = vld [vmem:[#allocation15 + $0x50] sm:$0xff] }
 0xa9a   : > { %v4645_v31 = vmul.f32 %v13229_v37, %v13229_v37  ;;  %v4646_v26 = vmul.f32 %v13232_v36, %v13232_v36  ;;  %v4675_v19 = vadd.f32 %v4644_v57, %v4643_v43 }
 0xa9b   : > { %v4555_v25 = vpop.xlane.xlu0 %4554 }
 0xa9c   : > { %v4597_v15 = vmul.f32 0.00390625, %v4555_v25  ;;  %4676 = vadd.xlane.f32.xlu0 %v4675_v19  ;;  %v4678_v20 = vadd.f32 %v4646_v26, %v4645_v31 }
 0xa9d   : > { %v4558_v5 = vpop.xlane.xlu1 %4557 }
 0xa9e   : > { %v13239_v3 = vsub.f32 %v13057_v1, %v4597_v15  ;;  %v13242_v0 = vsub.f32 %v13061_v50, %v4597_v15  ;;  %v4598_v60 = vmul.f32 0.00390625, %v4558_v5  ;;  %4679 = vadd.xlane.f32.xlu1 %v4678_v20  ;;  %v4996_v1 = vld [vmem:[#allocation15 + $0x308] sm:$0xff] }
 0xaa0   : > { %v4647_v59 = vmul.f32 %v13239_v3, %v13239_v3  ;;  %v4648_v6 = vmul.f32 %v13242_v0, %v13242_v0  ;;  %v13249_v58 = vsub.f32 %v13065_v13, %v4598_v60  ;;  %v13252_v44 = vsub.f32 %v13068_v61, %v4598_v60  ;;  %v4988_v61 = vld [vmem:[#allocation15 + $0x2c8] sm:$0xff] }
 0xaa2   : > { %v4649_v63 = vmul.f32 %v13249_v58, %v13249_v58  ;;  %v4650_v33 = vmul.f32 %v13252_v44, %v13252_v44  ;;  %v4681_v55 = vadd.f32 %v4648_v6, %v4647_v59 }
 0xaa3   : > { %v4561_v9 = vpop.xlane.xlu0 %4560 }
 0xaa4   : > { %v4599_v35 = vmul.f32 0.00390625, %v4561_v9  ;;  %4682 = vadd.xlane.f32.xlu0 %v4681_v55  ;;  %v4684_v18 = vadd.f32 %v4650_v33, %v4649_v63 }
 0xaa5   : > { %v4564_v43 = vpop.xlane.xlu1 %4563 }
 0xaa6   : > { %v13259_v57 = vsub.f32 %v13081_v46, %v4599_v35  ;;  %v13262_v31 = vsub.f32 %v13085_v2, %v4599_v35  ;;  %v4600_v26 = vmul.f32 0.00390625, %v4564_v43  ;;  %4685 = vadd.xlane.f32.xlu1 %v4684_v18  ;;  %v4979_v43 = vld [vmem:[#allocation15 + $0x280] sm:$0xff]  ;;  %v4984_v2 = vld [vmem:[#allocation15 + $0x2a8] sm:$0xff] }
 0xaa7   : > { %v4991_v46 = vld [vmem:[#allocation15 + $0x2e0] sm:$0xff] }
 0xaa8   : > { %v4651_v19 = vmul.f32 %v13259_v57, %v13259_v57  ;;  %v4652_v25 = vmul.f32 %v13262_v31, %v13262_v31  ;;  %v13269_v15 = vsub.f32 %v13089_v16, %v4600_v26  ;;  %v13272_v20 = vsub.f32 %v13092_v10, %v4600_v26  ;;  %v4983_v26 = vld [vmem:[#allocation15 + $0x2a0] sm:$0xff]  ;;  %v4980_v10 = vld [vmem:[#allocation15 + $0x288] sm:$0xff] }
 0xaa9   : > { %v8602_v16 = vcombine.high %v4979_v43, %v4983_v26 }
 0xaaa   : > { %v4653_v5 = vmul.f32 %v13269_v15, %v13269_v15  ;;  %v4654_v60 = vmul.f32 %v13272_v20, %v13272_v20  ;;  %v4687_v59 = vadd.f32 %v4652_v25, %v4651_v19 }
 0xaab   : > { %v4567_v6 = vpop.xlane.xlu0 %4566  ;;  %5729 = vmatprep.subr.bf16.mxu0 %v8602_v16 }
 0xaac   : > { %v4601_v63 = vmul.f32 0.00390625, %v4567_v6  ;;  %4688 = vadd.xlane.f32.xlu0 %v4687_v59  ;;  %v4690_v33 = vadd.f32 %v4654_v60, %v4653_v5  ;;  %v8601_v59 = vcombine.low %v4979_v43, %v4983_v26  ;;  %v8603_v6 = vcombine.low %v4980_v10, %v4984_v2 }
 0xaad   : > { %v4570_v55 = vpop.xlane.xlu1 %4569 }
 0xaae   : > { %v13279_v9 = vsub.f32 %v13105_v28, %v4601_v63  ;;  %v13282_v35 = vsub.f32 %v13109_v47, %v4601_v63  ;;  %v4602_v18 = vmul.f32 0.00390625, %v4570_v55  ;;  %4691 = vadd.xlane.f32.xlu1 %v4690_v33  ;;  %v8604_v63 = vcombine.high %v4980_v10, %v4984_v2  ;;  %v4987_v28 = vld [vmem:[#allocation15 + $0x2c0] sm:$0xff]  ;;  %5730 = vmatpush1.bf16.msra.mxu0 %v8601_v59 }
 0xaaf   : > { %v8609_v2 = vcombine.low %v4987_v28, %v4991_v46  ;;  %v4995_v59 = vld [vmem:[#allocation15 + $0x300] sm:$0xff] }
 0xab0   : > { %v4655_v19 = vmul.f32 %v13279_v9, %v13279_v9  ;;  %v4656_v25 = vmul.f32 %v13282_v35, %v13282_v35  ;;  %v13289_v5 = vsub.f32 %v13113_v27, %v4602_v18  ;;  %v13292_v60 = vsub.f32 %v13116_v22, %v4602_v18  ;;  %5842 = vmatprep.subr.bf16.mxu1 %v8604_v63  ;;  %v4992_v18 = vld [vmem:[#allocation15 + $0x2e8] sm:$0xff]  ;;  %v4999_v63 = vld [vmem:[#allocation15 + $0x320] sm:$0xff] }
 0xab1   : > { %v8610_v27 = vcombine.high %v4987_v28, %v4991_v46  ;;  %5843 = vmatpush1.bf16.msra.mxu1 %v8603_v6  ;;  %v8611_v10 = vcombine.low %v4988_v61, %v4992_v18  ;;  %v8612_v26 = vcombine.high %v4988_v61, %v4992_v18 }
 0xab2   : > { %v4657_v33 = vmul.f32 %v13289_v5, %v13289_v5  ;;  %v4658_v55 = vmul.f32 %v13292_v60, %v13292_v60  ;;  %v4693_v47 = vadd.f32 %v4656_v25, %v4655_v19 }
 0xab3   : > { %v4573_v13 = vpop.xlane.xlu0 %4572  ;;  %5731 = vmatprep.subr.bf16.mxu0 %v8610_v27  ;;  %5844 = vmatprep.subr.bf16.mxu1 %v8612_v26  ;;  %v5004_v26 = vld [vmem:[#allocation15 + $0x348] sm:$0xff] }
 0xab4   : > { %v4603_v22 = vmul.f32 0.00390625, %v4573_v13  ;;  %4694 = vadd.xlane.f32.xlu0 %v4693_v47  ;;  %v4696_v16 = vadd.f32 %v4658_v55, %v4657_v33  ;;  %5732 = vmatpush1.bf16.msra.mxu0 %v8609_v2  ;;  %v8618_v13 = vcombine.high %v4995_v59, %v4999_v63  ;;  %v5000_v47 = vld [vmem:[#allocation15 + $0x328] sm:$0xff]  ;;  %v5003_v2 = vld [vmem:[#allocation15 + $0x340] sm:$0xff] }
 0xab5   : > { %v4576_v43 = vpop.xlane.xlu1 %4575  ;;  %5845 = vmatpush1.bf16.msra.mxu1 %v8611_v10  ;;  %v8619_v6 = vcombine.low %v4996_v1, %v5000_v47  ;;  %v8620_v33 = vcombine.high %v4996_v1, %v5000_v47 }
 0xab6   : > { %v13299_v50 = vsub.f32 %v13129_v32, %v4603_v22  ;;  %v13302_v19 = vsub.f32 %v13133_v40, %v4603_v22  ;;  %v4604_v25 = vmul.f32 0.00390625, %v4576_v43  ;;  %4697 = vadd.xlane.f32.xlu1 %v4696_v16  ;;  %v8617_v22 = vcombine.low %v4995_v59, %v4999_v63  ;;  %5733 = vmatprep.subr.bf16.mxu0 %v8618_v13  ;;  %v5007_v43 = vld [vmem:[#allocation15 + $0x360] sm:$0xff]  ;;  %v5012_v32 = vld [vmem:[#allocation15 + $0x388] sm:$0xff] }
 0xab7   : > { %5846 = vmatprep.subr.bf16.mxu1 %v8620_v33  ;;  %v8625_v1 = vcombine.low %v5003_v2, %v5007_v43  ;;  %v5015_v33 = vld [vmem:[#allocation15 + $0x3a0] sm:$0xff] }
 0xab8   : > { %v4659_v46 = vmul.f32 %v13299_v50, %v13299_v50  ;;  %v4660_v61 = vmul.f32 %v13302_v19, %v13302_v19  ;;  %v13309_v28 = vsub.f32 %v13137_v48, %v4604_v25  ;;  %v13312_v27 = vsub.f32 %v13140_v11, %v4604_v25  ;;  %5734 = vmatpush1.bf16.msra.mxu0 %v8617_v22  ;;  %v5008_v11 = vld [vmem:[#allocation15 + $0x368] sm:$0xff]  ;;  %v5011_v22 = vld [vmem:[#allocation15 + $0x380] sm:$0xff] }
 0xab9   : > { %v8626_v25 = vcombine.high %v5003_v2, %v5007_v43  ;;  %5847 = vmatpush1.bf16.msra.mxu1 %v8619_v6  ;;  %v8627_v63 = vcombine.low %v5004_v26, %v5008_v11  ;;  %v8628_v47 = vcombine.high %v5004_v26, %v5008_v11  ;;  %v5016_v6 = vld [vmem:[#allocation15 + $0x3a8] sm:$0xff]  ;;  %v8633_v2 = vcombine.low %v5011_v22, %v5015_v33 }
 0xaba   : > { %v4661_v55 = vmul.f32 %v13309_v28, %v13309_v28  ;;  %v4662_v18 = vmul.f32 %v13312_v27, %v13312_v27  ;;  %v4699_v16 = vadd.f32 %v4660_v61, %v4659_v46  ;;  %v8635_v43 = vcombine.low %v5012_v32, %v5016_v6 }
 0xabb   : > { %v4579_v48 = vpop.xlane.xlu0 %4578  ;;  %5735 = vmatprep.subr.bf16.mxu0 %v8626_v25  ;;  %5848 = vmatprep.subr.bf16.mxu1 %v8628_v47  ;;  %v8636_v26 = vcombine.high %v5012_v32, %v5016_v6  ;;  %v5020_v47 = vld [vmem:[#allocation15 + $0x3c8] sm:$0xff] }
 0xabc   : > { %v4605_v10 = vmul.f32 0.00390625, %v4579_v48  ;;  %4700 = vadd.xlane.f32.xlu0 %v4699_v16  ;;  %v4702_v59 = vadd.f32 %v4662_v18, %v4661_v55  ;;  %5736 = vmatpush1.bf16.msra.mxu0 %v8625_v1  ;;  %v8634_v48 = vcombine.high %v5011_v22, %v5015_v33  ;;  %v5019_v1 = vld [vmem:[#allocation15 + $0x3c0] sm:$0xff] }
 0xabd   : > { %v4582_v13 = vpop.xlane.xlu1 %4581  ;;  %5849 = vmatpush1.bf16.msra.mxu1 %v8627_v63 }
 0xabe   : > { %v13319_v40 = vsub.f32 %v13153_v12, %v4605_v10  ;;  %v13322_v46 = vsub.f32 %v13157_v29, %v4605_v10  ;;  %v4606_v61 = vmul.f32 0.00390625, %v4582_v13  ;;  %4703 = vadd.xlane.f32.xlu1 %v4702_v59  ;;  %5737 = vmatprep.subr.bf16.mxu0 %v8634_v48  ;;  %v5023_v13 = vld [vmem:[#allocation15 + $0x3e0] sm:$0xff] }
 0xabf   : > { %5850 = vmatprep.subr.bf16.mxu1 %v8636_v26  ;;  %v8641_v32 = vcombine.low %v5019_v1, %v5023_v13  ;;  %v13346_v26 = vld [vmem:[#allocation15 + $0x30] sm:$0xff] }
 0xac0   : > { %v4663_v55 = vmul.f32 %v13319_v40, %v13319_v40  ;;  %v4664_v11 = vmul.f32 %v13322_v46, %v13322_v46  ;;  %v13329_v18 = vsub.f32 %v13161_v62, %v4606_v61  ;;  %v13332_v16 = vsub.f32 %v13164_v53, %v4606_v61  ;;  %5738 = vmatpush1.bf16.msra.mxu0 %v8633_v2  ;;  %v5024_v53 = vld [vmem:[#allocation15 + $0x3e8] sm:$0xff]  ;;  %v13344_v2 = vld [vmem:[#allocation15 + $0x10] sm:$0xff] }
 0xac1   : > { %v8642_v61 = vcombine.high %v5019_v1, %v5023_v13  ;;  %5851 = vmatpush1.bf16.msra.mxu1 %v8635_v43  ;;  %v8643_v33 = vcombine.low %v5020_v47, %v5024_v53  ;;  %v8644_v6 = vcombine.high %v5020_v47, %v5024_v53  ;;  %v8526_v43 = vcombine.high %v13344_v2, %v13346_v26  ;;  %v13352_v53 = vld [vmem:[#allocation15 + $0x38] sm:$0xff] }
 0xac2   : > { %v4665_v25 = vmul.f32 %v13329_v18, %v13329_v18  ;;  %v4666_v10 = vmul.f32 %v13332_v16, %v13332_v16  ;;  %v4705_v59 = vadd.f32 %v4664_v11, %v4663_v55 }
 0xac3   : > { %v4585_v62 = vpop.xlane.xlu0 %4584  ;;  %5739 = vmatprep.subr.bf16.mxu0 %v8642_v61  ;;  %5852 = vmatprep.subr.bf16.mxu1 %v8644_v6 }
 0xac4   : > { %v4607_v63 = vmul.f32 0.00390625, %v4585_v62  ;;  %4706 = vadd.xlane.f32.xlu0 %v4705_v59  ;;  %v4708_v22 = vadd.f32 %v4666_v10, %v4665_v25  ;;  %v13348_v62 = vld [vmem:[#allocation15 + $0x18] sm:$0xff]  ;;  %5740 = vmatpush1.bf16.msra.mxu0 %v8641_v32 }
 0xac5   : > { %v4588_v48 = vpop.xlane.xlu1 %4587  ;;  %5853 = vmatpush1.bf16.msra.mxu1 %v8643_v33  ;;  %5935 = vmatprep.subr.bf16.mxu0 %v8526_v43  ;;  %v8528_v61 = vcombine.high %v13348_v62, %v13352_v53 }
 0xac6   : > { %v13339_v29 = vsub.f32 %v13177_v39, %v4607_v63  ;;  %v13342_v55 = vsub.f32 %v13181_v56, %v4607_v63  ;;  %v4608_v11 = vmul.f32 0.00390625, %v4588_v48  ;;  %4709 = vadd.xlane.f32.xlu1 %v4708_v22 }
 0xac7   : > { %6048 = vmatprep.subr.bf16.mxu1 %v8528_v61 }
 0xac8   : > { %v4667_v25 = vmul.f32 %v13339_v29, %v13339_v29  ;;  %v4668_v10 = vmul.f32 %v13342_v55, %v13342_v55  ;;  %v13359_v59 = vsub.f32 %v13185_v42, %v4608_v11  ;;  %v13362_v1 = vsub.f32 %v13188_v17, %v4608_v11 }
 0xac9   : > { %v13395_v42 = vsub.s32 3, %v15707_v41 }
 0xaca   : > { %v4669_v63 = vmul.f32 %v13359_v59, %v13359_v59  ;;  %v4670_v22 = vmul.f32 %v13362_v1, %v13362_v1  ;;  %v4711_v32 = vadd.f32 %v4668_v10, %v4667_v25 }
 0xacb   : > { %v4591_v48 = vpop.xlane.xlu0 %4590 }
 0xacc   : > { %v4609_v33 = vmul.f32 0.00390625, %v4591_v48  ;;  %4712 = vadd.xlane.f32.xlu0 %v4711_v32  ;;  %v4714_v6 = vadd.f32 %v4670_v22, %v4669_v63 }
 0xacd   : > { %v4594_v11 = vpop.xlane.xlu1 %4593 }
 0xace   : > { %v13375_v43 = vsub.f32 %v13201_v23, %v4609_v33  ;;  %v13378_v47 = vsub.f32 %v13205_v7, %v4609_v33  ;;  %v4610_v13 = vmul.f32 0.00390625, %v4594_v11  ;;  %4715 = vadd.xlane.f32.xlu1 %v4714_v6 }
 0xad0   : > { %v4671_v17 = vmul.f32 %v13375_v43, %v13375_v43  ;;  %v4672_v25 = vmul.f32 %v13378_v47, %v13378_v47  ;;  %v13385_v10 = vsub.f32 %v13209_v34, %v4610_v13  ;;  %v13388_v61 = vsub.f32 %v13212_v54, %v4610_v13 }
 0xad2   : > { %v4673_v63 = vmul.f32 %v13385_v10, %v13385_v10  ;;  %v4674_v22 = vmul.f32 %v13388_v61, %v13388_v61  ;;  %v4717_v32 = vadd.f32 %v4672_v25, %v4671_v17  ;;  %v13398_v25 = vsub.s32 4, %v15707_v41 }
 0xad4   : > { %4718 = vadd.xlane.f32.xlu0 %v4717_v32  ;;  %v4720_v48 = vadd.f32 %v4674_v22, %v4673_v63  ;;  %v15776_v63 = vld [vmem:[#allocation38_spill] sm:$0xff] }
 0xad5   : > { %v13402_v22 = vrot.slane %v15776_v63, %v13395_v42 }
 0xad6   : > { %4721 = vadd.xlane.f32.xlu1 %v4720_v48  ;;  %v13412_v48 = vrot.slane %v15711_v51, %v13398_v25  ;;  %v13434_v51 = vld [vmem:[#allocation15 + $0x90] sm:$0xff] }
 0xb29   : > { %v4677_v33 = vpop.xlane.xlu0 %4676 }
 0xb2a   : > { %v4723_v6 = vmul.f32 0.00390625, %v4677_v33  ;;  %v13416_v33 = vrot.slane %v15710_v49, %v13398_v25 }
 0xb2b   : > { %v4680_v11 = vpop.xlane.xlu1 %4679 }
 0xb2c   : > { %v4739_v7 = vadd.f32 1e-06, %v4723_v6  ;;  %v4724_v23 = vmul.f32 0.00390625, %v4680_v11 }
 0xb2e   : > { %9948 = vrsqrt.f32 %v4739_v7  ;;  %v4740_v34 = vadd.f32 1e-06, %v4724_v23  ;;  %v15777_v23 = vld [vmem:[#allocation39_spill] sm:$0xff] }
 0xb2f   : > { %v13406_v7 = vrot.slane %v15777_v23, %v13395_v42 }
 0xb30   : > { %9950 = vrsqrt.f32 %v4740_v34 }
 0xb31   : > { %v4683_v13 = vpop.xlane.xlu0 %4682 }
 0xb32   : > { %v4725_v54 = vmul.f32 0.00390625, %v4683_v13 }
 0xb33   : > { %v4686_v56 = vpop.xlane.xlu1 %4685 }
 0xb34   : > { %v4741_v39 = vadd.f32 1e-06, %v4725_v54  ;;  %v4726_v12 = vmul.f32 0.00390625, %v4686_v56 }
 0xb36   : > { %9952 = vrsqrt.f32 %v4741_v39  ;;  %v4742_v17 = vadd.f32 1e-06, %v4726_v12 }
 0xb38   : > { %v9949_v34 = vpop.eup %9948  ;;  %9954 = vrsqrt.f32 %v4742_v17 }
 0xb39   : > { %v4771_v32 = vmul.f32 %v9949_v34, %v13219_v4  ;;  %v4772_v54 = vmul.f32 %v9949_v34, %v13222_v8  ;;  %v4689_v56 = vpop.xlane.xlu0 %4688 }
 0xb3a   : > { %v9951_v39 = vpop.eup %9950  ;;  %v4727_v12 = vmul.f32 0.00390625, %v4689_v56 }
 0xb3b   : > { %v4811_v6 = vmul.f32 %v13402_v22, %v4771_v32  ;;  %v4773_v11 = vmul.f32 %v9951_v39, %v13229_v37  ;;  %v4774_v13 = vmul.f32 %v9951_v39, %v13232_v36  ;;  %v4692_v4 = vpop.xlane.xlu1 %4691  ;;  %v4812_v8 = vmul.f32 %v13406_v7, %v4772_v54  ;;  %v4913_v39 = vld [vmem:[#allocation15 + $0x70] sm:$0xff]  ;;  %v4914_v54 = vld [vmem:[#allocation15 + $0x78] sm:$0xff] }
 0xb3c   : > { %v4743_v17 = vadd.f32 1e-06, %v4727_v12  ;;  %v4728_v63 = vmul.f32 0.00390625, %v4692_v4  ;;  %v8534_v30 = vcombine.high %v4909_v38, %v4913_v39 }
 0xb3d   : > { %v4813_v23 = vmul.f32 %v13402_v22, %v4773_v11  ;;  %v4814_v34 = vmul.f32 %v13406_v7, %v4774_v13  ;;  %v4852_v52 = vadd.f32 %v13412_v48, %v4812_v8  ;;  %v4851_v37 = vadd.f32 %v13416_v33, %v4811_v6 }
 0xb3e   : > { %9956 = vrsqrt.f32 %v4743_v17  ;;  %v4744_v56 = vadd.f32 1e-06, %v4728_v63  ;;  %v8536_v6 = vcombine.high %v4910_v21, %v4914_v54 }
 0xb3f   : > { %v4854_v32 = vadd.f32 %v13412_v48, %v4814_v34  ;;  %v4853_v36 = vadd.f32 %v13416_v33, %v4813_v23 }
 0xb40   : > { %v9953_v12 = vpop.eup %9952  ;;  %9958 = vrsqrt.f32 %v4744_v56 }
 0xb41   : > { %v4775_v11 = vmul.f32 %v9953_v12, %v13239_v3  ;;  %v4776_v13 = vmul.f32 %v9953_v12, %v13242_v0  ;;  %v4695_v4 = vpop.xlane.xlu0 %4694  ;;  %v13430_v17 = vpack.c.bf16 %v4854_v32, %v4852_v52  ;;  %v13432_v63 = vpack.c.bf16 %v4853_v36, %v4851_v37  ;;  %v4921_v3 = vld [vmem:[#allocation15 + $0xb0] sm:$0xff]  ;;  %v4918_v0 = vld [vmem:[#allocation15 + $0x98] sm:$0xff] }
 0xb42   : > { %v9955_v8 = vpop.eup %9954  ;;  %v4729_v34 = vmul.f32 0.00390625, %v4695_v4  ;;  %v4922_v32 = vld [vmem:[#allocation15 + $0xb8] sm:$0xff]  ;;  %v8533_v12 = vcombine.low %v4909_v38, %v4913_v39  ;;  %v15779_v4 = vcombine.low %v13348_v62, %v13352_v53  ;;  %v8542_v38 = vcombine.high %v13434_v51, %v4921_v3 }
 0xb43   : > { %v4777_v23 = vmul.f32 %v9955_v8, %v13249_v58  ;;  %v4778_v49 = vmul.f32 %v9955_v8, %v13252_v44  ;;  %v4698_v56 = vpop.xlane.xlu1 %4697  ;;  %5741 = vmatprep.mubr.bf16.mxu0 %v13430_v17  ;;  %5854 = vmatprep.mubr.bf16.mxu1 %v13430_v17  ;;  %v4816_v52 = vmul.f32 %v13406_v7, %v4776_v13  ;;  %v4926_v53 = vld [vmem:[#allocation15 + $0xd8] sm:$0xff] }
 0xb44   : > { %v4745_v37 = vadd.f32 1e-06, %v4729_v34  ;;  %v4730_v36 = vmul.f32 0.00390625, %v4698_v56  ;;  %5742 = vmatmul.mubr.bf16.vlgmr.msra.gmra.mrb[32].mxu0 %v13432_v63  ;;  %5855 = vmatmul.mubr.bf16.vlgmr.msra.gmra.mrb[160].mxu1 %v13432_v63  ;;  %v4815_v58 = vmul.f32 %v13402_v22, %v4775_v11  ;;  %v15778_v44 = vcombine.low %v13344_v2, %v13346_v26  ;;  %v13453_v11 = vld [vmem:[#allocation15 + $0xd0] sm:$0xff] }
 0xb45   : > { %6049 = vmatpush1.bf16.msra.mxu1 %v15779_v4  ;;  %v8535_v13 = vcombine.low %v4910_v21, %v4914_v54  ;;  %v4818_v8 = vmul.f32 %v13406_v7, %v4778_v49  ;;  %v4817_v34 = vmul.f32 %v13402_v22, %v4777_v23  ;;  %v8544_v39 = vcombine.high %v4918_v0, %v4922_v32  ;;  %v4929_v21 = vld [vmem:[#allocation15 + $0xf0] sm:$0xff]  ;;  %v4930_v49 = vld [vmem:[#allocation15 + $0xf8] sm:$0xff] }
 0xb46   : > { %5936 = vmatpush1.bf16.msra.mxu0 %v15778_v44  ;;  %9960 = vrsqrt.f32 %v4745_v37  ;;  %v4746_v56 = vadd.f32 1e-06, %v4730_v36  ;;  %6050 = vmatprep.subr.bf16.mxu1 %v8536_v6  ;;  %v4856_v2 = vadd.f32 %v13412_v48, %v4816_v52  ;;  %v4855_v23 = vadd.f32 %v13416_v33, %v4815_v58 }
 0xb47   : > { %5937 = vmatprep.subr.bf16.mxu0 %v8534_v30  ;;  %v4858_v26 = vadd.f32 %v13412_v48, %v4818_v8  ;;  %v4857_v62 = vadd.f32 %v13416_v33, %v4817_v34  ;;  %v8541_v30 = vcombine.low %v13434_v51, %v4921_v3  ;;  %v8543_v6 = vcombine.low %v4918_v0, %v4922_v32  ;;  %v13467_v51 = vld [vmem:[#allocation15 + $0x110] sm:$0xff] }
 0xb48   : > { %v9957_v54 = vpop.eup %9956  ;;  %9962 = vrsqrt.f32 %v4746_v56  ;;  %v8550_v58 = vcombine.high %v13453_v11, %v4929_v21  ;;  %v8552_v56 = vcombine.high %v4926_v53, %v4930_v49  ;;  %v4937_v32 = vld [vmem:[#allocation15 + $0x130] sm:$0xff] }
 0xb49   : > { %v4779_v37 = vmul.f32 %v9957_v54, %v13259_v57  ;;  %v4780_v36 = vmul.f32 %v9957_v54, %v13262_v31  ;;  %6051 = vmatpush1.bf16.msra.mxu1 %v8535_v13  ;;  %v4701_v52 = vpop.xlane.xlu0 %4700  ;;  %v13462_v44 = vpack.c.bf16 %v4858_v26, %v4856_v2  ;;  %v13464_v34 = vpack.c.bf16 %v4857_v62, %v4855_v23  ;;  %v4938_v13 = vld [vmem:[#allocation15 + $0x138] sm:$0xff] }
 0xb4a   : > { %5938 = vmatpush1.bf16.msra.mxu0 %v8533_v12  ;;  %v9959_v4 = vpop.eup %9958  ;;  %v4731_v8 = vmul.f32 0.00390625, %v4701_v52  ;;  %6052 = vmatprep.subr.bf16.mxu1 %v8544_v39  ;;  %v4934_v12 = vld [vmem:[#allocation15 + $0x118] sm:$0xff]  ;;  %v8551_v2 = vcombine.low %v4926_v53, %v4930_v49  ;;  %v8558_v23 = vcombine.high %v13467_v51, %v4937_v32  ;;  %v13481_v52 = vld [vmem:[#allocation15 + $0x150] sm:$0xff] }
 0xb4b   : > { %5939 = vmatprep.subr.bf16.mxu0 %v8542_v38  ;;  %v4781_v57 = vmul.f32 %v9959_v4, %v13269_v15  ;;  %v4782_v31 = vmul.f32 %v9959_v4, %v13272_v20  ;;  %v4704_v3 = vpop.xlane.xlu1 %4703  ;;  %5751 = vmatprep.mubr.bf16.mxu0 %v13462_v44  ;;  %v4820_v0 = vmul.f32 %v13406_v7, %v4780_v36  ;;  %v4945_v53 = vld [vmem:[#allocation15 + $0x170] sm:$0xff]  ;;  %v4942_v49 = vld [vmem:[#allocation15 + $0x158] sm:$0xff] }
 0xb4c   : > { %5864 = vmatprep.mubr.bf16.mxu1 %v13462_v44  ;;  %v4747_v38 = vadd.f32 1e-06, %v4731_v8  ;;  %v4732_v39 = vmul.f32 0.00390625, %v4704_v3  ;;  %5752 = vmatmul.mubr.bf16.gmra.mrb[36].mxu0 %v13464_v34  ;;  %v8549_v15 = vcombine.low %v13453_v11, %v4929_v21  ;;  %v4819_v20 = vmul.f32 %v13402_v22, %v4779_v37 }
 0xb4d   : > { %5865 = vmatmul.mubr.bf16.gmra.mrb[164].mxu1 %v13464_v34  ;;  %v4822_v26 = vmul.f32 %v13406_v7, %v4782_v31  ;;  %v4821_v62 = vmul.f32 %v13402_v22, %v4781_v57  ;;  %v8560_v36 = vcombine.high %v4934_v12, %v4938_v13  ;;  %v4860_v11 = vadd.f32 %v13412_v48, %v4820_v0 }
 0xb4e   : > { %5940 = vmatpush1.bf16.msra.mxu0 %v8541_v30  ;;  %6053 = vmatpush1.bf16.msra.mxu1 %v8543_v6  ;;  %9964 = vrsqrt.f32 %v4747_v38  ;;  %v4748_v54 = vadd.f32 1e-06, %v4732_v39  ;;  %v4946_v6 = vld [vmem:[#allocation15 + $0x178] sm:$0xff]  ;;  %v4859_v4 = vadd.f32 %v13416_v33, %v4819_v20  ;;  %v8557_v8 = vcombine.low %v13467_v51, %v4937_v32  ;;  %v13495_v51 = vld [vmem:[#allocation15 + $0x190] sm:$0xff] }
 0xb4f   : > { %5941 = vmatprep.subr.bf16.mxu0 %v8550_v58  ;;  %6054 = vmatprep.subr.bf16.mxu1 %v8552_v56  ;;  %v4862_v21 = vadd.f32 %v13412_v48, %v4822_v26  ;;  %v4861_v30 = vadd.f32 %v13416_v33, %v4821_v62  ;;  %v8559_v58 = vcombine.low %v4934_v12, %v4938_v13  ;;  %v4953_v13 = vld [vmem:[#allocation15 + $0x1b0] sm:$0xff] }
 0xb50   : > { %v9961_v37 = vpop.eup %9960  ;;  %9966 = vrsqrt.f32 %v4748_v54  ;;  %v8566_v20 = vcombine.high %v13481_v52, %v4945_v53  ;;  %v8568_v26 = vcombine.high %v4942_v49, %v4946_v6 }
 0xb51   : > { %v4783_v56 = vmul.f32 %v9961_v37, %v13279_v9  ;;  %v4784_v57 = vmul.f32 %v9961_v37, %v13282_v35  ;;  %v4707_v31 = vpop.xlane.xlu0 %4706  ;;  %v13490_v3 = vpack.c.bf16 %v4862_v21, %v4860_v11  ;;  %v13492_v39 = vpack.c.bf16 %v4861_v30, %v4859_v4  ;;  %v13509_v4 = vld [vmem:[#allocation15 + $0x1d0] sm:$0xff] }
 0xb52   : > { %5942 = vmatpush1.bf16.msra.mxu0 %v8549_v15  ;;  %6055 = vmatpush1.bf16.msra.mxu1 %v8551_v2  ;;  %v9963_v0 = vpop.eup %9962  ;;  %v4733_v38 = vmul.f32 0.00390625, %v4707_v31  ;;  %v4950_v15 = vld [vmem:[#allocation15 + $0x198] sm:$0xff]  ;;  %v8574_v30 = vcombine.high %v13495_v51, %v4953_v13  ;;  %v8573_v31 = vcombine.low %v13495_v51, %v4953_v13  ;;  %v13523_v51 = vld [vmem:[#allocation15 + $0x210] sm:$0xff] }
 0xb53   : > { %5943 = vmatprep.subr.bf16.mxu0 %v8558_v23  ;;  %6056 = vmatprep.subr.bf16.mxu1 %v8560_v36  ;;  %v4785_v9 = vmul.f32 %v9963_v0, %v13289_v5  ;;  %v4786_v35 = vmul.f32 %v9963_v0, %v13292_v60  ;;  %v4710_v32 = vpop.xlane.xlu1 %4709  ;;  %v4824_v12 = vmul.f32 %v13406_v7, %v4784_v57  ;;  %v4954_v2 = vld [vmem:[#allocation15 + $0x1b8] sm:$0xff] }
 0xb54   : > { %5761 = vmatprep.mubr.bf16.mxu0 %v13490_v3  ;;  %5874 = vmatprep.mubr.bf16.mxu1 %v13490_v3  ;;  %v4749_v62 = vadd.f32 1e-06, %v4733_v38  ;;  %v4734_v54 = vmul.f32 0.00390625, %v4710_v32  ;;  %v8565_v5 = vcombine.low %v13481_v52, %v4945_v53  ;;  %v4823_v60 = vmul.f32 %v13402_v22, %v4783_v56 }
 0xb55   : > { %5762 = vmatmul.mubr.bf16.gmra.mrb[40].mxu0 %v13492_v39  ;;  %5875 = vmatmul.mubr.bf16.gmra.mrb[168].mxu1 %v13492_v39  ;;  %v8567_v23 = vcombine.low %v4942_v49, %v4946_v6  ;;  %v4826_v36 = vmul.f32 %v13406_v7, %v4786_v35  ;;  %v4825_v11 = vmul.f32 %v13402_v22, %v4785_v9  ;;  %v4961_v49 = vld [vmem:[#allocation15 + $0x1f0] sm:$0xff]  ;;  %v4958_v6 = vld [vmem:[#allocation15 + $0x1d8] sm:$0xff] }
 0xb56   : > { %5944 = vmatpush1.bf16.msra.mxu0 %v8557_v8  ;;  %6057 = vmatpush1.bf16.msra.mxu1 %v8559_v58  ;;  %9968 = vrsqrt.f32 %v4749_v62  ;;  %v4750_v21 = vadd.f32 1e-06, %v4734_v54  ;;  %v8576_v37 = vcombine.high %v4950_v15, %v4954_v2  ;;  %v4864_v52 = vadd.f32 %v13412_v48, %v4824_v12  ;;  %v4962_v58 = vld [vmem:[#allocation15 + $0x1f8] sm:$0xff] }
 0xb57   : > { %5945 = vmatprep.subr.bf16.mxu0 %v8566_v20  ;;  %6058 = vmatprep.subr.bf16.mxu1 %v8568_v26  ;;  %v4866_v53 = vadd.f32 %v13412_v48, %v4826_v36  ;;  %v4865_v8 = vadd.f32 %v13416_v33, %v4825_v11  ;;  %v4863_v57 = vadd.f32 %v13416_v33, %v4823_v60  ;;  %v4970_v60 = vld [vmem:[#allocation15 + $0x238] sm:$0xff] }
 0xb58   : > { %v9965_v56 = vpop.eup %9964  ;;  %9970 = vrsqrt.f32 %v4750_v21  ;;  %v8575_v0 = vcombine.low %v4950_v15, %v4954_v2  ;;  %v8582_v62 = vcombine.high %v13509_v4, %v4961_v49  ;;  %v8584_v54 = vcombine.high %v4958_v6, %v4962_v58  ;;  %v4969_v2 = vld [vmem:[#allocation15 + $0x230] sm:$0xff] }
 0xb59   : > { %v4787_v38 = vmul.f32 %v9965_v56, %v13299_v50  ;;  %v4788_v20 = vmul.f32 %v9965_v56, %v13302_v19  ;;  %v4713_v26 = vpop.xlane.xlu0 %4712  ;;  %v13518_v9 = vpack.c.bf16 %v4866_v53, %v4864_v52  ;;  %v13520_v12 = vpack.c.bf16 %v4865_v8, %v4863_v57  ;;  %v13537_v8 = vld [vmem:[#allocation15 + $0x250] sm:$0xff]  ;;  %v4978_v57 = vld [vmem:[#allocation15 + $0x278] sm:$0xff] }
 0xb5a   : > { %5946 = vmatpush1.bf16.msra.mxu0 %v8565_v5  ;;  %6059 = vmatpush1.bf16.msra.mxu1 %v8567_v23  ;;  %v9967_v35 = vpop.eup %9966  ;;  %v4735_v32 = vmul.f32 0.00390625, %v4713_v26  ;;  %v4966_v5 = vld [vmem:[#allocation15 + $0x218] sm:$0xff]  ;;  %v8583_v11 = vcombine.low %v4958_v6, %v4962_v58  ;;  %v8590_v52 = vcombine.high %v13523_v51, %v4969_v2  ;;  %v4977_v6 = vld [vmem:[#allocation15 + $0x270] sm:$0xff] }
 0xb5b   : > { %5947 = vmatprep.subr.bf16.mxu0 %v8574_v30  ;;  %6060 = vmatprep.subr.bf16.mxu1 %v8576_v37  ;;  %v4789_v50 = vmul.f32 %v9967_v35, %v13309_v28  ;;  %v4790_v19 = vmul.f32 %v9967_v35, %v13312_v27  ;;  %v4716_v13 = vpop.xlane.xlu1 %4715  ;;  %v4828_v15 = vmul.f32 %v13406_v7, %v4788_v20  ;;  %v4974_v58 = vld [vmem:[#allocation15 + $0x258] sm:$0xff] }
 0xb5c   : > { %5771 = vmatprep.mubr.bf16.mxu0 %v13518_v9  ;;  %5884 = vmatprep.mubr.bf16.mxu1 %v13518_v9  ;;  %v4751_v23 = vadd.f32 1e-06, %v4735_v32  ;;  %v4736_v36 = vmul.f32 0.00390625, %v4716_v13  ;;  %v8581_v28 = vcombine.low %v13509_v4, %v4961_v49  ;;  %v4827_v27 = vmul.f32 %v13402_v22, %v4787_v38 }
 0xb5d   : > { %5772 = vmatmul.mubr.bf16.gmra.mrb[44].mxu0 %v13520_v12  ;;  %5885 = vmatmul.mubr.bf16.gmra.mrb[172].mxu1 %v13520_v12  ;;  %v4830_v21 = vmul.f32 %v13406_v7, %v4790_v19  ;;  %v4829_v30 = vmul.f32 %v13402_v22, %v4789_v50  ;;  %v8592_v53 = vcombine.high %v4966_v5, %v4970_v60 }
 0xb5e   : > { %5948 = vmatpush1.bf16.msra.mxu0 %v8573_v31  ;;  %6061 = vmatpush1.bf16.msra.mxu1 %v8575_v0  ;;  %9972 = vrsqrt.f32 %v4751_v23  ;;  %v4752_v37 = vadd.f32 1e-06, %v4736_v36  ;;  %v4868_v4 = vadd.f32 %v13412_v48, %v4828_v15  ;;  %v4867_v0 = vadd.f32 %v13416_v33, %v4827_v27  ;;  %v4982_v23 = vld [vmem:[#allocation15 + $0x298] sm:$0xff] }
 0xb5f   : > { %5949 = vmatprep.subr.bf16.mxu0 %v8582_v62  ;;  %6062 = vmatprep.subr.bf16.mxu1 %v8584_v54  ;;  %v4870_v49 = vadd.f32 %v13412_v48, %v4830_v21  ;;  %v4869_v56 = vadd.f32 %v13416_v33, %v4829_v30  ;;  %v8589_v38 = vcombine.low %v13523_v51, %v4969_v2  ;;  %v13551_v51 = vld [vmem:[#allocation15 + $0x290] sm:$0xff]  ;;  %v4986_v36 = vld [vmem:[#allocation15 + $0x2b8] sm:$0xff] }
 0xb60   : > { %v9969_v31 = vpop.eup %9968  ;;  %9974 = vrsqrt.f32 %v4752_v37  ;;  %v8591_v20 = vcombine.low %v4966_v5, %v4970_v60  ;;  %v8598_v13 = vcombine.high %v13537_v8, %v4977_v6  ;;  %v8600_v15 = vcombine.high %v4974_v58, %v4978_v57  ;;  %v4985_v60 = vld [vmem:[#allocation15 + $0x2b0] sm:$0xff] }
 0xb61   : > { %v4791_v26 = vmul.f32 %v9969_v31, %v13319_v40  ;;  %v4792_v35 = vmul.f32 %v9969_v31, %v13322_v46  ;;  %v4719_v32 = vpop.xlane.xlu0 %4718  ;;  %v13546_v62 = vpack.c.bf16 %v4870_v49, %v4868_v4  ;;  %v13548_v19 = vpack.c.bf16 %v4869_v56, %v4867_v0  ;;  %v4989_v4 = vld [vmem:[#allocation15 + $0x2d0] sm:$0xff] }
 0xb62   : > { %5950 = vmatpush1.bf16.msra.mxu0 %v8581_v28  ;;  %6063 = vmatpush1.bf16.msra.mxu1 %v8583_v11  ;;  %v9971_v54 = vpop.eup %9970  ;;  %v4737_v50 = vmul.f32 0.00390625, %v4719_v32  ;;  %v8599_v11 = vcombine.low %v4974_v58, %v4978_v57  ;;  %v4990_v58 = vld [vmem:[#allocation15 + $0x2d8] sm:$0xff] }
 0xb63   : > { %5951 = vmatprep.subr.bf16.mxu0 %v8590_v52  ;;  %6064 = vmatprep.subr.bf16.mxu1 %v8592_v53  ;;  %v4793_v40 = vmul.f32 %v9971_v54, %v13329_v18  ;;  %v4794_v46 = vmul.f32 %v9971_v54, %v13332_v16  ;;  %v4722_v2 = vpop.xlane.xlu1 %4721  ;;  %v4832_v5 = vmul.f32 %v13406_v7, %v4792_v35  ;;  %v4994_v57 = vld [vmem:[#allocation15 + $0x2f8] sm:$0xff] }
 0xb64   : > { %5781 = vmatprep.mubr.bf16.mxu0 %v13546_v62  ;;  %5894 = vmatprep.mubr.bf16.mxu1 %v13546_v62  ;;  %v4753_v28 = vadd.f32 1e-06, %v4737_v50  ;;  %v4738_v27 = vmul.f32 0.00390625, %v4722_v2  ;;  %v8597_v18 = vcombine.low %v13537_v8, %v4977_v6  ;;  %v4831_v16 = vmul.f32 %v13402_v22, %v4791_v26  ;;  %v4993_v6 = vld [vmem:[#allocation15 + $0x2f0] sm:$0xff]  ;;  %v4998_v2 = vld [vmem:[#allocation15 + $0x318] sm:$0xff] }
 0xb65   : > { %5782 = vmatmul.mubr.bf16.gmra.mrb[48].mxu0 %v13548_v19  ;;  %5895 = vmatmul.mubr.bf16.gmra.mrb[176].mxu1 %v13548_v19  ;;  %v4834_v21 = vmul.f32 %v13406_v7, %v4794_v46  ;;  %v4833_v30 = vmul.f32 %v13402_v22, %v4793_v40  ;;  %v8606_v52 = vcombine.high %v13551_v51, %v4985_v60  ;;  %v4997_v40 = vld [vmem:[#allocation15 + $0x310] sm:$0xff] }
 0xb66   : > { %5952 = vmatpush1.bf16.msra.mxu0 %v8589_v38  ;;  %6065 = vmatpush1.bf16.msra.mxu1 %v8591_v20  ;;  %9976 = vrsqrt.f32 %v4753_v28  ;;  %v4754_v37 = vadd.f32 1e-06, %v4738_v27  ;;  %v8608_v53 = vcombine.high %v4982_v23, %v4986_v36  ;;  %v4872_v49 = vadd.f32 %v13412_v48, %v4832_v5  ;;  %v5002_v5 = vld [vmem:[#allocation15 + $0x338] sm:$0xff] }
 0xb67   : > { %5953 = vmatprep.subr.bf16.mxu0 %v8598_v13  ;;  %6066 = vmatprep.subr.bf16.mxu1 %v8600_v15  ;;  %v4874_v8 = vadd.f32 %v13412_v48, %v4834_v21  ;;  %v4873_v56 = vadd.f32 %v13416_v33, %v4833_v30  ;;  %v4871_v0 = vadd.f32 %v13416_v33, %v4831_v16  ;;  %v5009_v30 = vld [vmem:[#allocation15 + $0x370] sm:$0xff] }
 0xb68   : > { %v9973_v31 = vpop.eup %9972  ;;  %9978 = vrsqrt.f32 %v4754_v37  ;;  %v8605_v38 = vcombine.low %v13551_v51, %v4985_v60  ;;  %v8607_v20 = vcombine.low %v4982_v23, %v4986_v36  ;;  %v8614_v13 = vcombine.high %v4989_v4, %v4993_v6  ;;  %v5006_v37 = vld [vmem:[#allocation15 + $0x358] sm:$0xff] }
 0xb69   : > { %v4795_v26 = vmul.f32 %v9973_v31, %v13339_v29  ;;  %v4796_v35 = vmul.f32 %v9973_v31, %v13342_v55  ;;  %v13572_v32 = vpack.c.bf16 %v4874_v8, %v4872_v49  ;;  %v13574_v50 = vpack.c.bf16 %v4873_v56, %v4871_v0  ;;  %v5001_v55 = vld [vmem:[#allocation15 + $0x330] sm:$0xff] }
 0xb6a   : > { %5954 = vmatpush1.bf16.msra.mxu0 %v8597_v18  ;;  %6067 = vmatpush1.bf16.msra.mxu1 %v8599_v11  ;;  %v9975_v54 = vpop.eup %9974  ;;  %v8616_v15 = vcombine.high %v4990_v58, %v4994_v57  ;;  %v8613_v60 = vcombine.low %v4989_v4, %v4993_v6  ;;  %v8622_v28 = vcombine.high %v4997_v40, %v5001_v55  ;;  %v5005_v18 = vld [vmem:[#allocation15 + $0x350] sm:$0xff] }
 0xb6b   : > { %5955 = vmatprep.subr.bf16.mxu0 %v8606_v52  ;;  %6068 = vmatprep.subr.bf16.mxu1 %v8608_v53  ;;  %v4797_v46 = vmul.f32 %v9975_v54, %v13359_v59  ;;  %v4798_v51 = vmul.f32 %v9975_v54, %v13362_v1  ;;  %v4836_v29 = vmul.f32 %v13406_v7, %v4796_v35  ;;  %v5010_v52 = vld [vmem:[#allocation15 + $0x378] sm:$0xff] }
 0xb6c   : > { %5791 = vmatprep.mubr.bf16.mxu0 %v13572_v32  ;;  %5904 = vmatprep.mubr.bf16.mxu1 %v13572_v32  ;;  %v4835_v23 = vmul.f32 %v13402_v22, %v4795_v26  ;;  %v8615_v59 = vcombine.low %v4990_v58, %v4994_v57  ;;  %v8624_v27 = vcombine.high %v4998_v2, %v5002_v5  ;;  %v5014_v54 = vld [vmem:[#allocation15 + $0x398] sm:$0xff] }
 0xb6d   : > { %5792 = vmatmul.mubr.bf16.gmra.mrb[52].mxu0 %v13574_v50  ;;  %5905 = vmatmul.mubr.bf16.gmra.mrb[180].mxu1 %v13574_v50  ;;  %v4838_v1 = vmul.f32 %v13406_v7, %v4798_v51  ;;  %v4837_v36 = vmul.f32 %v13402_v22, %v4797_v46  ;;  %v4876_v16 = vadd.f32 %v13412_v48, %v4836_v29 }
 0xb6e   : > { %5956 = vmatpush1.bf16.msra.mxu0 %v8605_v38  ;;  %6069 = vmatpush1.bf16.msra.mxu1 %v8607_v20  ;;  %v4875_v4 = vadd.f32 %v13416_v33, %v4835_v23  ;;  %v8621_v49 = vcombine.low %v4997_v40, %v5001_v55  ;;  %v8623_v8 = vcombine.low %v4998_v2, %v5002_v5  ;;  %v5013_v20 = vld [vmem:[#allocation15 + $0x390] sm:$0xff] }
 0xb6f   : > { %5957 = vmatprep.subr.bf16.mxu0 %v8614_v13  ;;  %6070 = vmatprep.subr.bf16.mxu1 %v8616_v15  ;;  %v4878_v11 = vadd.f32 %v13412_v48, %v4838_v1  ;;  %v4877_v21 = vadd.f32 %v13416_v33, %v4837_v36  ;;  %v8630_v0 = vcombine.high %v5005_v18, %v5009_v30  ;;  %v5018_v13 = vld [vmem:[#allocation15 + $0x3b8] sm:$0xff]  ;;  %v5021_v23 = vld [vmem:[#allocation15 + $0x3d0] sm:$0xff] }
 0xb70   : > { %v9977_v53 = vpop.eup %9976  ;;  %v8632_v38 = vcombine.high %v5006_v37, %v5010_v52  ;;  %v8629_v15 = vcombine.low %v5005_v18, %v5009_v30  ;;  %v8640_v29 = vcombine.high %v5014_v54, %v5018_v13  ;;  %v5022_v1 = vld [vmem:[#allocation15 + $0x3d8] sm:$0xff] }
 0xb71   : > { %v4799_v56 = vmul.f32 %v9977_v53, %v13375_v43  ;;  %v4800_v6 = vmul.f32 %v9977_v53, %v13378_v47  ;;  %v13592_v58 = vpack.c.bf16 %v4878_v11, %v4876_v16  ;;  %v13594_v31 = vpack.c.bf16 %v4877_v21, %v4875_v4  ;;  %v5017_v43 = vld [vmem:[#allocation15 + $0x3b0] sm:$0xff]  ;;  %v5026_v36 = vld [vmem:[#allocation15 + $0x3f8] sm:$0xff]  ;;  %v9534_v11 = vld [vmem:[#allocation17 + $0x4] ss:$8 sps:$4 sm:$0xff]  }
 0xb72   : > { %5958 = vmatpush1.bf16.msra.mxu0 %v8613_v60  ;;  %6071 = vmatpush1.bf16.msra.mxu1 %v8615_v59  ;;  %v9979_v57 = vpop.eup %9978  ;;  %v8638_v51 = vcombine.high %v5013_v20, %v5017_v43  ;;  %v5025_v59 = vld [vmem:[#allocation15 + $0x3f0] sm:$0xff]  ;;  %v8647_v16 = vcombine.low %v5022_v1, %v5026_v36  ;;  %v9532_v21 = vld [vmem:[#allocation17] ss:$8 sps:$4 sm:$0xff]  }
 0xb73   : > { %5959 = vmatprep.subr.bf16.mxu0 %v8622_v28  ;;  %6072 = vmatprep.subr.bf16.mxu1 %v8624_v27  ;;  %v4801_v26 = vmul.f32 %v9979_v57, %v13385_v10  ;;  %v4802_v35 = vmul.f32 %v9979_v57, %v13388_v61  ;;  %v4840_v47 = vmul.f32 %v13406_v7, %v4800_v6  ;;  %v9537_v30 = vld [vmem:[#allocation17 + $0x14] ss:$8 sps:$4 sm:$0xff]   ;;  %v9544_v4 = vld [vmem:[#allocation17 + $0x40] ss:$8 sps:$4 sm:$0xff]  }
 0xb74   : > { %5801 = vmatprep.mubr.bf16.mxu0 %v13592_v58  ;;  %5914 = vmatprep.mubr.bf16.mxu1 %v13592_v58  ;;  %v4839_v40 = vmul.f32 %v13402_v22, %v4799_v56  ;;  %v8631_v10 = vcombine.low %v5006_v37, %v5010_v52  ;;  %v8637_v28 = vcombine.low %v5013_v20, %v5017_v43  ;;  %v9535_v37 = vld [vmem:[#allocation17 + $0x10] ss:$8 sps:$4 sm:$0xff]   ;;  %v9538_v52 = vld [vmem:[#allocation17 + $0x20] ss:$8 sps:$4 sm:$0xff]   ;;  %v9543_v53 = vld [vmem:[#allocation17 + $0x34] ss:$8 sps:$4 sm:$0xff]  }
 0xb75   : > { %5802 = vmatmul.mubr.bf16.gmra.mrb[56].mxu0 %v13594_v31  ;;  %5915 = vmatmul.mubr.bf16.gmra.mrb[184].mxu1 %v13594_v31  ;;  %v4842_v61 = vmul.f32 %v13406_v7, %v4802_v35  ;;  %v4841_v46 = vmul.f32 %v13402_v22, %v4801_v26  ;;  %v4880_v55 = vadd.f32 %v13412_v48, %v4840_v47  ;;  %v9555_v56 = vld [vmem:[#allocation17 + $0x74] ss:$8 sps:$4 sm:$0xff]   ;;  %v9556_v6 = vld [vmem:[#allocation17 + $0x80] ss:$8 sps:$4 sm:$0xff]   ;;  %v9577_v43 = vld [vmem:[#allocation17 + $0xf0] ss:$8 sps:$4 sm:$0xff]  }
 0xb76   : > { %5960 = vmatpush1.bf16.msra.mxu0 %v8621_v49  ;;  %6073 = vmatpush1.bf16.msra.mxu1 %v8623_v8  ;;  %v4879_v5 = vadd.f32 %v13416_v33, %v4839_v40  ;;  %v8639_v27 = vcombine.low %v5014_v54, %v5018_v13  ;;  %v8645_v18 = vcombine.low %v5021_v23, %v5025_v59  ;;  %v9549_v49 = vld [vmem:[#allocation17 + $0x54] ss:$8 sps:$4 sm:$0xff]   ;;  %v9550_v8 = vld [vmem:[#allocation17 + $0x60] ss:$8 sps:$4 sm:$0xff]  }
 0xb77   : > { %5961 = vmatprep.subr.bf16.mxu0 %v8630_v0  ;;  %6074 = vmatprep.subr.bf16.mxu1 %v8632_v38  ;;  %v4882_v2 = vadd.f32 %v13412_v48, %v4842_v61  ;;  %v4881_v60 = vadd.f32 %v13416_v33, %v4841_v46  ;;  %v8646_v48 = vcombine.high %v5021_v23, %v5025_v59  ;;  %v9561_v57 = vld [vmem:[#allocation17 + $0x94] ss:$8 sps:$4 sm:$0xff]   ;;  %v9562_v0 = vld [vmem:[#allocation17 + $0xa0] ss:$8 sps:$4 sm:$0xff]  }
 0xb78   : > { %v8648_v33 = vcombine.high %v5022_v1, %v5026_v36  ;;  %v9567_v38 = vld [vmem:[#allocation17 + $0xb4] ss:$8 sps:$4 sm:$0xff]   ;;  %v9568_v20 = vld [vmem:[#allocation17 + $0xc0] ss:$8 sps:$4 sm:$0xff]   ;;  %v5055_v36 = vsub.s32 6, %v15707_v41 }
 0xb79   : > { %v13610_v7 = vpack.c.bf16 %v4882_v2, %v4880_v55  ;;  %v13612_v22 = vpack.c.bf16 %v4881_v60, %v4879_v5  ;;  %v9573_v26 = vld [vmem:[#allocation17 + $0xd4] ss:$8 sps:$4 sm:$0xff]   ;;  %v9574_v35 = vld [vmem:[#allocation17 + $0xe0] ss:$8 sps:$4 sm:$0xff]  }
 0xb7a   : > { %5962 = vmatpush1.bf16.msra.mxu0 %v8629_v15  ;;  %6075 = vmatpush1.bf16.msra.mxu1 %v8631_v10  ;;  %v9579_v47 = vld [vmem:[#allocation17 + $0xf4] ss:$8 sps:$4 sm:$0xff]   ;;  %v5027_v54 = vld [vmem:[%s15780_s22] sm:$0xff]  ;;  %s10440_s22 = scalar_lea.vmem %s10439_s26, 8192 }
 0xb7b   : > { %5963 = vmatprep.subr.bf16.mxu0 %v8638_v51  ;;  %6076 = vmatprep.subr.bf16.mxu1 %v8640_v29  ;;  %v13654_v13 = vrot.slane %v5027_v54, %v15708_v24  ;;  %v13657_v15 = vrot.slane %v5027_v54, %v13010_v45  ;;  %v13660_v40 = vrot.slane %v5027_v54, %v15709_v14  ;;  %p10442_p0 = scmp.lt.s32.totalorder %s10440_s22, %s10434_s29 }
 0xb7c   : > { %5811 = vmatprep.mubr.bf16.mxu0 %v13610_v7  ;;  %5924 = vmatprep.mubr.bf16.mxu1 %v13610_v7  ;;  %v13663_v10 = vrot.slane %v5027_v54, %v13395_v42  ;;  %v13671_v42 = vsub.s32 5, %v15707_v41 }
 0xb7d   : > { %5812 = vmatmul.mubr.bf16.gmra.mrb[60].mxu0 %v13612_v22  ;;  %5925 = vmatmul.mubr.bf16.gmra.mrb[188].mxu1 %v13612_v22  ;;  %p10443_p5 = por %p10442_p0, %p10441_p7 }
 0xb7e   : > { %5964 = vmatpush1.bf16.msra.mxu0 %v8637_v28  ;;  %5967 = vmatprep.mubr.bf16.mxu0 %v13430_v17  ;;  %15781 = vst [vmem:[#allocation75_spill] sm:$0xff] %v13671_v42  ;;  %v5059_v28 = vsub.s32 7, %v15707_v41  ;;  %v13684_v41 = vrot.slane %v5027_v54, %v13671_v42 }
 0xb7f   : > { %6077 = vmatpush1.bf16.msra.mxu1 %v8639_v27  ;;  %6080 = vmatprep.mubr.bf16.mxu1 %v13430_v17  ;;  %v9540_v17 = vld [vmem:[#allocation17 + $0x24] ss:$8 sps:$4 sm:$0xff]   ;;  %p10444_p9 = pnand %p10443_p5, %p10437_p1 }
 0xb80   : > { %5965 = vmatprep.subr.bf16.mxu0 %v8646_v48  ;;  %6078 = vmatprep.subr.bf16.mxu1 %v8648_v33  ;;  %15784 = vst [vmem:[#allocation78_spill] sm:$0xff] %v13684_v41 }
 0xb82   : > { %5966 = vmatpush1.bf16.msra.mxu0 %v8645_v18 }
 0xb83   : > { %6079 = vmatpush1.bf16.msra.mxu1 %v8647_v16  ;;  %7645 = vmatprep.subr.bf16.mxu0 %v9534_v11 }
 0xb85   : > { %5968 = vmatmul.mubr.bf16.vlgmr.msra.gmra.mrb[64].mxu0 %v13432_v63 }
 0xb86   : > { %6081 = vmatmul.mubr.bf16.vlgmr.msra.gmra.mrb[192].mxu1 %v13432_v63  ;;  %5977 = vmatprep.mubr.bf16.mxu0 %v13462_v44  ;;  %v9541_v63 = vld [vmem:[#allocation17 + $0x30] ss:$8 sps:$4 sm:$0xff]  }
 0xb87   : > { %6090 = vmatprep.mubr.bf16.mxu1 %v13462_v44  ;;  %7646 = vmatpush1.bf16.msra.mxu0 %v9532_v21  ;;  %v9546_v44 = vld [vmem:[#allocation17 + $0x44] ss:$8 sps:$4 sm:$0xff]   ;;  %v13679_v21 = vrot.slane %v5027_v54, %v13398_v25 }
 0xb88   : > { %7647 = vmatprep.subr.bf16.mxu0 %v9537_v30 }
 0xb89   : > { %15782 = vst [vmem:[#allocation76_spill] sm:$0xff] %v13679_v21 }
 0xb8b   : > { %7648 = vmatpush1.bf16.msra.mxu0 %v9535_v37  ;;  %v13681_v37 = vrot.slane %v5027_v54, %v5055_v36 }
 0xb8c   : > { %7649 = vmatprep.subr.bf16.mxu0 %v9540_v17 }
 0xb8d   : > { %5978 = vmatmul.mubr.bf16.gmra.mrb[68].mxu0 %v13464_v34  ;;  %15783 = vst [vmem:[#allocation77_spill] sm:$0xff] %v13681_v37  ;;  %v9603_v37 = vld [vmem:[#allocation17 + $0x174] ss:$8 sps:$4 sm:$0xff]  }
 0xb8e   : > { %6091 = vmatmul.mubr.bf16.gmra.mrb[196].mxu1 %v13464_v34  ;;  %5987 = vmatprep.mubr.bf16.mxu0 %v13490_v3  ;;  %v9547_v34 = vld [vmem:[#allocation17 + $0x50] ss:$8 sps:$4 sm:$0xff]  }
 0xb8f   : > { %6100 = vmatprep.mubr.bf16.mxu1 %v13490_v3  ;;  %7650 = vmatpush1.bf16.msra.mxu0 %v9538_v52  ;;  %v9552_v3 = vld [vmem:[#allocation17 + $0x64] ss:$8 sps:$4 sm:$0xff]  }
 0xb90   : > { %7651 = vmatprep.subr.bf16.mxu0 %v9543_v53 }
 0xb93   : > { %7652 = vmatpush1.bf16.msra.mxu0 %v9541_v63  ;;  %v13686_v63 = vrot.slane %v5027_v54, %v5059_v28 }
 0xb94   : > { %7653 = vmatprep.subr.bf16.mxu0 %v9546_v44 }
 0xb95   : > { %5988 = vmatmul.mubr.bf16.gmra.mrb[72].mxu0 %v13492_v39  ;;  %15785 = vst [vmem:[#allocation79_spill] sm:$0xff] %v13686_v63 }
 0xb96   : > { %6101 = vmatmul.mubr.bf16.gmra.mrb[200].mxu1 %v13492_v39  ;;  %5997 = vmatprep.mubr.bf16.mxu0 %v13518_v9  ;;  %v9553_v39 = vld [vmem:[#allocation17 + $0x70] ss:$8 sps:$4 sm:$0xff]  }
 0xb97   : > { %6110 = vmatprep.mubr.bf16.mxu1 %v13518_v9  ;;  %7654 = vmatpush1.bf16.msra.mxu0 %v9544_v4  ;;  %v9558_v9 = vld [vmem:[#allocation17 + $0x84] ss:$8 sps:$4 sm:$0xff]  }
 0xb98   : > { %7655 = vmatprep.subr.bf16.mxu0 %v9549_v49 }
 0xb9b   : > { %7656 = vmatpush1.bf16.msra.mxu0 %v9547_v34 }
 0xb9c   : > { %7657 = vmatprep.subr.bf16.mxu0 %v9552_v3 }
 0xb9d   : > { %5998 = vmatmul.mubr.bf16.gmra.mrb[76].mxu0 %v13520_v12 }
 0xb9e   : > { %6111 = vmatmul.mubr.bf16.gmra.mrb[204].mxu1 %v13520_v12  ;;  %6007 = vmatprep.mubr.bf16.mxu0 %v13546_v62  ;;  %v9559_v12 = vld [vmem:[#allocation17 + $0x90] ss:$8 sps:$4 sm:$0xff]  }
 0xb9f   : > { %6120 = vmatprep.mubr.bf16.mxu1 %v13546_v62  ;;  %7658 = vmatpush1.bf16.msra.mxu0 %v9550_v8  ;;  %v9564_v62 = vld [vmem:[#allocation17 + $0xa4] ss:$8 sps:$4 sm:$0xff]  }
 0xba0   : > { %7659 = vmatprep.subr.bf16.mxu0 %v9555_v56 }
 0xba3   : > { %7660 = vmatpush1.bf16.msra.mxu0 %v9553_v39 }
 0xba4   : > { %7661 = vmatprep.subr.bf16.mxu0 %v9558_v9 }
 0xba5   : > { %6008 = vmatmul.mubr.bf16.gmra.mrb[80].mxu0 %v13548_v19 }
 0xba6   : > { %6121 = vmatmul.mubr.bf16.gmra.mrb[208].mxu1 %v13548_v19  ;;  %6017 = vmatprep.mubr.bf16.mxu0 %v13572_v32  ;;  %v9565_v19 = vld [vmem:[#allocation17 + $0xb0] ss:$8 sps:$4 sm:$0xff]  }
 0xba7   : > { %6130 = vmatprep.mubr.bf16.mxu1 %v13572_v32  ;;  %7662 = vmatpush1.bf16.msra.mxu0 %v9556_v6  ;;  %v9570_v32 = vld [vmem:[#allocation17 + $0xc4] ss:$8 sps:$4 sm:$0xff]  }
 0xba8   : > { %7663 = vmatprep.subr.bf16.mxu0 %v9561_v57 }
 0xbab   : > { %7664 = vmatpush1.bf16.msra.mxu0 %v9559_v12 }
 0xbac   : > { %7665 = vmatprep.subr.bf16.mxu0 %v9564_v62 }
 0xbad   : > { %6018 = vmatmul.mubr.bf16.gmra.mrb[84].mxu0 %v13574_v50 }
 0xbae   : > { %6131 = vmatmul.mubr.bf16.gmra.mrb[212].mxu1 %v13574_v50  ;;  %6027 = vmatprep.mubr.bf16.mxu0 %v13592_v58  ;;  %v9571_v50 = vld [vmem:[#allocation17 + $0xd0] ss:$8 sps:$4 sm:$0xff]  }
 0xbaf   : > { %6140 = vmatprep.mubr.bf16.mxu1 %v13592_v58  ;;  %7666 = vmatpush1.bf16.msra.mxu0 %v9562_v0  ;;  %v9576_v58 = vld [vmem:[#allocation17 + $0xe4] ss:$8 sps:$4 sm:$0xff]  }
 0xbb0   : > { %7667 = vmatprep.subr.bf16.mxu0 %v9567_v38 }
 0xbb3   : > { %7668 = vmatpush1.bf16.msra.mxu0 %v9565_v19 }
 0xbb4   : > { %7669 = vmatprep.subr.bf16.mxu0 %v9570_v32 }
 0xbb5   : > { %6028 = vmatmul.mubr.bf16.gmra.mrb[88].mxu0 %v13594_v31 }
 0xbb6   : > { %6141 = vmatmul.mubr.bf16.gmra.mrb[216].mxu1 %v13594_v31  ;;  %6037 = vmatprep.mubr.bf16.mxu0 %v13610_v7  ;;  %v9582_v31 = vld [vmem:[#allocation17 + $0x104] ss:$8 sps:$4 sm:$0xff]  }
 0xbb7   : > { %6150 = vmatprep.mubr.bf16.mxu1 %v13610_v7  ;;  %7670 = vmatpush1.bf16.msra.mxu0 %v9568_v20 }
 0xbb8   : > { %7671 = vmatprep.subr.bf16.mxu0 %v9573_v26 }
 0xbbb   : > { %7672 = vmatpush1.bf16.msra.mxu0 %v9571_v50 }
 0xbbc   : > { %7673 = vmatprep.subr.bf16.mxu0 %v9576_v58 }
 0xbbd   : > { %6038 = vmatmul.mubr.bf16.gmra.mrb[92].mxu0 %v13612_v22 }
 0xbbe   : > { %6151 = vmatmul.mubr.bf16.gmra.mrb[220].mxu1 %v13612_v22 }
 0xbbf   : > { %7674 = vmatpush1.bf16.msra.mxu0 %v9574_v35 }
 0xbc0   : > { %7675 = vmatprep.subr.bf16.mxu0 %v9579_v47 }
 0xbc3   : > { %7676 = vmatpush1.bf16.msra.mxu0 %v9577_v43 }
 0xbc4   : > { %7758 = vmatprep.subr.bf16.mxu0 %v9582_v31 }
 0xc17   : > { %v5743_v61 = vpop.f32.mrb[32].mxu0  ;;  %v5856_v46 = vpop.f32.mrb[160].mxu1 }
 0xc18   : > { %v5744_v51 = vadd.f32 %v5743_v61, %v13654_v13  ;;  %v5857_v29 = vadd.f32 %v5856_v46, %v13657_v15  ;;  %v5745_v55 = vpop.f32.mrb[33].mxu0  ;;  %v5858_v2 = vpop.f32.mrb[161].mxu1 }
 0xc19   : > { %v5746_v5 = vadd.f32 %v5745_v55, %v13660_v40  ;;  %v5859_v60 = vadd.f32 %v5858_v2, %v13663_v10  ;;  %v5747_v45 = vpop.f32.mrb[34].mxu0  ;;  %v5860_v23 = vpop.f32.mrb[162].mxu1 }
 0xc1a   : > { %v6289_v59 = vmul.f32 0.70710677, %v5744_v51  ;;  %v6291_v1 = vmul.f32 0.70710677, %v5857_v29  ;;  %v5748_v27 = vadd.f32 %v5747_v45, %v13654_v13  ;;  %v5861_v48 = vadd.f32 %v5860_v23, %v13657_v15  ;;  %v5749_v33 = vpop.f32.mrb[35].mxu0  ;;  %v5862_v18 = vpop.f32.mrb[163].mxu1 }
 0xc1b   : > { %v6290_v7 = vmul.f32 0.70710677, %v5746_v5  ;;  %v6292_v22 = vmul.f32 0.70710677, %v5859_v60  ;;  %v5750_v16 = vadd.f32 %v5749_v33, %v13660_v40  ;;  %v5863_v11 = vadd.f32 %v5862_v18, %v13663_v10 }
 0xc1c   : > { %9980 = verf.f32 %v6289_v59  ;;  %v6297_v30 = vmul.f32 0.70710677, %v5748_v27  ;;  %v6299_v17 = vmul.f32 0.70710677, %v5861_v48  ;;  %v13688_v44 = vmul.f32 0.5, %v5744_v51 }
 0xc1d   : > { %9982 = verf.f32 %v6291_v1  ;;  %v6298_v52 = vmul.f32 0.70710677, %v5750_v16  ;;  %v6300_v4 = vmul.f32 0.70710677, %v5863_v11  ;;  %v13691_v3 = vmul.f32 0.5, %v5857_v29 }
 0xc1e   : > { %9984 = verf.f32 %v6290_v7  ;;  %v13695_v6 = vmul.f32 0.5, %v5746_v5  ;;  %v13698_v38 = vmul.f32 0.5, %v5859_v60  ;;  %v6169_v19 = vmul.f32 0.5, %v5748_v27 }
 0xc1f   : > { %9986 = verf.f32 %v6292_v22  ;;  %v5753_v53 = vpop.f32.mrb[36].mxu0  ;;  %v6171_v26 = vmul.f32 0.5, %v5861_v48  ;;  %v13703_v54 = vmul.f32 0.5, %v5750_v16  ;;  %v13705_v61 = vmul.f32 0.5, %v5863_v11 }
 0xc20   : > { %9988 = verf.f32 %v6297_v30  ;;  %v5754_v25 = vadd.f32 %v5753_v53, %v13654_v13  ;;  %v5866_v49 = vpop.f32.mrb[164].mxu1  ;;  %v5755_v34 = vpop.f32.mrb[37].mxu0 }
 0xc21   : > { %9990 = verf.f32 %v6299_v17  ;;  %v5867_v8 = vadd.f32 %v5866_v49, %v13657_v15  ;;  %v5756_v56 = vadd.f32 %v5755_v34, %v13660_v40  ;;  %v5868_v39 = vpop.f32.mrb[165].mxu1  ;;  %v5757_v9 = vpop.f32.mrb[38].mxu0 }
 0xc22   : > { %9992 = verf.f32 %v6298_v52  ;;  %v6305_v57 = vmul.f32 0.70710677, %v5754_v25  ;;  %v5869_v12 = vadd.f32 %v5868_v39, %v13663_v10  ;;  %v5870_v62 = vpop.f32.mrb[166].mxu1  ;;  %v5759_v0 = vpop.f32.mrb[39].mxu0  ;;  %v5758_v35 = vadd.f32 %v5757_v9, %v13654_v13 }
 0xc23   : > { %9994 = verf.f32 %v6300_v4  ;;  %v6307_v32 = vmul.f32 0.70710677, %v5867_v8  ;;  %v5872_v20 = vpop.f32.mrb[167].mxu1  ;;  %v6306_v50 = vmul.f32 0.70710677, %v5756_v56  ;;  %v5871_v47 = vadd.f32 %v5870_v62, %v13657_v15 }
 0xc24   : > { %9996 = verf.f32 %v6305_v57  ;;  %v6308_v58 = vmul.f32 0.70710677, %v5869_v12  ;;  %v5760_v43 = vadd.f32 %v5759_v0, %v13660_v40  ;;  %v13707_v46 = vmul.f32 0.5, %v5754_v25 }
 0xc25   : > { %9998 = verf.f32 %v6307_v32  ;;  %v13709_v29 = vmul.f32 0.5, %v5867_v8  ;;  %v6313_v55 = vmul.f32 0.70710677, %v5758_v35  ;;  %v5873_v2 = vadd.f32 %v5872_v20, %v13663_v10 }
 0xc26   : > { %v9981_v31 = vpop.eup %9980  ;;  %10000 = verf.f32 %v6306_v50  ;;  %v13712_v1 = vmul.f32 0.5, %v5756_v56  ;;  %v6315_v36 = vmul.f32 0.70710677, %v5871_v47  ;;  %v13714_v28 = vmul.f32 0.5, %v5869_v12 }
 0xc27   : > { %v9983_v51 = vpop.eup %9982  ;;  %10002 = verf.f32 %v6308_v58  ;;  %v6545_v23 = vadd.f32 1.0, %v9981_v31  ;;  %v13716_v27 = vmul.f32 0.5, %v5758_v35  ;;  %v6314_v48 = vmul.f32 0.70710677, %v5760_v43 }
 0xc28   : > { %v5763_v5 = vpop.f32.mrb[40].mxu0  ;;  %v5876_v60 = vpop.f32.mrb[168].mxu1  ;;  %v6547_v59 = vadd.f32 1.0, %v9983_v51  ;;  %10004 = verf.f32 %v6313_v55  ;;  %v13718_v30 = vmul.f32 0.5, %v5871_v47  ;;  %v13720_v17 = vmul.f32 0.5, %v5760_v43 }
 0xc29   : > { %v9985_v45 = vpop.eup %9984  ;;  %v5765_v7 = vpop.f32.mrb[41].mxu0  ;;  %10006 = verf.f32 %v6315_v36  ;;  %v6316_v34 = vmul.f32 0.70710677, %v5873_v2  ;;  %v13727_v39 = vmul.f32 %v6545_v23, %v13688_v44  ;;  %v5764_v12 = vadd.f32 %v5763_v5, %v13654_v13 }
 0xc2a   : > { %v9987_v22 = vpop.eup %9986  ;;  %v5878_v33 = vpop.f32.mrb[169].mxu1  ;;  %v6546_v11 = vadd.f32 1.0, %v9985_v45  ;;  %10008 = verf.f32 %v6314_v48  ;;  %v13730_v9 = vmul.f32 %v6547_v59, %v13691_v3  ;;  %v5877_v20 = vadd.f32 %v5876_v60, %v13657_v15 }
 0xc2b   : > { %v5767_v18 = vpop.f32.mrb[42].mxu0  ;;  %v9989_v16 = vpop.eup %9988  ;;  %v6548_v25 = vadd.f32 1.0, %v9987_v22  ;;  %10010 = verf.f32 %v6316_v34  ;;  %v13738_v35 = vmul.f32 0.5, %v5873_v2  ;;  %v6321_v44 = vmul.f32 0.70710677, %v5764_v12 }
 0xc2c   : > { %v5880_v52 = vpop.f32.mrb[170].mxu1  ;;  %v13722_v53 = vpop.f32.mrb[43].mxu0  ;;  %v6553_v49 = vadd.f32 1.0, %v9989_v16  ;;  %15786 = vst [vmem:[#allocation80_spill] sm:$0xff] %v13730_v9  ;;  %v5766_v47 = vadd.f32 %v5765_v7, %v13660_v40  ;;  %v13742_v43 = vmul.f32 %v6546_v11, %v13695_v6  ;;  %v13753_v45 = vmul.f32 0.5, %v5764_v12 }
 0xc2d   : > { %v9991_v4 = vpop.eup %9990  ;;  %v13724_v8 = vpop.f32.mrb[171].mxu1  ;;  %v13745_v31 = vmul.f32 %v6548_v25, %v13698_v38  ;;  %10012 = verf.f32 %v6321_v44  ;;  %v13760_v7 = vmul.f32 0.5, %v5877_v20  ;;  %v6323_v22 = vmul.f32 0.70710677, %v5877_v20 }
 0xc2e   : > { %v9993_v56 = vpop.eup %9992  ;;  %v6555_v57 = vadd.f32 1.0, %v9991_v4  ;;  %v13733_v0 = vmul.f32 %v6553_v49, %v6169_v19  ;;  %v6322_v25 = vmul.f32 0.70710677, %v5766_v47  ;;  %v5879_v49 = vadd.f32 %v5878_v33, %v13663_v10 }
 0xc2f   : > { %v9995_v62 = vpop.eup %9994  ;;  %v6554_v32 = vadd.f32 1.0, %v9993_v56  ;;  %15788 = vst [vmem:[#allocation82_spill] sm:$0xff] %v13745_v31  ;;  %10014 = verf.f32 %v6323_v22  ;;  %v5768_v12 = vadd.f32 %v5767_v18, %v13654_v13  ;;  %v13777_v44 = vmul.f32 0.5, %v5766_v47 }
 0xc30   : > { %v9997_v50 = vpop.eup %9996  ;;  %v13736_v58 = vmul.f32 %v6555_v57, %v6171_v26  ;;  %v6556_v51 = vadd.f32 1.0, %v9995_v62  ;;  %v5773_v55 = vpop.f32.mrb[44].mxu0  ;;  %v5881_v62 = vadd.f32 %v5880_v52, %v13657_v15  ;;  %10016 = verf.f32 %v6322_v25 }
 0xc31   : > { %v9999_v3 = vpop.eup %9998  ;;  %v13749_v5 = vpop.f32.mrb[172].mxu1  ;;  %v6561_v60 = vadd.f32 1.0, %v9997_v50  ;;  %v13758_v59 = vmul.f32 %v6554_v32, %v13703_v54  ;;  %v13788_v22 = vmul.f32 0.5, %v5879_v49  ;;  %v5770_v47 = vadd.f32 %v13722_v53, %v13660_v40 }
 0xc32   : > { %15787 = vst [vmem:[#allocation81_spill] sm:$0xff] %v13736_v58  ;;  %v10001_v26 = vpop.eup %10000  ;;  %v5775_v6 = vpop.f32.mrb[45].mxu0  ;;  %v6563_v36 = vadd.f32 1.0, %v9999_v3  ;;  %v13770_v54 = vmul.f32 %v6556_v51, %v13705_v61  ;;  %v6324_v61 = vmul.f32 0.70710677, %v5879_v49 }
 0xc33   : > { %v13755_v23 = vpop.f32.mrb[173].mxu1  ;;  %v10003_v38 = vpop.eup %10002  ;;  %v6562_v11 = vadd.f32 1.0, %v10001_v26  ;;  %v13775_v20 = vmul.f32 %v6561_v60, %v13707_v46  ;;  %v6329_v51 = vmul.f32 0.70710677, %v5768_v12  ;;  %v6331_v46 = vmul.f32 0.70710677, %v5881_v62 }
 0xc34   : > { %v5777_v48 = vpop.f32.mrb[46].mxu0  ;;  %v13762_v16 = vpop.f32.mrb[174].mxu1  ;;  %v6564_v4 = vadd.f32 1.0, %v10003_v38  ;;  %15789 = vst [vmem:[#allocation83_spill] sm:$0xff] %v13770_v54  ;;  %v13780_v3 = vmul.f32 %v6563_v36, %v13709_v29  ;;  %10018 = verf.f32 %v6324_v61  ;;  %v5883_v29 = vadd.f32 %v13724_v8, %v13663_v10 }
 0xc35   : > { %v13765_v34 = vpop.f32.mrb[47].mxu0  ;;  %v13767_v56 = vpop.f32.mrb[175].mxu1  ;;  %v13783_v38 = vmul.f32 %v6562_v11, %v13712_v1  ;;  %10020 = verf.f32 %v6329_v51  ;;  %v5774_v11 = vadd.f32 %v5773_v55, %v13654_v13  ;;  %v13811_v8 = vmul.f32 0.5, %v5881_v62 }
 0xc36   : > { %v10005_v57 = vpop.eup %10004  ;;  %15790 = vst [vmem:[#allocation84_spill] sm:$0xff] %v13780_v3  ;;  %v13786_v18 = vmul.f32 %v6564_v4, %v13714_v28  ;;  %v13801_v28 = vmul.f32 0.5, %v5768_v12  ;;  %10022 = verf.f32 %v6331_v46  ;;  %v5776_v62 = vadd.f32 %v5775_v6, %v13660_v40  ;;  %v9585_v6 = vld [vmem:[#allocation17 + $0x114] ss:$8 sps:$4 sm:$0xff]  }
 0xc37   : > { %v10007_v32 = vpop.eup %10006  ;;  %v6569_v50 = vadd.f32 1.0, %v10005_v57  ;;  %v6330_v57 = vmul.f32 0.70710677, %v5770_v47  ;;  %v6337_v61 = vmul.f32 0.70710677, %v5774_v11  ;;  %v5889_v46 = vadd.f32 %v13755_v23, %v13663_v10 }
 0xc38   : > { %v10009_v33 = vpop.eup %10008  ;;  %v6571_v26 = vadd.f32 1.0, %v10007_v32  ;;  %15791 = vst [vmem:[#allocation85_spill] sm:$0xff] %v13786_v18  ;;  %v13794_v36 = vpop.f32.mrb[48].mxu0  ;;  %v13842_v14 = vmul.f32 0.5, %v5774_v11  ;;  %v5891_v11 = vadd.f32 %v13762_v16, %v13657_v15 }
 0xc39   : > { %v6570_v52 = vadd.f32 1.0, %v10009_v33  ;;  %v10011_v60 = vpop.eup %10010  ;;  %v13796_v25 = vpop.f32.mrb[176].mxu1  ;;  %v13799_v1 = vmul.f32 %v6569_v50, %v13716_v27  ;;  %v6332_v33 = vmul.f32 0.70710677, %v5883_v29  ;;  %10024 = verf.f32 %v6330_v57 }
 0xc3a   : > { %v13804_v4 = vpop.f32.mrb[49].mxu0  ;;  %v13806_v49 = vpop.f32.mrb[177].mxu1  ;;  %v13809_v53 = vmul.f32 %v6571_v26, %v13718_v30  ;;  %v6572_v55 = vadd.f32 1.0, %v10011_v60  ;;  %v5887_v30 = vadd.f32 %v13749_v5, %v13657_v15  ;;  %v5778_v60 = vadd.f32 %v5777_v48, %v13654_v13 }
 0xc3b   : > { %v13813_v32 = vpop.f32.mrb[50].mxu0  ;;  %v13815_v27 = vpop.f32.mrb[178].mxu1  ;;  %v13818_v50 = vmul.f32 %v6570_v52, %v13720_v17  ;;  %10026 = verf.f32 %v6332_v33  ;;  %v6802_v17 = vpack.c.bf16 %v13758_v59, %v13742_v43  ;;  %v9580_v52 = vld [vmem:[#allocation17 + $0x100] ss:$8 sps:$4 sm:$0xff]   ;;  %v13834_v57 = vmul.f32 0.5, %v5883_v29 }
 0xc3c   : > { %15792 = vst [vmem:[#allocation86_spill] sm:$0xff] %v13809_v53  ;;  %v10013_v12 = vpop.eup %10012  ;;  %v13820_v51 = vpop.f32.mrb[51].mxu0  ;;  %10028 = verf.f32 %v6337_v61  ;;  %v6339_v5 = vmul.f32 0.70710677, %v5887_v30  ;;  %v13837_v33 = vmul.f32 %v6572_v55, %v13738_v35  ;;  %v6338_v43 = vmul.f32 0.70710677, %v5776_v62 }
 0xc3d   : > { %v6577_v2 = vadd.f32 1.0, %v10013_v12  ;;  %v13825_v26 = vpop.f32.mrb[179].mxu1  ;;  %v10015_v19 = vpop.eup %10014  ;;  %v13832_v12 = vmul.f32 0.5, %v5770_v47  ;;  %7677 = vmatprep.mubr.bf16.mxu0 %v6802_v17  ;;  %v9583_v59 = vld [vmem:[#allocation17 + $0x110] ss:$8 sps:$4 sm:$0xff]   ;;  %v13844_v47 = vmul.f32 0.5, %v5887_v30  ;;  %v15794_v61 = vpack.c.bf16 %v13733_v0, %v13727_v39 }
 0xc3e   : > { %v10017_v42 = vpop.eup %10016  ;;  %15793 = vst [vmem:[#allocation87_spill] sm:$0xff] %v13837_v33  ;;  %v6579_v48 = vadd.f32 1.0, %v10015_v19  ;;  %10030 = verf.f32 %v6339_v5  ;;  %v6340_v29 = vmul.f32 0.70710677, %v5889_v46  ;;  %v13859_v17 = vmul.f32 0.5, %v5776_v62 }
 0xc3f   : > { %v13840_v23 = vmul.f32 %v6577_v2, %v13753_v45  ;;  %7678 = vmatmul.mubr.bf16.vlgmr.msra.gmra.mrb[96].mxu0 %v15794_v61  ;;  %v6578_v2 = vadd.f32 1.0, %v10017_v42  ;;  %10032 = verf.f32 %v6338_v43  ;;  %v6345_v45 = vmul.f32 0.70710677, %v5778_v60  ;;  %v10019_v30 = vpop.eup %10018  ;;  %v9588_v0 = vld [vmem:[#allocation17 + $0x124] ss:$8 sps:$4 sm:$0xff]  }
 0xc40   : > { %v13849_v24 = vpop.f32.mrb[52].mxu0  ;;  %v13851_v35 = vpop.f32.mrb[180].mxu1  ;;  %7759 = vmatpush1.bf16.msra.mxu0 %v9580_v52  ;;  %10034 = verf.f32 %v6340_v29  ;;  %v5780_v39 = vadd.f32 %v13765_v34, %v13660_v40  ;;  %v5893_v42 = vadd.f32 %v13767_v56, %v13663_v10  ;;  %v13869_v43 = vmul.f32 0.5, %v5889_v46 }
 0xc41   : > { %v13855_v19 = vpop.f32.mrb[53].mxu0  ;;  %v13857_v55 = vpop.f32.mrb[181].mxu1  ;;  %7760 = vmatprep.subr.bf16.mxu0 %v9585_v6  ;;  %v13871_v61 = vmul.f32 0.5, %v5778_v60  ;;  %10036 = verf.f32 %v6345_v45  ;;  %v6347_v62 = vmul.f32 0.70710677, %v5891_v11  ;;  %v13878_v56 = vmul.f32 %v6579_v48, %v13760_v7 }
 0xc42   : > { %v13865_v5 = vpop.f32.mrb[54].mxu0  ;;  %v13867_v16 = vpop.f32.mrb[182].mxu1  ;;  %v6580_v6 = vadd.f32 1.0, %v10019_v30  ;;  %v6346_v33 = vmul.f32 0.70710677, %v5780_v39  ;;  %v13881_v18 = vmul.f32 %v6578_v2, %v13777_v44  ;;  %v13883_v58 = vmul.f32 0.5, %v5891_v11 }
 0xc43   : > { %v10021_v52 = vpop.eup %10020  ;;  %v13873_v29 = vpop.f32.mrb[55].mxu0  ;;  %15795 = vst [vmem:[#allocation88_spill] sm:$0xff] %v13878_v56  ;;  %10038 = verf.f32 %v6347_v62  ;;  %v6348_v60 = vmul.f32 0.70710677, %v5893_v42  ;;  %v9586_v45 = vld [vmem:[#allocation17 + $0x120] ss:$8 sps:$4 sm:$0xff]   ;;  %v5784_v54 = vadd.f32 %v13794_v36, %v13654_v13  ;;  %v5897_v7 = vadd.f32 %v13796_v25, %v13657_v15 }
 0xc44   : > { %v13875_v53 = vpop.f32.mrb[183].mxu1  ;;  %v10023_v34 = vpop.eup %10022  ;;  %v6585_v3 = vadd.f32 1.0, %v10021_v52  ;;  %7761 = vmatpush1.bf16.msra.mxu0 %v9583_v59  ;;  %10040 = verf.f32 %v6346_v33  ;;  %v9591_v48 = vld [vmem:[#allocation17 + $0x134] ss:$8 sps:$4 sm:$0xff]   ;;  %v13889_v44 = vmul.f32 0.5, %v5780_v39  ;;  %v13891_v2 = vmul.f32 0.5, %v5893_v42 }
 0xc45   : > { %v6587_v46 = vadd.f32 1.0, %v10023_v34  ;;  %v10025_v9 = vpop.eup %10024  ;;  %7762 = vmatprep.subr.bf16.mxu0 %v9588_v0  ;;  %10042 = verf.f32 %v6348_v60  ;;  %v5786_v59 = vadd.f32 %v13804_v4, %v13660_v40  ;;  %v9589_v11 = vld [vmem:[#allocation17 + $0x130] ss:$8 sps:$4 sm:$0xff]   ;;  %v13896_v33 = vmul.f32 %v6580_v6, %v13788_v22  ;;  %v9594_v62 = vld [vmem:[#allocation17 + $0x144] ss:$8 sps:$4 sm:$0xff]  }
 0xc46   : > { %v10027_v30 = vpop.eup %10026  ;;  %v13899_v36 = vmul.f32 %v6585_v3, %v13801_v28  ;;  %v6586_v25 = vadd.f32 1.0, %v10025_v9  ;;  %v6353_v0 = vmul.f32 0.70710677, %v5784_v54  ;;  %v13906_v60 = vmul.f32 0.5, %v5784_v54 }
 0xc47   : > { %v10029_v52 = vpop.eup %10028  ;;  %15796 = vst [vmem:[#allocation89_spill] sm:$0xff] %v13896_v33  ;;  %v13904_v39 = vmul.f32 %v6587_v46, %v13811_v8  ;;  %v6588_v42 = vadd.f32 1.0, %v10027_v30  ;;  %v6355_v4 = vmul.f32 0.70710677, %v5897_v7  ;;  %v6354_v9 = vmul.f32 0.70710677, %v5786_v59 }
 0xc48   : > { %v13901_v34 = vpop.f32.mrb[56].mxu0  ;;  %7763 = vmatpush1.bf16.msra.mxu0 %v9586_v45  ;;  %v13908_v56 = vpop.f32.mrb[184].mxu1  ;;  %v6593_v3 = vadd.f32 1.0, %v10029_v52  ;;  %10044 = verf.f32 %v6353_v0  ;;  %v5899_v28 = vadd.f32 %v13806_v49, %v13663_v10  ;;  %v13918_v30 = vmul.f32 0.5, %v5897_v7 }
 0xc49   : > { %15797 = vst [vmem:[#allocation90_spill] sm:$0xff] %v13904_v39  ;;  %v13910_v22 = vpop.f32.mrb[57].mxu0  ;;  %v10031_v6 = vpop.eup %10030  ;;  %7764 = vmatprep.subr.bf16.mxu0 %v9591_v48  ;;  %10046 = verf.f32 %v6355_v4  ;;  %v6810_v45 = vpack.c.bf16 %v13818_v50, %v13783_v38  ;;  %v13927_v49 = vmul.f32 %v6586_v25, %v13832_v12  ;;  %v13931_v41 = vmul.f32 0.5, %v5786_v59  ;;  %v9592_v4 = vld [vmem:[#allocation17 + $0x140] ss:$8 sps:$4 sm:$0xff]  }
 0xc4a   : > { %v13914_v33 = vpop.f32.mrb[185].mxu1  ;;  %v13916_v8 = vpop.f32.mrb[58].mxu0  ;;  %v6595_v46 = vadd.f32 1.0, %v10031_v6  ;;  %10048 = verf.f32 %v6354_v9  ;;  %v6356_v31 = vmul.f32 0.70710677, %v5899_v28  ;;  %v5788_v38 = vadd.f32 %v13813_v32, %v13654_v13 }
 0xc4b   : > { %v10033_v54 = vpop.eup %10032  ;;  %v13922_v39 = vpop.f32.mrb[186].mxu1  ;;  %7687 = vmatprep.mubr.bf16.mxu0 %v6810_v45  ;;  %v5901_v50 = vadd.f32 %v13815_v27, %v13657_v15  ;;  %v13938_v12 = vmul.f32 %v6588_v42, %v13834_v57  ;;  %v13941_v25 = vmul.f32 %v6593_v3, %v13842_v14  ;;  %v6809_v59 = vpack.c.bf16 %v13799_v1, %v13775_v20  ;;  %v9597_v9 = vld [vmem:[#allocation17 + $0x154] ss:$8 sps:$4 sm:$0xff]  }
 0xc4c   : > { %v13924_v52 = vpop.f32.mrb[59].mxu0  ;;  %v10035_v0 = vpop.eup %10034  ;;  %v6594_v48 = vadd.f32 1.0, %v10033_v54  ;;  %7765 = vmatpush1.bf16.msra.mxu0 %v9589_v11  ;;  %10050 = verf.f32 %v6356_v31  ;;  %v13946_v32 = vmul.f32 %v6595_v46, %v13844_v47  ;;  %v13948_v27 = vmul.f32 0.5, %v5899_v28  ;;  %v9595_v28 = vld [vmem:[#allocation17 + $0x150] ss:$8 sps:$4 sm:$0xff]  }
 0xc4d   : > { %v13929_v63 = vpop.f32.mrb[187].mxu1  ;;  %v10037_v6 = vpop.eup %10036  ;;  %v6596_v7 = vadd.f32 1.0, %v10035_v0  ;;  %15798 = vst [vmem:[#allocation38_spill] sm:$0xff] %v13938_v12  ;;  %7766 = vmatprep.subr.bf16.mxu0 %v9594_v62  ;;  %v6361_v11 = vmul.f32 0.70710677, %v5788_v38  ;;  %7688 = vmatmul.mubr.bf16.gmra.mrb[100].mxu0 %v6809_v59  ;;  %v5790_v31 = vadd.f32 %v13820_v51, %v13660_v40  ;;  %v5903_v3 = vadd.f32 %v13825_v26, %v13663_v10 }
 0xc4e   : > { %v10039_v54 = vpop.eup %10038  ;;  %15799 = vst [vmem:[#allocation39_spill] sm:$0xff] %v13946_v32  ;;  %v6601_v45 = vadd.f32 1.0, %v10037_v6  ;;  %v13951_v57 = vmul.f32 %v6594_v48, %v13859_v17  ;;  %v6363_v42 = vmul.f32 0.70710677, %v5901_v50  ;;  %v5794_v17 = vadd.f32 %v13849_v24, %v13654_v13  ;;  %v9600_v46 = vld [vmem:[#allocation17 + $0x164] ss:$8 sps:$4 sm:$0xff]  }
 0xc4f   : > { %v10041_v0 = vpop.eup %10040  ;;  %v6603_v14 = vadd.f32 1.0, %v10039_v54  ;;  %v13960_v62 = vmul.f32 %v6596_v7, %v13869_v43  ;;  %10052 = verf.f32 %v6361_v11  ;;  %v13970_v59 = vmul.f32 0.5, %v5788_v38 }
 0xc50   : > { %v13955_v20 = vpop.f32.mrb[60].mxu0  ;;  %v13957_v1 = vpop.f32.mrb[188].mxu1  ;;  %7767 = vmatpush1.bf16.msra.mxu0 %v9592_v4  ;;  %v6602_v6 = vadd.f32 1.0, %v10041_v0  ;;  %v13972_v54 = vmul.f32 0.5, %v5901_v50  ;;  %10054 = verf.f32 %v6363_v42  ;;  %v13979_v24 = vmul.f32 %v6601_v45, %v13871_v61 }
 0xc51   : > { %v10043_v47 = vpop.eup %10042  ;;  %15800 = vst [vmem:[#allocation109_spill] sm:$0xff] %v13960_v62  ;;  %v13966_v48 = vpop.f32.mrb[61].mxu0  ;;  %7768 = vmatprep.subr.bf16.mxu0 %v9597_v9  ;;  %v6362_v4 = vmul.f32 0.70710677, %v5790_v31  ;;  %v6364_v11 = vmul.f32 0.70710677, %v5903_v3  ;;  %v13984_v38 = vmul.f32 %v6603_v14, %v13883_v58  ;;  %v5907_v9 = vadd.f32 %v13851_v35, %v13657_v15 }
 0xc52   : > { %v13968_v51 = vpop.f32.mrb[189].mxu1  ;;  %v13974_v43 = vpop.f32.mrb[62].mxu0  ;;  %v6604_v7 = vadd.f32 1.0, %v10043_v47  ;;  %v13986_v50 = vmul.f32 0.5, %v5790_v31  ;;  %v6369_v0 = vmul.f32 0.70710677, %v5794_v17  ;;  %v5796_v45 = vadd.f32 %v13855_v19, %v13660_v40 }
 0xc53   : > { %v13976_v26 = vpop.f32.mrb[190].mxu1  ;;  %v13981_v32 = vpop.f32.mrb[63].mxu0  ;;  %15801 = vst [vmem:[#allocation110_spill] sm:$0xff] %v13984_v38  ;;  %10056 = verf.f32 %v6362_v4  ;;  %v5909_v47 = vadd.f32 %v13857_v55, %v13663_v10  ;;  %v9598_v58 = vld [vmem:[#allocation17 + $0x160] ss:$8 sps:$4 sm:$0xff]   ;;  %v13997_v31 = vmul.f32 %v6602_v6, %v13889_v44  ;;  %v13999_v38 = vmul.f32 0.5, %v5903_v3 }
 0xc54   : > { %v10045_v62 = vpop.eup %10044  ;;  %v13990_v42 = vpop.f32.mrb[191].mxu1  ;;  %7769 = vmatpush1.bf16.msra.mxu0 %v9595_v28  ;;  %10058 = verf.f32 %v6364_v11  ;;  %v6371_v35 = vmul.f32 0.70710677, %v5907_v9  ;;  %v14004_v19 = vmul.f32 0.5, %v5794_v17  ;;  %v9601_v55 = vld [vmem:[#allocation17 + $0x170] ss:$8 sps:$4 sm:$0xff]  }
 0xc55   : > { %15802 = vst [vmem:[#allocation111_spill] sm:$0xff] %v13990_v42  ;;  %v10047_v12 = vpop.eup %10046  ;;  %v6609_v61 = vadd.f32 1.0, %v10045_v62  ;;  %7770 = vmatprep.subr.bf16.mxu0 %v9600_v46  ;;  %v14002_v62 = vmul.f32 %v6604_v7, %v13891_v2  ;;  %10060 = verf.f32 %v6369_v0  ;;  %v14006_v42 = vmul.f32 0.5, %v5907_v9  ;;  %v9606_v9 = vld [vmem:[#allocation17 + $0x184] ss:$8 sps:$4 sm:$0xff]  }
 0xc56   : > { %v10049_v14 = vpop.eup %10048  ;;  %v6611_v4 = vadd.f32 1.0, %v10047_v12  ;;  %10062 = verf.f32 %v6371_v35  ;;  %v6370_v44 = vmul.f32 0.70710677, %v5796_v45  ;;  %v6372_v11 = vmul.f32 0.70710677, %v5909_v47 }
 0xc57   : > { %15803 = vst [vmem:[#allocation112_spill] sm:$0xff] %v14002_v62  ;;  %v10051_v28 = vpop.eup %10050  ;;  %v6610_v21 = vadd.f32 1.0, %v10049_v14  ;;  %v14011_v6 = vmul.f32 %v6609_v61, %v13906_v60  ;;  %v6818_v2 = vpack.c.bf16 %v13927_v49, %v13881_v18  ;;  %v5798_v7 = vadd.f32 %v13865_v5, %v13654_v13 }
 0xc58   : > { %v14008_v3 = vpop.f32.mrb[64].mxu0  ;;  %v6612_v46 = vadd.f32 1.0, %v10051_v28  ;;  %7771 = vmatpush1.bf16.msra.mxu0 %v9598_v58  ;;  %10064 = verf.f32 %v6370_v44  ;;  %v5911_v0 = vadd.f32 %v13867_v16, %v13657_v15  ;;  %v6817_v60 = vpack.c.bf16 %v13899_v36, %v13840_v23  ;;  %v9604_v44 = vld [vmem:[#allocation17 + $0x180] ss:$8 sps:$4 sm:$0xff]  }
 0xc59   : > { %v14015_v12 = vpop.f32.mrb[192].mxu1  ;;  %v14017_v17 = vpop.f32.mrb[65].mxu0  ;;  %7772 = vmatprep.subr.bf16.mxu0 %v9603_v37  ;;  %v14029_v58 = vmul.f32 0.5, %v5796_v45  ;;  %10066 = verf.f32 %v6372_v11  ;;  %7697 = vmatprep.mubr.bf16.mxu0 %v6818_v2  ;;  %v5800_v5 = vadd.f32 %v13873_v29, %v13660_v40  ;;  %v5913_v16 = vadd.f32 %v13875_v53, %v13663_v10 }
 0xc5a   : > { %v14025_v61 = vpop.f32.mrb[193].mxu1  ;;  %v14027_v18 = vpop.f32.mrb[66].mxu0  ;;  %v14040_v36 = vmul.f32 %v6611_v4, %v13918_v30  ;;  %v14043_v35 = vmul.f32 %v6610_v21, %v13931_v41  ;;  %v14045_v45 = vmul.f32 0.5, %v5909_v47  ;;  %v6377_v28 = vmul.f32 0.70710677, %v5798_v7  ;;  %7698 = vmatmul.mubr.bf16.gmra.mrb[104].mxu0 %v6817_v60 }
 0xc5b   : > { %v10053_v49 = vpop.eup %10052  ;;  %v14035_v14 = vpop.f32.mrb[194].mxu1  ;;  %v14050_v53 = vmul.f32 %v6612_v46, %v13948_v27  ;;  %v6379_v2 = vmul.f32 0.70710677, %v5911_v0  ;;  %v6378_v62 = vmul.f32 0.70710677, %v5800_v5  ;;  %v14052_v30 = vmul.f32 0.5, %v5798_v7 }
 0xc5c   : > { %v14037_v23 = vpop.f32.mrb[67].mxu0  ;;  %v10055_v37 = vpop.eup %10054  ;;  %15805 = vst [vmem:[#allocation114_spill] sm:$0xff] %v14040_v36  ;;  %v6617_v11 = vadd.f32 1.0, %v10053_v49  ;;  %7773 = vmatpush1.bf16.msra.mxu0 %v9601_v55  ;;  %10068 = verf.f32 %v6377_v28  ;;  %v6380_v21 = vmul.f32 0.70710677, %v5913_v16  ;;  %v14054_v4 = vmul.f32 0.5, %v5911_v0 }
 0xc5d   : > { %15804 = vst [vmem:[#allocation113_spill] sm:$0xff] %v14037_v23  ;;  %v14047_v29 = vpop.f32.mrb[195].mxu1  ;;  %15806 = vst [vmem:[#allocation115_spill] sm:$0xff] %v14050_v53  ;;  %v6619_v23 = vadd.f32 1.0, %v10055_v37  ;;  %7774 = vmatprep.subr.bf16.mxu0 %v9606_v9  ;;  %v9609_v41 = vld [vmem:[#allocation17 + $0x194] ss:$8 sps:$4 sm:$0xff]   ;;  %v10057_v47 = vpop.eup %10056  ;;  %10070 = verf.f32 %v6379_v2  ;;  %v5804_v60 = vadd.f32 %v13901_v34, %v13654_v13  ;;  %v5917_v27 = vadd.f32 %v13908_v56, %v13657_v15 }
 0xc5e   : > { %v9607_v46 = vld [vmem:[#allocation17 + $0x190] ss:$8 sps:$4 sm:$0xff]   ;;  %v10059_v49 = vpop.eup %10058  ;;  %v6618_v55 = vadd.f32 1.0, %v10057_v47  ;;  %v14060_v37 = vmul.f32 0.5, %v5800_v5  ;;  %10072 = verf.f32 %v6378_v62  ;;  %v5806_v7 = vadd.f32 %v13910_v22, %v13660_v40  ;;  %v9612_v9 = vld [vmem:[#allocation17 + $0x1a4] ss:$8 sps:$4 sm:$0xff]  }
 0xc5f   : > { %v10061_v0 = vpop.eup %10060  ;;  %v6620_v2 = vadd.f32 1.0, %v10059_v49  ;;  %10074 = verf.f32 %v6380_v21  ;;  %v6385_v36 = vmul.f32 0.70710677, %v5804_v60  ;;  %v5919_v34 = vadd.f32 %v13914_v33, %v13663_v10 }
 0xc60   : > { %v14064_v28 = vpop.f32.mrb[68].mxu0  ;;  %7775 = vmatpush1.bf16.msra.mxu0 %v9604_v44  ;;  %v10063_v5 = vpop.eup %10062  ;;  %v14073_v62 = vmul.f32 %v6617_v11, %v13970_v59  ;;  %v14076_v22 = vmul.f32 %v6619_v23, %v13972_v54  ;;  %v14078_v53 = vmul.f32 0.5, %v5913_v16  ;;  %v6387_v49 = vmul.f32 0.70710677, %v5917_v27 }
 0xc61   : > { %15807 = vst [vmem:[#allocation116_spill] sm:$0xff] %v14064_v28  ;;  %v14068_v56 = vpop.f32.mrb[196].mxu1  ;;  %v14070_v47 = vpop.f32.mrb[69].mxu0  ;;  %7776 = vmatprep.subr.bf16.mxu0 %v9609_v41  ;;  %v14085_v33 = vmul.f32 %v6618_v55, %v13986_v50  ;;  %v6625_v44 = vadd.f32 1.0, %v10061_v0  ;;  %10076 = verf.f32 %v6385_v36  ;;  %v6627_v16 = vadd.f32 1.0, %v10063_v5 }
 0xc62   : > { %15808 = vst [vmem:[#allocation117_spill] sm:$0xff] %v14070_v47  ;;  %15809 = vst [vmem:[#allocation118_spill] sm:$0xff] %v14076_v22  ;;  %v14080_v21 = vpop.f32.mrb[197].mxu1  ;;  %v14082_v28 = vpop.f32.mrb[70].mxu0  ;;  %v14087_v47 = vmul.f32 0.5, %v5804_v60  ;;  %v14093_v23 = vmul.f32 0.5, %v5917_v27  ;;  %10078 = verf.f32 %v6387_v49  ;;  %v14098_v50 = vmul.f32 %v6620_v2, %v13999_v38 }
 0xc63   : > { %15810 = vst [vmem:[#allocation119_spill] sm:$0xff] %v14082_v28  ;;  %v14089_v59 = vpop.f32.mrb[198].mxu1  ;;  %v14091_v11 = vpop.f32.mrb[71].mxu0  ;;  %v6386_v41 = vmul.f32 0.70710677, %v5806_v7  ;;  %v6826_v36 = vpack.c.bf16 %v13997_v31, %v13951_v57  ;;  %v14102_v0 = vmul.f32 0.5, %v5806_v7  ;;  %v5808_v27 = vadd.f32 %v13916_v8, %v13654_v13 }
 0xc64   : > { %v10065_v54 = vpop.eup %10064  ;;  %v14095_v22 = vpop.f32.mrb[199].mxu1  ;;  %15812 = vst [vmem:[#allocation121_spill] sm:$0xff] %v14098_v50  ;;  %v6388_v60 = vmul.f32 0.70710677, %v5919_v34  ;;  %7777 = vmatpush1.bf16.msra.mxu0 %v9607_v46  ;;  %v5921_v5 = vadd.f32 %v13922_v39, %v13657_v15  ;;  %v9610_v49 = vld [vmem:[#allocation17 + $0x1a0] ss:$8 sps:$4 sm:$0xff]   ;;  %v6825_v38 = vpack.c.bf16 %v13979_v24, %v13941_v25  ;;  %v5810_v57 = vadd.f32 %v13924_v52, %v13660_v40 }
 0xc65   : > { %15811 = vst [vmem:[#allocation120_spill] sm:$0xff] %v14095_v22  ;;  %v10067_v28 = vpop.eup %10066  ;;  %v6626_v55 = vadd.f32 1.0, %v10065_v54  ;;  %10080 = verf.f32 %v6386_v41  ;;  %7778 = vmatprep.subr.bf16.mxu0 %v9612_v9  ;;  %7707 = vmatprep.mubr.bf16.mxu0 %v6826_v36  ;;  %v9615_v31 = vld [vmem:[#allocation17 + $0x1b4] ss:$8 sps:$4 sm:$0xff]   ;;  %v14113_v7 = vmul.f32 %v6625_v44, %v14004_v19  ;;  %v14116_v8 = vmul.f32 %v6627_v16, %v14006_v42 }
 0xc66   : > { %v6628_v22 = vadd.f32 1.0, %v10067_v28  ;;  %10082 = verf.f32 %v6388_v60  ;;  %v10069_v46 = vpop.eup %10068  ;;  %v14118_v39 = vmul.f32 0.5, %v5919_v34  ;;  %v6393_v9 = vmul.f32 0.70710677, %v5808_v27  ;;  %7708 = vmatmul.mubr.bf16.gmra.mrb[108].mxu0 %v6825_v38  ;;  %v9613_v34 = vld [vmem:[#allocation17 + $0x1b0] ss:$8 sps:$4 sm:$0xff]  }
 0xc67   : > { %15813 = vst [vmem:[#allocation122_spill] sm:$0xff] %v14116_v8  ;;  %v10071_v2 = vpop.eup %10070  ;;  %v14123_v54 = vmul.f32 %v6626_v55, %v14029_v58  ;;  %v6633_v25 = vadd.f32 1.0, %v10069_v46  ;;  %v6395_v24 = vmul.f32 0.70710677, %v5921_v5  ;;  %v6394_v52 = vmul.f32 0.70710677, %v5810_v57 }
 0xc68   : > { %v14120_v28 = vpop.f32.mrb[72].mxu0  ;;  %v10073_v41 = vpop.eup %10072  ;;  %v6635_v60 = vadd.f32 1.0, %v10071_v2  ;;  %10084 = verf.f32 %v6393_v9  ;;  %v5923_v42 = vadd.f32 %v13929_v63, %v13663_v10  ;;  %v5814_v19 = vadd.f32 %v13955_v20, %v13654_v13  ;;  %7779 = vmatpush1.bf16.msra.mxu0 %v9610_v49  ;;  %v9618_v63 = vld [vmem:[#allocation17 + $0x1c4] ss:$8 sps:$4 sm:$0xff]  }
 0xc69   : > { %v14129_v44 = vpop.f32.mrb[200].mxu1  ;;  %v14131_v16 = vpop.f32.mrb[73].mxu0  ;;  %v14134_v55 = vmul.f32 %v6628_v22, %v14045_v45  ;;  %v14136_v36 = vmul.f32 0.5, %v5808_v27  ;;  %10086 = verf.f32 %v6395_v24  ;;  %v5927_v38 = vadd.f32 %v13957_v1, %v13657_v15  ;;  %7780 = vmatprep.subr.bf16.mxu0 %v9615_v31 }
 0xc6a   : > { %v10075_v58 = vpop.eup %10074  ;;  %v14140_v46 = vpop.f32.mrb[201].mxu1  ;;  %v6634_v49 = vadd.f32 1.0, %v10073_v41  ;;  %v14144_v9 = vmul.f32 0.5, %v5921_v5  ;;  %v14146_v2 = vmul.f32 0.5, %v5810_v57  ;;  %10088 = verf.f32 %v6394_v52 }
 0xc6b   : > { %15814 = vst [vmem:[#allocation123_spill] sm:$0xff] %v14134_v55  ;;  %v14142_v20 = vpop.f32.mrb[74].mxu0  ;;  %v14148_v45 = vpop.f32.mrb[202].mxu1  ;;  %v14153_v24 = vmul.f32 %v6633_v25, %v14052_v30  ;;  %v6636_v1 = vadd.f32 1.0, %v10075_v58  ;;  %v6396_v31 = vmul.f32 0.70710677, %v5923_v42  ;;  %v14158_v5 = vmul.f32 %v6635_v60, %v14054_v4 }
 0xc6c   : > { %15815 = vst [vmem:[#allocation124_spill] sm:$0xff] %v14148_v45  ;;  %v14150_v22 = vpop.f32.mrb[75].mxu0  ;;  %v10077_v27 = vpop.eup %10076  ;;  %v6401_v8 = vmul.f32 0.70710677, %v5814_v19  ;;  %v14160_v41 = vmul.f32 0.5, %v5923_v42  ;;  %7781 = vmatpush1.bf16.msra.mxu0 %v9613_v34  ;;  %v5816_v30 = vadd.f32 %v13966_v48, %v13660_v40  ;;  %v5929_v25 = vadd.f32 %v13968_v51, %v13663_v10 }
 0xc6d   : > { %15816 = vst [vmem:[#allocation125_spill] sm:$0xff] %v14150_v22  ;;  %v14155_v55 = vpop.f32.mrb[203].mxu1  ;;  %v10079_v50 = vpop.eup %10078  ;;  %15818 = vst [vmem:[#allocation127_spill] sm:$0xff] %v14158_v5  ;;  %v6641_v57 = vadd.f32 1.0, %v10077_v27  ;;  %v6403_v52 = vmul.f32 0.70710677, %v5927_v38  ;;  %10090 = verf.f32 %v6396_v31  ;;  %7782 = vmatprep.subr.bf16.mxu0 %v9618_v63  ;;  %v14167_v4 = vmul.f32 %v6634_v49, %v14060_v37 }
 0xc6e   : > { %15817 = vst [vmem:[#allocation126_spill] sm:$0xff] %v14155_v55  ;;  %v9616_v45 = vld [vmem:[#allocation17 + $0x1c0] ss:$8 sps:$4 sm:$0xff]   ;;  %v6643_v22 = vadd.f32 1.0, %v10079_v50  ;;  %v9621_v58 = vld [vmem:[#allocation17 + $0x1d4] ss:$8 sps:$4 sm:$0xff]   ;;  %10092 = verf.f32 %v6401_v8  ;;  %v6834_v60 = vpack.c.bf16 %v14085_v33, %v14043_v35  ;;  %v5818_v50 = vadd.f32 %v13974_v43, %v13654_v13 }
 0xc6f   : > { %v10081_v55 = vpop.eup %10080  ;;  %v14176_v48 = vmul.f32 %v6636_v1, %v14078_v53  ;;  %v14178_v63 = vmul.f32 0.5, %v5814_v19  ;;  %10094 = verf.f32 %v6403_v52  ;;  %v9619_v27 = vld [vmem:[#allocation17 + $0x1d0] ss:$8 sps:$4 sm:$0xff]   ;;  %v14185_v35 = vmul.f32 %v6641_v57, %v14087_v47  ;;  %v9630_v5 = vld [vmem:[#allocation17 + $0x204] ss:$8 sps:$4 sm:$0xff]  }
 0xc70   : > { %v14173_v42 = vpop.f32.mrb[76].mxu0  ;;  %v10083_v34 = vpop.eup %10082  ;;  %v6642_v51 = vadd.f32 1.0, %v10081_v55  ;;  %v14187_v33 = vmul.f32 0.5, %v5927_v38  ;;  %v6402_v13 = vmul.f32 0.70710677, %v5816_v30  ;;  %7717 = vmatprep.mubr.bf16.mxu0 %v6834_v60  ;;  %7783 = vmatpush1.bf16.msra.mxu0 %v9616_v45  ;;  %v14190_v53 = vmul.f32 %v6643_v22, %v14093_v23 }
 0xc71   : > { %15819 = vst [vmem:[#allocation128_spill] sm:$0xff] %v14176_v48  ;;  %v14180_v37 = vpop.f32.mrb[204].mxu1  ;;  %v14182_v8 = vpop.f32.mrb[77].mxu0  ;;  %v6404_v43 = vmul.f32 0.70710677, %v5929_v25  ;;  %v14192_v19 = vmul.f32 0.5, %v5816_v30  ;;  %v5931_v49 = vadd.f32 %v13976_v26, %v13657_v15  ;;  %7784 = vmatprep.subr.bf16.mxu0 %v9621_v58  ;;  %v6833_v45 = vpack.c.bf16 %v14073_v62, %v14011_v6 }
 0xc72   : > { %15820 = vst [vmem:[#allocation129_spill] sm:$0xff] %v14190_v53  ;;  %v6409_v55 = vmul.f32 0.70710677, %v5818_v50  ;;  %v14196_v1 = vpop.f32.mrb[205].mxu1  ;;  %v14198_v47 = vpop.f32.mrb[78].mxu0  ;;  %v6644_v31 = vadd.f32 1.0, %v10083_v34  ;;  %10096 = verf.f32 %v6402_v13  ;;  %v5820_v23 = vadd.f32 %v13981_v32, %v13660_v40 }
 0xc73   : > { %v10085_v38 = vpop.eup %10084  ;;  %v9624_v22 = vld [vmem:[#allocation17 + $0x1e4] ss:$8 sps:$4 sm:$0xff]   ;;  %v14204_v57 = vpop.f32.mrb[206].mxu1  ;;  %v14209_v26 = vmul.f32 %v6642_v51, %v14102_v0  ;;  %v14211_v30 = vmul.f32 0.5, %v5929_v25  ;;  %10098 = verf.f32 %v6404_v43  ;;  %v6411_v58 = vmul.f32 0.70710677, %v5931_v49  ;;  %7718 = vmatmul.mubr.bf16.gmra.mrb[112].mxu0 %v6833_v45 }
 0xc74   : > { %v14206_v52 = vpop.f32.mrb[79].mxu0  ;;  %v10087_v15 = vpop.eup %10086  ;;  %v6649_v6 = vadd.f32 1.0, %v10085_v38  ;;  %10100 = verf.f32 %v6409_v55  ;;  %v6410_v40 = vmul.f32 0.70710677, %v5820_v23  ;;  %v14215_v13 = vmul.f32 0.5, %v5818_v50  ;;  %v15822_v53 = vld [vmem:[#allocation111_spill] sm:$0xff]  ;;  %7785 = vmatpush1.bf16.msra.mxu0 %v9619_v27 }
 0xc75   : > { %v14213_v60 = vpop.f32.mrb[207].mxu1  ;;  %v10089_v34 = vpop.eup %10088  ;;  %v6651_v62 = vadd.f32 1.0, %v10087_v15  ;;  %10102 = verf.f32 %v6411_v58  ;;  %v5933_v0 = vadd.f32 %v15822_v53, %v13663_v10  ;;  %v9622_v25 = vld [vmem:[#allocation17 + $0x1e0] ss:$8 sps:$4 sm:$0xff]   ;;  %v14220_v51 = vmul.f32 %v6644_v31, %v14118_v39  ;;  %v15825_v15 = vld [vmem:[#allocation77_spill] sm:$0xff]  ;;  %7786 = vmatprep.subr.bf16.mxu0 %v9624_v22  ;;  %v15827_v53 = vld [vmem:[#allocation78_spill] sm:$0xff] }
 0xc76   : > { %15821 = vst [vmem:[#allocation130_spill] sm:$0xff] %v14213_v60  ;;  %v6650_v32 = vadd.f32 1.0, %v10089_v34  ;;  %10104 = verf.f32 %v6410_v40  ;;  %v15824_v43 = vld [vmem:[#allocation76_spill] sm:$0xff]  ;;  %v6083_v55 = vadd.f32 %v14015_v12, %v15825_v15  ;;  %v9627_v45 = vld [vmem:[#allocation17 + $0x1f4] ss:$8 sps:$4 sm:$0xff]   ;;  %v14228_v34 = vmul.f32 0.5, %v5931_v49 }
 0xc77   : > { %15823 = vst [vmem:[#allocation111_spill] sm:$0xff] %v14220_v51  ;;  %v5970_v38 = vadd.f32 %v14008_v3, %v15824_v43  ;;  %v10091_v58 = vpop.eup %10090  ;;  %v14230_v10 = vmul.f32 0.5, %v5820_v23  ;;  %v6412_v27 = vmul.f32 0.70710677, %v5933_v0  ;;  %v5972_v39 = vadd.f32 %v14017_v17, %v15827_v53  ;;  %v9625_v31 = vld [vmem:[#allocation17 + $0x1f0] ss:$8 sps:$4 sm:$0xff]  }
 0xc78   : > { %v14226_v50 = vpop.f32.mrb[80].mxu0  ;;  %v10093_v51 = vpop.eup %10092  ;;  %v14239_v12 = vmul.f32 %v6649_v6, %v14136_v36  ;;  %v14242_v22 = vmul.f32 %v6651_v62, %v14144_v9  ;;  %v14245_v49 = vmul.f32 %v6650_v32, %v14146_v2  ;;  %v14249_v60 = vmul.f32 0.5, %v5933_v0  ;;  %7787 = vmatpush1.bf16.msra.mxu0 %v9622_v25  ;;  %v15832_v0 = vld [vmem:[#allocation79_spill] sm:$0xff] }
 0xc79   : > { %15826 = vst [vmem:[#allocation76_spill] sm:$0xff] %v14226_v50  ;;  %v14234_v40 = vpop.f32.mrb[208].mxu1  ;;  %v14236_v3 = vpop.f32.mrb[81].mxu0  ;;  %v6293_v23 = vmul.f32 0.70710677, %v5970_v38  ;;  %v6652_v50 = vadd.f32 1.0, %v10091_v58  ;;  %10106 = verf.f32 %v6412_v27  ;;  %7788 = vmatprep.subr.bf16.mxu0 %v9627_v45  ;;  %v6085_v58 = vadd.f32 %v14025_v61, %v15832_v0 }
 0xc7a   : > { %15828 = vst [vmem:[#allocation77_spill] sm:$0xff] %v14234_v40  ;;  %15829 = vst [vmem:[#allocation78_spill] sm:$0xff] %v14236_v3  ;;  %v14247_v48 = vpop.f32.mrb[209].mxu1  ;;  %v10095_v17 = vpop.eup %10094  ;;  %v6295_v3 = vmul.f32 0.70710677, %v6083_v55  ;;  %v6657_v9 = vadd.f32 1.0, %v10093_v51  ;;  %v6842_v25 = vpack.c.bf16 %v14167_v4, %v14123_v54  ;;  %v5974_v51 = vadd.f32 %v14027_v18, %v15824_v43 }
 0xc7b   : > { %15830 = vst [vmem:[#allocation131_spill] sm:$0xff] %v14242_v22  ;;  %v14251_v40 = vpop.f32.mrb[82].mxu0  ;;  %v14253_v36 = vpop.f32.mrb[210].mxu1  ;;  %v6659_v6 = vadd.f32 1.0, %v10095_v17  ;;  %10108 = verf.f32 %v6293_v23  ;;  %v6294_v2 = vmul.f32 0.70710677, %v5972_v39  ;;  %v6087_v45 = vadd.f32 %v14035_v14, %v15825_v15 }
 0xc7c   : > { %15831 = vst [vmem:[#allocation132_spill] sm:$0xff] %v14253_v36  ;;  %v14255_v62 = vpop.f32.mrb[83].mxu0  ;;  %v14257_v32 = vpop.f32.mrb[211].mxu1  ;;  %v14259_v22 = vmul.f32 0.5, %v5970_v38  ;;  %10110 = verf.f32 %v6295_v3  ;;  %v14265_v36 = vmul.f32 0.5, %v6083_v55  ;;  %v14272_v38 = vmul.f32 %v6652_v50, %v14160_v41  ;;  %7727 = vmatprep.mubr.bf16.mxu0 %v6842_v25  ;;  %7789 = vmatpush1.bf16.msra.mxu0 %v9625_v31 }
 0xc7d   : > { %v10097_v27 = vpop.eup %10096  ;;  %10112 = verf.f32 %v6294_v2  ;;  %v14274_v3 = vmul.f32 0.5, %v5972_v39  ;;  %v6296_v61 = vmul.f32 0.70710677, %v6085_v58  ;;  %v6841_v54 = vpack.c.bf16 %v14153_v24, %v14113_v7  ;;  %7871 = vmatprep.subr.bf16.mxu0 %v9630_v5 }
 0xc7e   : > { %v10099_v23 = vpop.eup %10098  ;;  %15833 = vst [vmem:[#allocation79_spill] sm:$0xff] %v14272_v38  ;;  %v14279_v55 = vmul.f32 %v6657_v9, %v14178_v63  ;;  %v14282_v18 = vmul.f32 %v6659_v6, %v14187_v33  ;;  %v6658_v14 = vadd.f32 1.0, %v10097_v27  ;;  %v6301_v17 = vmul.f32 0.70710677, %v5974_v51  ;;  %v15835_v33 = vld [vmem:[#allocation113_spill] sm:$0xff] }
 0xc7f   : > { %v10101_v4 = vpop.eup %10100  ;;  %v6660_v39 = vadd.f32 1.0, %v10099_v23  ;;  %10114 = verf.f32 %v6296_v61  ;;  %v6303_v25 = vmul.f32 0.70710677, %v6087_v45  ;;  %7728 = vmatmul.mubr.bf16.gmra.mrb[116].mxu0 %v6841_v54  ;;  %v14290_v9 = vmul.f32 0.5, %v6085_v58 }
 0xc80   : > { %15834 = vst [vmem:[#allocation133_spill] sm:$0xff] %v14282_v18  ;;  %v14284_v41 = vpop.f32.mrb[84].mxu0  ;;  %v10103_v50 = vpop.eup %10102  ;;  %v6665_v2 = vadd.f32 1.0, %v10101_v4  ;;  %10116 = verf.f32 %v6301_v17  ;;  %v5976_v5 = vadd.f32 %v15835_v33, %v15827_v53  ;;  %v14298_v23 = vmul.f32 0.5, %v5974_v51  ;;  %v15840_v18 = vld [vmem:[#allocation116_spill] sm:$0xff] }
 0xc81   : > { %v14286_v7 = vpop.f32.mrb[212].mxu1  ;;  %v14288_v24 = vpop.f32.mrb[85].mxu0  ;;  %v6667_v31 = vadd.f32 1.0, %v10103_v50  ;;  %v14300_v61 = vmul.f32 0.5, %v6087_v45  ;;  %10118 = verf.f32 %v6303_v25  ;;  %v6089_v54 = vadd.f32 %v14047_v29, %v15832_v0 }
 0xc82   : > { %v10105_v63 = vpop.eup %10104  ;;  %v14294_v6 = vpop.f32.mrb[213].mxu1  ;;  %v14309_v17 = vmul.f32 %v6658_v14, %v14192_v19  ;;  %v6302_v33 = vmul.f32 0.70710677, %v5976_v5  ;;  %v5980_v38 = vadd.f32 %v15840_v18, %v15824_v43  ;;  %v14316_v25 = vmul.f32 %v6660_v39, %v14211_v30 }
 0xc83   : > { %15836 = vst [vmem:[#allocation113_spill] sm:$0xff] %v14294_v6  ;;  %v14296_v27 = vpop.f32.mrb[86].mxu0  ;;  %v14304_v4 = vpop.f32.mrb[214].mxu1  ;;  %v6666_v50 = vadd.f32 1.0, %v10105_v63  ;;  %v14319_v29 = vmul.f32 %v6665_v2, %v14215_v13  ;;  %v14324_v14 = vmul.f32 %v6667_v31, %v14228_v34  ;;  %v14326_v63 = vmul.f32 0.5, %v5976_v5 }
 0xc84   : > { %15837 = vst [vmem:[#allocation134_spill] sm:$0xff] %v14296_v27  ;;  %15838 = vst [vmem:[#allocation135_spill] sm:$0xff] %v14304_v4  ;;  %v14306_v58 = vpop.f32.mrb[87].mxu0  ;;  %v14313_v51 = vpop.f32.mrb[215].mxu1  ;;  %v6304_v4 = vmul.f32 0.70710677, %v6089_v54  ;;  %10120 = verf.f32 %v6302_v33 }
 0xc85   : > { %15839 = vst [vmem:[#allocation136_spill] sm:$0xff] %v14306_v58  ;;  %15841 = vst [vmem:[#allocation116_spill] sm:$0xff] %v14313_v51  ;;  %v10107_v45 = vpop.eup %10106  ;;  %v6093_v58 = vadd.f32 %v14068_v56, %v15825_v15  ;;  %v6309_v18 = vmul.f32 0.70710677, %v5980_v38  ;;  %v14329_v13 = vmul.f32 %v6666_v50, %v14230_v10  ;;  %v15844_v56 = vld [vmem:[#allocation117_spill] sm:$0xff]  ;;  %v14335_v31 = vmul.f32 0.5, %v6089_v54 }
 0xc86   : > { %15842 = vst [vmem:[#allocation137_spill] sm:$0xff] %v14316_v25  ;;  %v10109_v19 = vpop.eup %10108  ;;  %15843 = vst [vmem:[#allocation138_spill] sm:$0xff] %v14324_v14  ;;  %v6668_v27 = vadd.f32 1.0, %v10107_v45  ;;  %10122 = verf.f32 %v6304_v4  ;;  %v5982_v25 = vadd.f32 %v15844_v56, %v15827_v53  ;;  %v14337_v5 = vmul.f32 0.5, %v5980_v38 }
 0xc87   : > { %v10111_v51 = vpop.eup %10110  ;;  %v6549_v6 = vadd.f32 1.0, %v10109_v19  ;;  %v6311_v30 = vmul.f32 0.70710677, %v6093_v58  ;;  %10124 = verf.f32 %v6309_v18  ;;  %v6095_v4 = vadd.f32 %v14080_v21, %v15832_v0 }
 0xc88   : > { %v10113_v39 = vpop.eup %10112  ;;  %v6551_v2 = vadd.f32 1.0, %v10111_v51  ;;  %v14333_v34 = vpop.f32.mrb[88].mxu0  ;;  %v14345_v50 = vmul.f32 0.5, %v6093_v58  ;;  %v6310_v51 = vmul.f32 0.70710677, %v5982_v25  ;;  %v6850_v19 = vpack.c.bf16 %v14245_v49, %v14209_v26 }
 0xc89   : > { %10126 = verf.f32 %v6311_v30  ;;  %v14341_v33 = vpop.f32.mrb[216].mxu1  ;;  %v14343_v45 = vpop.f32.mrb[89].mxu0  ;;  %v6550_v10 = vadd.f32 1.0, %v10113_v39  ;;  %v14354_v30 = vmul.f32 %v6668_v27, %v14249_v60  ;;  %v14357_v21 = vmul.f32 %v6549_v6, %v14259_v22  ;;  %v15848_v39 = vld [vmem:[#allocation119_spill] sm:$0xff] }
 0xc8a   : > { %15845 = vst [vmem:[#allocation117_spill] sm:$0xff] %v14343_v45  ;;  %v14349_v18 = vpop.f32.mrb[217].mxu1  ;;  %v14351_v54 = vpop.f32.mrb[90].mxu0  ;;  %v6312_v56 = vmul.f32 0.70710677, %v6095_v4  ;;  %v5984_v58 = vadd.f32 %v15848_v39, %v15824_v43  ;;  %v14366_v49 = vmul.f32 %v6551_v2, %v14265_v36  ;;  %10128 = verf.f32 %v6310_v51  ;;  %7737 = vmatprep.mubr.bf16.mxu0 %v6850_v19 }
 0xc8b   : > { %v10115_v38 = vpop.eup %10114  ;;  %15846 = vst [vmem:[#allocation139_spill] sm:$0xff] %v14354_v30  ;;  %15847 = vst [vmem:[#allocation140_spill] sm:$0xff] %v14357_v21  ;;  %v14361_v14 = vpop.f32.mrb[218].mxu1  ;;  %v6097_v60 = vadd.f32 %v14089_v59, %v15825_v15  ;;  %v6849_v22 = vpack.c.bf16 %v14239_v12, %v14185_v35  ;;  %v14374_v30 = vmul.f32 0.5, %v5982_v25  ;;  %v5986_v35 = vadd.f32 %v14091_v11, %v15827_v53  ;;  %v15854_v12 = vld [vmem:[#allocation120_spill] sm:$0xff] }
 0xc8c   : > { %15849 = vst [vmem:[#allocation119_spill] sm:$0xff] %v14361_v14  ;;  %v14363_v45 = vpop.f32.mrb[91].mxu0  ;;  %v10117_v26 = vpop.eup %10116  ;;  %15851 = vst [vmem:[#allocation142_spill] sm:$0xff] %v14366_v49  ;;  %10130 = verf.f32 %v6312_v56  ;;  %v14377_v14 = vmul.f32 %v6550_v10, %v14274_v3  ;;  %v6552_v36 = vadd.f32 1.0, %v10115_v38  ;;  %v6099_v25 = vadd.f32 %v15854_v12, %v15832_v0 }
 0xc8d   : > { %15850 = vst [vmem:[#allocation141_spill] sm:$0xff] %v14363_v45  ;;  %v14372_v6 = vpop.f32.mrb[219].mxu1  ;;  %v10119_v27 = vpop.eup %10118  ;;  %v6557_v39 = vadd.f32 1.0, %v10117_v26  ;;  %v6317_v45 = vmul.f32 0.70710677, %v5984_v58  ;;  %7738 = vmatmul.mubr.bf16.gmra.mrb[120].mxu0 %v6849_v22  ;;  %v14389_v3 = vmul.f32 0.5, %v6095_v4  ;;  %v5990_v10 = vadd.f32 %v14120_v28, %v15824_v43 }
 0xc8e   : > { %15852 = vst [vmem:[#allocation143_spill] sm:$0xff] %v14377_v14  ;;  %v6559_v2 = vadd.f32 1.0, %v10119_v27  ;;  %v6319_v51 = vmul.f32 0.70710677, %v6097_v60  ;;  %v10121_v19 = vpop.eup %10120  ;;  %v6318_v26 = vmul.f32 0.70710677, %v5986_v35  ;;  %v6103_v22 = vadd.f32 %v14129_v44, %v15825_v15 }
 0xc8f   : > { %v14380_v59 = vmul.f32 %v6557_v39, %v14298_v23  ;;  %10132 = verf.f32 %v6317_v45  ;;  %v6558_v11 = vadd.f32 1.0, %v10121_v19  ;;  %v14404_v39 = vmul.f32 %v6552_v36, %v14290_v9 }
 0xc90   : > { %v14387_v56 = vmul.f32 %v6559_v2, %v14300_v61  ;;  %10134 = verf.f32 %v6319_v51  ;;  %v14393_v38 = vpop.f32.mrb[92].mxu0  ;;  %v10123_v23 = vpop.eup %10122  ;;  %v14408_v2 = vmul.f32 0.5, %v5984_v58  ;;  %v6320_v51 = vmul.f32 0.70710677, %v6099_v25 }
 0xc91   : > { %15853 = vst [vmem:[#allocation144_spill] sm:$0xff] %v14380_v59  ;;  %v14399_v27 = vpop.f32.mrb[220].mxu1  ;;  %v14401_v61 = vpop.f32.mrb[93].mxu0  ;;  %15857 = vst [vmem:[#allocation146_spill] sm:$0xff] %v14404_v39  ;;  %v6560_v44 = vadd.f32 1.0, %v10123_v23  ;;  %v6191_v59 = vmul.f32 0.5, %v6097_v60  ;;  %10136 = verf.f32 %v6318_v26  ;;  %v14425_v49 = vmul.f32 %v6558_v11, %v14326_v63 }
 0xc92   : > { %15855 = vst [vmem:[#allocation120_spill] sm:$0xff] %v14387_v56  ;;  %15856 = vst [vmem:[#allocation145_spill] sm:$0xff] %v14401_v61  ;;  %v10125_v4 = vpop.eup %10124  ;;  %v14410_v12 = vpop.f32.mrb[221].mxu1  ;;  %v14418_v9 = vmul.f32 0.5, %v5986_v35  ;;  %v14420_v36 = vmul.f32 0.5, %v6099_v25  ;;  %10138 = verf.f32 %v6320_v51  ;;  %v14427_v56 = vmul.f32 0.5, %v5990_v10 }
 0xc93   : > { %v14412_v19 = vpop.f32.mrb[94].mxu0  ;;  %v10127_v45 = vpop.eup %10126  ;;  %v6565_v21 = vadd.f32 1.0, %v10125_v4  ;;  %v6325_v58 = vmul.f32 0.70710677, %v5990_v10  ;;  %15858 = vst [vmem:[#allocation147_spill] sm:$0xff] %v14425_v49  ;;  %v5992_v60 = vadd.f32 %v14131_v16, %v15827_v53  ;;  %v6105_v35 = vadd.f32 %v14140_v46, %v15832_v0 }
 0xc94   : > { %v14414_v14 = vpop.f32.mrb[222].mxu1  ;;  %v14416_v61 = vpop.f32.mrb[95].mxu0  ;;  %v6327_v23 = vmul.f32 0.70710677, %v6103_v22  ;;  %v6567_v4 = vadd.f32 1.0, %v10127_v45  ;;  %v6858_v25 = vpack.c.bf16 %v14329_v13, %v14309_v17  ;;  %v14436_v39 = vmul.f32 %v6560_v44, %v14335_v31  ;;  %v15860_v17 = vld [vmem:[#allocation124_spill] sm:$0xff] }
 0xc95   : > { %v14422_v28 = vpop.f32.mrb[223].mxu1  ;;  %v10129_v26 = vpop.eup %10128  ;;  %10140 = verf.f32 %v6325_v58  ;;  %v14439_v63 = vmul.f32 %v6565_v21, %v14337_v5  ;;  %v6326_v10 = vmul.f32 0.70710677, %v5992_v60  ;;  %v14441_v16 = vmul.f32 0.5, %v6103_v22 }
 0xc96   : > { %v10131_v51 = vpop.eup %10130  ;;  %15859 = vst [vmem:[#allocation148_spill] sm:$0xff] %v14436_v39  ;;  %10142 = verf.f32 %v6327_v23  ;;  %v6566_v11 = vadd.f32 1.0, %v10129_v26  ;;  %v6328_v45 = vmul.f32 0.70710677, %v6105_v35  ;;  %7747 = vmatprep.mubr.bf16.mxu0 %v6858_v25  ;;  %v5994_v46 = vadd.f32 %v14142_v20, %v15824_v43 }
 0xc97   : > { %v6568_v49 = vadd.f32 1.0, %v10131_v51  ;;  %10144 = verf.f32 %v6326_v10  ;;  %v6107_v13 = vadd.f32 %v15860_v17, %v15825_v15  ;;  %v6857_v31 = vpack.c.bf16 %v14319_v29, %v14279_v55  ;;  %v15862_v10 = vld [vmem:[#allocation125_spill] sm:$0xff]  ;;  %v15863_v29 = vld [vmem:[#allocation126_spill] sm:$0xff] }
 0xc98   : > { %v14450_v21 = vmul.f32 %v6567_v4, %v14345_v50  ;;  %v14452_v22 = vmul.f32 0.5, %v5992_v60  ;;  %v14454_v44 = vmul.f32 0.5, %v6105_v35  ;;  %10146 = verf.f32 %v6328_v45  ;;  %v15864_v4 = vld [vmem:[#allocation82_spill] sm:$0xff]  ;;  %v15865_v60 = vld [vmem:[#allocation83_spill] sm:$0xff] }
 0xc99   : > { %v10133_v58 = vpop.eup %10132  ;;  %v6333_v26 = vmul.f32 0.70710677, %v5994_v46  ;;  %v6335_v25 = vmul.f32 0.70710677, %v6107_v13  ;;  %7748 = vmatmul.mubr.bf16.gmra.mrb[124].mxu0 %v6857_v31  ;;  %v14457_v51 = vmul.f32 %v6566_v11, %v14374_v30  ;;  %v5996_v55 = vadd.f32 %v15862_v10, %v15827_v53 }
 0xc9a   : > { %v10135_v5 = vpop.eup %10134  ;;  %15861 = vst [vmem:[#allocation124_spill] sm:$0xff] %v14450_v21  ;;  %v6573_v23 = vadd.f32 1.0, %v10133_v58  ;;  %v6109_v50 = vadd.f32 %v15863_v29, %v15832_v0  ;;  %v6804_v17 = vpack.c.bf16 %v15865_v60, %v15864_v4  ;;  %v14466_v45 = vmul.f32 %v6568_v49, %v14389_v3 }
 0xc9b   : > { %v6575_v20 = vadd.f32 1.0, %v10135_v5  ;;  %v10137_v35 = vpop.eup %10136  ;;  %10148 = verf.f32 %v6333_v26  ;;  %v6000_v58 = vadd.f32 %v14173_v42, %v15824_v43  ;;  %v6113_v30 = vadd.f32 %v14180_v37, %v15825_v15 }
 0xc9c   : > { %15866 = vst [vmem:[#allocation125_spill] sm:$0xff] %v14466_v45  ;;  %v10139_v11 = vpop.eup %10138  ;;  %v14472_v31 = vmul.f32 0.5, %v5994_v46  ;;  %v14474_v5 = vmul.f32 0.5, %v6107_v13  ;;  %10150 = verf.f32 %v6335_v25  ;;  %v6334_v10 = vmul.f32 0.70710677, %v5996_v55  ;;  %7790 = vmatprep.mubr.bf16.mxu0 %v6804_v17 }
 0xc9d   : > { %v14477_v29 = vmul.f32 %v6573_v23, %v14408_v2  ;;  %v14479_v49 = vmul.f32 %v6575_v20, %v6191_v59  ;;  %v6574_v3 = vadd.f32 1.0, %v10137_v35  ;;  %v6336_v26 = vmul.f32 0.70710677, %v6109_v50  ;;  %v9628_v46 = vld [vmem:[#allocation17 + $0x200] ss:$8 sps:$4 sm:$0xff]  }
 0xc9e   : > { %v6576_v42 = vadd.f32 1.0, %v10139_v11  ;;  %v14481_v60 = vmul.f32 0.5, %v5996_v55  ;;  %10152 = verf.f32 %v6334_v10  ;;  %v6341_v37 = vmul.f32 0.70710677, %v6000_v58  ;;  %v9633_v17 = vld [vmem:[#allocation17 + $0x214] ss:$8 sps:$4 sm:$0xff]  }
 0xc9f   : > { %15867 = vst [vmem:[#allocation126_spill] sm:$0xff] %v14479_v49  ;;  %v10141_v4 = vpop.eup %10140  ;;  %v14483_v45 = vmul.f32 0.5, %v6109_v50  ;;  %10154 = verf.f32 %v6336_v26  ;;  %v6343_v25 = vmul.f32 0.70710677, %v6113_v30  ;;  %v6002_v59 = vadd.f32 %v14182_v8, %v15827_v53  ;;  %v15868_v11 = vld [vmem:[#allocation81_spill] sm:$0xff]  ;;  %v15869_v10 = vld [vmem:[#allocation80_spill] sm:$0xff] }
 0xca0   : > { %v10143_v21 = vpop.eup %10142  ;;  %v6581_v13 = vadd.f32 1.0, %v10141_v4  ;;  %10156 = verf.f32 %v6341_v37  ;;  %v6115_v23 = vadd.f32 %v14196_v1, %v15832_v0  ;;  %v14489_v55 = vmul.f32 0.5, %v6000_v58  ;;  %v9631_v37 = vld [vmem:[#allocation17 + $0x210] ss:$8 sps:$4 sm:$0xff]  }
 0xca1   : > { %v6583_v2 = vadd.f32 1.0, %v10143_v21  ;;  %v10145_v20 = vpop.eup %10144  ;;  %10158 = verf.f32 %v6343_v25  ;;  %v6004_v35 = vadd.f32 %v14198_v47, %v15824_v43  ;;  %v6117_v50 = vadd.f32 %v14204_v57, %v15825_v15 }
 0xca2   : > { %v15870_v21 = vpack.c.bf16 %v15868_v11, %v15869_v10  ;;  %v10147_v26 = vpop.eup %10146  ;;  %v14499_v8 = vmul.f32 %v6574_v3, %v14418_v9  ;;  %v14502_v1 = vmul.f32 %v6576_v42, %v14420_v36  ;;  %v14504_v58 = vmul.f32 0.5, %v6113_v30  ;;  %v9636_v10 = vld [vmem:[#allocation17 + $0x224] ss:$8 sps:$4 sm:$0xff]  }
 0xca3   : > { %v6342_v4 = vmul.f32 0.70710677, %v6002_v59  ;;  %v14507_v47 = vmul.f32 %v6581_v13, %v14427_v56  ;;  %v14510_v57 = vmul.f32 %v6583_v2, %v14441_v16  ;;  %v6582_v25 = vadd.f32 1.0, %v10145_v20  ;;  %v15873_v2 = vld [vmem:[#allocation130_spill] sm:$0xff]  ;;  %v15874_v20 = vld [vmem:[#allocation85_spill] sm:$0xff] }
 0xca4   : > { %7791 = vmatmul.mubr.bf16.vlgmr.msra.gmra.mrb[96].mxu0 %v15870_v21  ;;  %15871 = vst [vmem:[#allocation82_spill] sm:$0xff] %v14502_v1  ;;  %v6344_v11 = vmul.f32 0.70710677, %v6115_v23  ;;  %v6584_v9 = vadd.f32 1.0, %v10147_v26  ;;  %v14512_v3 = vmul.f32 0.5, %v6002_v59  ;;  %v14514_v42 = vmul.f32 0.5, %v6115_v23 }
 0xca5   : > { %7872 = vmatpush1.bf16.msra.mxu0 %v9628_v46  ;;  %15872 = vst [vmem:[#allocation83_spill] sm:$0xff] %v14510_v57  ;;  %10160 = verf.f32 %v6342_v4  ;;  %v6349_v36 = vmul.f32 0.70710677, %v6004_v35  ;;  %v10149_v30 = vpop.eup %10148  ;;  %v6351_v46 = vmul.f32 0.70710677, %v6117_v50  ;;  %v6006_v56 = vadd.f32 %v14206_v52, %v15827_v53  ;;  %v15875_v21 = vld [vmem:[#allocation87_spill] sm:$0xff] }
 0xca6   : > { %7873 = vmatprep.subr.bf16.mxu0 %v9633_v17  ;;  %10162 = verf.f32 %v6344_v11  ;;  %v10151_v13 = vpop.eup %10150  ;;  %v6589_v16 = vadd.f32 1.0, %v10149_v30  ;;  %v6119_v17 = vadd.f32 %v15873_v2, %v15832_v0  ;;  %v6812_v59 = vpack.c.bf16 %v15875_v21, %v15874_v20  ;;  %v9634_v26 = vld [vmem:[#allocation17 + $0x220] ss:$8 sps:$4 sm:$0xff]   ;;  %v9639_v52 = vld [vmem:[#allocation17 + $0x234] ss:$8 sps:$4 sm:$0xff]  }
 0xca7   : > { %10164 = verf.f32 %v6349_v36  ;;  %v14523_v4 = vmul.f32 %v6582_v25, %v14452_v22  ;;  %v14525_v23 = vmul.f32 0.5, %v6004_v35  ;;  %v6350_v11 = vmul.f32 0.70710677, %v6006_v56  ;;  %v15876_v2 = vld [vmem:[#allocation76_spill] sm:$0xff]  ;;  %v15878_v35 = vld [vmem:[#allocation77_spill] sm:$0xff] }
 0xca8   : > { %10166 = verf.f32 %v6351_v46  ;;  %v10153_v57 = vpop.eup %10152  ;;  %v6591_v30 = vadd.f32 1.0, %v10151_v13  ;;  %v14527_v36 = vmul.f32 0.5, %v6117_v50  ;;  %v6352_v49 = vmul.f32 0.70710677, %v6119_v17  ;;  %7800 = vmatprep.mubr.bf16.mxu0 %v6812_v59 }
 0xca9   : > { %7874 = vmatpush1.bf16.msra.mxu0 %v9631_v37  ;;  %v6010_v20 = vadd.f32 %v15876_v2, %v15824_v43  ;;  %v10155_v37 = vpop.eup %10154  ;;  %v14532_v21 = vmul.f32 %v6584_v9, %v14454_v44  ;;  %v14534_v22 = vmul.f32 0.5, %v6006_v56  ;;  %10168 = verf.f32 %v6350_v11  ;;  %v9642_v2 = vld [vmem:[#allocation17 + $0x244] ss:$8 sps:$4 sm:$0xff]  }
 0xcaa   : > { %7875 = vmatprep.subr.bf16.mxu0 %v9636_v10  ;;  %v6123_v25 = vadd.f32 %v15878_v35, %v15825_v15  ;;  %v9637_v10 = vld [vmem:[#allocation17 + $0x230] ss:$8 sps:$4 sm:$0xff]   ;;  %v10157_v46 = vpop.eup %10156  ;;  %v14539_v50 = vmul.f32 %v6589_v16, %v14472_v31  ;;  %v6590_v13 = vadd.f32 1.0, %v10153_v57  ;;  %10170 = verf.f32 %v6352_v49 }
 0xcab   : > { %15877 = vst [vmem:[#allocation81_spill] sm:$0xff] %v14532_v21  ;;  %v6357_v59 = vmul.f32 0.70710677, %v6010_v20  ;;  %v10159_v1 = vpop.eup %10158  ;;  %v6592_v39 = vadd.f32 1.0, %v10155_v37  ;;  %v6597_v44 = vadd.f32 1.0, %v10157_v46  ;;  %v14541_v9 = vmul.f32 0.5, %v6119_v17 }
 0xcac   : > { %v6359_v56 = vmul.f32 0.70710677, %v6123_v25  ;;  %v14544_v11 = vmul.f32 %v6591_v30, %v14474_v5  ;;  %v6599_v35 = vadd.f32 1.0, %v10159_v1  ;;  %v15880_v31 = vld [vmem:[#allocation78_spill] sm:$0xff]  ;;  %v14548_v57 = vmul.f32 0.5, %v6010_v20  ;;  %v15881_v30 = vld [vmem:[#allocation132_spill] sm:$0xff] }
 0xcad   : > { %7876 = vmatpush1.bf16.msra.mxu0 %v9634_v26  ;;  %10172 = verf.f32 %v6357_v59  ;;  %v6012_v16 = vadd.f32 %v15880_v31, %v15827_v53  ;;  %v6125_v49 = vadd.f32 %v14247_v48, %v15832_v0  ;;  %v6014_v17 = vadd.f32 %v14251_v40, %v15824_v43  ;;  %v9640_v20 = vld [vmem:[#allocation17 + $0x240] ss:$8 sps:$4 sm:$0xff]  }
 0xcae   : > { %7877 = vmatprep.subr.bf16.mxu0 %v9639_v52  ;;  %15879 = vst [vmem:[#allocation80_spill] sm:$0xff] %v14544_v11  ;;  %10174 = verf.f32 %v6359_v56  ;;  %v14555_v52 = vmul.f32 %v6590_v13, %v14481_v60  ;;  %v14557_v5 = vmul.f32 0.5, %v6123_v25  ;;  %v6127_v37 = vadd.f32 %v15881_v30, %v15825_v15  ;;  %v9645_v25 = vld [vmem:[#allocation17 + $0x254] ss:$8 sps:$4 sm:$0xff]  }
 0xcaf   : > { %v10161_v26 = vpop.eup %10160  ;;  %v6358_v1 = vmul.f32 0.70710677, %v6012_v16  ;;  %v14562_v59 = vmul.f32 %v6592_v39, %v14483_v45  ;;  %v14565_v48 = vmul.f32 %v6597_v44, %v14489_v55  ;;  %v14568_v40 = vmul.f32 %v6599_v35, %v14504_v58  ;;  %v15883_v58 = vld [vmem:[#allocation84_spill] sm:$0xff]  ;;  %v15884_v44 = vld [vmem:[#allocation86_spill] sm:$0xff] }
 0xcb0   : > { %v10163_v46 = vpop.eup %10162  ;;  %v6360_v60 = vmul.f32 0.70710677, %v6125_v49  ;;  %v6598_v56 = vadd.f32 1.0, %v10161_v26  ;;  %v14570_v31 = vmul.f32 0.5, %v6012_v16  ;;  %v6367_v39 = vmul.f32 0.70710677, %v6127_v37 }
 0xcb1   : > { %7878 = vmatpush1.bf16.msra.mxu0 %v9637_v10  ;;  %15882 = vst [vmem:[#allocation130_spill] sm:$0xff] %v14568_v40  ;;  %v10165_v13 = vpop.eup %10164  ;;  %10176 = verf.f32 %v6358_v1  ;;  %v6365_v10 = vmul.f32 0.70710677, %v6014_v17  ;;  %v6600_v11 = vadd.f32 1.0, %v10163_v46  ;;  %v14572_v55 = vmul.f32 0.5, %v6125_v49 }
 0xcb2   : > { %7879 = vmatprep.subr.bf16.mxu0 %v9642_v2  ;;  %v10167_v30 = vpop.eup %10166  ;;  %v6605_v21 = vadd.f32 1.0, %v10165_v13  ;;  %10178 = verf.f32 %v6360_v60  ;;  %v6811_v35 = vpack.c.bf16 %v15884_v44, %v15883_v58  ;;  %v9643_v2 = vld [vmem:[#allocation17 + $0x250] ss:$8 sps:$4 sm:$0xff]   ;;  %v14576_v26 = vmul.f32 0.5, %v6014_v17  ;;  %v9648_v46 = vld [vmem:[#allocation17 + $0x264] ss:$8 sps:$4 sm:$0xff]  }
 0xcb3   : > { %v6607_v45 = vadd.f32 1.0, %v10167_v30  ;;  %10180 = verf.f32 %v6365_v10  ;;  %v10169_v40 = vpop.eup %10168  ;;  %v6016_v16 = vadd.f32 %v14255_v62, %v15827_v53  ;;  %v6129_v1 = vadd.f32 %v14257_v32, %v15832_v0  ;;  %v15886_v10 = vld [vmem:[#allocation38_spill] sm:$0xff]  ;;  %v9646_v58 = vld [vmem:[#allocation17 + $0x260] ss:$8 sps:$4 sm:$0xff]  }
 0xcb4   : > { %10182 = verf.f32 %v6367_v39  ;;  %v10171_v49 = vpop.eup %10170  ;;  %v14583_v60 = vmul.f32 %v6598_v56, %v14512_v3  ;;  %v14585_v13 = vmul.f32 0.5, %v6127_v37  ;;  %7801 = vmatmul.mubr.bf16.gmra.mrb[100].mxu0 %v6811_v35  ;;  %v6020_v30 = vadd.f32 %v14284_v41, %v15824_v43 }
 0xcb5   : > { %7880 = vmatpush1.bf16.msra.mxu0 %v9640_v20  ;;  %v15885_v20 = vld [vmem:[#allocation89_spill] sm:$0xff]  ;;  %v14592_v62 = vmul.f32 %v6600_v11, %v14514_v42  ;;  %v14595_v32 = vmul.f32 %v6605_v21, %v14525_v23  ;;  %v6366_v39 = vmul.f32 0.70710677, %v6016_v16  ;;  %v14598_v37 = vmul.f32 %v6607_v45, %v14527_v36 }
 0xcb6   : > { %7881 = vmatprep.subr.bf16.mxu0 %v9645_v25  ;;  %v6820_v17 = vpack.c.bf16 %v15886_v10, %v15885_v20  ;;  %v6606_v25 = vadd.f32 1.0, %v10169_v40  ;;  %v6608_v56 = vadd.f32 1.0, %v10171_v49  ;;  %v6368_v44 = vmul.f32 0.70710677, %v6129_v1  ;;  %v9651_v23 = vld [vmem:[#allocation17 + $0x274] ss:$8 sps:$4 sm:$0xff]  }
 0xcb7   : > { %v10173_v3 = vpop.eup %10172  ;;  %15887 = vst [vmem:[#allocation85_spill] sm:$0xff] %v14598_v37  ;;  %v6373_v35 = vmul.f32 0.70710677, %v6020_v30  ;;  %v14600_v10 = vmul.f32 0.5, %v6016_v16  ;;  %10184 = verf.f32 %v6366_v39  ;;  %v6133_v42 = vadd.f32 %v14286_v7, %v15825_v15  ;;  %v15888_v11 = vld [vmem:[#allocation113_spill] sm:$0xff] }
 0xcb8   : > { %7810 = vmatprep.mubr.bf16.mxu0 %v6820_v17  ;;  %v10175_v20 = vpop.eup %10174  ;;  %v6613_v41 = vadd.f32 1.0, %v10173_v3  ;;  %v14604_v21 = vmul.f32 0.5, %v6129_v1  ;;  %10186 = verf.f32 %v6368_v44  ;;  %v6022_v36 = vadd.f32 %v14288_v24, %v15827_v53  ;;  %v9649_v44 = vld [vmem:[#allocation17 + $0x270] ss:$8 sps:$4 sm:$0xff]  }
 0xcb9   : > { %7882 = vmatpush1.bf16.msra.mxu0 %v9643_v2  ;;  %v6135_v40 = vadd.f32 %v15888_v11, %v15832_v0  ;;  %v14611_v45 = vmul.f32 %v6606_v25, %v14534_v22  ;;  %v6615_v2 = vadd.f32 1.0, %v10175_v20  ;;  %10188 = verf.f32 %v6373_v35  ;;  %v15890_v22 = vld [vmem:[#allocation134_spill] sm:$0xff] }
 0xcba   : > { %7883 = vmatprep.subr.bf16.mxu0 %v9648_v46  ;;  %v6375_v16 = vmul.f32 0.70710677, %v6133_v42  ;;  %v14614_v7 = vmul.f32 %v6608_v56, %v14541_v9  ;;  %v14617_v1 = vmul.f32 %v6613_v41, %v14548_v57  ;;  %v14619_v46 = vmul.f32 0.5, %v6020_v30  ;;  %v15891_v9 = vld [vmem:[#allocation135_spill] sm:$0xff]  ;;  %v15892_v30 = vld [vmem:[#allocation88_spill] sm:$0xff]  ;;  %v15893_v56 = vld [vmem:[#allocation90_spill] sm:$0xff] }
 0xcbb   : > { %v10177_v49 = vpop.eup %10176  ;;  %v6374_v17 = vmul.f32 0.70710677, %v6022_v36  ;;  %v6376_v3 = vmul.f32 0.70710677, %v6135_v40  ;;  %v6024_v25 = vadd.f32 %v15890_v22, %v15824_v43  ;;  %v14623_v20 = vmul.f32 0.5, %v6133_v42 }
 0xcbc   : > { %15889 = vst [vmem:[#allocation87_spill] sm:$0xff] %v14614_v7  ;;  %v10179_v24 = vpop.eup %10178  ;;  %v6614_v39 = vadd.f32 1.0, %v10177_v49  ;;  %10190 = verf.f32 %v6375_v16  ;;  %v6137_v57 = vadd.f32 %v15891_v9, %v15825_v15  ;;  %v6819_v41 = vpack.c.bf16 %v15893_v56, %v15892_v30  ;;  %v15895_v56 = vld [vmem:[#allocation136_spill] sm:$0xff] }
 0xcbd   : > { %7884 = vmatpush1.bf16.msra.mxu0 %v9646_v58  ;;  %v10181_v35 = vpop.eup %10180  ;;  %10192 = verf.f32 %v6374_v17  ;;  %v9654_v58 = vld [vmem:[#allocation17 + $0x284] ss:$8 sps:$4 sm:$0xff]   ;;  %v14630_v16 = vmul.f32 %v6615_v2, %v14557_v5  ;;  %v6616_v49 = vadd.f32 1.0, %v10179_v24  ;;  %v14632_v37 = vmul.f32 0.5, %v6022_v36  ;;  %v9652_v36 = vld [vmem:[#allocation17 + $0x280] ss:$8 sps:$4 sm:$0xff]  }
 0xcbe   : > { %7885 = vmatprep.subr.bf16.mxu0 %v9651_v23  ;;  %v10183_v11 = vpop.eup %10182  ;;  %10194 = verf.f32 %v6376_v3  ;;  %v14635_v23 = vmul.f32 %v6614_v39, %v14570_v31  ;;  %v6621_v42 = vadd.f32 1.0, %v10181_v35  ;;  %v14637_v17 = vmul.f32 0.5, %v6135_v40  ;;  %7811 = vmatmul.mubr.bf16.gmra.mrb[104].mxu0 %v6819_v41  ;;  %v15896_v5 = vld [vmem:[#allocation116_spill] sm:$0xff]  ;;  %v15897_v31 = vld [vmem:[#allocation109_spill] sm:$0xff] }
 0xcbf   : > { %15894 = vst [vmem:[#allocation76_spill] sm:$0xff] %v14630_v16  ;;  %v6381_v22 = vmul.f32 0.70710677, %v6024_v25  ;;  %v14639_v9 = vmul.f32 0.5, %v6024_v25  ;;  %v6383_v30 = vmul.f32 0.70710677, %v6137_v57  ;;  %v6026_v7 = vadd.f32 %v15895_v56, %v15827_v53 }
 0xcc0   : > { %v6139_v2 = vadd.f32 %v15896_v5, %v15832_v0  ;;  %v6623_v24 = vadd.f32 1.0, %v10183_v11  ;;  %v15898_v39 = vld [vmem:[#allocation112_spill] sm:$0xff]  ;;  %v6030_v40 = vadd.f32 %v14333_v34, %v15824_v43  ;;  %v9657_v25 = vld [vmem:[#allocation17 + $0x294] ss:$8 sps:$4 sm:$0xff]   ;;  %v14650_v41 = vmul.f32 %v6616_v49, %v14572_v55  ;;  %v9655_v49 = vld [vmem:[#allocation17 + $0x290] ss:$8 sps:$4 sm:$0xff]  }
 0xcc1   : > { %7886 = vmatpush1.bf16.msra.mxu0 %v9649_v44  ;;  %10196 = verf.f32 %v6381_v22  ;;  %v6828_v3 = vpack.c.bf16 %v15898_v39, %v15897_v31  ;;  %v10185_v35 = vpop.eup %10184  ;;  %v14652_v56 = vmul.f32 0.5, %v6137_v57  ;;  %v6382_v5 = vmul.f32 0.70710677, %v6026_v7  ;;  %v15900_v55 = vld [vmem:[#allocation117_spill] sm:$0xff] }
 0xcc2   : > { %7887 = vmatprep.subr.bf16.mxu0 %v9654_v58  ;;  %15899 = vst [vmem:[#allocation77_spill] sm:$0xff] %v14650_v41  ;;  %10198 = verf.f32 %v6383_v30  ;;  %v10187_v44 = vpop.eup %10186  ;;  %v14655_v11 = vmul.f32 %v6621_v42, %v14576_v26  ;;  %v6622_v22 = vadd.f32 1.0, %v10185_v35  ;;  %v6384_v16 = vmul.f32 0.70710677, %v6139_v2 }
 0xcc3   : > { %7820 = vmatprep.mubr.bf16.mxu0 %v6828_v3  ;;  %v6389_v31 = vmul.f32 0.70710677, %v6030_v40  ;;  %v10189_v39 = vpop.eup %10188  ;;  %v6624_v34 = vadd.f32 1.0, %v10187_v44  ;;  %10200 = verf.f32 %v6382_v5  ;;  %v6143_v58 = vadd.f32 %v14341_v33, %v15825_v15  ;;  %v9660_v3 = vld [vmem:[#allocation17 + $0x2a4] ss:$8 sps:$4 sm:$0xff]  }
 0xcc4   : > { %v6032_v57 = vadd.f32 %v15900_v55, %v15827_v53  ;;  %v14662_v30 = vmul.f32 %v6623_v24, %v14585_v13  ;;  %v14664_v26 = vmul.f32 0.5, %v6026_v7  ;;  %10202 = verf.f32 %v6384_v16 }
 0xcc5   : > { %7888 = vmatpush1.bf16.msra.mxu0 %v9652_v36  ;;  %v6145_v42 = vadd.f32 %v14349_v18, %v15832_v0  ;;  %v6629_v5 = vadd.f32 1.0, %v10189_v39  ;;  %v14668_v44 = vmul.f32 0.5, %v6139_v2  ;;  %10204 = verf.f32 %v6389_v31 }
 0xcc6   : > { %15901 = vst [vmem:[#allocation78_spill] sm:$0xff] %v14662_v30  ;;  %7889 = vmatprep.subr.bf16.mxu0 %v9657_v25  ;;  %v10191_v35 = vpop.eup %10190  ;;  %v6391_v33 = vmul.f32 0.70710677, %v6143_v58  ;;  %v14671_v36 = vmul.f32 %v6622_v22, %v14600_v10  ;;  %v14674_v13 = vmul.f32 %v6624_v34, %v14604_v21  ;;  %v14676_v7 = vmul.f32 0.5, %v6030_v40  ;;  %v9658_v22 = vld [vmem:[#allocation17 + $0x2a0] ss:$8 sps:$4 sm:$0xff]  }
 0xcc7   : > { %v10193_v55 = vpop.eup %10192  ;;  %v6390_v16 = vmul.f32 0.70710677, %v6032_v57  ;;  %v6631_v18 = vadd.f32 1.0, %v10191_v35  ;;  %v6392_v30 = vmul.f32 0.70710677, %v6145_v42  ;;  %v14678_v39 = vmul.f32 0.5, %v6143_v58 }
 0xcc8   : > { %15902 = vst [vmem:[#allocation132_spill] sm:$0xff] %v14674_v13  ;;  %v10195_v24 = vpop.eup %10194  ;;  %v6630_v25 = vadd.f32 1.0, %v10193_v55  ;;  %10206 = verf.f32 %v6391_v33  ;;  %v6034_v10 = vadd.f32 %v14351_v54, %v15824_v43  ;;  %v14683_v21 = vmul.f32 %v6629_v5, %v14619_v46  ;;  %v15904_v40 = vld [vmem:[#allocation119_spill] sm:$0xff]  ;;  %v15905_v34 = vld [vmem:[#allocation39_spill] sm:$0xff]  ;;  %v15907_v54 = vld [vmem:[#allocation141_spill] sm:$0xff] }
 0xcc9   : > { %7890 = vmatpush1.bf16.msra.mxu0 %v9655_v49  ;;  %v6632_v2 = vadd.f32 1.0, %v10195_v24  ;;  %10208 = verf.f32 %v6390_v16  ;;  %v6147_v31 = vadd.f32 %v15904_v40, %v15825_v15  ;;  %v15906_v35 = vld [vmem:[#allocation110_spill] sm:$0xff]  ;;  %v14689_v58 = vmul.f32 0.5, %v6032_v57 }
 0xcca   : > { %7891 = vmatprep.subr.bf16.mxu0 %v9660_v3  ;;  %15903 = vst [vmem:[#allocation84_spill] sm:$0xff] %v14683_v21  ;;  %10210 = verf.f32 %v6392_v30  ;;  %v6827_v33 = vpack.c.bf16 %v15906_v35, %v15905_v34  ;;  %v9663_v49 = vld [vmem:[#allocation17 + $0x2b4] ss:$8 sps:$4 sm:$0xff]   ;;  %v14691_v16 = vmul.f32 0.5, %v6145_v42  ;;  %v6397_v24 = vmul.f32 0.70710677, %v6034_v10 }
 0xccb   : > { %v10197_v55 = vpop.eup %10196  ;;  %v6036_v3 = vadd.f32 %v15907_v54, %v15827_v53  ;;  %v14696_v46 = vmul.f32 %v6631_v18, %v14623_v20  ;;  %v14699_v30 = vmul.f32 %v6630_v25, %v14632_v37  ;;  %v6399_v5 = vmul.f32 0.70710677, %v6147_v31  ;;  %v9661_v35 = vld [vmem:[#allocation17 + $0x2b0] ss:$8 sps:$4 sm:$0xff]   ;;  %v9666_v18 = vld [vmem:[#allocation17 + $0x2c4] ss:$8 sps:$4 sm:$0xff]  }
 0xccc   : > { %v10199_v13 = vpop.eup %10198  ;;  %7821 = vmatmul.mubr.bf16.gmra.mrb[108].mxu0 %v6827_v33  ;;  %v6149_v40 = vadd.f32 %v14372_v6, %v15832_v0  ;;  %v14704_v57 = vmul.f32 %v6632_v2, %v14637_v17  ;;  %v6637_v42 = vadd.f32 1.0, %v10197_v55  ;;  %10212 = verf.f32 %v6397_v24  ;;  %v15910_v6 = vld [vmem:[#allocation115_spill] sm:$0xff]  ;;  %v15911_v17 = vld [vmem:[#allocation121_spill] sm:$0xff] }
 0xccd   : > { %15908 = vst [vmem:[#allocation86_spill] sm:$0xff] %v14696_v46  ;;  %15909 = vst [vmem:[#allocation89_spill] sm:$0xff] %v14699_v30  ;;  %v6398_v34 = vmul.f32 0.70710677, %v6036_v3  ;;  %7892 = vmatpush1.bf16.msra.mxu0 %v9658_v22  ;;  %v10201_v54 = vpop.eup %10200  ;;  %v6639_v41 = vadd.f32 1.0, %v10199_v13  ;;  %v14706_v20 = vmul.f32 0.5, %v6034_v10  ;;  %10214 = verf.f32 %v6399_v5 }
 0xcce   : > { %v6400_v37 = vmul.f32 0.70710677, %v6149_v40  ;;  %7893 = vmatprep.subr.bf16.mxu0 %v9663_v49  ;;  %v10203_v25 = vpop.eup %10202  ;;  %v6638_v33 = vadd.f32 1.0, %v10201_v54  ;;  %v14708_v46 = vmul.f32 0.5, %v6147_v31  ;;  %v6836_v2 = vpack.c.bf16 %v15911_v17, %v15910_v6  ;;  %v15912_v31 = vld [vmem:[#allocation145_spill] sm:$0xff] }
 0xccf   : > { %10216 = verf.f32 %v6398_v34  ;;  %v10205_v55 = vpop.eup %10204  ;;  %v6640_v24 = vadd.f32 1.0, %v10203_v25  ;;  %v6040_v13 = vadd.f32 %v14393_v38, %v15824_v43  ;;  %v6153_v10 = vadd.f32 %v14399_v27, %v15825_v15  ;;  %v9664_v54 = vld [vmem:[#allocation17 + $0x2c0] ss:$8 sps:$4 sm:$0xff]  }
 0xcd0   : > { %10218 = verf.f32 %v6400_v37  ;;  %v14717_v22 = vmul.f32 %v6637_v42, %v14639_v9  ;;  %v14719_v49 = vmul.f32 0.5, %v6036_v3  ;;  %7830 = vmatprep.mubr.bf16.mxu0 %v6836_v2  ;;  %v6042_v5 = vadd.f32 %v15912_v31, %v15827_v53  ;;  %v9669_v3 = vld [vmem:[#allocation17 + $0x2d4] ss:$8 sps:$4 sm:$0xff]  }
 0xcd1   : > { %v6155_v34 = vadd.f32 %v14410_v12, %v15832_v0  ;;  %7894 = vmatpush1.bf16.msra.mxu0 %v9661_v35  ;;  %v14726_v38 = vmul.f32 %v6639_v41, %v14652_v56  ;;  %v6645_v25 = vadd.f32 1.0, %v10205_v55  ;;  %v14728_v27 = vmul.f32 0.5, %v6149_v40 }
 0xcd2   : > { %v10207_v37 = vpop.eup %10206  ;;  %v6405_v9 = vmul.f32 0.70710677, %v6040_v13  ;;  %7895 = vmatprep.subr.bf16.mxu0 %v9666_v18  ;;  %v14731_v6 = vmul.f32 %v6638_v33, %v14664_v26  ;;  %v14734_v17 = vmul.f32 %v6640_v24, %v14668_v44  ;;  %v14736_v12 = vmul.f32 0.5, %v6040_v13  ;;  %v9667_v24 = vld [vmem:[#allocation17 + $0x2d0] ss:$8 sps:$4 sm:$0xff]  }
 0xcd3   : > { %v10209_v42 = vpop.eup %10208  ;;  %v6407_v35 = vmul.f32 0.70710677, %v6153_v10  ;;  %v6647_v31 = vadd.f32 1.0, %v10207_v37  ;;  %v14738_v41 = vmul.f32 0.5, %v6153_v10  ;;  %v6406_v56 = vmul.f32 0.70710677, %v6042_v5 }
 0xcd4   : > { %15913 = vst [vmem:[#allocation38_spill] sm:$0xff] %v14731_v6  ;;  %v10211_v2 = vpop.eup %10210  ;;  %10220 = verf.f32 %v6405_v9  ;;  %v6646_v40 = vadd.f32 1.0, %v10209_v42  ;;  %v6408_v18 = vmul.f32 0.70710677, %v6155_v34  ;;  %v14741_v26 = vmul.f32 %v6645_v25, %v14676_v7  ;;  %v15916_v37 = vld [vmem:[#allocation114_spill] sm:$0xff]  ;;  %v15950_v6 = vld [vmem:[#allocation76_spill] sm:$0xff] }
 0xcd5   : > { %v6648_v55 = vadd.f32 1.0, %v10211_v2  ;;  %10222 = verf.f32 %v6407_v35  ;;  %7896 = vmatpush1.bf16.msra.mxu0 %v9664_v54  ;;  %v6044_v44 = vadd.f32 %v14412_v19, %v15824_v43  ;;  %v6157_v33 = vadd.f32 %v14414_v14, %v15825_v15  ;;  %v15917_v9 = vld [vmem:[#allocation118_spill] sm:$0xff]  ;;  %v9672_v54 = vld [vmem:[#allocation17 + $0x2e4] ss:$8 sps:$4 sm:$0xff]  }
 0xcd6   : > { %15914 = vst [vmem:[#allocation113_spill] sm:$0xff] %v14741_v26  ;;  %10224 = verf.f32 %v6406_v56  ;;  %7897 = vmatprep.subr.bf16.mxu0 %v9669_v3  ;;  %v10213_v13 = vpop.eup %10212  ;;  %v14747_v10 = vmul.f32 0.5, %v6042_v5  ;;  %v6835_v42 = vpack.c.bf16 %v15917_v9, %v15916_v37  ;;  %v6046_v7 = vadd.f32 %v14416_v61, %v15827_v53 }
 0xcd7   : > { %10226 = verf.f32 %v6408_v18  ;;  %v10215_v25 = vpop.eup %10214  ;;  %v14754_v35 = vmul.f32 %v6647_v31, %v14678_v39  ;;  %v6653_v43 = vadd.f32 1.0, %v10213_v13  ;;  %v14756_v19 = vmul.f32 0.5, %v6155_v34  ;;  %v9670_v34 = vld [vmem:[#allocation17 + $0x2e0] ss:$8 sps:$4 sm:$0xff]   ;;  %v9675_v13 = vld [vmem:[#allocation17 + $0x2f4] ss:$8 sps:$4 sm:$0xff]  }
 0xcd8   : > { %15915 = vst [vmem:[#allocation134_spill] sm:$0xff] %v14747_v10  ;;  %v6413_v15 = vmul.f32 0.70710677, %v6044_v44  ;;  %v14759_v5 = vmul.f32 %v6646_v40, %v14689_v58  ;;  %v14762_v3 = vmul.f32 %v6648_v55, %v14691_v16  ;;  %v6415_v2 = vmul.f32 0.70710677, %v6157_v33  ;;  %7831 = vmatmul.mubr.bf16.gmra.mrb[112].mxu0 %v6835_v42  ;;  %v15920_v16 = vld [vmem:[#allocation123_spill] sm:$0xff] }
 0xcd9   : > { %15918 = vst [vmem:[#allocation135_spill] sm:$0xff] %v14756_v19  ;;  %v10217_v14 = vpop.eup %10216  ;;  %v6414_v56 = vmul.f32 0.70710677, %v6046_v7  ;;  %v14764_v18 = vmul.f32 0.5, %v6044_v44  ;;  %v14768_v39 = vadd.f32 %v14422_v28, %v15832_v0  ;;  %7898 = vmatpush1.bf16.msra.mxu0 %v9667_v24  ;;  %v6655_v31 = vadd.f32 1.0, %v10215_v25  ;;  %v15921_v40 = vld [vmem:[#allocation128_spill] sm:$0xff] }
 0xcda   : > { %15919 = vst [vmem:[#allocation88_spill] sm:$0xff] %v14759_v5  ;;  %v10219_v53 = vpop.eup %10218  ;;  %v6654_v61 = vadd.f32 1.0, %v10217_v14  ;;  %10228 = verf.f32 %v6413_v15  ;;  %v14770_v58 = vmul.f32 0.5, %v6157_v33  ;;  %v6844_v55 = vpack.c.bf16 %v15921_v40, %v15920_v16  ;;  %7899 = vmatprep.subr.bf16.mxu0 %v9672_v54  ;;  %v15924_v28 = vld [vmem:[#allocation122_spill] sm:$0xff]  ;;  %v15925_v33 = vld [vmem:[#allocation127_spill] sm:$0xff]  ;;  %v15928_v14 = vld [vmem:[#allocation129_spill] sm:$0xff] }
 0xcdb   : > { %10230 = verf.f32 %v6415_v2  ;;  %v14775_v37 = vmul.f32 %v6653_v43, %v14706_v20  ;;  %v6656_v44 = vadd.f32 1.0, %v10219_v53  ;;  %v6416_v9 = vmul.f32 0.70710677, %v14768_v39  ;;  %v15926_v42 = vld [vmem:[#allocation111_spill] sm:$0xff]  ;;  %v15930_v20 = vld [vmem:[#allocation137_spill] sm:$0xff]  ;;  %v15933_v40 = vld [vmem:[#allocation138_spill] sm:$0xff] }
 0xcdc   : > { %10232 = verf.f32 %v6414_v56  ;;  %v14779_v0 = vmul.f32 %v6654_v61, %v14719_v49  ;;  %7840 = vmatprep.mubr.bf16.mxu0 %v6844_v55  ;;  %v6843_v24 = vpack.c.bf16 %v15925_v33, %v15924_v28  ;;  %v15927_v25 = vld [vmem:[#allocation79_spill] sm:$0xff]  ;;  %v15932_v53 = vld [vmem:[#allocation133_spill] sm:$0xff]  ;;  %v6286_v19 = vmul.f32 0.5, %v6046_v7  ;;  %v15944_v5 = vld [vmem:[#allocation80_spill] sm:$0xff] }
 0xcdd   : > { %15922 = vst [vmem:[#allocation90_spill] sm:$0xff] %v14775_v37  ;;  %v6852_v15 = vpack.c.bf16 %v15927_v25, %v15926_v42  ;;  %v15929_v54 = vld [vmem:[#allocation131_spill] sm:$0xff]  ;;  %10234 = verf.f32 %v6416_v9  ;;  %7900 = vmatpush1.bf16.msra.mxu0 %v9670_v34  ;;  %v9673_v10 = vld [vmem:[#allocation17 + $0x2f0] ss:$8 sps:$4 sm:$0xff]   ;;  %v14806_v25 = vmul.f32 %v6655_v31, %v14708_v46  ;;  %v14809_v9 = vmul.f32 %v6656_v44, %v14728_v27 }
 0xcde   : > { %15923 = vst [vmem:[#allocation136_spill] sm:$0xff] %v14779_v0  ;;  %v10221_v16 = vpop.eup %10220  ;;  %v15931_v43 = vld [vmem:[#allocation139_spill] sm:$0xff]  ;;  %7901 = vmatprep.subr.bf16.mxu0 %v9675_v13  ;;  %v15942_v27 = vld [vmem:[#allocation81_spill] sm:$0xff]  ;;  %v15951_v46 = vld [vmem:[#allocation78_spill] sm:$0xff]  ;;  %v6288_v30 = vmul.f32 0.5, %v14768_v39 }
 0xcdf   : > { %v15934_v49 = vld [vmem:[#allocation143_spill] sm:$0xff]  ;;  %v10223_v28 = vpop.eup %10222  ;;  %v6661_v33 = vadd.f32 1.0, %v10221_v16  ;;  %v15947_v34 = vld [vmem:[#allocation85_spill] sm:$0xff]  ;;  %v15952_v44 = vld [vmem:[#allocation86_spill] sm:$0xff] }
 0xce0   : > { %v15935_v61 = vld [vmem:[#allocation147_spill] sm:$0xff]  ;;  %v10225_v2 = vpop.eup %10224  ;;  %7841 = vmatmul.mubr.bf16.gmra.mrb[116].mxu0 %v6843_v24  ;;  %v6663_v55 = vadd.f32 1.0, %v10223_v28  ;;  %v15948_v13 = vld [vmem:[#allocation77_spill] sm:$0xff] }
 0xce1   : > { %v9678_v42 = vld [vmem:[#allocation17 + $0x304] ss:$8 sps:$4 sm:$0xff]   ;;  %v10227_v16 = vpop.eup %10226  ;;  %v14816_v56 = vmul.f32 %v6661_v33, %v14736_v12  ;;  %7850 = vmatprep.mubr.bf16.mxu0 %v6852_v15  ;;  %7902 = vmatpush1.bf16.msra.mxu0 %v9673_v10  ;;  %v6662_v31 = vadd.f32 1.0, %v10225_v2 }
 0xce2   : > { %7984 = vmatprep.subr.bf16.mxu0 %v9678_v42  ;;  %v6664_v15 = vadd.f32 1.0, %v10227_v16  ;;  %v15945_v24 = vld [vmem:[#allocation87_spill] sm:$0xff]  ;;  %v15949_v10 = vld [vmem:[#allocation132_spill] sm:$0xff]  ;;  %v14854_v33 = vmul.f32 %v6663_v55, %v14738_v41  ;;  %v15954_v16 = vpack.c.bf16 %v15929_v54, %v15928_v14  ;;  %v15957_v54 = vpack.c.bf16 %v15933_v40, %v15932_v53  ;;  %v9687_v40 = vld [vmem:[#allocation17 + $0x334] ss:$8 sps:$4 sm:$0xff]  }
 0xce3   : > { %v9682_v53 = vld [vmem:[#allocation17 + $0x320] ss:$8 sps:$4 sm:$0xff]  }
 0xce4   : > { %v10229_v28 = vpop.eup %10228 }
 0xce5   : > { %v10231_v42 = vpop.eup %10230  ;;  %v6669_v21 = vadd.f32 1.0, %v10229_v28 }
 0xce6   : > { %v10233_v12 = vpop.eup %10232  ;;  %v6671_v37 = vadd.f32 1.0, %v10231_v42 }
 0xce7   : > { %v14847_v2 = vmul.f32 %v6669_v21, %v14764_v18  ;;  %v6670_v0 = vadd.f32 1.0, %v10233_v12  ;;  %v10235_v42 = vpop.eup %10234  ;;  %v6855_v21 = vpack.c.bf16 %v14806_v25, %v14754_v35  ;;  %v15953_v18 = vld [vmem:[#allocation134_spill] sm:$0xff]  ;;  %v16007_v35 = vld [vmem:[#allocation75_spill] sm:$0xff] }
 0xce8   : > { %v14857_v7 = vmul.f32 %v6671_v37, %v14770_v58  ;;  %v14863_v12 = vmul.f32 %v6662_v31, %v15953_v18  ;;  %v6672_v26 = vadd.f32 1.0, %v10235_v42  ;;  %7851 = vmatmul.mubr.bf16.gmra.mrb[120].mxu0 %v15954_v16  ;;  %v15955_v58 = vpack.c.bf16 %v15931_v43, %v15930_v20  ;;  %v15956_v37 = vld [vmem:[#allocation135_spill] sm:$0xff]  ;;  %v9681_v31 = vld [vmem:[#allocation17 + $0x314] ss:$8 sps:$4 sm:$0xff]   ;;  %v15960_v16 = vld [vmem:[#allocation140_spill] sm:$0xff] }
 0xce9   : > { %v14865_v28 = vmul.f32 %v6670_v0, %v6286_v19  ;;  %v6861_v41 = vpack.c.bf16 %v14847_v2, %v14816_v56  ;;  %v14878_v55 = vmul.f32 %v6664_v15, %v15956_v37  ;;  %v15958_v20 = vpack.c.bf16 %v15935_v61, %v15934_v49  ;;  %v9676_v43 = vld [vmem:[#allocation17 + $0x300] ss:$8 sps:$4 sm:$0xff]   ;;  %v9679_v42 = vld [vmem:[#allocation17 + $0x310] ss:$8 sps:$4 sm:$0xff]   ;;  %v9684_v18 = vld [vmem:[#allocation17 + $0x324] ss:$8 sps:$4 sm:$0xff]  }
 0xcea   : > { %7860 = vmatprep.mubr.bf16.mxu0 %v15955_v58  ;;  %v6863_v39 = vpack.c.bf16 %v14857_v7, %v14854_v33  ;;  %v14880_v19 = vmul.f32 %v6672_v26, %v6288_v30  ;;  %v15959_v15 = vld [vmem:[#allocation144_spill] sm:$0xff]  ;;  %v15962_v26 = vpack.c.bf16 %v14499_v8, %v14457_v51  ;;  %v15963_v49 = vpack.c.bf16 %v14477_v29, %v14439_v63  ;;  %v9685_v58 = vld [vmem:[#allocation17 + $0x330] ss:$8 sps:$4 sm:$0xff]   ;;  %v9693_v37 = vld [vmem:[#allocation17 + $0x354] ss:$8 sps:$4 sm:$0xff]  }
 0xceb   : > { %v6862_v0 = vpack.c.bf16 %v14865_v28, %v14863_v12  ;;  %v15961_v30 = vpack.c.bf16 %v15959_v15, %v15960_v16  ;;  %v15964_v61 = vpack.c.bf16 %v14555_v52, %v14523_v4  ;;  %v9690_v51 = vld [vmem:[#allocation17 + $0x344] ss:$8 sps:$4 sm:$0xff]   ;;  %v9688_v8 = vld [vmem:[#allocation17 + $0x340] ss:$8 sps:$4 sm:$0xff]   ;;  %v15966_v63 = vpack.c.bf16 %v14611_v45, %v14583_v60  ;;  %v9691_v29 = vld [vmem:[#allocation17 + $0x350] ss:$8 sps:$4 sm:$0xff]  }
 0xcec   : > { %v6864_v14 = vpack.c.bf16 %v14880_v19, %v14878_v55  ;;  %v9696_v4 = vld [vmem:[#allocation17 + $0x364] ss:$8 sps:$4 sm:$0xff]   ;;  %v9694_v52 = vld [vmem:[#allocation17 + $0x360] ss:$8 sps:$4 sm:$0xff]   ;;  %v15969_v15 = vpack.c.bf16 %v14655_v11, %v14617_v1  ;;  %v15970_v16 = vld [vmem:[#allocation38_spill] sm:$0xff]  ;;  %v15993_v2 = vpack.c.bf16 %v14562_v59, %v15942_v27  ;;  %v16000_v59 = vpack.c.bf16 %v15951_v46, %v15950_v6 }
 0xced   : > { %v9702_v60 = vld [vmem:[#allocation17 + $0x384] ss:$8 sps:$4 sm:$0xff]   ;;  %v9700_v45 = vld [vmem:[#allocation17 + $0x380] ss:$8 sps:$4 sm:$0xff]   ;;  %v15985_v12 = vld [vmem:[#allocation142_spill] sm:$0xff] }
 0xcee   : > { %v15976_v1 = vld [vmem:[#allocation88_spill] sm:$0xff]  ;;  %v16008_v25 = vld [vmem:[#allocation36_spill] sm:$0xff] }
 0xcef   : > { %v15984_v28 = vld [vmem:[#allocation120_spill] sm:$0xff] }
 0xcf0   : > { %7861 = vmatmul.mubr.bf16.gmra.mrb[124].mxu0 %v15957_v54  ;;  %v15965_v54 = vpack.c.bf16 %v14539_v50, %v14507_v47  ;;  %v15968_v47 = vpack.c.bf16 %v14671_v36, %v14635_v23  ;;  %v9697_v50 = vld [vmem:[#allocation17 + $0x370] ss:$8 sps:$4 sm:$0xff]   ;;  %v9708_v23 = vld [vmem:[#allocation17 + $0x3a4] ss:$8 sps:$4 sm:$0xff]   ;;  %v9706_v36 = vld [vmem:[#allocation17 + $0x3a0] ss:$8 sps:$4 sm:$0xff]  }
 0xcf1   : > { %7903 = vmatprep.mubr.bf16.mxu0 %v15958_v20  ;;  %v9699_v20 = vld [vmem:[#allocation17 + $0x374] ss:$8 sps:$4 sm:$0xff]   ;;  %v16009_v46 = vld [vmem:[#allocation37_spill] sm:$0xff] }
 0xcf2   : > { %v15000_v7 = vrot.slane %v16009_v46, %v16007_v35 }
 0xcf8   : > { %7904 = vmatmul.mubr.bf16.vlgmr.msra.gmra.mrb[96].mxu0 %v15961_v30  ;;  %v9703_v30 = vld [vmem:[#allocation17 + $0x390] ss:$8 sps:$4 sm:$0xff]  }
 0xcf9   : > { %7985 = vmatpush1.bf16.msra.mxu0 %v9676_v43  ;;  %7913 = vmatprep.mubr.bf16.mxu0 %v15962_v26  ;;  %v15967_v43 = vpack.c.bf16 %v14595_v32, %v14565_v48  ;;  %v15971_v48 = vld [vmem:[#allocation89_spill] sm:$0xff] }
 0xcfa   : > { %7986 = vmatprep.subr.bf16.mxu0 %v9681_v31  ;;  %v9705_v31 = vld [vmem:[#allocation17 + $0x394] ss:$8 sps:$4 sm:$0xff]   ;;  %v15972_v32 = vpack.c.bf16 %v15970_v16, %v15971_v48  ;;  %v15996_v16 = vpack.c.bf16 %v15945_v24, %v14592_v62  ;;  %v16002_v62 = vpack.c.bf16 %v14726_v38, %v15952_v44  ;;  %v16005_v38 = vld [vmem:[#allocation92_spill] sm:$0xff] }
 0xcfb   : > { %v9711_v26 = vld [vmem:[#allocation17 + $0x3b4] ss:$8 sps:$4 sm:$0xff]  }
 0xcfc   : > { %v15997_v48 = vld [vmem:[#allocation130_spill] sm:$0xff] }
 0xcfd   : > { %7987 = vmatpush1.bf16.msra.mxu0 %v9679_v42  ;;  %v15973_v42 = vld [vmem:[#allocation84_spill] sm:$0xff] }
 0xcfe   : > { %7988 = vmatprep.subr.bf16.mxu0 %v9684_v18  ;;  %v15974_v18 = vpack.c.bf16 %v14717_v22, %v15973_v42  ;;  %v9715_v22 = vld [vmem:[#allocation17 + $0x3d0] ss:$8 sps:$4 sm:$0xff]  }
 0xd00   : > { %7914 = vmatmul.mubr.bf16.gmra.mrb[100].mxu0 %v15963_v49  ;;  %v9714_v49 = vld [vmem:[#allocation17 + $0x3c4] ss:$8 sps:$4 sm:$0xff]  }
 0xd01   : > { %7989 = vmatpush1.bf16.msra.mxu0 %v9682_v53  ;;  %7923 = vmatprep.mubr.bf16.mxu0 %v15964_v61  ;;  %v15975_v53 = vld [vmem:[#allocation136_spill] sm:$0xff] }
 0xd02   : > { %7990 = vmatprep.subr.bf16.mxu0 %v9687_v40  ;;  %v15977_v11 = vpack.c.bf16 %v15975_v53, %v15976_v1  ;;  %v9709_v40 = vld [vmem:[#allocation17 + $0x3b0] ss:$8 sps:$4 sm:$0xff]   ;;  %v9712_v61 = vld [vmem:[#allocation17 + $0x3c0] ss:$8 sps:$4 sm:$0xff]  }
 0xd03   : > { %v16012_v53 = vld [vmem:[#allocation103_spill] sm:$0xff] }
 0xd05   : > { %7991 = vmatpush1.bf16.msra.mxu0 %v9685_v58  ;;  %v9717_v58 = vld [vmem:[#allocation17 + $0x3d4] ss:$8 sps:$4 sm:$0xff]  }
 0xd06   : > { %7992 = vmatprep.subr.bf16.mxu0 %v9690_v51  ;;  %v15978_v51 = vld [vmem:[#allocation90_spill] sm:$0xff] }
 0xd08   : > { %7924 = vmatmul.mubr.bf16.gmra.mrb[104].mxu0 %v15965_v54  ;;  %v9720_v54 = vld [vmem:[#allocation17 + $0x3e4] ss:$8 sps:$4 sm:$0xff]  }
 0xd09   : > { %7993 = vmatpush1.bf16.msra.mxu0 %v9688_v8  ;;  %7933 = vmatprep.mubr.bf16.mxu0 %v15966_v63  ;;  %v15979_v8 = vld [vmem:[#allocation113_spill] sm:$0xff]  ;;  %v9718_v63 = vld [vmem:[#allocation17 + $0x3e0] ss:$8 sps:$4 sm:$0xff]  }
 0xd0a   : > { %7994 = vmatprep.subr.bf16.mxu0 %v9693_v37  ;;  %v15980_v37 = vpack.c.bf16 %v15978_v51, %v15979_v8 }
 0xd0d   : > { %7995 = vmatpush1.bf16.msra.mxu0 %v9691_v29  ;;  %v9723_v29 = vld [vmem:[#allocation17 + $0x3f4] ss:$8 sps:$4 sm:$0xff]  }
 0xd0e   : > { %7996 = vmatprep.subr.bf16.mxu0 %v9696_v4  ;;  %v15981_v4 = vld [vmem:[#allocation148_spill] sm:$0xff] }
 0xd10   : > { %7934 = vmatmul.mubr.bf16.gmra.mrb[108].mxu0 %v15967_v43  ;;  %v9721_v43 = vld [vmem:[#allocation17 + $0x3f0] ss:$8 sps:$4 sm:$0xff]  }
 0xd11   : > { %7997 = vmatpush1.bf16.msra.mxu0 %v9694_v52  ;;  %7943 = vmatprep.mubr.bf16.mxu0 %v15968_v47  ;;  %v15982_v52 = vld [vmem:[#allocation146_spill] sm:$0xff] }
 0xd12   : > { %7998 = vmatprep.subr.bf16.mxu0 %v9699_v20  ;;  %v15983_v20 = vpack.c.bf16 %v15981_v4, %v15982_v52  ;;  %v15987_v47 = vld [vmem:[#allocation82_spill] sm:$0xff] }
 0xd13   : > { %v16014_v4 = vld [vmem:[#allocation98_spill] sm:$0xff] }
 0xd15   : > { %7999 = vmatpush1.bf16.msra.mxu0 %v9697_v50  ;;  %v15988_v50 = vld [vmem:[#allocation125_spill] sm:$0xff] }
 0xd16   : > { %8000 = vmatprep.subr.bf16.mxu0 %v9702_v60  ;;  %v15989_v60 = vpack.c.bf16 %v15987_v47, %v15988_v50  ;;  %v16017_v50 = vld [vmem:[#allocation106_spill] sm:$0xff] }
 0xd18   : > { %7944 = vmatmul.mubr.bf16.gmra.mrb[112].mxu0 %v15969_v15 }
 0xd19   : > { %8001 = vmatpush1.bf16.msra.mxu0 %v9700_v45  ;;  %7953 = vmatprep.mubr.bf16.mxu0 %v15972_v32  ;;  %v15990_v45 = vld [vmem:[#allocation126_spill] sm:$0xff]  ;;  %v15998_v32 = vpack.c.bf16 %v15947_v34, %v15997_v48  ;;  %v16003_v34 = vpack.c.bf16 %v14809_v9, %v14762_v3  ;;  %v14996_v9 = vrot.slane %v16008_v25, %v16007_v35  ;;  %v16021_v25 = vld [vmem:[#allocation101_spill] sm:$0xff] }
 0xd1a   : > { %8002 = vmatprep.subr.bf16.mxu0 %v9705_v31  ;;  %v15991_v31 = vld [vmem:[#allocation124_spill] sm:$0xff] }
 0xd1b   : > { %v15992_v56 = vpack.c.bf16 %v15990_v45, %v15991_v31 }
 0xd1d   : > { %8003 = vmatpush1.bf16.msra.mxu0 %v9703_v30  ;;  %v15999_v30 = vpack.c.bf16 %v15949_v10, %v15948_v13 }
 0xd1e   : > { %8004 = vmatprep.subr.bf16.mxu0 %v9708_v23 }
 0xd20   : > { %7954 = vmatmul.mubr.bf16.gmra.mrb[116].mxu0 %v15974_v18 }
 0xd21   : > { %8005 = vmatpush1.bf16.msra.mxu0 %v9706_v36  ;;  %7963 = vmatprep.mubr.bf16.mxu0 %v15977_v11  ;;  %v16013_v11 = vld [vmem:[#allocation96_spill] sm:$0xff] }
 0xd22   : > { %8006 = vmatprep.subr.bf16.mxu0 %v9711_v26  ;;  %v16011_v26 = vld [vmem:[#allocation95_spill] sm:$0xff] }
 0xd25   : > { %8007 = vmatpush1.bf16.msra.mxu0 %v9709_v40 }
 0xd26   : > { %8008 = vmatprep.subr.bf16.mxu0 %v9714_v49 }
 0xd28   : > { %7964 = vmatmul.mubr.bf16.gmra.mrb[120].mxu0 %v15980_v37 }
 0xd29   : > { %8009 = vmatpush1.bf16.msra.mxu0 %v9712_v61  ;;  %7973 = vmatprep.mubr.bf16.mxu0 %v6862_v0  ;;  %v15986_v0 = vpack.c.bf16 %v15984_v28, %v15985_v12 }
 0xd2a   : > { %8010 = vmatprep.subr.bf16.mxu0 %v9717_v58 }
 0xd2d   : > { %8011 = vmatpush1.bf16.msra.mxu0 %v9715_v22 }
 0xd2e   : > { %8012 = vmatprep.subr.bf16.mxu0 %v9720_v54 }
 0xd30   : > { %7974 = vmatmul.mubr.bf16.gmra.mrb[124].mxu0 %v6861_v41  ;;  %v15994_v41 = vld [vmem:[#allocation83_spill] sm:$0xff] }
 0xd31   : > { %8013 = vmatpush1.bf16.msra.mxu0 %v9718_v63  ;;  %8016 = vmatprep.mubr.bf16.mxu0 %v15983_v20  ;;  %v15995_v15 = vpack.c.bf16 %v15944_v5, %v15994_v41  ;;  %v16001_v5 = vpack.c.bf16 %v14734_v17, %v14704_v57  ;;  %v6993_v57 = vld [vmem:[%s16004_s23] sm:$0x3]  ;;  %v16006_v17 = vld [vmem:[#allocation93_spill] sm:$0xff] }
 0xd32   : > { %8014 = vmatprep.subr.bf16.mxu0 %v9723_v29  ;;  %v14989_v6 = vrot.slane %v6993_v57, %v16005_v38  ;;  %v14992_v3 = vrot.slane %v6993_v57, %v16006_v17  ;;  %v16020_v17 = vld [vmem:[#allocation107_spill] sm:$0xff] }
 0xd35   : > { %8015 = vmatpush1.bf16.msra.mxu0 %v9721_v43  ;;  %v16015_v43 = vld [vmem:[#allocation104_spill] sm:$0xff] }
 0xd38   : > { %8017 = vmatmul.mubr.bf16.vlgmr.msra.gmra.mrb[96].mxu0 %v15986_v0  ;;  %v16016_v0 = vld [vmem:[#allocation97_spill] sm:$0xff] }
 0xd39   : > { %8026 = vmatprep.mubr.bf16.mxu0 %v15989_v60 }
 0xd40   : > { %8027 = vmatmul.mubr.bf16.gmra.mrb[100].mxu0 %v15992_v56 }
 0xd41   : > { %8036 = vmatprep.mubr.bf16.mxu0 %v15993_v2 }
 0xd48   : > { %8037 = vmatmul.mubr.bf16.gmra.mrb[104].mxu0 %v15995_v15 }
 0xd49   : > { %8046 = vmatprep.mubr.bf16.mxu0 %v15996_v16 }
 0xd50   : > { %8047 = vmatmul.mubr.bf16.gmra.mrb[108].mxu0 %v15998_v32 }
 0xd51   : > { %8056 = vmatprep.mubr.bf16.mxu0 %v15999_v30 }
 0xd58   : > { %8057 = vmatmul.mubr.bf16.gmra.mrb[112].mxu0 %v16000_v59  ;;  %v16018_v59 = vld [vmem:[#allocation99_spill] sm:$0xff] }
 0xd59   : > { %8066 = vmatprep.mubr.bf16.mxu0 %v16001_v5 }
 0xd60   : > { %8067 = vmatmul.mubr.bf16.gmra.mrb[116].mxu0 %v16002_v62 }
 0xd61   : > { %8076 = vmatprep.mubr.bf16.mxu0 %v16003_v34  ;;  %v16019_v34 = vld [vmem:[#allocation105_spill] sm:$0xff] }
 0xd68   : > { %8077 = vmatmul.mubr.bf16.gmra.mrb[120].mxu0 %v6855_v21 }
 0xd69   : > { %8086 = vmatprep.mubr.bf16.mxu0 %v6864_v14  ;;  %v16010_v14 = vld [vmem:[#allocation94_spill] sm:$0xff] }
 0xd70   : > { %8087 = vmatmul.mubr.bf16.gmra.mrb[124].mxu0 %v6863_v39 }
 0xe0b   : > { %v8018_v13 = vpop.f32.mrb[96].mxu0 }
 0xe0c   : > { %v8980_v27 = vadd.f32 %v8018_v13, %v14989_v6  ;;  %v8020_v44 = vpop.f32.mrb[97].mxu0 }
 0xe0d   : > { %v8981_v24 = vadd.f32 %v8020_v44, %v14992_v3  ;;  %v8022_v33 = vpop.f32.mrb[98].mxu0 }
 0xe0e   : > { %v8105_v10 = vmul.f32 %v8980_v27, %v14996_v9  ;;  %v8982_v21 = vadd.f32 %v8022_v33, %v14989_v6  ;;  %v8024_v39 = vpop.f32.mrb[99].mxu0 }
 0xe0f   : > { %v8106_v55 = vmul.f32 %v8981_v24, %v15000_v7  ;;  %v8983_v19 = vadd.f32 %v8024_v39, %v14992_v3 }
 0xe10   : > { %v8137_v23 = vadd.f32 %v8105_v10, %v16010_v14  ;;  %v8107_v36 = vmul.f32 %v8982_v21, %v14996_v9  ;;  %v16022_v14 = vld [vmem:[#allocation108_spill] sm:$0xff] }
 0xe11   : > { %v8138_v42 = vadd.f32 %v8106_v55, %v16011_v26  ;;  %v8108_v18 = vmul.f32 %v8983_v19, %v15000_v7  ;;  %v16023_v26 = vld [vmem:[#allocation100_spill] sm:$0xff] }
 0xe12   : > { %8169 = vst [vmem:[%s11004_s14] sm:$0xff] %v8137_v23  ;;  %v8139_v1 = vadd.f32 %v8107_v36, %v16012_v53  ;;  %v16024_v53 = vld [vmem:[#allocation102_spill] sm:$0xff] }
 0xe13   : > { %8170 = vst [vmem:[%s11004_s14 + $0x8] sm:$0xff] %v8138_v42  ;;  %v8140_v40 = vadd.f32 %v8108_v18, %v16013_v11  ;;  %v8028_v49 = vpop.f32.mrb[100].mxu0  ;;  %v16025_v11 = vld [vmem:[#allocation91_spill] sm:$0xff] }
 0xe14   : > { %8171 = vst [vmem:[%s11004_s14 + $0x10] sm:$0xff] %v8139_v1  ;;  %v8984_v61 = vadd.f32 %v8028_v49, %v14989_v6  ;;  %v8030_v58 = vpop.f32.mrb[101].mxu0 }
 0xe15   : > { %8172 = vst [vmem:[%s11004_s14 + $0x18] sm:$0xff] %v8140_v40  ;;  %v8985_v51 = vadd.f32 %v8030_v58, %v14992_v3  ;;  %v8032_v8 = vpop.f32.mrb[102].mxu0 }
 0xe16   : > { %v8109_v37 = vmul.f32 %v8984_v61, %v14996_v9  ;;  %v8986_v22 = vadd.f32 %v8032_v8, %v14989_v6  ;;  %v8034_v54 = vpop.f32.mrb[103].mxu0 }
 0xe17   : > { %v8110_v63 = vmul.f32 %v8985_v51, %v15000_v7  ;;  %v8987_v29 = vadd.f32 %v8034_v54, %v14992_v3 }
 0xe18   : > { %v8141_v52 = vadd.f32 %v8109_v37, %v16014_v4  ;;  %v8111_v20 = vmul.f32 %v8986_v22, %v14996_v9  ;;  %v16026_v4 = vld [vmem:[#allocation59_spill] sm:$0xff] }
 0xe19   : > { %v8142_v28 = vadd.f32 %v8110_v63, %v16015_v43  ;;  %v8112_v12 = vmul.f32 %v8987_v29, %v15000_v7  ;;  %v16027_v43 = vld [vmem:[#allocation60_spill] sm:$0xff] }
 0xe1a   : > { %8173 = vst [vmem:[%s11004_s14 + $0x20] sm:$0xff] %v8141_v52  ;;  %v8143_v47 = vadd.f32 %v8111_v20, %v16016_v0  ;;  %v16028_v0 = vld [vmem:[#allocation63_spill] sm:$0xff] }
 0xe1b   : > { %8174 = vst [vmem:[%s11004_s14 + $0x28] sm:$0xff] %v8142_v28  ;;  %v8144_v60 = vadd.f32 %v8112_v12, %v16017_v50  ;;  %v8038_v45 = vpop.f32.mrb[104].mxu0  ;;  %v16029_v50 = vld [vmem:[#allocation64_spill] sm:$0xff] }
 0xe1c   : > { %8175 = vst [vmem:[%s11004_s14 + $0x30] sm:$0xff] %v8143_v47  ;;  %v8988_v31 = vadd.f32 %v8038_v45, %v14989_v6  ;;  %v8040_v56 = vpop.f32.mrb[105].mxu0 }
 0xe1d   : > { %8176 = vst [vmem:[%s11004_s14 + $0x38] sm:$0xff] %v8144_v60  ;;  %v8989_v2 = vadd.f32 %v8040_v56, %v14992_v3  ;;  %v8042_v41 = vpop.f32.mrb[106].mxu0 }
 0xe1e   : > { %v8113_v15 = vmul.f32 %v8988_v31, %v14996_v9  ;;  %v8990_v16 = vadd.f32 %v8042_v41, %v14989_v6  ;;  %v8044_v48 = vpop.f32.mrb[107].mxu0 }
 0xe1f   : > { %v8114_v32 = vmul.f32 %v8989_v2, %v15000_v7  ;;  %v8991_v30 = vadd.f32 %v8044_v48, %v14992_v3 }
 0xe20   : > { %v8145_v5 = vadd.f32 %v8113_v15, %v16018_v59  ;;  %v8115_v62 = vmul.f32 %v8990_v16, %v14996_v9  ;;  %v16030_v59 = vld [vmem:[#allocation61_spill] sm:$0xff] }
 0xe21   : > { %v8146_v57 = vadd.f32 %v8114_v32, %v16019_v34  ;;  %v8116_v38 = vmul.f32 %v8991_v30, %v15000_v7  ;;  %v16031_v34 = vld [vmem:[#allocation62_spill] sm:$0xff] }
 0xe22   : > { %8177 = vst [vmem:[%s11004_s14 + $0x40] sm:$0xff] %v8145_v5  ;;  %v8147_v35 = vadd.f32 %v8115_v62, %v16020_v17  ;;  %v16032_v17 = vld [vmem:[#allocation65_spill] sm:$0xff] }
 0xe23   : > { %8178 = vst [vmem:[%s11004_s14 + $0x48] sm:$0xff] %v8146_v57  ;;  %v8148_v13 = vadd.f32 %v8116_v38, %v16021_v25  ;;  %v8048_v46 = vpop.f32.mrb[108].mxu0  ;;  %v16033_v25 = vld [vmem:[#allocation66_spill] sm:$0xff] }
 0xe24   : > { %8179 = vst [vmem:[%s11004_s14 + $0x50] sm:$0xff] %v8147_v35  ;;  %v8992_v27 = vadd.f32 %v8048_v46, %v14989_v6  ;;  %v8050_v44 = vpop.f32.mrb[109].mxu0 }
 0xe25   : > { %8180 = vst [vmem:[%s11004_s14 + $0x58] sm:$0xff] %v8148_v13  ;;  %v8993_v24 = vadd.f32 %v8050_v44, %v14992_v3  ;;  %v8052_v33 = vpop.f32.mrb[110].mxu0 }
 0xe26   : > { %v8117_v10 = vmul.f32 %v8992_v27, %v14996_v9  ;;  %v8994_v21 = vadd.f32 %v8052_v33, %v14989_v6  ;;  %v8054_v39 = vpop.f32.mrb[111].mxu0 }
 0xe27   : > { %v8118_v55 = vmul.f32 %v8993_v24, %v15000_v7  ;;  %v8995_v19 = vadd.f32 %v8054_v39, %v14992_v3 }
 0xe28   : > { %v8149_v23 = vadd.f32 %v8117_v10, %v16022_v14  ;;  %v8119_v36 = vmul.f32 %v8994_v21, %v14996_v9  ;;  %v16034_v14 = vld [vmem:[#allocation67_spill] sm:$0xff] }
 0xe29   : > { %v8150_v42 = vadd.f32 %v8118_v55, %v16023_v26  ;;  %v8120_v18 = vmul.f32 %v8995_v19, %v15000_v7  ;;  %v16035_v26 = vld [vmem:[#allocation68_spill] sm:$0xff] }
 0xe2a   : > { %8181 = vst [vmem:[%s11004_s14 + $0x60] sm:$0xff] %v8149_v23  ;;  %v8151_v1 = vadd.f32 %v8119_v36, %v16024_v53  ;;  %v16036_v53 = vld [vmem:[#allocation69_spill] sm:$0xff] }
 0xe2b   : > { %8182 = vst [vmem:[%s11004_s14 + $0x68] sm:$0xff] %v8150_v42  ;;  %v8152_v40 = vadd.f32 %v8120_v18, %v16025_v11  ;;  %v8058_v49 = vpop.f32.mrb[112].mxu0  ;;  %v16037_v11 = vld [vmem:[#allocation70_spill] sm:$0xff] }
 0xe2c   : > { %8183 = vst [vmem:[%s11004_s14 + $0x70] sm:$0xff] %v8151_v1  ;;  %v8996_v61 = vadd.f32 %v8058_v49, %v14989_v6  ;;  %v8060_v58 = vpop.f32.mrb[113].mxu0 }
 0xe2d   : > { %8184 = vst [vmem:[%s11004_s14 + $0x78] sm:$0xff] %v8152_v40  ;;  %v8997_v51 = vadd.f32 %v8060_v58, %v14992_v3  ;;  %v8062_v8 = vpop.f32.mrb[114].mxu0 }
 0xe2e   : > { %v8121_v37 = vmul.f32 %v8996_v61, %v14996_v9  ;;  %v8998_v22 = vadd.f32 %v8062_v8, %v14989_v6  ;;  %v8064_v54 = vpop.f32.mrb[115].mxu0 }
 0xe2f   : > { %v8122_v63 = vmul.f32 %v8997_v51, %v15000_v7  ;;  %v8999_v29 = vadd.f32 %v8064_v54, %v14992_v3 }
 0xe30   : > { %v8153_v52 = vadd.f32 %v8121_v37, %v16026_v4  ;;  %v8123_v20 = vmul.f32 %v8998_v22, %v14996_v9  ;;  %v16038_v4 = vld [vmem:[#allocation71_spill] sm:$0xff] }
 0xe31   : > { %v8154_v28 = vadd.f32 %v8122_v63, %v16027_v43  ;;  %v8124_v12 = vmul.f32 %v8999_v29, %v15000_v7  ;;  %v16040_v43 = vld [vmem:[#allocation72_spill] sm:$0xff] }
 0xe32   : > { %8185 = vst [vmem:[%s11004_s14 + $0x80] sm:$0xff] %v8153_v52  ;;  %v8155_v47 = vadd.f32 %v8123_v20, %v16028_v0 }
 0xe33   : > { %8186 = vst [vmem:[%s11004_s14 + $0x88] sm:$0xff] %v8154_v28  ;;  %v8156_v60 = vadd.f32 %v8124_v12, %v16029_v50  ;;  %v8068_v45 = vpop.f32.mrb[116].mxu0 }
 0xe34   : > { %8187 = vst [vmem:[%s11004_s14 + $0x90] sm:$0xff] %v8155_v47  ;;  %v9000_v31 = vadd.f32 %v8068_v45, %v14989_v6  ;;  %v8070_v56 = vpop.f32.mrb[117].mxu0 }
 0xe35   : > { %8188 = vst [vmem:[%s11004_s14 + $0x98] sm:$0xff] %v8156_v60  ;;  %v9001_v2 = vadd.f32 %v8070_v56, %v14992_v3  ;;  %v8072_v41 = vpop.f32.mrb[118].mxu0 }
 0xe36   : > { %v8125_v15 = vmul.f32 %v9000_v31, %v14996_v9  ;;  %v9002_v16 = vadd.f32 %v8072_v41, %v14989_v6  ;;  %v8074_v48 = vpop.f32.mrb[119].mxu0 }
 0xe37   : > { %v8126_v32 = vmul.f32 %v9001_v2, %v15000_v7  ;;  %v9003_v30 = vadd.f32 %v8074_v48, %v14992_v3 }
 0xe38   : > { %v8157_v5 = vadd.f32 %v8125_v15, %v16030_v59  ;;  %v8127_v62 = vmul.f32 %v9002_v16, %v14996_v9 }
 0xe39   : > { %v8158_v57 = vadd.f32 %v8126_v32, %v16031_v34  ;;  %v8128_v38 = vmul.f32 %v9003_v30, %v15000_v7 }
 0xe3a   : > { %8189 = vst [vmem:[%s11004_s14 + $0xa0] sm:$0xff] %v8157_v5  ;;  %v8159_v35 = vadd.f32 %v8127_v62, %v16032_v17 }
 0xe3b   : > { %8190 = vst [vmem:[%s11004_s14 + $0xa8] sm:$0xff] %v8158_v57  ;;  %v8160_v13 = vadd.f32 %v8128_v38, %v16033_v25  ;;  %v8078_v46 = vpop.f32.mrb[120].mxu0 }
 0xe3c   : > { %8191 = vst [vmem:[%s11004_s14 + $0xb0] sm:$0xff] %v8159_v35  ;;  %v9004_v27 = vadd.f32 %v8078_v46, %v14989_v6  ;;  %v8080_v44 = vpop.f32.mrb[121].mxu0 }
 0xe3d   : > { %8192 = vst [vmem:[%s11004_s14 + $0xb8] sm:$0xff] %v8160_v13  ;;  %v9005_v24 = vadd.f32 %v8080_v44, %v14992_v3  ;;  %v8082_v33 = vpop.f32.mrb[122].mxu0 }
 0xe3e   : > { %v8129_v10 = vmul.f32 %v9004_v27, %v14996_v9  ;;  %v9006_v21 = vadd.f32 %v8082_v33, %v14989_v6  ;;  %v8084_v39 = vpop.f32.mrb[123].mxu0 }
 0xe3f   : > { %v8130_v55 = vmul.f32 %v9005_v24, %v15000_v7  ;;  %v9007_v19 = vadd.f32 %v8084_v39, %v14992_v3 }
 0xe40   : > { %v8161_v23 = vadd.f32 %v8129_v10, %v16034_v14  ;;  %v8131_v36 = vmul.f32 %v9006_v21, %v14996_v9 }
 0xe41   : > { %v8162_v42 = vadd.f32 %v8130_v55, %v16035_v26  ;;  %v8132_v18 = vmul.f32 %v9007_v19, %v15000_v7 }
 0xe42   : > { %8193 = vst [vmem:[%s11004_s14 + $0xc0] sm:$0xff] %v8161_v23  ;;  %v8163_v1 = vadd.f32 %v8131_v36, %v16036_v53 }
 0xe43   : > { %8194 = vst [vmem:[%s11004_s14 + $0xc8] sm:$0xff] %v8162_v42  ;;  %v8164_v40 = vadd.f32 %v8132_v18, %v16037_v11  ;;  %v8088_v49 = vpop.f32.mrb[124].mxu0 }
 0xe44   : > { %8195 = vst [vmem:[%s11004_s14 + $0xd0] sm:$0xff] %v8163_v1  ;;  %v9008_v61 = vadd.f32 %v8088_v49, %v14989_v6  ;;  %v8090_v58 = vpop.f32.mrb[125].mxu0 }
 0xe45   : > { %8196 = vst [vmem:[%s11004_s14 + $0xd8] sm:$0xff] %v8164_v40  ;;  %v9009_v51 = vadd.f32 %v8090_v58, %v14992_v3  ;;  %v8092_v8 = vpop.f32.mrb[126].mxu0 }
 0xe46   : > { %v8133_v37 = vmul.f32 %v9008_v61, %v14996_v9  ;;  %v9010_v22 = vadd.f32 %v8092_v8, %v14989_v6  ;;  %v8094_v54 = vpop.f32.mrb[127].mxu0  ;;  %v16041_v6 = vld [vmem:[#allocation73_spill] sm:$0xff] }
 0xe47   : > { %v8134_v63 = vmul.f32 %v9009_v51, %v15000_v7  ;;  %v9011_v29 = vadd.f32 %v8094_v54, %v14992_v3  ;;  %v16042_v3 = vld [vmem:[#allocation74_spill] sm:$0xff] }
 0xe48   : > { %v8165_v52 = vadd.f32 %v8133_v37, %v16038_v4  ;;  %v8135_v20 = vmul.f32 %v9010_v22, %v14996_v9 }
 0xe49   : > { %v8166_v28 = vadd.f32 %v8134_v63, %v16040_v43  ;;  %v8136_v12 = vmul.f32 %v9011_v29, %v15000_v7 }
 0xe4a   : > { %8197 = vst [vmem:[%s11004_s14 + $0xe0] sm:$0xff] %v8165_v52  ;;  %v8167_v0 = vadd.f32 %v8135_v20, %v16041_v6 }
 0xe4b   : > { %8198 = vst [vmem:[%s11004_s14 + $0xe8] sm:$0xff] %v8166_v28  ;;  %v8168_v47 = vadd.f32 %v8136_v12, %v16042_v3 }
 0xe4c   : > { %8199 = vst [vmem:[%s11004_s14 + $0xf0] sm:$0xff] %v8167_v0 }
 0xe4d   : > { %8200 = vst [vmem:[%s11004_s14 + $0xf8] sm:$0xff] %v8168_v47 }
 0xe4e   : > { %10447 = shalt.err (!%p10444_p9)
}
 0xe4f   : > { %s10448_s21 = scalar_lea.hbm %s15136_s13, 4096  ;;  %s10452_s2 = scalar_lea.hbm %s16044_s9, 16384 }
 0xe50   : > { %p10449_p11 = scmp.ne.s32.totalorder %s15136_s13, %s10448_s21  ;;  %p10453_p4 = scmp.lt.u32.totalorder %s15136_s13, %s16044_s9 }
 0xe51   : > { %p10454_p12 = scmp.lt.u32.totalorder %s10452_s2, %s10448_s21  ;;  %p10456_p6 = scmp.lt.u32.totalorder %s10448_s21, %s15136_s13 }
 0xe52   : > { %p10450_p8 = pnand %p10449_p11, %p16045_p10 }
 0xe53   : > { %p10455_p13 = por %p10454_p12, %p10453_p4 }
 0xe54   : > { %p10451_p2 = pneg %p10450_p8 }
 0xe55   : > { %p10457_p3 = por %p10456_p6, %p10455_p13 }
 0xe57   : > { %p10458_p1 = pnand %p10457_p3, %p10451_p2 }
 0xe59   : > { %10461 = shalt.err (!%p10458_p1)
}
 0xe5a   : > { %s10582_s27 = smov 256   ;;  %s10583_s28 = smov 16  }
 0xe5b   : > { %9134 = dma.vmem_to_hbm [thread:$0]  (%p16045_p10), %s15129_s19, 4096, %s15136_s13, %s15142_s7, %s10582_s27, %s10582_s27, %s10583_s28  }
 0xe5c PF: > { %s16046_s3 = sld [smem:[#allocation29_spill]]  ;;  %s16047_s16 = sld [smem:[#allocation24_spill]] }
 0xe5d   : > { %s16048_s11 = sld [smem:[#allocation33_spill]] }
 0xe62   : > { %p9174_p7 = scmp.ge.s32.totalorder %s16046_s3, 2  ;;  %s8233_s15 = sand.u32 1, %s16047_s16  }
 0xe63   : > { %p16049_p0 = scmp.ne.s32.totalorder %s16048_s11, 0  ;;  %s8234_s29 = scalar_lea.sflag [#allocation8], %s8233_s15 }
 0xe65   : > { %p9159_p5 = pnand %p9174_p7, %p16049_p0 }
 0xe67   : > { %10523 = dma.done.wait (!%p9159_p5), %s8234_s29, 4096  }
 0xe68   : > { %10525 = vsyncadd (!%p9159_p5), %s8234_s29, 4294963200  ;;  %s31_s23 = sadd.s32 1, %s16046_s3   ;;  %s16050_s24 = sld [smem:[#allocation25_spill]] }
 0xe69   : > { %p28_p9 = scmp.ge.s32.totalorder %s31_s23, 6   ;;  %s16051_s15 = sld [smem:[#allocation35_spill]] }
 0xe6a   : > { %s16052_s20 = sld [smem:[#allocation26_spill]]  ;;  %s16053_s18 = sld [smem:[#allocation34_spill]] }
 0xe6b   : > { %s16054_s19 = sld [smem:[#allocation27_spill]]  ;;  %s16055_s13 = sld [smem:[#allocation28_spill]] }
 0xe6c   : > { %s16056_s21 = sld [smem:[#allocation30_spill]]  ;;  %s16057_s22 = sld [smem:[#allocation31_spill]] }
 0xe6d   : > { %s16058_s29 = smov %s10532_s30  ;;  %s16060_s16 = smov %s10544_s17 }
 0xe6e   : > { %s16059_s30 = smov %s16050_s24  ;;  %30 = sbr.rel (!%p28_p9) target bundleno = 19 (0x13), region = 149 }
 0xe70   : > { %s16061_s17 = smov %s16052_s20 }
 0xe71   : > { %s16062_s20 = smov %s16055_s13 }
 0xe75   :  { %8239 = vsyncpa [#allocation7], 1 }
 0xe76   :  { %8241 = vsyncpa [#allocation7 + $0x1], 1 }
 0xe77   :  { %8242 = vsyncpa [#allocation10], 1 }
 0xe78   :  { %8243 = vsyncpa [#allocation13], 1 }
 0xe79   :  { %8244 = vsyncpa [#allocation16], 1 }
 0xe7a   :  { %8245 = vsyncpa [#allocation8], 1 }
 0xe7b   :  { %8247 = vsyncpa [#allocation8 + $0x1], 1 }

</bundles_post_ra>
